<compile_context>
chip_gen: v5e
topology: v5e:2x2
jax: 0.10.0
libtpu: 0.0.40
codegen_flags: <defaults>
</compile_context>

<pallas_src>
import functools

import jax
import jax.numpy as jnp
from jax.experimental import pallas as pl
from jax.experimental.pallas import tpu as pltpu


_TM_CAP = 256                 # max rows of an output tile
_TK_CAP = 1024                # max contraction tile
_TN_CAP = 512                 # max output-lane tile
_VMEM_LIMIT = 32 * 1024 * 1024

_CONV_CFG = {
    "conv1": dict(cin=3,    cout=96,   k=7, stride=2, pad=1),
    "conv2": dict(cin=96,   cout=256,  k=5, stride=2, pad=1),
    "conv3": dict(cin=256,  cout=512,  k=3, stride=1, pad=1),
    "conv4": dict(cin=512,  cout=1024, k=3, stride=1, pad=1),
    "conv5": dict(cin=1024, cout=1024, k=3, stride=1, pad=1),
}


# ----------------------------------------------------------------------------
# Tiling helpers (all static Python arithmetic)
# ----------------------------------------------------------------------------
def _round_up(x, m):
    return (x + m - 1) // m * m


def _pick_tile(d, cap, align):
    """Tile <= cap (multiple of align) minimizing padding of d; prefers large tiles."""
    d_al = _round_up(d, align)
    if d_al <= cap:
        return d_al
    best_t = cap
    best_pad = _round_up(d, cap) - d
    t = cap - align
    floor_t = max(align, cap // 2)
    while t >= floor_t and best_pad > 0:
        pad = _round_up(d, t) - d
        if pad < best_pad:
            best_t, best_pad = t, pad
        t -= align
    return best_t


def _divisor_tile(dp, cap, align):
    """Largest multiple of `align`, <= cap, dividing dp (dp is a multiple of align)."""
    if dp <= cap:
        return dp
    t = (cap // align) * align
    while t > align:
        if dp % t == 0:
            return t
        t -= align
    return align


# ----------------------------------------------------------------------------
# Pallas kernels
# ----------------------------------------------------------------------------
def _matmul_bias_kernel(a_ref, b_ref, bias_ref, o_ref, acc_ref):
    """Tiled bf16 matmul with f32 accumulation; bias added on the last K step."""
    @pl.when(pl.program_id(2) == 0)
    def _():
        acc_ref[...] = jnp.zeros_like(acc_ref)

    acc_ref[...] += jnp.dot(a_ref[...], b_ref[...],
                            preferred_element_type=jnp.float32)

    @pl.when(pl.program_id(2) == pl.num_programs(2) - 1)
    def _():
        o_ref[...] = (acc_ref[...] + bias_ref[...]).astype(o_ref.dtype)


def _maxpool_kernel(ee_ref, eo_ref, oe_ref, oo_ref, o_ref, *, oh, ow):
    """3x3/stride-2 max pool from the 2x2 phase decomposition.

    Phases: ee = x[2i,2j], eo = x[2i,2j+1], oe = x[2i+1,2j], oo = x[2i+1,2j+1].
    All 9 taps of the window become contiguous shifted slices of the phases.
    """
    m = ee_ref[0, 0:oh, 0:ow, :]
    m = jnp.maximum(m, ee_ref[0, 0:oh, 1:ow + 1, :])
    m = jnp.maximum(m, ee_ref[0, 1:oh + 1, 0:ow, :])
    m = jnp.maximum(m, ee_ref[0, 1:oh + 1, 1:ow + 1, :])
    m = jnp.maximum(m, eo_ref[0, 0:oh, 0:ow, :])
    m = jnp.maximum(m, eo_ref[0, 1:oh + 1, 0:ow, :])
    m = jnp.maximum(m, oe_ref[0, 0:oh, 0:ow, :])
    m = jnp.maximum(m, oe_ref[0, 0:oh, 1:ow + 1, :])
    m = jnp.maximum(m, oo_ref[0, 0:oh, 0:ow, :])
    o_ref[0] = m


# ----------------------------------------------------------------------------
# Pallas wrappers
# ----------------------------------------------------------------------------
def pallas_matmul_bias(a, b, bias, *, n_out, out_dtype=jnp.bfloat16):
    """a: (M, K) float, b: (Kp, Np) bf16 (pre-padded), bias: (1, Np) f32.

    Returns (M, n_out) in `out_dtype`.  a is cast to bf16 and zero-padded to the
    tile grid; zero padding contributes nothing to the dot.
    """
    M, K = a.shape
    Kp, Np = b.shape
    assert Kp >= K and Kp % 128 == 0 and Np % 128 == 0

    tm = _pick_tile(M, _TM_CAP, 16)            # 16-aligned for bf16 sublane packing
    Mp = _round_up(M, tm)
    tk = _divisor_tile(Kp, _TK_CAP, 128)
    # If there is only one M tile, split N into >=2 tiles so both TensorCores
    # (v7x megacore) have independent output tiles to work on.
    n_cap = _TN_CAP if Mp > tm else max(128, min(_TN_CAP, Np // 2))
    tn = _divisor_tile(Np, n_cap, 128)

    a = a.astype(jnp.bfloat16)
    if (Mp, Kp) != (M, K):
        a = jnp.pad(a, ((0, Mp - M), (0, Kp - K)))

    grid = (Mp // tm, Np // tn, Kp // tk)
    out_bytes = jnp.dtype(out_dtype).itemsize
    cost = pl.CostEstimate(
        flops=int(2 * Mp * Np * Kp),
        transcendentals=0,
        bytes_accessed=int(Mp * Kp * 2 + Kp * Np * 2 + Mp * Np * out_bytes + Np * 4),
    )

    out = pl.pallas_call(
        _matmul_bias_kernel,
        out_shape=jax.ShapeDtypeStruct((Mp, Np), out_dtype),
        grid_spec=pltpu.PrefetchScalarGridSpec(
            num_scalar_prefetch=0,
            grid=grid,
            in_specs=[
                pl.BlockSpec((tm, tk), lambda i, j, k: (i, k)),
                pl.BlockSpec((tk, tn), lambda i, j, k: (k, j)),
                pl.BlockSpec((1, tn), lambda i, j, k: (0, j)),
            ],
            out_specs=pl.BlockSpec((tm, tn), lambda i, j, k: (i, j)),
            scratch_shapes=[pltpu.VMEM((tm, tn), jnp.float32)],
        ),
        compiler_params=pltpu.CompilerParams(
            dimension_semantics=("parallel", "parallel", "arbitrary"),
            vmem_limit_bytes=_VMEM_LIMIT),
        cost_estimate=cost,
    )(a, b, bias)
    return out[:M, :n_out]


def _im2col(x, kh, kw, stride, pad):
    """Extract conv patches from NHWC bf16 input; K axis ordered (kh, kw, cin)."""
    # TODO(synk): fuse patch extraction into the matmul BlockSpec/index_map so the
    # (B*oh*ow, kh*kw*C) buffer is never materialized in HBM.
    if pad:
        x = jnp.pad(x, ((0, 0), (pad, pad), (pad, pad), (0, 0)))
    B, H, W, C = x.shape
    oh = (H - kh) // stride + 1
    ow = (W - kw) // stride + 1
    cols = []
    for i in range(kh):
        for j in range(kw):
            cols.append(x[:, i:i + stride * (oh - 1) + 1:stride,
                          j:j + stride * (ow - 1) + 1:stride, :])
    patches = jnp.stack(cols, axis=3)                 # (B, oh, ow, kh*kw, C)
    return patches.reshape(B * oh * ow, kh * kw * C), oh, ow


def conv2d(x_nhwc, w_mat, bias, *, cin, cout, k, stride, pad):
    """PyTorch-semantics Conv2d on NHWC bf16 activations with prepped weights."""
    assert x_nhwc.shape[-1] == cin
    B = x_nhwc.shape[0]
    patches, oh, ow = _im2col(x_nhwc, k, k, stride, pad)
    out = pallas_matmul_bias(patches, w_mat, bias, n_out=cout,
                             out_dtype=jnp.bfloat16)
    return out.reshape(B, oh, ow, cout)


def maxpool_3x3_s2(x):
    """MaxPool2d(kernel_size=3, stride=2), no padding.  x: NHWC."""
    B, H, W, C = x.shape
    oh = (H - 3) // 2 + 1
    ow = (W - 3) // 2 + 1
    # 2x2 phase split (a permutation of x: ~1x HBM traffic, no 9x expansion).
    ee = x[:, 0::2, 0::2, :]
    eo = x[:, 0::2, 1::2, :]
    oe = x[:, 1::2, 0::2, :]
    oo = x[:, 1::2, 1::2, :]
    He, We = ee.shape[1], ee.shape[2]     # He == oh + 1, We == ow + 1
    Ho, Wo = oo.shape[1], oo.shape[2]     # Ho >= oh,     Wo >= ow

    kern = functools.partial(_maxpool_kernel, oh=oh, ow=ow)
    return pl.pallas_call(
        kern,
        out_shape=jax.ShapeDtypeStruct((B, oh, ow, C), x.dtype),
        grid_spec=pltpu.PrefetchScalarGridSpec(
            num_scalar_prefetch=0,
            grid=(B,),
            in_specs=[
                pl.BlockSpec((1, He, We, C), lambda b: (b, 0, 0, 0)),
                pl.BlockSpec((1, He, Wo, C), lambda b: (b, 0, 0, 0)),
                pl.BlockSpec((1, Ho, We, C), lambda b: (b, 0, 0, 0)),
                pl.BlockSpec((1, Ho, Wo, C), lambda b: (b, 0, 0, 0)),
            ],
            out_specs=pl.BlockSpec((1, oh, ow, C), lambda b: (b, 0, 0, 0)),
        ),
        compiler_params=pltpu.CompilerParams(
            dimension_semantics=("parallel",),
            vmem_limit_bytes=_VMEM_LIMIT),
    )(ee, eo, oe, oo)


# ----------------------------------------------------------------------------
# ZFNet parameters + forward
# ----------------------------------------------------------------------------
def init_zfnet_params(key, num_classes=10):
    """Deterministic init mimicking PyTorch's default uniform(+-1/sqrt(fan_in))."""
    def conv_init(key, cout, cin, k):
        k1, k2 = jax.random.split(key)
        bound = 1.0 / jnp.sqrt(cin * k * k)
        w = jax.random.uniform(k1, (cout, cin, k, k), jnp.float32, -bound, bound)
        b = jax.random.uniform(k2, (cout,), jnp.float32, -bound, bound)
        return w, b

    def linear_init(key, cout, cin):
        k1, k2 = jax.random.split(key)
        bound = 1.0 / jnp.sqrt(cin)
        w = jax.random.uniform(k1, (cout, cin), jnp.float32, -bound, bound)
        b = jax.random.uniform(k2, (cout,), jnp.float32, -bound, bound)
        return w, b

    names = list(_CONV_CFG)
    keys = jax.random.split(key, len(names) + 1)
    params = {}
    for kk, name in zip(keys[:-1], names):
        cfg = _CONV_CFG[name]
        params[name] = conv_init(kk, cfg["cout"], cfg["cin"], cfg["k"])
    params["fc"] = linear_init(keys[-1], num_classes, 1024)
    return params


def prepare_params(params):
    """One-time weight prep: transpose to (K, Cout), pad to tile grid, cast bf16."""
    prepped = {}
    for name in _CONV_CFG:
        w, b = params[name]
        cout, cin, kh, kw = w.shape
        K = kh * kw * cin
        tk = _pick_tile(K, _TK_CAP, 128)
        Kp = _round_up(K, tk)
        Np = _round_up(cout, 128)
        w_mat = jnp.transpose(w, (2, 3, 1, 0)).reshape(K, cout)
        w_mat = jnp.pad(w_mat, ((0, Kp - K), (0, Np - cout))).astype(jnp.bfloat16)
        bias = jnp.pad(b, (0, Np - cout)).reshape(1, Np).astype(jnp.float32)
        prepped[name] = (w_mat, bias)
    prepped["fc"] = params["fc"]
    return prepped


def zfnet_forward(prepped, x_nchw):
    # NHWC, bf16 activations end-to-end (f32 accumulation inside every matmul).
    x = jnp.transpose(x_nchw, (0, 2, 3, 1)).astype(jnp.bfloat16)
    x = conv2d(x, *prepped["conv1"], **_CONV_CFG["conv1"])
    x = maxpool_3x3_s2(x)
    x = conv2d(x, *prepped["conv2"], **_CONV_CFG["conv2"])
    x = maxpool_3x3_s2(x)
    x = conv2d(x, *prepped["conv3"], **_CONV_CFG["conv3"])
    x = conv2d(x, *prepped["conv4"], **_CONV_CFG["conv4"])
    x = conv2d(x, *prepped["conv5"], **_CONV_CFG["conv5"])

    # AdaptiveAvgPool2d((1,1)) + flatten + Linear fused into ONE Pallas matmul:
    #   mean_hw(x)[b,c] @ W[n,c] + b[n] == x_flat[b, hw*C+c] @ (tile(W.T, hw)/hw) + b
    B, H, W, C = x.shape
    hw = H * W
    x_flat = x.reshape(B, hw * C)
    w_fc, b_fc = prepped["fc"]                      # (num_classes, 1024), (num_classes,)
    nc = w_fc.shape[0]
    npad = _round_up(nc, 128)
    fc_mat = jnp.tile(w_fc.T / float(hw), (hw, 1))  # (hw*C, nc)
    fc_mat = jnp.pad(fc_mat, ((0, 0), (0, npad - nc))).astype(jnp.bfloat16)
    fc_bias = jnp.pad(b_fc, (0, npad - nc)).reshape(1, npad).astype(jnp.float32)
    logits = pallas_matmul_bias(x_flat, fc_mat, fc_bias, n_out=nc,
                                out_dtype=jnp.float32)
    return logits


if __name__ == "__main__":
    key = jax.random.PRNGKey(0)
    k_param, k_x = jax.random.split(key)
    params = init_zfnet_params(k_param, num_classes=10)
    prepped = prepare_params(params)

    # Smallest-ish spatial size that survives the conv/pool stack: 64x64.
    x = jax.random.normal(k_x, (2, 3, 64, 64), dtype=jnp.float32)

    fwd = jax.jit(zfnet_forward)
    out = jax.block_until_ready(fwd(prepped, x))
    assert out.shape == (2, 10), out.shape
    assert bool(jnp.all(jnp.isfinite(out)))
    print("KERNEL_OK")
</pallas_src>

<mosaic_0001>
module attributes {stable_mosaic.version = 11 : i64} {
  func.func @_matmul_bias_kernel(%arg0: i32, %arg1: i32, %arg2: i32, %arg3: memref<208x256xbf16, #tpu.memory_space<vmem>>, %arg4: memref<256x128xbf16, #tpu.memory_space<vmem>>, %arg5: memref<1x128xf32, #tpu.memory_space<vmem>>, %arg6: memref<208x128xbf16, #tpu.memory_space<vmem>>, %arg7: memref<208x128xf32, #tpu.memory_space<vmem>>) attributes {dimension_semantics = [#tpu.dimension_semantics<parallel>, #tpu.dimension_semantics<parallel>, #tpu.dimension_semantics<arbitrary>], iteration_bounds = array<i64: 9, 1, 1>, scalar_prefetch = 0 : i64, scratch_operands = 1 : i64, tpu.core_type = #tpu.core_type<tc>, window_params = [{transform_indices = @transform_0, window_bounds = array<i64: 208, 256>}, {transform_indices = @transform_1, window_bounds = array<i64: 256, 128>}, {transform_indices = @transform_2, window_bounds = array<i64: 1, 128>}, {transform_indices = @transform_3, window_bounds = array<i64: 208, 128>}]} {
    %c0_i32 = arith.constant 0 : i32
    %0 = arith.cmpi eq, %arg2, %c0_i32 : i32
    %1 = arith.extui %0 : i1 to i32
    %c0_i32_0 = arith.constant 0 : i32
    %2 = arith.cmpi ne, %1, %c0_i32_0 : i32
    scf.if %2 {
      %cst_10 = arith.constant 0.000000e+00 : f32
      %12 = vector.broadcast %cst_10 : f32 to vector<208x128xf32>
      %c0_11 = arith.constant 0 : index
      %c0_12 = arith.constant 0 : index
      %13 = vector.load %arg7[%c0_11, %c0_12] : memref<208x128xf32, #tpu.memory_space<vmem>>, vector<208x128xf32>
      tpu.vector_store %arg7[%c0_11, %c0_12], %12 {strides = array<i32>} : memref<208x128xf32, #tpu.memory_space<vmem>>, vector<208x128xf32>,
    } else {
    }
    %c0 = arith.constant 0 : index
    %c0_1 = arith.constant 0 : index
    %3 = vector.load %arg7[%c0, %c0_1] : memref<208x128xf32, #tpu.memory_space<vmem>>, vector<208x128xf32>
    %c0_2 = arith.constant 0 : index
    %c0_3 = arith.constant 0 : index
    %4 = vector.load %arg3[%c0_2, %c0_3] : memref<208x256xbf16, #tpu.memory_space<vmem>>, vector<208x256xbf16>
    %c0_4 = arith.constant 0 : index
    %c0_5 = arith.constant 0 : index
    %5 = vector.load %arg4[%c0_4, %c0_5] : memref<256x128xbf16, #tpu.memory_space<vmem>>, vector<256x128xbf16>
    %cst = arith.constant dense<0.000000e+00> : vector<208x128xf32>
    %6 = tpu.matmul %4, %5, %cst {dimension_numbers = #tpu.dot_dimension_numbers<[1], [0], [0], [1], [0, 0, 1, 1], [], []>} : vector<208x256xbf16>, vector<256x128xbf16>, vector<208x128xf32> -> vector<208x128xf32>
    %7 = arith.addf %3, %6 : vector<208x128xf32>
    %c0_6 = arith.constant 0 : index
    %c0_7 = arith.constant 0 : index
    %8 = vector.load %arg7[%c0_6, %c0_7] : memref<208x128xf32, #tpu.memory_space<vmem>>, vector<208x128xf32>
    tpu.vector_store %arg7[%c0_6, %c0_7], %7 {strides = array<i32>} : memref<208x128xf32, #tpu.memory_space<vmem>>, vector<208x128xf32>,
    %c0_i32_8 = arith.constant 0 : i32
    %9 = arith.cmpi eq, %arg2, %c0_i32_8 : i32
    %10 = arith.extui %9 : i1 to i32
    %c0_i32_9 = arith.constant 0 : i32
    %11 = arith.cmpi ne, %10, %c0_i32_9 : i32
    scf.if %11 {
      %c0_10 = arith.constant 0 : index
      %c0_11 = arith.constant 0 : index
      %12 = vector.load %arg7[%c0_10, %c0_11] : memref<208x128xf32, #tpu.memory_space<vmem>>, vector<208x128xf32>
      %c0_12 = arith.constant 0 : index
      %c0_13 = arith.constant 0 : index
      %13 = vector.load %arg5[%c0_12, %c0_13] : memref<1x128xf32, #tpu.memory_space<vmem>>, vector<1x128xf32>
      %14 = vector.broadcast %13 : vector<1x128xf32> to vector<208x128xf32>
      %15 = arith.addf %12, %14 : vector<208x128xf32>
      %16 = arith.truncf %15 : vector<208x128xf32> to vector<208x128xbf16>
      %c0_14 = arith.constant 0 : index
      %c0_15 = arith.constant 0 : index
      %17 = vector.load %arg6[%c0_14, %c0_15] : memref<208x128xbf16, #tpu.memory_space<vmem>>, vector<208x128xbf16>
      tpu.vector_store %arg6[%c0_14, %c0_15], %16 {strides = array<i32>} : memref<208x128xbf16, #tpu.memory_space<vmem>>, vector<208x128xbf16>,
    } else {
    }
    return
  }
  func.func @transform_0(%arg0: i32, %arg1: i32, %arg2: i32) -> (i32, i32) {
    %c0_i32 = arith.constant 0 : i32
    return %arg0, %arg2 : i32, i32
  }
  func.func @transform_1(%arg0: i32, %arg1: i32, %arg2: i32) -> (i32, i32) {
    %c0_i32 = arith.constant 0 : i32
    return %arg2, %arg1 : i32, i32
  }
  func.func @transform_2(%arg0: i32, %arg1: i32, %arg2: i32) -> (i32, i32) {
    %c0_i32 = arith.constant 0 : i32
    %c0_i32_0 = arith.constant 0 : i32
    return %c0_i32, %arg1 : i32, i32
  }
  func.func @transform_3(%arg0: i32, %arg1: i32, %arg2: i32) -> (i32, i32) {
    %c0_i32 = arith.constant 0 : i32
    return %arg0, %arg1 : i32, i32
  }
}

module attributes {stable_mosaic.version = 11 : i64} {
  func.func @_maxpool_kernel(%arg0: i32, %arg1: memref<1x15x15x96xbf16, #tpu.memory_space<vmem>>, %arg2: memref<1x15x15x96xbf16, #tpu.memory_space<vmem>>, %arg3: memref<1x15x15x96xbf16, #tpu.memory_space<vmem>>, %arg4: memref<1x15x15x96xbf16, #tpu.memory_space<vmem>>, %arg5: memref<1x14x14x96xbf16, #tpu.memory_space<vmem>>) attributes {dimension_semantics = [#tpu.dimension_semantics<parallel>], iteration_bounds = array<i64: 2>, scalar_prefetch = 0 : i64, scratch_operands = 0 : i64, tpu.core_type = #tpu.core_type<tc>, window_params = [{transform_indices = @transform_0, window_bounds = array<i64: 1, 15, 15, 96>}, {transform_indices = @transform_1, window_bounds = array<i64: 1, 15, 15, 96>}, {transform_indices = @transform_2, window_bounds = array<i64: 1, 15, 15, 96>}, {transform_indices = @transform_3, window_bounds = array<i64: 1, 15, 15, 96>}, {transform_indices = @transform_4, window_bounds = array<i64: 1, 14, 14, 96>}]} {
    %c0 = arith.constant 0 : index
    %c0_0 = arith.constant 0 : index
    %c0_1 = arith.constant 0 : index
    %c0_2 = arith.constant 0 : index
    %0 = vector.load %arg1[%c0, %c0_0, %c0_1, %c0_2] : memref<1x15x15x96xbf16, #tpu.memory_space<vmem>>, vector<1x14x14x96xbf16>
    %1 = vector.shape_cast %0 : vector<1x14x14x96xbf16> to vector<14x14x96xbf16>
    %c0_3 = arith.constant 0 : index
    %c0_4 = arith.constant 0 : index
    %c1 = arith.constant 1 : index
    %c0_5 = arith.constant 0 : index
    %2 = vector.load %arg1[%c0_3, %c0_4, %c1, %c0_5] : memref<1x15x15x96xbf16, #tpu.memory_space<vmem>>, vector<1x14x14x96xbf16>
    %3 = vector.shape_cast %2 : vector<1x14x14x96xbf16> to vector<14x14x96xbf16>
    %4 = arith.maximumf %1, %3 : vector<14x14x96xbf16>
    %c0_6 = arith.constant 0 : index
    %c1_7 = arith.constant 1 : index
    %c0_8 = arith.constant 0 : index
    %c0_9 = arith.constant 0 : index
    %5 = vector.load %arg1[%c0_6, %c1_7, %c0_8, %c0_9] : memref<1x15x15x96xbf16, #tpu.memory_space<vmem>>, vector<1x14x14x96xbf16>
    %6 = vector.shape_cast %5 : vector<1x14x14x96xbf16> to vector<14x14x96xbf16>
    %7 = arith.maximumf %4, %6 : vector<14x14x96xbf16>
    %c0_10 = arith.constant 0 : index
    %c1_11 = arith.constant 1 : index
    %c1_12 = arith.constant 1 : index
    %c0_13 = arith.constant 0 : index
    %8 = vector.load %arg1[%c0_10, %c1_11, %c1_12, %c0_13] : memref<1x15x15x96xbf16, #tpu.memory_space<vmem>>, vector<1x14x14x96xbf16>
    %9 = vector.shape_cast %8 : vector<1x14x14x96xbf16> to vector<14x14x96xbf16>
    %10 = arith.maximumf %7, %9 : vector<14x14x96xbf16>
    %c0_14 = arith.constant 0 : index
    %c0_15 = arith.constant 0 : index
    %c0_16 = arith.constant 0 : index
    %c0_17 = arith.constant 0 : index
    %11 = vector.load %arg2[%c0_14, %c0_15, %c0_16, %c0_17] : memref<1x15x15x96xbf16, #tpu.memory_space<vmem>>, vector<1x14x14x96xbf16>
    %12 = vector.shape_cast %11 : vector<1x14x14x96xbf16> to vector<14x14x96xbf16>
    %13 = arith.maximumf %10, %12 : vector<14x14x96xbf16>
    %c0_18 = arith.constant 0 : index
    %c1_19 = arith.constant 1 : index
    %c0_20 = arith.constant 0 : index
    %c0_21 = arith.constant 0 : index
    %14 = vector.load %arg2[%c0_18, %c1_19, %c0_20, %c0_21] : memref<1x15x15x96xbf16, #tpu.memory_space<vmem>>, vector<1x14x14x96xbf16>
    %15 = vector.shape_cast %14 : vector<1x14x14x96xbf16> to vector<14x14x96xbf16>
    %16 = arith.maximumf %13, %15 : vector<14x14x96xbf16>
    %c0_22 = arith.constant 0 : index
    %c0_23 = arith.constant 0 : index
    %c0_24 = arith.constant 0 : index
    %c0_25 = arith.constant 0 : index
    %17 = vector.load %arg3[%c0_22, %c0_23, %c0_24, %c0_25] : memref<1x15x15x96xbf16, #tpu.memory_space<vmem>>, vector<1x14x14x96xbf16>
    %18 = vector.shape_cast %17 : vector<1x14x14x96xbf16> to vector<14x14x96xbf16>
    %19 = arith.maximumf %16, %18 : vector<14x14x96xbf16>
    %c0_26 = arith.constant 0 : index
    %c0_27 = arith.constant 0 : index
    %c1_28 = arith.constant 1 : index
    %c0_29 = arith.constant 0 : index
    %20 = vector.load %arg3[%c0_26, %c0_27, %c1_28, %c0_29] : memref<1x15x15x96xbf16, #tpu.memory_space<vmem>>, vector<1x14x14x96xbf16>
    %21 = vector.shape_cast %20 : vector<1x14x14x96xbf16> to vector<14x14x96xbf16>
    %22 = arith.maximumf %19, %21 : vector<14x14x96xbf16>
    %c0_30 = arith.constant 0 : index
    %c0_31 = arith.constant 0 : index
    %c0_32 = arith.constant 0 : index
    %c0_33 = arith.constant 0 : index
    %23 = vector.load %arg4[%c0_30, %c0_31, %c0_32, %c0_33] : memref<1x15x15x96xbf16, #tpu.memory_space<vmem>>, vector<1x14x14x96xbf16>
    %24 = vector.shape_cast %23 : vector<1x14x14x96xbf16> to vector<14x14x96xbf16>
    %25 = arith.maximumf %22, %24 : vector<14x14x96xbf16>
    %c0_34 = arith.constant 0 : index
    %c0_35 = arith.constant 0 : index
    %c0_36 = arith.constant 0 : index
    %c0_37 = arith.constant 0 : index
    %26 = vector.load %arg5[%c0_34, %c0_35, %c0_36, %c0_37] : memref<1x14x14x96xbf16, #tpu.memory_space<vmem>>, vector<1x14x14x96xbf16>
    %27 = vector.shape_cast %26 : vector<1x14x14x96xbf16> to vector<14x14x96xbf16>
    %28 = vector.shape_cast %25 : vector<14x14x96xbf16> to vector<1x14x14x96xbf16>
    tpu.vector_store %arg5[%c0_34, %c0_35, %c0_36, %c0_37], %28 {strides = array<i32>} : memref<1x14x14x96xbf16, #tpu.memory_space<vmem>>, vector<1x14x14x96xbf16>,
    return
  }
  func.func @transform_0(%arg0: i32) -> (i32, i32, i32, i32) {
    %c0_i32 = arith.constant 0 : i32
    %c0_i32_0 = arith.constant 0 : i32
    %c0_i32_1 = arith.constant 0 : i32
    %c0_i32_2 = arith.constant 0 : i32
    return %arg0, %c0_i32, %c0_i32_0, %c0_i32_1 : i32, i32, i32, i32
  }
  func.func @transform_1(%arg0: i32) -> (i32, i32, i32, i32) {
    %c0_i32 = arith.constant 0 : i32
    %c0_i32_0 = arith.constant 0 : i32
    %c0_i32_1 = arith.constant 0 : i32
    %c0_i32_2 = arith.constant 0 : i32
    return %arg0, %c0_i32, %c0_i32_0, %c0_i32_1 : i32, i32, i32, i32
  }
  func.func @transform_2(%arg0: i32) -> (i32, i32, i32, i32) {
    %c0_i32 = arith.constant 0 : i32
    %c0_i32_0 = arith.constant 0 : i32
    %c0_i32_1 = arith.constant 0 : i32
    %c0_i32_2 = arith.constant 0 : i32
    return %arg0, %c0_i32, %c0_i32_0, %c0_i32_1 : i32, i32, i32, i32
  }
  func.func @transform_3(%arg0: i32) -> (i32, i32, i32, i32) {
    %c0_i32 = arith.constant 0 : i32
    %c0_i32_0 = arith.constant 0 : i32
    %c0_i32_1 = arith.constant 0 : i32
    %c0_i32_2 = arith.constant 0 : i32
    return %arg0, %c0_i32, %c0_i32_0, %c0_i32_1 : i32, i32, i32, i32
  }
  func.func @transform_4(%arg0: i32) -> (i32, i32, i32, i32) {
    %c0_i32 = arith.constant 0 : i32
    %c0_i32_0 = arith.constant 0 : i32
    %c0_i32_1 = arith.constant 0 : i32
    %c0_i32_2 = arith.constant 0 : i32
    return %arg0, %c0_i32, %c0_i32_0, %c0_i32_1 : i32, i32, i32, i32
  }
}

module attributes {stable_mosaic.version = 11 : i64} {
  func.func @_matmul_bias_kernel(%arg0: i32, %arg1: i32, %arg2: i32, %arg3: memref<80x640xbf16, #tpu.memory_space<vmem>>, %arg4: memref<640x128xbf16, #tpu.memory_space<vmem>>, %arg5: memref<1x128xf32, #tpu.memory_space<vmem>>, %arg6: memref<80x128xbf16, #tpu.memory_space<vmem>>, %arg7: memref<80x128xf32, #tpu.memory_space<vmem>>) attributes {dimension_semantics = [#tpu.dimension_semantics<parallel>, #tpu.dimension_semantics<parallel>, #tpu.dimension_semantics<arbitrary>], iteration_bounds = array<i64: 1, 2, 4>, scalar_prefetch = 0 : i64, scratch_operands = 1 : i64, tpu.core_type = #tpu.core_type<tc>, window_params = [{transform_indices = @transform_0, window_bounds = array<i64: 80, 640>}, {transform_indices = @transform_1, window_bounds = array<i64: 640, 128>}, {transform_indices = @transform_2, window_bounds = array<i64: 1, 128>}, {transform_indices = @transform_3, window_bounds = array<i64: 80, 128>}]} {
    %c0_i32 = arith.constant 0 : i32
    %0 = arith.cmpi eq, %arg2, %c0_i32 : i32
    %1 = arith.extui %0 : i1 to i32
    %c0_i32_0 = arith.constant 0 : i32
    %2 = arith.cmpi ne, %1, %c0_i32_0 : i32
    scf.if %2 {
      %cst_9 = arith.constant 0.000000e+00 : f32
      %12 = vector.broadcast %cst_9 : f32 to vector<80x128xf32>
      %c0_10 = arith.constant 0 : index
      %c0_11 = arith.constant 0 : index
      %13 = vector.load %arg7[%c0_10, %c0_11] : memref<80x128xf32, #tpu.memory_space<vmem>>, vector<80x128xf32>
      tpu.vector_store %arg7[%c0_10, %c0_11], %12 {strides = array<i32>} : memref<80x128xf32, #tpu.memory_space<vmem>>, vector<80x128xf32>,
    } else {
    }
    %c0 = arith.constant 0 : index
    %c0_1 = arith.constant 0 : index
    %3 = vector.load %arg7[%c0, %c0_1] : memref<80x128xf32, #tpu.memory_space<vmem>>, vector<80x128xf32>
    %c0_2 = arith.constant 0 : index
    %c0_3 = arith.constant 0 : index
    %4 = vector.load %arg3[%c0_2, %c0_3] : memref<80x640xbf16, #tpu.memory_space<vmem>>, vector<80x640xbf16>
    %c0_4 = arith.constant 0 : index
    %c0_5 = arith.constant 0 : index
    %5 = vector.load %arg4[%c0_4, %c0_5] : memref<640x128xbf16, #tpu.memory_space<vmem>>, vector<640x128xbf16>
    %cst = arith.constant dense<0.000000e+00> : vector<80x128xf32>
    %6 = tpu.matmul %4, %5, %cst {dimension_numbers = #tpu.dot_dimension_numbers<[1], [0], [0], [1], [0, 0, 1, 1], [], []>} : vector<80x640xbf16>, vector<640x128xbf16>, vector<80x128xf32> -> vector<80x128xf32>
    %7 = arith.addf %3, %6 : vector<80x128xf32>
    %c0_6 = arith.constant 0 : index
    %c0_7 = arith.constant 0 : index
    %8 = vector.load %arg7[%c0_6, %c0_7] : memref<80x128xf32, #tpu.memory_space<vmem>>, vector<80x128xf32>
    tpu.vector_store %arg7[%c0_6, %c0_7], %7 {strides = array<i32>} : memref<80x128xf32, #tpu.memory_space<vmem>>, vector<80x128xf32>,
    %c3_i32 = arith.constant 3 : i32
    %9 = arith.cmpi eq, %arg2, %c3_i32 : i32
    %10 = arith.extui %9 : i1 to i32
    %c0_i32_8 = arith.constant 0 : i32
    %11 = arith.cmpi ne, %10, %c0_i32_8 : i32
    scf.if %11 {
      %c0_9 = arith.constant 0 : index
      %c0_10 = arith.constant 0 : index
      %12 = vector.load %arg7[%c0_9, %c0_10] : memref<80x128xf32, #tpu.memory_space<vmem>>, vector<80x128xf32>
      %c0_11 = arith.constant 0 : index
      %c0_12 = arith.constant 0 : index
      %13 = vector.load %arg5[%c0_11, %c0_12] : memref<1x128xf32, #tpu.memory_space<vmem>>, vector<1x128xf32>
      %14 = vector.broadcast %13 : vector<1x128xf32> to vector<80x128xf32>
      %15 = arith.addf %12, %14 : vector<80x128xf32>
      %16 = arith.truncf %15 : vector<80x128xf32> to vector<80x128xbf16>
      %c0_13 = arith.constant 0 : index
      %c0_14 = arith.constant 0 : index
      %17 = vector.load %arg6[%c0_13, %c0_14] : memref<80x128xbf16, #tpu.memory_space<vmem>>, vector<80x128xbf16>
      tpu.vector_store %arg6[%c0_13, %c0_14], %16 {strides = array<i32>} : memref<80x128xbf16, #tpu.memory_space<vmem>>, vector<80x128xbf16>,
    } else {
    }
    return
  }
  func.func @transform_0(%arg0: i32, %arg1: i32, %arg2: i32) -> (i32, i32) {
    %c0_i32 = arith.constant 0 : i32
    return %arg0, %arg2 : i32, i32
  }
  func.func @transform_1(%arg0: i32, %arg1: i32, %arg2: i32) -> (i32, i32) {
    %c0_i32 = arith.constant 0 : i32
    return %arg2, %arg1 : i32, i32
  }
  func.func @transform_2(%arg0: i32, %arg1: i32, %arg2: i32) -> (i32, i32) {
    %c0_i32 = arith.constant 0 : i32
    %c0_i32_0 = arith.constant 0 : i32
    return %c0_i32, %arg1 : i32, i32
  }
  func.func @transform_3(%arg0: i32, %arg1: i32, %arg2: i32) -> (i32, i32) {
    %c0_i32 = arith.constant 0 : i32
    return %arg0, %arg1 : i32, i32
  }
}

module attributes {stable_mosaic.version = 11 : i64} {
  func.func @_maxpool_kernel(%arg0: i32, %arg1: memref<1x3x3x256xbf16, #tpu.memory_space<vmem>>, %arg2: memref<1x3x3x256xbf16, #tpu.memory_space<vmem>>, %arg3: memref<1x3x3x256xbf16, #tpu.memory_space<vmem>>, %arg4: memref<1x3x3x256xbf16, #tpu.memory_space<vmem>>, %arg5: memref<1x2x2x256xbf16, #tpu.memory_space<vmem>>) attributes {dimension_semantics = [#tpu.dimension_semantics<parallel>], iteration_bounds = array<i64: 2>, scalar_prefetch = 0 : i64, scratch_operands = 0 : i64, tpu.core_type = #tpu.core_type<tc>, window_params = [{transform_indices = @transform_0, window_bounds = array<i64: 1, 3, 3, 256>}, {transform_indices = @transform_1, window_bounds = array<i64: 1, 3, 3, 256>}, {transform_indices = @transform_2, window_bounds = array<i64: 1, 3, 3, 256>}, {transform_indices = @transform_3, window_bounds = array<i64: 1, 3, 3, 256>}, {transform_indices = @transform_4, window_bounds = array<i64: 1, 2, 2, 256>}]} {
    %c0 = arith.constant 0 : index
    %c0_0 = arith.constant 0 : index
    %c0_1 = arith.constant 0 : index
    %c0_2 = arith.constant 0 : index
    %0 = vector.load %arg1[%c0, %c0_0, %c0_1, %c0_2] : memref<1x3x3x256xbf16, #tpu.memory_space<vmem>>, vector<1x2x2x256xbf16>
    %1 = vector.shape_cast %0 : vector<1x2x2x256xbf16> to vector<2x2x256xbf16>
    %c0_3 = arith.constant 0 : index
    %c0_4 = arith.constant 0 : index
    %c1 = arith.constant 1 : index
    %c0_5 = arith.constant 0 : index
    %2 = vector.load %arg1[%c0_3, %c0_4, %c1, %c0_5] : memref<1x3x3x256xbf16, #tpu.memory_space<vmem>>, vector<1x2x2x256xbf16>
    %3 = vector.shape_cast %2 : vector<1x2x2x256xbf16> to vector<2x2x256xbf16>
    %4 = arith.maximumf %1, %3 : vector<2x2x256xbf16>
    %c0_6 = arith.constant 0 : index
    %c1_7 = arith.constant 1 : index
    %c0_8 = arith.constant 0 : index
    %c0_9 = arith.constant 0 : index
    %5 = vector.load %arg1[%c0_6, %c1_7, %c0_8, %c0_9] : memref<1x3x3x256xbf16, #tpu.memory_space<vmem>>, vector<1x2x2x256xbf16>
    %6 = vector.shape_cast %5 : vector<1x2x2x256xbf16> to vector<2x2x256xbf16>
    %7 = arith.maximumf %4, %6 : vector<2x2x256xbf16>
    %c0_10 = arith.constant 0 : index
    %c1_11 = arith.constant 1 : index
    %c1_12 = arith.constant 1 : index
    %c0_13 = arith.constant 0 : index
    %8 = vector.load %arg1[%c0_10, %c1_11, %c1_12, %c0_13] : memref<1x3x3x256xbf16, #tpu.memory_space<vmem>>, vector<1x2x2x256xbf16>
    %9 = vector.shape_cast %8 : vector<1x2x2x256xbf16> to vector<2x2x256xbf16>
    %10 = arith.maximumf %7, %9 : vector<2x2x256xbf16>
    %c0_14 = arith.constant 0 : index
    %c0_15 = arith.constant 0 : index
    %c0_16 = arith.constant 0 : index
    %c0_17 = arith.constant 0 : index
    %11 = vector.load %arg2[%c0_14, %c0_15, %c0_16, %c0_17] : memref<1x3x3x256xbf16, #tpu.memory_space<vmem>>, vector<1x2x2x256xbf16>
    %12 = vector.shape_cast %11 : vector<1x2x2x256xbf16> to vector<2x2x256xbf16>
    %13 = arith.maximumf %10, %12 : vector<2x2x256xbf16>
    %c0_18 = arith.constant 0 : index
    %c1_19 = arith.constant 1 : index
    %c0_20 = arith.constant 0 : index
    %c0_21 = arith.constant 0 : index
    %14 = vector.load %arg2[%c0_18, %c1_19, %c0_20, %c0_21] : memref<1x3x3x256xbf16, #tpu.memory_space<vmem>>, vector<1x2x2x256xbf16>
    %15 = vector.shape_cast %14 : vector<1x2x2x256xbf16> to vector<2x2x256xbf16>
    %16 = arith.maximumf %13, %15 : vector<2x2x256xbf16>
    %c0_22 = arith.constant 0 : index
    %c0_23 = arith.constant 0 : index
    %c0_24 = arith.constant 0 : index
    %c0_25 = arith.constant 0 : index
    %17 = vector.load %arg3[%c0_22, %c0_23, %c0_24, %c0_25] : memref<1x3x3x256xbf16, #tpu.memory_space<vmem>>, vector<1x2x2x256xbf16>
    %18 = vector.shape_cast %17 : vector<1x2x2x256xbf16> to vector<2x2x256xbf16>
    %19 = arith.maximumf %16, %18 : vector<2x2x256xbf16>
    %c0_26 = arith.constant 0 : index
    %c0_27 = arith.constant 0 : index
    %c1_28 = arith.constant 1 : index
    %c0_29 = arith.constant 0 : index
    %20 = vector.load %arg3[%c0_26, %c0_27, %c1_28, %c0_29] : memref<1x3x3x256xbf16, #tpu.memory_space<vmem>>, vector<1x2x2x256xbf16>
    %21 = vector.shape_cast %20 : vector<1x2x2x256xbf16> to vector<2x2x256xbf16>
    %22 = arith.maximumf %19, %21 : vector<2x2x256xbf16>
    %c0_30 = arith.constant 0 : index
    %c0_31 = arith.constant 0 : index
    %c0_32 = arith.constant 0 : index
    %c0_33 = arith.constant 0 : index
    %23 = vector.load %arg4[%c0_30, %c0_31, %c0_32, %c0_33] : memref<1x3x3x256xbf16, #tpu.memory_space<vmem>>, vector<1x2x2x256xbf16>
    %24 = vector.shape_cast %23 : vector<1x2x2x256xbf16> to vector<2x2x256xbf16>
    %25 = arith.maximumf %22, %24 : vector<2x2x256xbf16>
    %c0_34 = arith.constant 0 : index
    %c0_35 = arith.constant 0 : index
    %c0_36 = arith.constant 0 : index
    %c0_37 = arith.constant 0 : index
    %26 = vector.load %arg5[%c0_34, %c0_35, %c0_36, %c0_37] : memref<1x2x2x256xbf16, #tpu.memory_space<vmem>>, vector<1x2x2x256xbf16>
    %27 = vector.shape_cast %26 : vector<1x2x2x256xbf16> to vector<2x2x256xbf16>
    %28 = vector.shape_cast %25 : vector<2x2x256xbf16> to vector<1x2x2x256xbf16>
    tpu.vector_store %arg5[%c0_34, %c0_35, %c0_36, %c0_37], %28 {strides = array<i32>} : memref<1x2x2x256xbf16, #tpu.memory_space<vmem>>, vector<1x2x2x256xbf16>,
    return
  }
  func.func @transform_0(%arg0: i32) -> (i32, i32, i32, i32) {
    %c0_i32 = arith.constant 0 : i32
    %c0_i32_0 = arith.constant 0 : i32
    %c0_i32_1 = arith.constant 0 : i32
    %c0_i32_2 = arith.constant 0 : i32
    return %arg0, %c0_i32, %c0_i32_0, %c0_i32_1 : i32, i32, i32, i32
  }
  func.func @transform_1(%arg0: i32) -> (i32, i32, i32, i32) {
    %c0_i32 = arith.constant 0 : i32
    %c0_i32_0 = arith.constant 0 : i32
    %c0_i32_1 = arith.constant 0 : i32
    %c0_i32_2 = arith.constant 0 : i32
    return %arg0, %c0_i32, %c0_i32_0, %c0_i32_1 : i32, i32, i32, i32
  }
  func.func @transform_2(%arg0: i32) -> (i32, i32, i32, i32) {
    %c0_i32 = arith.constant 0 : i32
    %c0_i32_0 = arith.constant 0 : i32
    %c0_i32_1 = arith.constant 0 : i32
    %c0_i32_2 = arith.constant 0 : i32
    return %arg0, %c0_i32, %c0_i32_0, %c0_i32_1 : i32, i32, i32, i32
  }
  func.func @transform_3(%arg0: i32) -> (i32, i32, i32, i32) {
    %c0_i32 = arith.constant 0 : i32
    %c0_i32_0 = arith.constant 0 : i32
    %c0_i32_1 = arith.constant 0 : i32
    %c0_i32_2 = arith.constant 0 : i32
    return %arg0, %c0_i32, %c0_i32_0, %c0_i32_1 : i32, i32, i32, i32
  }
  func.func @transform_4(%arg0: i32) -> (i32, i32, i32, i32) {
    %c0_i32 = arith.constant 0 : i32
    %c0_i32_0 = arith.constant 0 : i32
    %c0_i32_1 = arith.constant 0 : i32
    %c0_i32_2 = arith.constant 0 : i32
    return %arg0, %c0_i32, %c0_i32_0, %c0_i32_1 : i32, i32, i32, i32
  }
}

module attributes {stable_mosaic.version = 11 : i64} {
  func.func @_matmul_bias_kernel(%arg0: i32, %arg1: i32, %arg2: i32, %arg3: memref<16x768xbf16, #tpu.memory_space<vmem>>, %arg4: memref<768x256xbf16, #tpu.memory_space<vmem>>, %arg5: memref<1x256xf32, #tpu.memory_space<vmem>>, %arg6: memref<16x256xbf16, #tpu.memory_space<vmem>>, %arg7: memref<16x256xf32, #tpu.memory_space<vmem>>) attributes {dimension_semantics = [#tpu.dimension_semantics<parallel>, #tpu.dimension_semantics<parallel>, #tpu.dimension_semantics<arbitrary>], iteration_bounds = array<i64: 1, 2, 3>, scalar_prefetch = 0 : i64, scratch_operands = 1 : i64, tpu.core_type = #tpu.core_type<tc>, window_params = [{transform_indices = @transform_0, window_bounds = array<i64: 16, 768>}, {transform_indices = @transform_1, window_bounds = array<i64: 768, 256>}, {transform_indices = @transform_2, window_bounds = array<i64: 1, 256>}, {transform_indices = @transform_3, window_bounds = array<i64: 16, 256>}]} {
    %c0_i32 = arith.constant 0 : i32
    %0 = arith.cmpi eq, %arg2, %c0_i32 : i32
    %1 = arith.extui %0 : i1 to i32
    %c0_i32_0 = arith.constant 0 : i32
    %2 = arith.cmpi ne, %1, %c0_i32_0 : i32
    scf.if %2 {
      %cst_9 = arith.constant 0.000000e+00 : f32
      %12 = vector.broadcast %cst_9 : f32 to vector<16x256xf32>
      %c0_10 = arith.constant 0 : index
      %c0_11 = arith.constant 0 : index
      %13 = vector.load %arg7[%c0_10, %c0_11] : memref<16x256xf32, #tpu.memory_space<vmem>>, vector<16x256xf32>
      tpu.vector_store %arg7[%c0_10, %c0_11], %12 {strides = array<i32>} : memref<16x256xf32, #tpu.memory_space<vmem>>, vector<16x256xf32>,
    } else {
    }
    %c0 = arith.constant 0 : index
    %c0_1 = arith.constant 0 : index
    %3 = vector.load %arg7[%c0, %c0_1] : memref<16x256xf32, #tpu.memory_space<vmem>>, vector<16x256xf32>
    %c0_2 = arith.constant 0 : index
    %c0_3 = arith.constant 0 : index
    %4 = vector.load %arg3[%c0_2, %c0_3] : memref<16x768xbf16, #tpu.memory_space<vmem>>, vector<16x768xbf16>
    %c0_4 = arith.constant 0 : index
    %c0_5 = arith.constant 0 : index
    %5 = vector.load %arg4[%c0_4, %c0_5] : memref<768x256xbf16, #tpu.memory_space<vmem>>, vector<768x256xbf16>
    %cst = arith.constant dense<0.000000e+00> : vector<16x256xf32>
    %6 = tpu.matmul %4, %5, %cst {dimension_numbers = #tpu.dot_dimension_numbers<[1], [0], [0], [1], [0, 0, 1, 1], [], []>} : vector<16x768xbf16>, vector<768x256xbf16>, vector<16x256xf32> -> vector<16x256xf32>
    %7 = arith.addf %3, %6 : vector<16x256xf32>
    %c0_6 = arith.constant 0 : index
    %c0_7 = arith.constant 0 : index
    %8 = vector.load %arg7[%c0_6, %c0_7] : memref<16x256xf32, #tpu.memory_space<vmem>>, vector<16x256xf32>
    tpu.vector_store %arg7[%c0_6, %c0_7], %7 {strides = array<i32>} : memref<16x256xf32, #tpu.memory_space<vmem>>, vector<16x256xf32>,
    %c2_i32 = arith.constant 2 : i32
    %9 = arith.cmpi eq, %arg2, %c2_i32 : i32
    %10 = arith.extui %9 : i1 to i32
    %c0_i32_8 = arith.constant 0 : i32
    %11 = arith.cmpi ne, %10, %c0_i32_8 : i32
    scf.if %11 {
      %c0_9 = arith.constant 0 : index
      %c0_10 = arith.constant 0 : index
      %12 = vector.load %arg7[%c0_9, %c0_10] : memref<16x256xf32, #tpu.memory_space<vmem>>, vector<16x256xf32>
      %c0_11 = arith.constant 0 : index
      %c0_12 = arith.constant 0 : index
      %13 = vector.load %arg5[%c0_11, %c0_12] : memref<1x256xf32, #tpu.memory_space<vmem>>, vector<1x256xf32>
      %14 = vector.broadcast %13 : vector<1x256xf32> to vector<16x256xf32>
      %15 = arith.addf %12, %14 : vector<16x256xf32>
      %16 = arith.truncf %15 : vector<16x256xf32> to vector<16x256xbf16>
      %c0_13 = arith.constant 0 : index
      %c0_14 = arith.constant 0 : index
      %17 = vector.load %arg6[%c0_13, %c0_14] : memref<16x256xbf16, #tpu.memory_space<vmem>>, vector<16x256xbf16>
      tpu.vector_store %arg6[%c0_13, %c0_14], %16 {strides = array<i32>} : memref<16x256xbf16, #tpu.memory_space<vmem>>, vector<16x256xbf16>,
    } else {
    }
    return
  }
  func.func @transform_0(%arg0: i32, %arg1: i32, %arg2: i32) -> (i32, i32) {
    %c0_i32 = arith.constant 0 : i32
    return %arg0, %arg2 : i32, i32
  }
  func.func @transform_1(%arg0: i32, %arg1: i32, %arg2: i32) -> (i32, i32) {
    %c0_i32 = arith.constant 0 : i32
    return %arg2, %arg1 : i32, i32
  }
  func.func @transform_2(%arg0: i32, %arg1: i32, %arg2: i32) -> (i32, i32) {
    %c0_i32 = arith.constant 0 : i32
    %c0_i32_0 = arith.constant 0 : i32
    return %c0_i32, %arg1 : i32, i32
  }
  func.func @transform_3(%arg0: i32, %arg1: i32, %arg2: i32) -> (i32, i32) {
    %c0_i32 = arith.constant 0 : i32
    return %arg0, %arg1 : i32, i32
  }
}

module attributes {stable_mosaic.version = 11 : i64} {
  func.func @_matmul_bias_kernel(%arg0: i32, %arg1: i32, %arg2: i32, %arg3: memref<16x768xbf16, #tpu.memory_space<vmem>>, %arg4: memref<768x512xbf16, #tpu.memory_space<vmem>>, %arg5: memref<1x512xf32, #tpu.memory_space<vmem>>, %arg6: memref<16x512xbf16, #tpu.memory_space<vmem>>, %arg7: memref<16x512xf32, #tpu.memory_space<vmem>>) attributes {dimension_semantics = [#tpu.dimension_semantics<parallel>, #tpu.dimension_semantics<parallel>, #tpu.dimension_semantics<arbitrary>], iteration_bounds = array<i64: 1, 2, 6>, scalar_prefetch = 0 : i64, scratch_operands = 1 : i64, tpu.core_type = #tpu.core_type<tc>, window_params = [{transform_indices = @transform_0, window_bounds = array<i64: 16, 768>}, {transform_indices = @transform_1, window_bounds = array<i64: 768, 512>}, {transform_indices = @transform_2, window_bounds = array<i64: 1, 512>}, {transform_indices = @transform_3, window_bounds = array<i64: 16, 512>}]} {
    %c0_i32 = arith.constant 0 : i32
    %0 = arith.cmpi eq, %arg2, %c0_i32 : i32
    %1 = arith.extui %0 : i1 to i32
    %c0_i32_0 = arith.constant 0 : i32
    %2 = arith.cmpi ne, %1, %c0_i32_0 : i32
    scf.if %2 {
      %cst_9 = arith.constant 0.000000e+00 : f32
      %12 = vector.broadcast %cst_9 : f32 to vector<16x512xf32>
      %c0_10 = arith.constant 0 : index
      %c0_11 = arith.constant 0 : index
      %13 = vector.load %arg7[%c0_10, %c0_11] : memref<16x512xf32, #tpu.memory_space<vmem>>, vector<16x512xf32>
      tpu.vector_store %arg7[%c0_10, %c0_11], %12 {strides = array<i32>} : memref<16x512xf32, #tpu.memory_space<vmem>>, vector<16x512xf32>,
    } else {
    }
    %c0 = arith.constant 0 : index
    %c0_1 = arith.constant 0 : index
    %3 = vector.load %arg7[%c0, %c0_1] : memref<16x512xf32, #tpu.memory_space<vmem>>, vector<16x512xf32>
    %c0_2 = arith.constant 0 : index
    %c0_3 = arith.constant 0 : index
    %4 = vector.load %arg3[%c0_2, %c0_3] : memref<16x768xbf16, #tpu.memory_space<vmem>>, vector<16x768xbf16>
    %c0_4 = arith.constant 0 : index
    %c0_5 = arith.constant 0 : index
    %5 = vector.load %arg4[%c0_4, %c0_5] : memref<768x512xbf16, #tpu.memory_space<vmem>>, vector<768x512xbf16>
    %cst = arith.constant dense<0.000000e+00> : vector<16x512xf32>
    %6 = tpu.matmul %4, %5, %cst {dimension_numbers = #tpu.dot_dimension_numbers<[1], [0], [0], [1], [0, 0, 1, 1], [], []>} : vector<16x768xbf16>, vector<768x512xbf16>, vector<16x512xf32> -> vector<16x512xf32>
    %7 = arith.addf %3, %6 : vector<16x512xf32>
    %c0_6 = arith.constant 0 : index
    %c0_7 = arith.constant 0 : index
    %8 = vector.load %arg7[%c0_6, %c0_7] : memref<16x512xf32, #tpu.memory_space<vmem>>, vector<16x512xf32>
    tpu.vector_store %arg7[%c0_6, %c0_7], %7 {strides = array<i32>} : memref<16x512xf32, #tpu.memory_space<vmem>>, vector<16x512xf32>,
    %c5_i32 = arith.constant 5 : i32
    %9 = arith.cmpi eq, %arg2, %c5_i32 : i32
    %10 = arith.extui %9 : i1 to i32
    %c0_i32_8 = arith.constant 0 : i32
    %11 = arith.cmpi ne, %10, %c0_i32_8 : i32
    scf.if %11 {
      %c0_9 = arith.constant 0 : index
      %c0_10 = arith.constant 0 : index
      %12 = vector.load %arg7[%c0_9, %c0_10] : memref<16x512xf32, #tpu.memory_space<vmem>>, vector<16x512xf32>
      %c0_11 = arith.constant 0 : index
      %c0_12 = arith.constant 0 : index
      %13 = vector.load %arg5[%c0_11, %c0_12] : memref<1x512xf32, #tpu.memory_space<vmem>>, vector<1x512xf32>
      %14 = vector.broadcast %13 : vector<1x512xf32> to vector<16x512xf32>
      %15 = arith.addf %12, %14 : vector<16x512xf32>
      %16 = arith.truncf %15 : vector<16x512xf32> to vector<16x512xbf16>
      %c0_13 = arith.constant 0 : index
      %c0_14 = arith.constant 0 : index
      %17 = vector.load %arg6[%c0_13, %c0_14] : memref<16x512xbf16, #tpu.memory_space<vmem>>, vector<16x512xbf16>
      tpu.vector_store %arg6[%c0_13, %c0_14], %16 {strides = array<i32>} : memref<16x512xbf16, #tpu.memory_space<vmem>>, vector<16x512xbf16>,
    } else {
    }
    return
  }
  func.func @transform_0(%arg0: i32, %arg1: i32, %arg2: i32) -> (i32, i32) {
    %c0_i32 = arith.constant 0 : i32
    return %arg0, %arg2 : i32, i32
  }
  func.func @transform_1(%arg0: i32, %arg1: i32, %arg2: i32) -> (i32, i32) {
    %c0_i32 = arith.constant 0 : i32
    return %arg2, %arg1 : i32, i32
  }
  func.func @transform_2(%arg0: i32, %arg1: i32, %arg2: i32) -> (i32, i32) {
    %c0_i32 = arith.constant 0 : i32
    %c0_i32_0 = arith.constant 0 : i32
    return %c0_i32, %arg1 : i32, i32
  }
  func.func @transform_3(%arg0: i32, %arg1: i32, %arg2: i32) -> (i32, i32) {
    %c0_i32 = arith.constant 0 : i32
    return %arg0, %arg1 : i32, i32
  }
}

module attributes {stable_mosaic.version = 11 : i64} {
  func.func @_matmul_bias_kernel(%arg0: i32, %arg1: i32, %arg2: i32, %arg3: memref<16x1024xbf16, #tpu.memory_space<vmem>>, %arg4: memref<1024x512xbf16, #tpu.memory_space<vmem>>, %arg5: memref<1x512xf32, #tpu.memory_space<vmem>>, %arg6: memref<16x512xbf16, #tpu.memory_space<vmem>>, %arg7: memref<16x512xf32, #tpu.memory_space<vmem>>) attributes {dimension_semantics = [#tpu.dimension_semantics<parallel>, #tpu.dimension_semantics<parallel>, #tpu.dimension_semantics<arbitrary>], iteration_bounds = array<i64: 1, 2, 9>, scalar_prefetch = 0 : i64, scratch_operands = 1 : i64, tpu.core_type = #tpu.core_type<tc>, window_params = [{transform_indices = @transform_0, window_bounds = array<i64: 16, 1024>}, {transform_indices = @transform_1, window_bounds = array<i64: 1024, 512>}, {transform_indices = @transform_2, window_bounds = array<i64: 1, 512>}, {transform_indices = @transform_3, window_bounds = array<i64: 16, 512>}]} {
    %c0_i32 = arith.constant 0 : i32
    %0 = arith.cmpi eq, %arg2, %c0_i32 : i32
    %1 = arith.extui %0 : i1 to i32
    %c0_i32_0 = arith.constant 0 : i32
    %2 = arith.cmpi ne, %1, %c0_i32_0 : i32
    scf.if %2 {
      %cst_9 = arith.constant 0.000000e+00 : f32
      %12 = vector.broadcast %cst_9 : f32 to vector<16x512xf32>
      %c0_10 = arith.constant 0 : index
      %c0_11 = arith.constant 0 : index
      %13 = vector.load %arg7[%c0_10, %c0_11] : memref<16x512xf32, #tpu.memory_space<vmem>>, vector<16x512xf32>
      tpu.vector_store %arg7[%c0_10, %c0_11], %12 {strides = array<i32>} : memref<16x512xf32, #tpu.memory_space<vmem>>, vector<16x512xf32>,
    } else {
    }
    %c0 = arith.constant 0 : index
    %c0_1 = arith.constant 0 : index
    %3 = vector.load %arg7[%c0, %c0_1] : memref<16x512xf32, #tpu.memory_space<vmem>>, vector<16x512xf32>
    %c0_2 = arith.constant 0 : index
    %c0_3 = arith.constant 0 : index
    %4 = vector.load %arg3[%c0_2, %c0_3] : memref<16x1024xbf16, #tpu.memory_space<vmem>>, vector<16x1024xbf16>
    %c0_4 = arith.constant 0 : index
    %c0_5 = arith.constant 0 : index
    %5 = vector.load %arg4[%c0_4, %c0_5] : memref<1024x512xbf16, #tpu.memory_space<vmem>>, vector<1024x512xbf16>
    %cst = arith.constant dense<0.000000e+00> : vector<16x512xf32>
    %6 = tpu.matmul %4, %5, %cst {dimension_numbers = #tpu.dot_dimension_numbers<[1], [0], [0], [1], [0, 0, 1, 1], [], []>} : vector<16x1024xbf16>, vector<1024x512xbf16>, vector<16x512xf32> -> vector<16x512xf32>
    %7 = arith.addf %3, %6 : vector<16x512xf32>
    %c0_6 = arith.constant 0 : index
    %c0_7 = arith.constant 0 : index
    %8 = vector.load %arg7[%c0_6, %c0_7] : memref<16x512xf32, #tpu.memory_space<vmem>>, vector<16x512xf32>
    tpu.vector_store %arg7[%c0_6, %c0_7], %7 {strides = array<i32>} : memref<16x512xf32, #tpu.memory_space<vmem>>, vector<16x512xf32>,
    %c8_i32 = arith.constant 8 : i32
    %9 = arith.cmpi eq, %arg2, %c8_i32 : i32
    %10 = arith.extui %9 : i1 to i32
    %c0_i32_8 = arith.constant 0 : i32
    %11 = arith.cmpi ne, %10, %c0_i32_8 : i32
    scf.if %11 {
      %c0_9 = arith.constant 0 : index
      %c0_10 = arith.constant 0 : index
      %12 = vector.load %arg7[%c0_9, %c0_10] : memref<16x512xf32, #tpu.memory_space<vmem>>, vector<16x512xf32>
      %c0_11 = arith.constant 0 : index
      %c0_12 = arith.constant 0 : index
      %13 = vector.load %arg5[%c0_11, %c0_12] : memref<1x512xf32, #tpu.memory_space<vmem>>, vector<1x512xf32>
      %14 = vector.broadcast %13 : vector<1x512xf32> to vector<16x512xf32>
      %15 = arith.addf %12, %14 : vector<16x512xf32>
      %16 = arith.truncf %15 : vector<16x512xf32> to vector<16x512xbf16>
      %c0_13 = arith.constant 0 : index
      %c0_14 = arith.constant 0 : index
      %17 = vector.load %arg6[%c0_13, %c0_14] : memref<16x512xbf16, #tpu.memory_space<vmem>>, vector<16x512xbf16>
      tpu.vector_store %arg6[%c0_13, %c0_14], %16 {strides = array<i32>} : memref<16x512xbf16, #tpu.memory_space<vmem>>, vector<16x512xbf16>,
    } else {
    }
    return
  }
  func.func @transform_0(%arg0: i32, %arg1: i32, %arg2: i32) -> (i32, i32) {
    %c0_i32 = arith.constant 0 : i32
    return %arg0, %arg2 : i32, i32
  }
  func.func @transform_1(%arg0: i32, %arg1: i32, %arg2: i32) -> (i32, i32) {
    %c0_i32 = arith.constant 0 : i32
    return %arg2, %arg1 : i32, i32
  }
  func.func @transform_2(%arg0: i32, %arg1: i32, %arg2: i32) -> (i32, i32) {
    %c0_i32 = arith.constant 0 : i32
    %c0_i32_0 = arith.constant 0 : i32
    return %c0_i32, %arg1 : i32, i32
  }
  func.func @transform_3(%arg0: i32, %arg1: i32, %arg2: i32) -> (i32, i32) {
    %c0_i32 = arith.constant 0 : i32
    return %arg0, %arg1 : i32, i32
  }
}

module attributes {stable_mosaic.version = 11 : i64} {
  func.func @_matmul_bias_kernel(%arg0: i32, %arg1: i32, %arg2: i32, %arg3: memref<16x1024xbf16, #tpu.memory_space<vmem>>, %arg4: memref<1024x128xbf16, #tpu.memory_space<vmem>>, %arg5: memref<1x128xf32, #tpu.memory_space<vmem>>, %arg6: memref<16x128xf32, #tpu.memory_space<vmem>>, %arg7: memref<16x128xf32, #tpu.memory_space<vmem>>) attributes {dimension_semantics = [#tpu.dimension_semantics<parallel>, #tpu.dimension_semantics<parallel>, #tpu.dimension_semantics<arbitrary>], iteration_bounds = array<i64: 1, 1, 4>, scalar_prefetch = 0 : i64, scratch_operands = 1 : i64, tpu.core_type = #tpu.core_type<tc>, window_params = [{transform_indices = @transform_0, window_bounds = array<i64: 16, 1024>}, {transform_indices = @transform_1, window_bounds = array<i64: 1024, 128>}, {transform_indices = @transform_2, window_bounds = array<i64: 1, 128>}, {transform_indices = @transform_3, window_bounds = array<i64: 16, 128>}]} {
    %c0_i32 = arith.constant 0 : i32
    %0 = arith.cmpi eq, %arg2, %c0_i32 : i32
    %1 = arith.extui %0 : i1 to i32
    %c0_i32_0 = arith.constant 0 : i32
    %2 = arith.cmpi ne, %1, %c0_i32_0 : i32
    scf.if %2 {
      %cst_9 = arith.constant 0.000000e+00 : f32
      %12 = vector.broadcast %cst_9 : f32 to vector<16x128xf32>
      %c0_10 = arith.constant 0 : index
      %c0_11 = arith.constant 0 : index
      %13 = vector.load %arg7[%c0_10, %c0_11] : memref<16x128xf32, #tpu.memory_space<vmem>>, vector<16x128xf32>
      tpu.vector_store %arg7[%c0_10, %c0_11], %12 {strides = array<i32>} : memref<16x128xf32, #tpu.memory_space<vmem>>, vector<16x128xf32>,
    } else {
    }
    %c0 = arith.constant 0 : index
    %c0_1 = arith.constant 0 : index
    %3 = vector.load %arg7[%c0, %c0_1] : memref<16x128xf32, #tpu.memory_space<vmem>>, vector<16x128xf32>
    %c0_2 = arith.constant 0 : index
    %c0_3 = arith.constant 0 : index
    %4 = vector.load %arg3[%c0_2, %c0_3] : memref<16x1024xbf16, #tpu.memory_space<vmem>>, vector<16x1024xbf16>
    %c0_4 = arith.constant 0 : index
    %c0_5 = arith.constant 0 : index
    %5 = vector.load %arg4[%c0_4, %c0_5] : memref<1024x128xbf16, #tpu.memory_space<vmem>>, vector<1024x128xbf16>
    %cst = arith.constant dense<0.000000e+00> : vector<16x128xf32>
    %6 = tpu.matmul %4, %5, %cst {dimension_numbers = #tpu.dot_dimension_numbers<[1], [0], [0], [1], [0, 0, 1, 1], [], []>} : vector<16x1024xbf16>, vector<1024x128xbf16>, vector<16x128xf32> -> vector<16x128xf32>
    %7 = arith.addf %3, %6 : vector<16x128xf32>
    %c0_6 = arith.constant 0 : index
    %c0_7 = arith.constant 0 : index
    %8 = vector.load %arg7[%c0_6, %c0_7] : memref<16x128xf32, #tpu.memory_space<vmem>>, vector<16x128xf32>
    tpu.vector_store %arg7[%c0_6, %c0_7], %7 {strides = array<i32>} : memref<16x128xf32, #tpu.memory_space<vmem>>, vector<16x128xf32>,
    %c3_i32 = arith.constant 3 : i32
    %9 = arith.cmpi eq, %arg2, %c3_i32 : i32
    %10 = arith.extui %9 : i1 to i32
    %c0_i32_8 = arith.constant 0 : i32
    %11 = arith.cmpi ne, %10, %c0_i32_8 : i32
    scf.if %11 {
      %c0_9 = arith.constant 0 : index
      %c0_10 = arith.constant 0 : index
      %12 = vector.load %arg7[%c0_9, %c0_10] : memref<16x128xf32, #tpu.memory_space<vmem>>, vector<16x128xf32>
      %c0_11 = arith.constant 0 : index
      %c0_12 = arith.constant 0 : index
      %13 = vector.load %arg5[%c0_11, %c0_12] : memref<1x128xf32, #tpu.memory_space<vmem>>, vector<1x128xf32>
      %14 = vector.broadcast %13 : vector<1x128xf32> to vector<16x128xf32>
      %15 = arith.addf %12, %14 : vector<16x128xf32>
      %c0_13 = arith.constant 0 : index
      %c0_14 = arith.constant 0 : index
      %16 = vector.load %arg6[%c0_13, %c0_14] : memref<16x128xf32, #tpu.memory_space<vmem>>, vector<16x128xf32>
      tpu.vector_store %arg6[%c0_13, %c0_14], %15 {strides = array<i32>} : memref<16x128xf32, #tpu.memory_space<vmem>>, vector<16x128xf32>,
    } else {
    }
    return
  }
  func.func @transform_0(%arg0: i32, %arg1: i32, %arg2: i32) -> (i32, i32) {
    %c0_i32 = arith.constant 0 : i32
    return %arg0, %arg2 : i32, i32
  }
  func.func @transform_1(%arg0: i32, %arg1: i32, %arg2: i32) -> (i32, i32) {
    %c0_i32 = arith.constant 0 : i32
    return %arg2, %arg1 : i32, i32
  }
  func.func @transform_2(%arg0: i32, %arg1: i32, %arg2: i32) -> (i32, i32) {
    %c0_i32 = arith.constant 0 : i32
    %c0_i32_0 = arith.constant 0 : i32
    return %c0_i32, %arg1 : i32, i32
  }
  func.func @transform_3(%arg0: i32, %arg1: i32, %arg2: i32) -> (i32, i32) {
    %c0_i32 = arith.constant 0 : i32
    return %arg0, %arg1 : i32, i32
  }
}

</mosaic_0001>

<bundles_post_ra>
// kernel: zfnet_forward.8
= control target key start
LH: loop header
LB: loop body
LE: loop exit
PB: predicated region body
PF: predicated region fallthrough
CT: control target
= control target key end

     0   :  { %s1417_s12 = smov 0   ;;  %s1419_s13 = smov 0   ;;  %s1611_s0 = inlined_call_operand.vmem [shape: bf16[1872,256], index: 0, kind: input, shape index: {}]   ;;  %s1612_s1 = inlined_call_operand.vmem [shape: bf16[256,128], index: 1, kind: input, shape index: {}]   ;;  %s1613_s2 = inlined_call_operand.vmem [shape: f32[1,128], index: 2, kind: input, shape index: {}]   ;;  %s1614_s3 = inlined_call_operand.vmem [shape: bf16[1872,128], index: 3, kind: output, shape index: {}]  }
   0x1   :  { %s1421_s14 = smov 0  }
   0x2 LB: > { %s32_s15 = sadd.s32 1, %s1391_s13  ;;  %p1038_p0 = scmp.ge.s32.totalorder %s1395_s14, 1  ;;  %s1395_s14 = sphi %s1421_s14, %s13_s14   ;;  %s1391_s13 = sphi %s1419_s13, %s1616_s13   ;;  %s1387_s12 = sphi %s1417_s12, %s1615_s12  }
   0x3   : > { %p34_p1 = scmp.ge.s32.totalorder %s32_s15, 9  ;;  %p191_p2 = scmp.lt.s32.totalorder %s1395_s14, 10 }
   0x5   : > { %s1618_s15 = smov (%p34_p1, %s32_s15), 0  ;;  %p192_p3 = pnand %p1038_p0, %p191_p2 }
   0x6   : > { %s234_s28 = smul.u32 (!%p192_p3), 26, %s1387_s12 }
   0x7   : > { %195 = sbr.rel (%p192_p3) target bundleno = 287 (0x11f), region = 32 }
   0x8   : > { %p236_p4 = scmp.lt.s32.totalorder (!%p192_p3), %s234_s28, 233 }
   0xc   : > { %v1246_v0 = vld [vmem:[%s1612_s1 + $0x38] sm:$0xff]  ;;  %v1245_v2 = vld [vmem:[%s1612_s1 + $0x30] sm:$0xff]  ;;  %v1244_v4 = vld [vmem:[%s1612_s1 + $0x28] sm:$0xff]  ;;  %s1620_s28 = smov (!%p236_p4, %s234_s28), 233 }
   0xd   : > { %v1254_v1 = vld [vmem:[%s1612_s1 + $0x78] sm:$0xff]  ;;  %607 = vmatpush.bf16.msra.mxu0 %v1246_v0  ;;  %1332 = vmatpush.bf16.msra.mxu2 %v1246_v0  ;;  %v1253_v3 = vld [vmem:[%s1612_s1 + $0x70] sm:$0xff]  ;;  %v1252_v5 = vld [vmem:[%s1612_s1 + $0x68] sm:$0xff]  ;;  %s1212_s17 = sshll.u32 %s1620_s28, 3  ;;  %s1041_s5 = sshll.u32 %s1620_s28, 2 }
   0xe   : > { %681 = vmatpush.bf16.msra.mxu1 %v1254_v1  ;;  %1340 = vmatpush.bf16.msra.mxu3 %v1254_v1  ;;  %v1243_v6 = vld [vmem:[%s1612_s1 + $0x20] sm:$0xff]  ;;  %v1242_v8 = vld [vmem:[%s1612_s1 + $0x18] sm:$0xff]  ;;  %v1241_v10 = vld [vmem:[%s1612_s1 + $0x10] sm:$0xff]  ;;  %s1483_s22 = scalar_lea.vmem %s1611_s0, %s1212_s17  ;;  %s1559_s8 = scalar_lea.vmem %s1614_s3, %s1041_s5 }
   0xf   : > { %v1251_v7 = vld [vmem:[%s1612_s1 + $0x60] sm:$0xff]  ;;  %v1250_v9 = vld [vmem:[%s1612_s1 + $0x58] sm:$0xff]  ;;  %v1249_v11 = vld [vmem:[%s1612_s1 + $0x50] sm:$0xff] }
  0x10   : > { %v1240_v12 = vld [vmem:[%s1612_s1 + $0x8] sm:$0xff]  ;;  %v1239_v14 = vld [vmem:[%s1612_s1] sm:$0xff]  ;;  %v1227_v22 = vld [vmem:[%s1483_s22 + $0x74] sm:$0xf] }
  0x11   : > { %608 = vmatpush.bf16.msra.mxu0 %v1245_v2  ;;  %1333 = vmatpush.bf16.msra.mxu2 %v1245_v2  ;;  %v1248_v13 = vld [vmem:[%s1612_s1 + $0x48] sm:$0xff]  ;;  %v1247_v15 = vld [vmem:[%s1612_s1 + $0x40] sm:$0xff]  ;;  %v1102_v23 = vld [vmem:[%s1483_s22 + $0x78] sm:$0xf0] }
  0x12   : > { %682 = vmatpush.bf16.msra.mxu1 %v1253_v3  ;;  %1341 = vmatpush.bf16.msra.mxu3 %v1253_v3  ;;  %v1044_v16 = vld [vmem:[%s1483_s22] sm:$0xf]  ;;  %v1214_v17 = vld [vmem:[%s1483_s22 + $0x4] sm:$0xf0]  ;;  %v1213_v20 = vld [vmem:[%s1483_s22 + $0x4] sm:$0xf]  ;;  %v1105_v27 = vor.u32 %v1227_v22, %v1102_v23 }
  0x13   : > { %v1092_v18 = vld [vmem:[%s1483_s22 + $0x60] sm:$0xf]  ;;  %v1226_v19 = vld [vmem:[%s1483_s22 + $0x64] sm:$0xf0]  ;;  %v1046_v21 = vld [vmem:[%s1483_s22 + $0x8] sm:$0xf0]  ;;  %v1045_v24 = vor.u32 %v1214_v17, %v1044_v16 }
  0x14   : > { %v1093_v25 = vor.u32 %v1226_v19, %v1092_v18  ;;  %v1049_v26 = vor.u32 %v1213_v20, %v1046_v21  ;;  %v1052_v28 = vld [vmem:[%s1483_s22 + $0x10] sm:$0xf]  ;;  %v1216_v29 = vld [vmem:[%s1483_s22 + $0x14] sm:$0xf0]  ;;  %v1215_v32 = vld [vmem:[%s1483_s22 + $0x14] sm:$0xf] }
  0x15   : > { %609 = vmatpush.bf16.msra.mxu0 %v1244_v4  ;;  %1334 = vmatpush.bf16.msra.mxu2 %v1244_v4  ;;  %v1100_v30 = vld [vmem:[%s1483_s22 + $0x70] sm:$0xf]  ;;  %v1228_v31 = vld [vmem:[%s1483_s22 + $0x74] sm:$0xf0]  ;;  %v1054_v33 = vld [vmem:[%s1483_s22 + $0x18] sm:$0xf0]  ;;  %v1053_v36 = vor.u32 %v1216_v29, %v1052_v28 }
  0x16   : > { %683 = vmatpush.bf16.msra.mxu1 %v1252_v5  ;;  %1342 = vmatpush.bf16.msra.mxu3 %v1252_v5  ;;  %v1229_v34 = vld [vmem:[%s1483_s22 + $0x84] sm:$0xf]  ;;  %v1110_v35 = vld [vmem:[%s1483_s22 + $0x88] sm:$0xf0]  ;;  %v1101_v37 = vor.u32 %v1228_v31, %v1100_v30  ;;  %v1057_v38 = vor.u32 %v1215_v32, %v1054_v33  ;;  %v1060_v40 = vld [vmem:[%s1483_s22 + $0x20] sm:$0xf] }
  0x17   : > { %v1113_v39 = vor.u32 %v1229_v34, %v1110_v35  ;;  %v1218_v41 = vld [vmem:[%s1483_s22 + $0x24] sm:$0xf0]  ;;  %v1108_v42 = vld [vmem:[%s1483_s22 + $0x80] sm:$0xf]  ;;  %v1217_v44 = vld [vmem:[%s1483_s22 + $0x24] sm:$0xf] }
  0x18   : > { %v1230_v43 = vld [vmem:[%s1483_s22 + $0x84] sm:$0xf0]  ;;  %v1062_v45 = vld [vmem:[%s1483_s22 + $0x28] sm:$0xf0]  ;;  %v1231_v46 = vld [vmem:[%s1483_s22 + $0x94] sm:$0xf]  ;;  %v1061_v48 = vor.u32 %v1218_v41, %v1060_v40 }
  0x19   : > { %610 = vmatpush.bf16.msra.mxu0 %v1243_v6  ;;  %1335 = vmatpush.bf16.msra.mxu2 %v1243_v6  ;;  %v1118_v47 = vld [vmem:[%s1483_s22 + $0x98] sm:$0xf0]  ;;  %v1109_v49 = vor.u32 %v1230_v43, %v1108_v42  ;;  %v1065_v50 = vor.u32 %v1217_v44, %v1062_v45  ;;  %v1068_v52 = vld [vmem:[%s1483_s22 + $0x30] sm:$0xf]  ;;  %v1220_v53 = vld [vmem:[%s1483_s22 + $0x34] sm:$0xf0] }
  0x1a   : > { %684 = vmatpush.bf16.msra.mxu1 %v1251_v7  ;;  %1343 = vmatpush.bf16.msra.mxu3 %v1251_v7  ;;  %v1121_v51 = vor.u32 %v1231_v46, %v1118_v47  ;;  %v1116_v54 = vld [vmem:[%s1483_s22 + $0x90] sm:$0xf]  ;;  %v1232_v55 = vld [vmem:[%s1483_s22 + $0x94] sm:$0xf0]  ;;  %v1219_v56 = vld [vmem:[%s1483_s22 + $0x34] sm:$0xf]  ;;  %v1069_v60 = vor.u32 %v1220_v53, %v1068_v52 }
  0x1b   : > { %v1070_v57 = vld [vmem:[%s1483_s22 + $0x38] sm:$0xf0]  ;;  %v1233_v58 = vld [vmem:[%s1483_s22 + $0xa4] sm:$0xf]  ;;  %v1126_v59 = vld [vmem:[%s1483_s22 + $0xa8] sm:$0xf0]  ;;  %v1117_v61 = vor.u32 %v1232_v55, %v1116_v54 }
  0x1c   : > { %v1073_v62 = vor.u32 %v1219_v56, %v1070_v57  ;;  %v1129_v63 = vor.u32 %v1233_v58, %v1126_v59  ;;  %v1076_v0 = vld [vmem:[%s1483_s22 + $0x40] sm:$0xf]  ;;  %v1222_v1 = vld [vmem:[%s1483_s22 + $0x44] sm:$0xf0]  ;;  %v1221_v4 = vld [vmem:[%s1483_s22 + $0x44] sm:$0xf] }
  0x1d   : > { %611 = vmatpush.bf16.msra.mxu0 %v1242_v8  ;;  %1336 = vmatpush.bf16.msra.mxu2 %v1242_v8  ;;  %v1124_v2 = vld [vmem:[%s1483_s22 + $0xa0] sm:$0xf]  ;;  %v1234_v3 = vld [vmem:[%s1483_s22 + $0xa4] sm:$0xf0]  ;;  %v1078_v5 = vld [vmem:[%s1483_s22 + $0x48] sm:$0xf0]  ;;  %v1077_v8 = vor.u32 %v1222_v1, %v1076_v0 }
  0x1e   : > { %685 = vmatpush.bf16.msra.mxu1 %v1250_v9  ;;  %1344 = vmatpush.bf16.msra.mxu3 %v1250_v9  ;;  %v1235_v6 = vld [vmem:[%s1483_s22 + $0xb4] sm:$0xf]  ;;  %v1134_v7 = vld [vmem:[%s1483_s22 + $0xb8] sm:$0xf0]  ;;  %v1125_v9 = vor.u32 %v1234_v3, %v1124_v2  ;;  %v1237_v18 = vld [vmem:[%s1483_s22 + $0xc4] sm:$0xf] }
  0x1f   : > { %v1223_v16 = vld [vmem:[%s1483_s22 + $0x54] sm:$0xf]  ;;  %v1086_v17 = vld [vmem:[%s1483_s22 + $0x58] sm:$0xf0]  ;;  %v1142_v19 = vld [vmem:[%s1483_s22 + $0xc8] sm:$0xf0] }
  0x20   : > { %v1089_v22 = vor.u32 %v1223_v16, %v1086_v17  ;;  %v1145_v23 = vor.u32 %v1237_v18, %v1142_v19  ;;  %v1551_v35 = vld [vmem:[%s1613_s2] ss:$0 sm:$0xff] }
  0x21   : > { %612 = vmatpush.bf16.msra.mxu0 %v1241_v10  ;;  %1337 = vmatpush.bf16.msra.mxu2 %v1241_v10  ;;  %v1081_v10 = vor.u32 %v1221_v4, %v1078_v5 }
  0x22   : > { %686 = vmatpush.bf16.msra.mxu1 %v1249_v11  ;;  %1345 = vmatpush.bf16.msra.mxu3 %v1249_v11  ;;  %v1137_v11 = vor.u32 %v1235_v6, %v1134_v7 }
  0x25   : > { %613 = vmatpush.bf16.msra.mxu0 %v1240_v12  ;;  %1338 = vmatpush.bf16.msra.mxu2 %v1240_v12  ;;  %v1084_v12 = vld [vmem:[%s1483_s22 + $0x50] sm:$0xf] }
  0x26   : > { %687 = vmatpush.bf16.msra.mxu1 %v1248_v13  ;;  %1346 = vmatpush.bf16.msra.mxu3 %v1248_v13  ;;  %v1224_v13 = vld [vmem:[%s1483_s22 + $0x54] sm:$0xf0] }
  0x27   : > { %v1085_v20 = vor.u32 %v1224_v13, %v1084_v12 }
  0x29   : > { %614 = vmatpush.bf16.msra.mxu0 %v1239_v14  ;;  %1339 = vmatpush.bf16.msra.mxu2 %v1239_v14  ;;  %v1132_v14 = vld [vmem:[%s1483_s22 + $0xb0] sm:$0xf] }
  0x2a   : > { %688 = vmatpush.bf16.msra.mxu1 %v1247_v15  ;;  %1347 = vmatpush.bf16.msra.mxu3 %v1247_v15  ;;  %v1236_v15 = vld [vmem:[%s1483_s22 + $0xb4] sm:$0xf0] }
  0x2b   : > { %v1133_v21 = vor.u32 %v1236_v15, %v1132_v14 }
  0x2c   : > { %615 = vmatmul.bf16.vlgmr.msra.gmra.mxu0 %v1045_v24  ;;  %645 = vmatmul.bf16.vlgmr.msra.gmra.mxu2 %v1093_v25  ;;  %v1140_v24 = vld [vmem:[%s1483_s22 + $0xc0] sm:$0xf]  ;;  %v1238_v25 = vld [vmem:[%s1483_s22 + $0xc4] sm:$0xf0] }
  0x2d   : > { %689 = vmatmul.bf16.vlgmr.msra.gmra.mxu1 %v1049_v26  ;;  %724 = vmatmul.bf16.vlgmr.msra.gmra.mxu3 %v1105_v27  ;;  %v1225_v26 = vld [vmem:[%s1483_s22 + $0x64] sm:$0xf]  ;;  %v1094_v27 = vld [vmem:[%s1483_s22 + $0x68] sm:$0xf0]  ;;  %v1141_v28 = vor.u32 %v1238_v25, %v1140_v24 }
  0x2e   : > { %v1097_v29 = vor.u32 %v1225_v26, %v1094_v27 }
  0x3c   : > { %620 = vmatmul.bf16.gmra.mxu0 %v1053_v36  ;;  %650 = vmatmul.bf16.gmra.mxu2 %v1101_v37 }
  0x3d   : > { %694 = vmatmul.bf16.gmra.mxu1 %v1057_v38  ;;  %729 = vmatmul.bf16.gmra.mxu3 %v1113_v39 }
  0x4c   : > { %625 = vmatmul.bf16.gmra.mxu0 %v1061_v48  ;;  %655 = vmatmul.bf16.gmra.mxu2 %v1109_v49 }
  0x4d   : > { %699 = vmatmul.bf16.gmra.mxu1 %v1065_v50  ;;  %734 = vmatmul.bf16.gmra.mxu3 %v1121_v51 }
  0x5c   : > { %630 = vmatmul.bf16.gmra.mxu0 %v1069_v60  ;;  %660 = vmatmul.bf16.gmra.mxu2 %v1117_v61 }
  0x5d   : > { %704 = vmatmul.bf16.gmra.mxu1 %v1073_v62  ;;  %739 = vmatmul.bf16.gmra.mxu3 %v1129_v63 }
  0x6c   : > { %635 = vmatmul.bf16.gmra.mxu0 %v1077_v8  ;;  %665 = vmatmul.bf16.gmra.mxu2 %v1125_v9 }
  0x6d   : > { %709 = vmatmul.bf16.gmra.mxu1 %v1081_v10  ;;  %744 = vmatmul.bf16.gmra.mxu3 %v1137_v11 }
  0x7c   : > { %640 = vmatmul.bf16.gmra.mxu0 %v1085_v20  ;;  %670 = vmatmul.bf16.gmra.mxu2 %v1133_v21 }
  0x7d   : > { %714 = vmatmul.bf16.gmra.mxu1 %v1089_v22  ;;  %749 = vmatmul.bf16.gmra.mxu3 %v1145_v23 }
  0x8c   : > { %675 = vmatmul.bf16.gmra.mxu2 %v1141_v28 }
  0x8d   : > { %719 = vmatmul.bf16.gmra.mxu1 %v1097_v29 }
  0xa9   : > { %v616_v30 = vpop.f32.mrf.mxu0 }
  0xaa   : > { %v690_v31 = vpop.f32.mrf.mxu1 }
  0xab   : > { %v691_v34 = vadd.f32 %v690_v31, %v616_v30 }
  0xad   : > { %v840_v39 = vadd.f32 %v1551_v35, %v691_v34 }
  0xaf   : > { %v1546_v32 = vpop.f32.mrf.mxu2 }
  0xb0   : > { %v725_v33 = vpop.f32.mrf.mxu3 }
  0xb1   : > { %v618_v36 = vpop.f32.mrf.mxu0 }
  0xb2   : > { %v692_v37 = vpop.f32.mrf.mxu1 }
  0xb3   : > { %v693_v38 = vadd.f32 %v692_v37, %v618_v36 }
  0xb5   : > { %v841_v40 = vadd.f32 %v1551_v35, %v693_v38 }
  0xb7   : > { %v1258_v41 = vpack.c.bf16 %v841_v40, %v840_v39  ;;  %v1561_v42 = vpop.f32.mrf.mxu2 }
  0xb8   : > { %v727_v43 = vpop.f32.mrf.mxu3 }
  0xb9   : > { %1259 = vst [vmem:[%s1559_s8] sm:$0xff] %v1258_v41   ;;  %v621_v44 = vpop.f32.mrf.mxu0 }
  0xba   : > { %v695_v45 = vpop.f32.mrf.mxu1 }
  0xbb   : > { %v696_v48 = vadd.f32 %v695_v45, %v621_v44 }
  0xbd   : > { %v842_v52 = vadd.f32 %v1551_v35, %v696_v48 }
  0xbf   : > { %v651_v46 = vpop.f32.mrf.mxu2 }
  0xc0   : > { %v730_v47 = vpop.f32.mrf.mxu3  ;;  %v726_v54 = vadd.f32 %v725_v33, %v651_v46 }
  0xc1   : > { %v623_v49 = vpop.f32.mrf.mxu0 }
  0xc2   : > { %v697_v50 = vpop.f32.mrf.mxu1  ;;  %v854_v60 = vadd.f32 %v1551_v35, %v726_v54 }
  0xc3   : > { %v698_v51 = vadd.f32 %v697_v50, %v623_v49 }
  0xc5   : > { %v843_v53 = vadd.f32 %v1551_v35, %v698_v51 }
  0xc7   : > { %v1263_v55 = vpack.c.bf16 %v843_v53, %v842_v52  ;;  %v653_v56 = vpop.f32.mrf.mxu2 }
  0xc8   : > { %v728_v57 = vadd.f32 %v727_v43, %v653_v56  ;;  %v732_v58 = vpop.f32.mrf.mxu3 }
  0xc9   : > { %1320 = vst [vmem:[%s1559_s8 + $0x8] sm:$0xff] %v1263_v55   ;;  %v626_v59 = vpop.f32.mrf.mxu0 }
  0xca   : > { %v855_v61 = vadd.f32 %v1551_v35, %v728_v57  ;;  %v700_v62 = vpop.f32.mrf.mxu1 }
  0xcb   : > { %v701_v1 = vadd.f32 %v700_v62, %v626_v59 }
  0xcc   : > { %v1293_v63 = vpack.c.bf16 %v855_v61, %v854_v60 }
  0xcd   : > { %v844_v6 = vadd.f32 %v1551_v35, %v701_v1 }
  0xce   : > { %1326 = vst [vmem:[%s1559_s8 + $0x38] sm:$0xff] %v1293_v63  }
  0xcf   : > { %v656_v0 = vpop.f32.mrf.mxu2 }
  0xd0   : > { %v735_v3 = vpop.f32.mrf.mxu3  ;;  %v731_v8 = vadd.f32 %v730_v47, %v656_v0 }
  0xd1   : > { %v628_v2 = vpop.f32.mrf.mxu0 }
  0xd2   : > { %v702_v4 = vpop.f32.mrf.mxu1  ;;  %v856_v13 = vadd.f32 %v1551_v35, %v731_v8 }
  0xd3   : > { %v703_v5 = vadd.f32 %v702_v4, %v628_v2 }
  0xd5   : > { %v845_v7 = vadd.f32 %v1551_v35, %v703_v5 }
  0xd7   : > { %v1268_v9 = vpack.c.bf16 %v845_v7, %v844_v6  ;;  %v658_v10 = vpop.f32.mrf.mxu2 }
  0xd8   : > { %v733_v11 = vadd.f32 %v732_v58, %v658_v10  ;;  %v737_v16 = vpop.f32.mrf.mxu3 }
  0xd9   : > { %1321 = vst [vmem:[%s1559_s8 + $0x10] sm:$0xff] %v1268_v9   ;;  %v631_v12 = vpop.f32.mrf.mxu0 }
  0xda   : > { %v857_v14 = vadd.f32 %v1551_v35, %v733_v11  ;;  %v705_v15 = vpop.f32.mrf.mxu1 }
  0xdb   : > { %v706_v19 = vadd.f32 %v705_v15, %v631_v12 }
  0xdc   : > { %v1298_v17 = vpack.c.bf16 %v857_v14, %v856_v13 }
  0xdd   : > { %v846_v23 = vadd.f32 %v1551_v35, %v706_v19 }
  0xde   : > { %1327 = vst [vmem:[%s1559_s8 + $0x40] sm:$0xff] %v1298_v17  }
  0xdf   : > { %v661_v18 = vpop.f32.mrf.mxu2 }
  0xe0   : > { %v740_v25 = vpop.f32.mrf.mxu3  ;;  %v736_v26 = vadd.f32 %v735_v3, %v661_v18 }
  0xe1   : > { %v633_v20 = vpop.f32.mrf.mxu0 }
  0xe2   : > { %v707_v21 = vpop.f32.mrf.mxu1  ;;  %v858_v31 = vadd.f32 %v1551_v35, %v736_v26 }
  0xe3   : > { %v708_v22 = vadd.f32 %v707_v21, %v633_v20 }
  0xe5   : > { %v847_v24 = vadd.f32 %v1551_v35, %v708_v22 }
  0xe7   : > { %v1273_v27 = vpack.c.bf16 %v847_v24, %v846_v23  ;;  %v663_v28 = vpop.f32.mrf.mxu2 }
  0xe8   : > { %v738_v29 = vadd.f32 %v737_v16, %v663_v28  ;;  %v742_v38 = vpop.f32.mrf.mxu3 }
  0xe9   : > { %1322 = vst [vmem:[%s1559_s8 + $0x18] sm:$0xff] %v1273_v27   ;;  %v636_v30 = vpop.f32.mrf.mxu0 }
  0xea   : > { %v859_v33 = vadd.f32 %v1551_v35, %v738_v29  ;;  %v710_v34 = vpop.f32.mrf.mxu1 }
  0xeb   : > { %v711_v39 = vadd.f32 %v710_v34, %v636_v30 }
  0xec   : > { %v1303_v36 = vpack.c.bf16 %v859_v33, %v858_v31 }
  0xed   : > { %v848_v44 = vadd.f32 %v1551_v35, %v711_v39 }
  0xee   : > { %1328 = vst [vmem:[%s1559_s8 + $0x48] sm:$0xff] %v1303_v36  }
  0xef   : > { %v666_v37 = vpop.f32.mrf.mxu2 }
  0xf0   : > { %v741_v46 = vadd.f32 %v740_v25, %v666_v37  ;;  %v745_v50 = vpop.f32.mrf.mxu3 }
  0xf1   : > { %v638_v40 = vpop.f32.mrf.mxu0 }
  0xf2   : > { %v712_v41 = vpop.f32.mrf.mxu1  ;;  %v860_v52 = vadd.f32 %v1551_v35, %v741_v46 }
  0xf3   : > { %v713_v43 = vadd.f32 %v712_v41, %v638_v40 }
  0xf5   : > { %v849_v45 = vadd.f32 %v1551_v35, %v713_v43 }
  0xf7   : > { %v1278_v47 = vpack.c.bf16 %v849_v45, %v848_v44  ;;  %v668_v48 = vpop.f32.mrf.mxu2 }
  0xf8   : > { %v743_v49 = vadd.f32 %v742_v38, %v668_v48  ;;  %v747_v60 = vpop.f32.mrf.mxu3 }
  0xf9   : > { %1323 = vst [vmem:[%s1559_s8 + $0x20] sm:$0xff] %v1278_v47   ;;  %v641_v51 = vpop.f32.mrf.mxu0 }
  0xfa   : > { %v861_v53 = vadd.f32 %v1551_v35, %v743_v49  ;;  %v715_v54 = vpop.f32.mrf.mxu1 }
  0xfb   : > { %v716_v57 = vadd.f32 %v715_v54, %v641_v51 }
  0xfc   : > { %v1308_v55 = vpack.c.bf16 %v861_v53, %v860_v52 }
  0xfd   : > { %v850_v62 = vadd.f32 %v1551_v35, %v716_v57 }
  0xfe   : > { %1329 = vst [vmem:[%s1559_s8 + $0x50] sm:$0xff] %v1308_v55  }
  0xff   : > { %v671_v56 = vpop.f32.mrf.mxu2 }
 0x100   : > { %v746_v0 = vadd.f32 %v745_v50, %v671_v56  ;;  %v750_v8 = vpop.f32.mrf.mxu3 }
 0x101   : > { %v643_v58 = vpop.f32.mrf.mxu0 }
 0x102   : > { %v717_v59 = vpop.f32.mrf.mxu1  ;;  %v862_v4 = vadd.f32 %v1551_v35, %v746_v0 }
 0x103   : > { %v718_v61 = vadd.f32 %v717_v59, %v643_v58 }
 0x105   : > { %v851_v63 = vadd.f32 %v1551_v35, %v718_v61 }
 0x107   : > { %v1283_v1 = vpack.c.bf16 %v851_v63, %v850_v62  ;;  %v673_v2 = vpop.f32.mrf.mxu2 }
 0x108   : > { %v748_v3 = vadd.f32 %v747_v60, %v673_v2  ;;  %v752_v16 = vpop.f32.mrf.mxu3 }
 0x109   : > { %1324 = vst [vmem:[%s1559_s8 + $0x28] sm:$0xff] %v1283_v1  }
 0x10a   : > { %v863_v5 = vadd.f32 %v1551_v35, %v748_v3  ;;  %v720_v6 = vpop.f32.mrf.mxu1 }
 0x10b   : > { %v721_v10 = vadd.f32 %v720_v6, %v1546_v32 }
 0x10c   : > { %v1313_v7 = vpack.c.bf16 %v863_v5, %v862_v4 }
 0x10d   : > { %v852_v13 = vadd.f32 %v1551_v35, %v721_v10 }
 0x10e   : > { %1330 = vst [vmem:[%s1559_s8 + $0x58] sm:$0xff] %v1313_v7  }
 0x10f   : > { %v676_v9 = vpop.f32.mrf.mxu2 }
 0x110   : > { %v751_v15 = vadd.f32 %v750_v8, %v676_v9 }
 0x112   : > { %v722_v11 = vpop.f32.mrf.mxu1  ;;  %v864_v20 = vadd.f32 %v1551_v35, %v751_v15 }
 0x113   : > { %v723_v12 = vadd.f32 %v722_v11, %v1561_v42 }
 0x115   : > { %v853_v14 = vadd.f32 %v1551_v35, %v723_v12 }
 0x117   : > { %v1288_v17 = vpack.c.bf16 %v853_v14, %v852_v13  ;;  %v678_v18 = vpop.f32.mrf.mxu2 }
 0x118   : > { %v753_v19 = vadd.f32 %v752_v16, %v678_v18 }
 0x119   : > { %1325 = vst [vmem:[%s1559_s8 + $0x30] sm:$0xff] %v1288_v17  }
 0x11a   : > { %v865_v21 = vadd.f32 %v1551_v35, %v753_v19 }
 0x11c   : > { %v1318_v22 = vpack.c.bf16 %v865_v21, %v864_v20 }
 0x11e   : > { %1331 = vst [vmem:[%s1559_s8 + $0x60] sm:$0xff] %v1318_v22  }
 0x11f PF: > { %s13_s14 = sadd.s32 1, %s1395_s14   ;;  %s1615_s12 = smov %s1391_s13 }
 0x120   : > { %p10_p5 = scmp.ge.s32.totalorder %s13_s14, 11   ;;  %s1616_s13 = smov %s1618_s15 }
 0x122   :  { %12 = sbr.rel (!%p10_p5) target bundleno = 2 (0x2), region = 76 }

// kernel: zfnet_forward.9
= control target key start
LH: loop header
LB: loop body
LE: loop exit
PB: predicated region body
PF: predicated region fallthrough
CT: control target
= control target key end

     0   :  { %s1865_s15 = smov 0   ;;  %s2319_s0 = inlined_call_operand.vmem [shape: bf16[2,15,15,96], index: 0, kind: input, shape index: {}]   ;;  %s2320_s1 = inlined_call_operand.vmem [shape: bf16[2,15,15,96], index: 1, kind: input, shape index: {}]   ;;  %s2321_s2 = inlined_call_operand.vmem [shape: bf16[2,15,15,96], index: 2, kind: input, shape index: {}]   ;;  %s2322_s3 = inlined_call_operand.vmem [shape: bf16[2,15,15,96], index: 3, kind: input, shape index: {}]   ;;  %s2323_s4 = inlined_call_operand.vmem [shape: bf16[2,14,14,96], index: 4, kind: output, shape index: {}]  }
   0x1 LB: > { %s1740_s16 = sadd.s32 4294967295, %s1838_s15   ;;  %p1744_p0 = scmp.ge.s32.totalorder %s1838_s15, 1  ;;  %s1838_s15 = sphi %s1865_s15, %s14_s15  }
   0x2   : > { %p192_p1 = scmp.lt.s32.totalorder %s1838_s15, 3 }
   0x4   : > { %p193_p2 = pnand %p1744_p0, %p192_p1 }
   0x5   : > { %p233_p3 = scmp.lt.s32.totalorder (!%p193_p2), %s1740_s16, 1 }
   0x6   : > { %196 = sbr.rel (%p193_p2) target bundleno = 174 (0xae), region = 36 }
   0xb   : > { %s2325_s16 = smov (!%p233_p3, %s1740_s16), 1  ;;  %vm370_vm0 = vcmask 1046528   ;;  %vm1619_vm1 = vcmask 781312   ;;  %vm1621_vm2 = vcmask 780288  }
   0xc   : > { %s1822_s17 = smul.u32 120, %s2325_s16 }
   0xd   : > { %s1823_s30 = smul.u32 112, %s2325_s16 }
   0xe   : > { %s1879_s20 = scalar_lea.vmem %s2319_s0, %s1822_s17  ;;  %s1884_s23 = scalar_lea.vmem %s2320_s1, %s1822_s17 }
   0xf   : > { %s1889_s26 = scalar_lea.vmem %s2321_s2, %s1822_s17  ;;  %s1894_s29 = scalar_lea.vmem %s2322_s3, %s1822_s17  ;;  %v258_v0 = vld [vmem:[%s1879_s20] sm:$0xff]   ;;  %v1750_v1 = vld [vmem:[%s1879_s20 + $0x8] sm:$0xff]   ;;  %v1752_v29 = vld [vmem:[%s1879_s20 + $0x10] sm:$0xff]  }
  0x10   : > { %v300_v2 = vunpack.c.l.bf16 %v258_v0  ;;  %v328_v3 = vunpack.c.h.bf16 %v258_v0  ;;  %v554_v4 = vunpack.c.l.bf16 %v1750_v1  ;;  %v680_v5 = vunpack.c.h.bf16 %v1750_v1  ;;  %v848_v6 = vld [vmem:[%s1884_s23] sm:$0xf]  ;;  %v1900_v7 = vld [vmem:[%s1884_s23 + $0x8] sm:$0xf]  ;;  %v259_v12 = vld [vmem:[%s1879_s20 + $0x4] sm:$0x7]  ;;  %s1971_s7 = scalar_lea.vmem %s2323_s4, %s1823_s30 }
  0x11   : > { %v1903_v8 = vld [vmem:[%s1889_s26] sm:$0xff]   ;;  %v1751_v13 = vld [vmem:[%s1879_s20 + $0xc] sm:$0x7]  ;;  %v904_v19 = vunpack.c.l.bf16 %v848_v6  ;;  %v301_v22 = vunpack.c.l.bf16 %v259_v12  ;;  %v1045_v25 = vunpack.c.l.bf16 %v1900_v7  ;;  %v556_v42 = vunpack.c.l.bf16 %v1752_v29  ;;  %v850_v44 = vld [vmem:[%s1884_s23 + $0x8] sm:$0xf] }
  0x12   : > { %v1185_v9 = vunpack.c.l.bf16 %v1903_v8  ;;  %v1311_v10 = vunpack.c.h.bf16 %v1903_v8  ;;  %v1908_v11 = vld [vmem:[%s1894_s29] sm:$0xf]  ;;  %v371_v14 = vrot.slane %v300_v2, 1  ;;  %v372_v15 = vrot.slane %v328_v3, 1  ;;  %v849_v18 = vld [vmem:[%s1884_s23 + $0x4] sm:$0x7] }
  0x13   : > { %v722_v16 = vrot.slane %v554_v4, 1  ;;  %v723_v17 = vrot.slane %v680_v5, 1  ;;  %v1793_v23 = vld [vmem:[%s1884_s23 + $0xc] sm:$0x7]  ;;  %v1535_v26 = vunpack.c.l.bf16 %v1908_v11  ;;  %v555_v27 = vunpack.c.l.bf16 %v1751_v13  ;;  %v1130_v34 = vld [vmem:[%s1889_s26 + $0x4] sm:$0x7] }
  0x14   : > { %v1353_v20 = vrot.slane %v1185_v9, 1  ;;  %v1915_v21 = vrot.slane %v1311_v10, 1  ;;  %v373_v24 = vsel %vm370_vm0, %v371_v14, %v372_v15  ;;  %v260_v28 = vld [vmem:[%s1879_s20 + $0x8] sm:$0xff]   ;;  %v442_v32 = vmax.f32 %v301_v22, %v372_v15  ;;  %v1926_v35 = vld [vmem:[%s1894_s29 + $0x4] sm:$0x7]  ;;  %v262_v15 = vld [vmem:[%s1879_s20 + $0x10] sm:$0xff]  }
  0x15   : > { %v441_v30 = vmax.f32 %v300_v2, %v373_v24  ;;  %v724_v31 = vsel %vm370_vm0, %v722_v16, %v723_v17  ;;  %v905_v33 = vunpack.c.l.bf16 %v849_v18  ;;  %v1046_v37 = vunpack.c.l.bf16 %v1793_v23  ;;  %v1934_v45 = vld [vmem:[%s1889_s26 + $0x8] sm:$0xff]   ;;  %v1753_v55 = vld [vmem:[%s1879_s20 + $0x14] sm:$0x7]  ;;  %v1794_v58 = vld [vmem:[%s1884_s23 + $0x10] sm:$0xf] }
  0x16   : > { %v1930_v36 = vsel %vm370_vm0, %v1353_v20, %v1915_v21  ;;  %v302_v38 = vunpack.c.l.bf16 %v260_v28  ;;  %v329_v39 = vunpack.c.h.bf16 %v260_v28  ;;  %v583_v41 = vmax.f32 %v442_v32, %v555_v27  ;;  %v261_v54 = vld [vmem:[%s1879_s20 + $0xc] sm:$0x7]  ;;  %v1945_v1 = vld [vmem:[%s1894_s29 + $0x8] sm:$0xf]  ;;  %v1795_v7 = vld [vmem:[%s1884_s23 + $0x14] sm:$0x7] }
  0x17   : > { %v582_v40 = vmax.f32 %v441_v30, %v554_v4  ;;  %v681_v43 = vunpack.c.h.bf16 %v1752_v29  ;;  %v1186_v46 = vunpack.c.l.bf16 %v1130_v34  ;;  %v1536_v47 = vunpack.c.l.bf16 %v1926_v35  ;;  %v851_v2 = vld [vmem:[%s1884_s23 + $0xc] sm:$0x7]  ;;  %v1754_v16 = vld [vmem:[%s1879_s20 + $0x18] sm:$0xff]   ;;  %v852_v11 = vld [vmem:[%s1884_s23 + $0x10] sm:$0xf] }
  0x18   : > { %v374_v48 = vrot.slane %v302_v38, 1  ;;  %v375_v49 = vrot.slane %v329_v39, 1  ;;  %v793_v51 = vmax.f32 %v583_v41, %v723_v17  ;;  %v725_v52 = vrot.slane %v556_v42, 1  ;;  %v1132_v34 = vld [vmem:[%s1889_s26 + $0xc] sm:$0x7] }
  0x19   : > { %v792_v50 = vmax.f32 %v582_v40, %v724_v31  ;;  %v726_v53 = vrot.slane %v681_v43, 1  ;;  %v906_v57 = vunpack.c.l.bf16 %v850_v44  ;;  %v1187_v59 = vunpack.c.l.bf16 %v1934_v45  ;;  %v1482_v35 = vld [vmem:[%s1894_s29 + $0xc] sm:$0x7] }
  0x1a   : > { %v376_v56 = vsel %vm370_vm0, %v374_v48, %v375_v49  ;;  %v1312_v60 = vunpack.c.h.bf16 %v1934_v45  ;;  %v933_v62 = vmax.f32 %v793_v51, %v905_v33  ;;  %v303_v5 = vunpack.c.l.bf16 %v261_v54  ;;  %v1755_v51 = vld [vmem:[%s1879_s20 + $0x1c] sm:$0x7]  ;;  %v1796_v54 = vld [vmem:[%s1884_s23 + $0x18] sm:$0xf] }
  0x1b   : > { %v932_v61 = vmax.f32 %v792_v50, %v904_v19  ;;  %v443_v63 = vmax.f32 %v302_v38, %v376_v56  ;;  %v727_v0 = vsel %vm370_vm0, %v725_v52, %v726_v53  ;;  %v1356_v3 = vrot.slane %v1187_v59, 1 }
  0x1c   : > { %v1948_v4 = vrot.slane %v1312_v60, 1  ;;  %v557_v6 = vunpack.c.l.bf16 %v1753_v55  ;;  %v1074_v12 = vmax.f32 %v933_v62, %v1046_v37  ;;  %v1047_v14 = vunpack.c.l.bf16 %v1794_v58 }
  0x1d   : > { %v1073_v10 = vmax.f32 %v932_v61, %v1045_v25  ;;  %v584_v13 = vmax.f32 %v443_v63, %v556_v42  ;;  %v1537_v18 = vunpack.c.l.bf16 %v1945_v1  ;;  %v444_v19 = vmax.f32 %v303_v5, %v375_v49  ;;  %v1483_v61 = vld [vmem:[%s1894_s29 + $0x10] sm:$0xf] }
  0x1e   : > { %v1358_v17 = vsel %vm370_vm0, %v1356_v3, %v1948_v4  ;;  %v907_v20 = vunpack.c.l.bf16 %v851_v2  ;;  %v1214_v23 = vmax.f32 %v1074_v12, %v1186_v46  ;;  %v1048_v25 = vunpack.c.l.bf16 %v1795_v7  ;;  %v1756_v12 = vld [vmem:[%s1879_s20 + $0x20] sm:$0xff]  }
  0x1f   : > { %v1213_v22 = vmax.f32 %v1073_v10, %v1185_v9  ;;  %v794_v24 = vmax.f32 %v584_v13, %v727_v0  ;;  %v585_v27 = vmax.f32 %v444_v19, %v557_v6  ;;  %v304_v28 = vunpack.c.l.bf16 %v262_v15  ;;  %v264_v10 = vld [vmem:[%s1879_s20 + $0x18] sm:$0xff]  }
  0x20   : > { %v330_v29 = vunpack.c.h.bf16 %v262_v15  ;;  %v558_v30 = vunpack.c.l.bf16 %v1754_v16  ;;  %v1424_v32 = vmax.f32 %v1214_v23, %v1915_v21  ;;  %v682_v37 = vunpack.c.h.bf16 %v1754_v16  ;;  %v1133_v21 = vld [vmem:[%s1889_s26 + $0x10] sm:$0xff]   ;;  %v1797_v16 = vld [vmem:[%s1884_s23 + $0x1c] sm:$0x7] }
  0x21   : > { %v1423_v31 = vmax.f32 %v1213_v22, %v1930_v36  ;;  %v934_v33 = vmax.f32 %v794_v24, %v906_v57  ;;  %v795_v8 = vmax.f32 %v585_v27, %v726_v53  ;;  %v377_v9 = vrot.slane %v304_v28, 1  ;;  %v1134_v23 = vld [vmem:[%s1889_s26 + $0x14] sm:$0x7] }
  0x22   : > { %v378_v38 = vrot.slane %v330_v29, 1  ;;  %v728_v39 = vrot.slane %v558_v30, 1  ;;  %v1564_v41 = vmax.f32 %v1424_v32, %v1536_v47  ;;  %v1965_v43 = vrot.slane %v682_v37, 1  ;;  %v2000_v32 = vld [vmem:[%s1889_s26 + $0x18] sm:$0xff]  }
  0x23   : > { %v1563_v40 = vmax.f32 %v1423_v31, %v1535_v26  ;;  %v1075_v42 = vmax.f32 %v934_v33, %v1047_v14  ;;  %v935_v36 = vmax.f32 %v795_v8, %v907_v20  ;;  %v1188_v44 = vunpack.c.l.bf16 %v1132_v34  ;;  %v263_v26 = vld [vmem:[%s1879_s20 + $0x14] sm:$0x7] }
  0x24   : > { %v1538_v45 = vunpack.c.l.bf16 %v1482_v35  ;;  %v379_v46 = vsel %vm370_vm0, %v377_v9, %v378_v38  ;;  %v1592_v48 = vpack.c.bf16 %v1564_v41, %v1564_v41  ;;  %v730_v53 = vsel %vm370_vm0, %v728_v39, %v1965_v43  ;;  %v1757_v41 = vld [vmem:[%s1879_s20 + $0x24] sm:$0x7] }
  0x25   : > { %v1591_v47 = vpack.c.bf16 %v1563_v40, %v1563_v40  ;;  %v1215_v49 = vmax.f32 %v1075_v42, %v1187_v59  ;;  %v445_v50 = vmax.f32 %v304_v28, %v379_v46  ;;  %v1076_v52 = vmax.f32 %v935_v36, %v1048_v25  ;;  %v853_v59 = vld [vmem:[%s1884_s23 + $0x14] sm:$0x7]  ;;  %v265_v40 = vld [vmem:[%s1879_s20 + $0x1c] sm:$0x7] }
  0x26   : > { %v1189_v55 = vunpack.c.l.bf16 %v1133_v21  ;;  %v1313_v56 = vunpack.c.h.bf16 %v1133_v21  ;;  %v908_v60 = vunpack.c.l.bf16 %v852_v11  ;;  %v305_v62 = vunpack.c.l.bf16 %v263_v26  ;;  %1622 = vst.msk [vmem:[%s1971_s7 + $0x4] sm:$0x7] %vm1621_vm2, %v1592_v48  ;;  %v854_v21 = vld [vmem:[%s1884_s23 + $0x18] sm:$0xf] }
  0x27   : > { %1620 = vst.msk [vmem:[%s1971_s7] sm:$0xf] %vm1619_vm1, %v1591_v47  ;;  %v1425_v57 = vmax.f32 %v1215_v49, %v1358_v17  ;;  %v586_v58 = vmax.f32 %v445_v50, %v558_v30  ;;  %v1216_v63 = vmax.f32 %v1076_v52, %v1188_v44  ;;  %v559_v2 = vunpack.c.l.bf16 %v1755_v51  ;;  %v1484_v30 = vld [vmem:[%s1894_s29 + $0x14] sm:$0x7]  ;;  %v1798_v47 = vld [vmem:[%s1884_s23 + $0x20] sm:$0xf] }
  0x28   : > { %v1359_v0 = vrot.slane %v1189_v55, 1  ;;  %v1986_v1 = vrot.slane %v1313_v56, 1  ;;  %v1049_v6 = vunpack.c.l.bf16 %v1796_v54  ;;  %v446_v7 = vmax.f32 %v305_v62, %v378_v38  ;;  %v2013_v48 = vld [vmem:[%s1894_s29 + $0x18] sm:$0xf]  ;;  %v855_v49 = vld [vmem:[%s1884_s23 + $0x1c] sm:$0x7] }
  0x29   : > { %v1565_v3 = vmax.f32 %v1425_v57, %v1537_v18  ;;  %v796_v5 = vmax.f32 %v586_v58, %v730_v53  ;;  %v1426_v13 = vmax.f32 %v1216_v63, %v1948_v4  ;;  %v1539_v14 = vunpack.c.l.bf16 %v1483_v61  ;;  %v266_v58 = vld [vmem:[%s1879_s20 + $0x20] sm:$0xff]  }
  0x2a   : > { %v909_v15 = vunpack.c.l.bf16 %v853_v59  ;;  %v1361_v20 = vsel %vm370_vm0, %v1359_v0, %v1986_v1  ;;  %v587_v22 = vmax.f32 %v446_v7, %v559_v2  ;;  %v306_v24 = vunpack.c.l.bf16 %v264_v10  ;;  %v1799_v0 = vld [vmem:[%s1884_s23 + $0x24] sm:$0x7] }
  0x2b   : > { %v1593_v17 = vpack.c.bf16 %v1565_v3, %v1565_v3  ;;  %v936_v19 = vmax.f32 %v796_v5, %v908_v60  ;;  %v1566_v18 = vmax.f32 %v1426_v13, %v1538_v45  ;;  %v331_v25 = vunpack.c.h.bf16 %v264_v10  ;;  %v1758_v60 = vld [vmem:[%s1879_s20 + $0x28] sm:$0xff]   ;;  %v1136_v10 = vld [vmem:[%s1889_s26 + $0x1c] sm:$0x7] }
  0x2c   : > { %v560_v27 = vunpack.c.l.bf16 %v1756_v12  ;;  %v797_v28 = vmax.f32 %v587_v22, %v1965_v43  ;;  %v1050_v29 = vunpack.c.l.bf16 %v1797_v16  ;;  %v683_v31 = vunpack.c.h.bf16 %v1756_v12 }
  0x2d   : > { %1623 = vst.msk [vmem:[%s1971_s7 + $0x8] sm:$0xf] %vm1619_vm1, %v1593_v17  ;;  %v1077_v4 = vmax.f32 %v936_v19, %v1049_v6  ;;  %v1594_v33 = vpack.c.bf16 %v1566_v18, %v1566_v18  ;;  %v380_v34 = vrot.slane %v306_v24, 1  ;;  %v381_v35 = vrot.slane %v331_v25, 1  ;;  %v1486_v19 = vld [vmem:[%s1894_s29 + $0x1c] sm:$0x7] }
  0x2e   : > { %v731_v37 = vrot.slane %v560_v27, 1  ;;  %v937_v9 = vmax.f32 %v797_v28, %v909_v15  ;;  %v1190_v38 = vunpack.c.l.bf16 %v1134_v23  ;;  %v732_v39 = vrot.slane %v683_v31, 1  ;;  %v856_v25 = vld [vmem:[%s1884_s23 + $0x20] sm:$0xf]  ;;  %v267_v31 = vld [vmem:[%s1879_s20 + $0x24] sm:$0x7] }
  0x2f   : > { %v1217_v8 = vmax.f32 %v1077_v4, %v1189_v55  ;;  %1624 = vst.msk [vmem:[%s1971_s7 + $0xc] sm:$0x7] %vm1621_vm2, %v1594_v33  ;;  %v1540_v42 = vunpack.c.l.bf16 %v1484_v30  ;;  %v382_v43 = vsel %vm370_vm0, %v380_v34, %v381_v35  ;;  %v1191_v36 = vunpack.c.l.bf16 %v2000_v32  ;;  %v1800_v30 = vld [vmem:[%s1884_s23 + $0x28] sm:$0xf] }
  0x30   : > { %v1314_v44 = vunpack.c.h.bf16 %v2000_v32  ;;  %v1078_v46 = vmax.f32 %v937_v9, %v1050_v29  ;;  %v447_v11 = vmax.f32 %v306_v24, %v382_v43  ;;  %v733_v26 = vsel %vm370_vm0, %v731_v37, %v732_v39  ;;  %v2039_v37 = vld [vmem:[%s1894_s29 + $0x20] sm:$0xf] }
  0x31   : > { %v1427_v45 = vmax.f32 %v1217_v8, %v1361_v20  ;;  %v1362_v50 = vrot.slane %v1191_v36, 1  ;;  %v307_v52 = vunpack.c.l.bf16 %v265_v40  ;;  %v561_v53 = vunpack.c.l.bf16 %v1757_v41  ;;  %v1759_v8 = vld [vmem:[%s1879_s20 + $0x2c] sm:$0x7] }
  0x32   : > { %v2016_v51 = vrot.slane %v1314_v44, 1  ;;  %v1218_v55 = vmax.f32 %v1078_v46, %v1190_v38  ;;  %v588_v56 = vmax.f32 %v447_v11, %v560_v27  ;;  %v910_v57 = vunpack.c.l.bf16 %v854_v21  ;;  %v857_v44 = vld [vmem:[%s1884_s23 + $0x24] sm:$0x7] }
  0x33   : > { %v1567_v54 = vmax.f32 %v1427_v45, %v1539_v14  ;;  %v1051_v61 = vunpack.c.l.bf16 %v1798_v47  ;;  %v1541_v62 = vunpack.c.l.bf16 %v2013_v48  ;;  %v448_v59 = vmax.f32 %v307_v52, %v381_v35  ;;  %v1801_v45 = vld [vmem:[%s1884_s23 + $0x2c] sm:$0x7] }
  0x34   : > { %v911_v63 = vunpack.c.l.bf16 %v855_v49  ;;  %v1428_v3 = vmax.f32 %v1218_v55, %v1986_v1  ;;  %v798_v5 = vmax.f32 %v588_v56, %v733_v26  ;;  %v1364_v6 = vsel %vm370_vm0, %v1362_v50, %v2016_v51  ;;  %v2030_v1 = vld [vmem:[%s1889_s26 + $0x20] sm:$0xff]   ;;  %v268_v48 = vld [vmem:[%s1879_s20 + $0x28] sm:$0xff]  }
  0x35   : > { %v1595_v2 = vpack.c.bf16 %v1567_v54, %v1567_v54  ;;  %v589_v7 = vmax.f32 %v448_v59, %v561_v53  ;;  %v308_v12 = vunpack.c.l.bf16 %v266_v58  ;;  %v332_v13 = vunpack.c.h.bf16 %v266_v58  ;;  %v1760_v53 = vld [vmem:[%s1879_s20 + $0x30] sm:$0xff]  }
  0x36   : > { %v562_v14 = vunpack.c.l.bf16 %v1758_v60  ;;  %v1568_v15 = vmax.f32 %v1428_v3, %v1540_v42  ;;  %v938_v16 = vmax.f32 %v798_v5, %v910_v57  ;;  %v1052_v17 = vunpack.c.l.bf16 %v1799_v0 }
  0x37   : > { %1625 = vst.msk [vmem:[%s1971_s7 + $0x10] sm:$0xf] %vm1619_vm1, %v1595_v2  ;;  %v684_v20 = vunpack.c.h.bf16 %v1758_v60  ;;  %v799_v22 = vmax.f32 %v589_v7, %v732_v39  ;;  %v383_v18 = vrot.slane %v308_v12, 1  ;;  %v384_v23 = vrot.slane %v332_v13, 1  ;;  %v1138_v2 = vld [vmem:[%s1889_s26 + $0x24] sm:$0x7] }
  0x38   : > { %v734_v24 = vrot.slane %v562_v14, 1  ;;  %v1596_v27 = vpack.c.bf16 %v1568_v15, %v1568_v15  ;;  %v1079_v4 = vmax.f32 %v938_v16, %v1051_v61  ;;  %v1192_v28 = vunpack.c.l.bf16 %v1136_v10  ;;  %v2056_v13 = vld [vmem:[%s1889_s26 + $0x28] sm:$0xff]  }
  0x39   : > { %v735_v29 = vrot.slane %v684_v20, 1  ;;  %v939_v32 = vmax.f32 %v799_v22, %v911_v63  ;;  %v385_v33 = vsel %vm370_vm0, %v383_v18, %v384_v23  ;;  %v1193_v34 = vunpack.c.l.bf16 %v2030_v1  ;;  %v858_v18 = vld [vmem:[%s1884_s23 + $0x28] sm:$0xf] }
  0x3a   : > { %v1315_v35 = vunpack.c.h.bf16 %v2030_v1  ;;  %1626 = vst.msk [vmem:[%s1971_s7 + $0x14] sm:$0x7] %vm1621_vm2, %v1596_v27  ;;  %v1219_v9 = vmax.f32 %v1079_v4, %v1191_v36  ;;  %v1542_v38 = vunpack.c.l.bf16 %v1486_v19  ;;  %v449_v39 = vmax.f32 %v308_v12, %v385_v33  ;;  %v1802_v4 = vld [vmem:[%s1884_s23 + $0x30] sm:$0xf]  ;;  %v859_v33 = vld [vmem:[%s1884_s23 + $0x2c] sm:$0x7] }
  0x3b   : > { %v912_v40 = vunpack.c.l.bf16 %v856_v25  ;;  %v1080_v41 = vmax.f32 %v939_v32, %v1052_v17  ;;  %v736_v42 = vsel %vm370_vm0, %v734_v24, %v735_v29  ;;  %v1053_v43 = vunpack.c.l.bf16 %v1800_v30  ;;  %v269_v17 = vld [vmem:[%s1879_s20 + $0x2c] sm:$0x7] }
  0x3c   : > { %v309_v21 = vunpack.c.l.bf16 %v267_v31  ;;  %v1429_v46 = vmax.f32 %v1219_v9, %v1364_v6  ;;  %v590_v11 = vmax.f32 %v449_v39, %v562_v14  ;;  %v1543_v26 = vunpack.c.l.bf16 %v2039_v37  ;;  %v1803_v9 = vld [vmem:[%s1884_s23 + $0x34] sm:$0x7] }
  0x3d   : > { %v563_v47 = vunpack.c.l.bf16 %v1759_v8  ;;  %v1220_v49 = vmax.f32 %v1080_v41, %v1192_v28  ;;  %v1365_v36 = vrot.slane %v1193_v34, 1  ;;  %v2049_v50 = vrot.slane %v1315_v35, 1 }
  0x3e   : > { %v450_v52 = vmax.f32 %v309_v21, %v384_v23  ;;  %v1569_v54 = vmax.f32 %v1429_v46, %v1541_v62  ;;  %v800_v55 = vmax.f32 %v590_v11, %v736_v42  ;;  %v913_v56 = vunpack.c.l.bf16 %v857_v44  ;;  %v1488_v62 = vld [vmem:[%s1894_s29 + $0x24] sm:$0x7]  ;;  %v1761_v23 = vld [vmem:[%s1879_s20 + $0x34] sm:$0x7]  ;;  %v1762_v11 = vld [vmem:[%s1879_s20 + $0x38] sm:$0xff]  }
  0x3f   : > { %v1054_v57 = vunpack.c.l.bf16 %v1801_v45  ;;  %v1430_v58 = vmax.f32 %v1220_v49, %v2016_v51  ;;  %v310_v61 = vunpack.c.l.bf16 %v268_v48  ;;  %v333_v59 = vunpack.c.h.bf16 %v268_v48 }
  0x40   : > { %v591_v60 = vmax.f32 %v450_v52, %v563_v47  ;;  %v1597_v63 = vpack.c.bf16 %v1569_v54, %v1569_v54  ;;  %v940_v0 = vmax.f32 %v800_v55, %v912_v40  ;;  %v564_v3 = vunpack.c.l.bf16 %v1760_v53 }
  0x41   : > { %v685_v5 = vunpack.c.h.bf16 %v1760_v53  ;;  %v1570_v6 = vmax.f32 %v1430_v58, %v1542_v38  ;;  %v386_v10 = vrot.slane %v310_v61, 1  ;;  %v387_v12 = vrot.slane %v333_v59, 1  ;;  %v1140_v38 = vld [vmem:[%s1889_s26 + $0x2c] sm:$0x7] }
  0x42   : > { %v801_v7 = vmax.f32 %v591_v60, %v735_v29  ;;  %1627 = vst.msk [vmem:[%s1971_s7 + $0x18] sm:$0xf] %vm1619_vm1, %v1597_v63  ;;  %v1081_v51 = vmax.f32 %v940_v0, %v1053_v43  ;;  %v1367_v14 = vsel %vm370_vm0, %v1365_v36, %v2049_v50  ;;  %v737_v15 = vrot.slane %v564_v3, 1  ;;  %v270_v43 = vld [vmem:[%s1879_s20 + $0x30] sm:$0xff]   ;;  %v1490_v63 = vld [vmem:[%s1894_s29 + $0x2c] sm:$0x7] }
  0x43   : > { %v738_v16 = vrot.slane %v685_v5, 1  ;;  %v1598_v19 = vpack.c.bf16 %v1570_v6, %v1570_v6  ;;  %v1194_v1 = vunpack.c.l.bf16 %v1138_v2  ;;  %v388_v22 = vsel %vm370_vm0, %v386_v10, %v387_v12  ;;  %v271_v10 = vld [vmem:[%s1879_s20 + $0x34] sm:$0x7] }
  0x44   : > { %v941_v20 = vmax.f32 %v801_v7, %v913_v56  ;;  %v1221_v24 = vmax.f32 %v1081_v51, %v1193_v34  ;;  %v1544_v25 = vunpack.c.l.bf16 %v1488_v62  ;;  %v451_v27 = vmax.f32 %v310_v61, %v388_v22  ;;  %v2082_v61 = vld [vmem:[%s1889_s26 + $0x30] sm:$0xff]  }
  0x45   : > { %v1195_v28 = vunpack.c.l.bf16 %v2056_v13  ;;  %1628 = vst.msk [vmem:[%s1971_s7 + $0x1c] sm:$0x7] %vm1621_vm2, %v1598_v19  ;;  %v739_v30 = vsel %vm370_vm0, %v737_v15, %v738_v16  ;;  %v1316_v31 = vunpack.c.h.bf16 %v2056_v13  ;;  %v311_v32 = vunpack.c.l.bf16 %v269_v17  ;;  %v860_v62 = vld [vmem:[%s1884_s23 + $0x30] sm:$0xf] }
  0x46   : > { %v1082_v29 = vmax.f32 %v941_v20, %v1054_v57  ;;  %v1431_v35 = vmax.f32 %v1221_v24, %v1367_v14  ;;  %v592_v37 = vmax.f32 %v451_v27, %v564_v3  ;;  %v914_v34 = vunpack.c.l.bf16 %v858_v18  ;;  %v1804_v14 = vld [vmem:[%s1884_s23 + $0x38] sm:$0xf]  ;;  %v2100_v24 = vld [vmem:[%s1894_s29 + $0x30] sm:$0xf]  ;;  %v861_v27 = vld [vmem:[%s1884_s23 + $0x34] sm:$0x7] }
  0x47   : > { %v565_v8 = vunpack.c.l.bf16 %v1761_v23  ;;  %v1055_v40 = vunpack.c.l.bf16 %v1802_v4  ;;  %v1368_v41 = vrot.slane %v1195_v28, 1  ;;  %v452_v42 = vmax.f32 %v311_v32, %v387_v12  ;;  %v272_v32 = vld [vmem:[%s1879_s20 + $0x38] sm:$0xff]  }
  0x48   : > { %v1222_v39 = vmax.f32 %v1082_v29, %v1194_v1  ;;  %v1571_v21 = vmax.f32 %v1431_v35, %v1543_v26  ;;  %v802_v44 = vmax.f32 %v592_v37, %v739_v30  ;;  %v2076_v45 = vrot.slane %v1316_v31, 1  ;;  %v1489_v26 = vld [vmem:[%s1894_s29 + $0x28] sm:$0xf]  ;;  %v1805_v31 = vld [vmem:[%s1884_s23 + $0x3c] sm:$0x7] }
  0x49   : > { %v915_v46 = vunpack.c.l.bf16 %v859_v33  ;;  %v593_v48 = vmax.f32 %v452_v42, %v565_v8  ;;  %v1056_v49 = vunpack.c.l.bf16 %v1803_v9  ;;  %v1196_v36 = vunpack.c.l.bf16 %v1140_v38  ;;  %v1764_v8 = vld [vmem:[%s1879_s20 + $0x40] sm:$0xff]  }
  0x4a   : > { %v1432_v47 = vmax.f32 %v1222_v39, %v2049_v50  ;;  %v1599_v52 = vpack.c.bf16 %v1571_v21, %v1571_v21  ;;  %v942_v53 = vmax.f32 %v802_v44, %v914_v34  ;;  %v312_v54 = vunpack.c.l.bf16 %v270_v43 }
  0x4b   : > { %v334_v55 = vunpack.c.h.bf16 %v270_v43  ;;  %v803_v57 = vmax.f32 %v593_v48, %v738_v16  ;;  %v566_v58 = vunpack.c.l.bf16 %v1762_v11  ;;  %v686_v60 = vunpack.c.h.bf16 %v1762_v11  ;;  %v1763_v16 = vld [vmem:[%s1879_s20 + $0x3c] sm:$0x7]  ;;  %v1142_v11 = vld [vmem:[%s1889_s26 + $0x34] sm:$0x7] }
  0x4c   : > { %v1572_v56 = vmax.f32 %v1432_v47, %v1544_v25  ;;  %1629 = vst.msk [vmem:[%s1971_s7 + $0x20] sm:$0xf] %vm1619_vm1, %v1599_v52  ;;  %v1083_v50 = vmax.f32 %v942_v53, %v1055_v40  ;;  %v1370_v59 = vsel %vm370_vm0, %v1368_v41, %v2076_v45  ;;  %v389_v0 = vrot.slane %v312_v54, 1  ;;  %v1492_v52 = vld [vmem:[%s1894_s29 + $0x34] sm:$0x7] }
  0x4d   : > { %v390_v2 = vrot.slane %v334_v55, 1  ;;  %v943_v5 = vmax.f32 %v803_v57, %v915_v46  ;;  %v740_v6 = vrot.slane %v566_v58, 1  ;;  %v741_v7 = vrot.slane %v686_v60, 1  ;;  %v1806_v60 = vld [vmem:[%s1884_s23 + $0x40] sm:$0xf] }
  0x4e   : > { %v1600_v3 = vpack.c.bf16 %v1572_v56, %v1572_v56  ;;  %v1223_v12 = vmax.f32 %v1083_v50, %v1195_v28  ;;  %v1545_v13 = vunpack.c.l.bf16 %v1489_v26  ;;  %v1197_v15 = vunpack.c.l.bf16 %v2082_v61 }
  0x4f   : > { %v391_v51 = vsel %vm370_vm0, %v389_v0, %v390_v2  ;;  %v1084_v17 = vmax.f32 %v943_v5, %v1056_v49  ;;  %v1546_v19 = vunpack.c.l.bf16 %v1490_v63  ;;  %v1317_v1 = vunpack.c.h.bf16 %v2082_v61  ;;  %v2112_v49 = vld [vmem:[%s1889_s26 + $0x38] sm:$0xff]  }
  0x50   : > { %1630 = vst.msk [vmem:[%s1971_s7 + $0x24] sm:$0x7] %vm1621_vm2, %v1600_v3  ;;  %v453_v20 = vmax.f32 %v312_v54, %v391_v51  ;;  %v1433_v22 = vmax.f32 %v1223_v12, %v1370_v59  ;;  %v742_v18 = vsel %vm370_vm0, %v740_v6, %v741_v7  ;;  %v916_v23 = vunpack.c.l.bf16 %v860_v62  ;;  %v273_v0 = vld [vmem:[%s1879_s20 + $0x3c] sm:$0x7]  ;;  %v2129_v62 = vld [vmem:[%s1894_s29 + $0x38] sm:$0xf] }
  0x51   : > { %v313_v25 = vunpack.c.l.bf16 %v271_v10  ;;  %v1224_v4 = vmax.f32 %v1084_v17, %v1196_v36  ;;  %v1057_v29 = vunpack.c.l.bf16 %v1804_v14  ;;  %v567_v30 = vunpack.c.l.bf16 %v1763_v16  ;;  %v863_v14 = vld [vmem:[%s1884_s23 + $0x3c] sm:$0x7] }
  0x52   : > { %v594_v28 = vmax.f32 %v453_v20, %v566_v58  ;;  %v1573_v33 = vmax.f32 %v1433_v22, %v1545_v13  ;;  %v1371_v35 = vrot.slane %v1197_v15, 1  ;;  %v2105_v37 = vrot.slane %v1317_v1, 1  ;;  %v862_v58 = vld [vmem:[%s1884_s23 + $0x38] sm:$0xf]  ;;  %v1807_v1 = vld [vmem:[%s1884_s23 + $0x44] sm:$0x7] }
  0x53   : > { %v454_v34 = vmax.f32 %v313_v25, %v390_v2  ;;  %v1434_v9 = vmax.f32 %v1224_v4, %v2076_v45  ;;  %v1547_v39 = vunpack.c.l.bf16 %v2100_v24  ;;  %v917_v40 = vunpack.c.l.bf16 %v861_v27  ;;  %v1765_v2 = vld [vmem:[%s1879_s20 + $0x44] sm:$0x7]  ;;  %v1766_v25 = vld [vmem:[%s1879_s20 + $0x48] sm:$0xff]  }
  0x54   : > { %v804_v38 = vmax.f32 %v594_v28, %v742_v18  ;;  %v1601_v41 = vpack.c.bf16 %v1573_v33, %v1573_v33  ;;  %v1058_v43 = vunpack.c.l.bf16 %v1805_v31  ;;  %v314_v21 = vunpack.c.l.bf16 %v272_v32 }
  0x55   : > { %v595_v42 = vmax.f32 %v454_v34, %v567_v30  ;;  %v1574_v44 = vmax.f32 %v1434_v9, %v1546_v19  ;;  %v335_v47 = vunpack.c.h.bf16 %v272_v32  ;;  %v568_v48 = vunpack.c.l.bf16 %v1764_v8 }
  0x56   : > { %v944_v46 = vmax.f32 %v804_v38, %v916_v23  ;;  %1631 = vst.msk [vmem:[%s1971_s7 + $0x28] sm:$0xf] %vm1619_vm1, %v1601_v41  ;;  %v1373_v45 = vsel %vm370_vm0, %v1371_v35, %v2105_v37  ;;  %v392_v53 = vrot.slane %v314_v21, 1  ;;  %v687_v54 = vunpack.c.h.bf16 %v1764_v8  ;;  %v1144_v8 = vld [vmem:[%s1889_s26 + $0x3c] sm:$0x7] }
  0x57   : > { %v805_v36 = vmax.f32 %v595_v42, %v741_v7  ;;  %v1602_v55 = vpack.c.bf16 %v1574_v44, %v1574_v44  ;;  %v393_v26 = vrot.slane %v335_v47, 1  ;;  %v743_v57 = vrot.slane %v568_v48, 1 }
  0x58   : > { %v1085_v56 = vmax.f32 %v944_v46, %v1057_v29  ;;  %v1198_v50 = vunpack.c.l.bf16 %v1142_v11  ;;  %v744_v59 = vrot.slane %v687_v54, 1  ;;  %v1199_v63 = vunpack.c.l.bf16 %v2112_v49  ;;  %v1494_v46 = vld [vmem:[%s1894_s29 + $0x3c] sm:$0x7]  ;;  %v275_v54 = vld [vmem:[%s1879_s20 + $0x44] sm:$0x7] }
  0x59   : > { %v945_v61 = vmax.f32 %v805_v36, %v917_v40  ;;  %1632 = vst.msk [vmem:[%s1971_s7 + $0x2c] sm:$0x7] %vm1621_vm2, %v1602_v55  ;;  %v1548_v5 = vunpack.c.l.bf16 %v1492_v52  ;;  %v394_v6 = vsel %vm370_vm0, %v392_v53, %v393_v26  ;;  %v1318_v7 = vunpack.c.h.bf16 %v2112_v49  ;;  %v1808_v53 = vld [vmem:[%s1884_s23 + $0x48] sm:$0xf] }
  0x5a   : > { %v1225_v3 = vmax.f32 %v1085_v56, %v1197_v15  ;;  %v455_v12 = vmax.f32 %v314_v21, %v394_v6  ;;  %v918_v13 = vunpack.c.l.bf16 %v862_v58  ;;  %v1059_v51 = vunpack.c.l.bf16 %v1806_v60  ;;  %v274_v15 = vld [vmem:[%s1879_s20 + $0x40] sm:$0xff]   ;;  %v1767_v60 = vld [vmem:[%s1879_s20 + $0x4c] sm:$0x7] }
  0x5b   : > { %v1086_v10 = vmax.f32 %v945_v61, %v1058_v43  ;;  %v745_v17 = vsel %vm370_vm0, %v743_v57, %v744_v59  ;;  %v315_v19 = vunpack.c.l.bf16 %v273_v0  ;;  %v569_v20 = vunpack.c.l.bf16 %v1765_v2  ;;  %v864_v43 = vld [vmem:[%s1884_s23 + $0x40] sm:$0xf] }
  0x5c   : > { %v1435_v16 = vmax.f32 %v1225_v3, %v1373_v45  ;;  %v596_v18 = vmax.f32 %v455_v12, %v568_v48  ;;  %v1374_v23 = vrot.slane %v1199_v63, 1  ;;  %v1549_v24 = vunpack.c.l.bf16 %v2129_v62  ;;  %v2145_v21 = vld [vmem:[%s1889_s26 + $0x40] sm:$0xff]   ;;  %v1809_v62 = vld [vmem:[%s1884_s23 + $0x4c] sm:$0x7] }
  0x5d   : > { %v1226_v22 = vmax.f32 %v1086_v10, %v1198_v50  ;;  %v2139_v4 = vrot.slane %v1318_v7, 1  ;;  %v456_v28 = vmax.f32 %v315_v19, %v393_v26  ;;  %v919_v29 = vunpack.c.l.bf16 %v863_v14  ;;  %v2158_v58 = vld [vmem:[%s1894_s29 + $0x40] sm:$0xf]  ;;  %v865_v7 = vld [vmem:[%s1884_s23 + $0x44] sm:$0x7]  ;;  %v276_v14 = vld [vmem:[%s1879_s20 + $0x48] sm:$0xff]  }
  0x5e   : > { %v1575_v27 = vmax.f32 %v1435_v16, %v1547_v39  ;;  %v806_v31 = vmax.f32 %v596_v18, %v745_v17  ;;  %v1060_v32 = vunpack.c.l.bf16 %v1807_v1  ;;  %v316_v33 = vunpack.c.l.bf16 %v274_v15  ;;  %v1768_v19 = vld [vmem:[%s1879_s20 + $0x50] sm:$0xff]  }
  0x5f   : > { %v1436_v30 = vmax.f32 %v1226_v22, %v2105_v37  ;;  %v597_v34 = vmax.f32 %v456_v28, %v569_v20  ;;  %v336_v9 = vunpack.c.h.bf16 %v274_v15  ;;  %v570_v38 = vunpack.c.l.bf16 %v1766_v25 }
  0x60   : > { %v1603_v35 = vpack.c.bf16 %v1575_v27, %v1575_v27  ;;  %v946_v39 = vmax.f32 %v806_v31, %v918_v13  ;;  %v395_v41 = vrot.slane %v316_v33, 1  ;;  %v688_v42 = vunpack.c.h.bf16 %v1766_v25 }
  0x61   : > { %v1576_v40 = vmax.f32 %v1436_v30, %v1548_v5  ;;  %v1376_v37 = vsel %vm370_vm0, %v1374_v23, %v2139_v4  ;;  %v807_v44 = vmax.f32 %v597_v34, %v744_v59  ;;  %v396_v11 = vrot.slane %v336_v9, 1  ;;  %v1146_v30 = vld [vmem:[%s1889_s26 + $0x44] sm:$0x7]  ;;  %v2177_v9 = vld [vmem:[%s1889_s26 + $0x48] sm:$0xff]  }
  0x62   : > { %1633 = vst.msk [vmem:[%s1971_s7 + $0x30] sm:$0xf] %vm1619_vm1, %v1603_v35  ;;  %v746_v47 = vrot.slane %v570_v38, 1  ;;  %v1087_v45 = vmax.f32 %v946_v39, %v1059_v51  ;;  %v1200_v36 = vunpack.c.l.bf16 %v1144_v8  ;;  %v747_v52 = vrot.slane %v688_v42, 1 }
  0x63   : > { %v1604_v48 = vpack.c.bf16 %v1576_v40, %v1576_v40  ;;  %v947_v55 = vmax.f32 %v807_v44, %v919_v29  ;;  %v397_v56 = vsel %vm370_vm0, %v395_v41, %v396_v11  ;;  %v1201_v26 = vunpack.c.l.bf16 %v2145_v21  ;;  %v277_v41 = vld [vmem:[%s1879_s20 + $0x4c] sm:$0x7]  ;;  %v866_v44 = vld [vmem:[%s1884_s23 + $0x48] sm:$0xf] }
  0x64   : > { %v1319_v57 = vunpack.c.h.bf16 %v2145_v21  ;;  %v1227_v61 = vmax.f32 %v1087_v45, %v1199_v63  ;;  %v1550_v50 = vunpack.c.l.bf16 %v1494_v46  ;;  %v457_v59 = vmax.f32 %v316_v33, %v397_v56  ;;  %v1769_v46 = vld [vmem:[%s1879_s20 + $0x54] sm:$0x7]  ;;  %v1810_v45 = vld [vmem:[%s1884_s23 + $0x50] sm:$0xf]  ;;  %v867_v56 = vld [vmem:[%s1884_s23 + $0x4c] sm:$0x7] }
  0x65   : > { %1634 = vst.msk [vmem:[%s1971_s7 + $0x34] sm:$0x7] %vm1621_vm2, %v1604_v48  ;;  %v920_v0 = vunpack.c.l.bf16 %v864_v43  ;;  %v1088_v2 = vmax.f32 %v947_v55, %v1060_v32  ;;  %v748_v3 = vsel %vm370_vm0, %v746_v47, %v747_v52  ;;  %v1061_v5 = vunpack.c.l.bf16 %v1808_v53 }
  0x66   : > { %v317_v6 = vunpack.c.l.bf16 %v275_v54  ;;  %v1437_v10 = vmax.f32 %v1227_v61, %v1376_v37  ;;  %v598_v12 = vmax.f32 %v457_v59, %v570_v38  ;;  %v1551_v13 = vunpack.c.l.bf16 %v2158_v58  ;;  %v1811_v61 = vld [vmem:[%s1884_s23 + $0x54] sm:$0x7] }
  0x67   : > { %v571_v51 = vunpack.c.l.bf16 %v1767_v60  ;;  %v1228_v49 = vmax.f32 %v1088_v2, %v1200_v36  ;;  %v1377_v63 = vrot.slane %v1201_v26, 1  ;;  %v2170_v16 = vrot.slane %v1319_v57, 1 }
  0x68   : > { %v458_v17 = vmax.f32 %v317_v6, %v396_v11  ;;  %v1577_v20 = vmax.f32 %v1437_v10, %v1549_v24  ;;  %v808_v1 = vmax.f32 %v598_v12, %v748_v3  ;;  %v921_v15 = vunpack.c.l.bf16 %v865_v7  ;;  %v1496_v24 = vld [vmem:[%s1894_s29 + $0x44] sm:$0x7]  ;;  %v1770_v12 = vld [vmem:[%s1879_s20 + $0x58] sm:$0xff]  }
  0x69   : > { %v1062_v22 = vunpack.c.l.bf16 %v1809_v62  ;;  %v1438_v18 = vmax.f32 %v1228_v49, %v2139_v4  ;;  %v318_v25 = vunpack.c.l.bf16 %v276_v14  ;;  %v337_v27 = vunpack.c.h.bf16 %v276_v14 }
  0x6a   : > { %v599_v23 = vmax.f32 %v458_v17, %v571_v51  ;;  %v1605_v28 = vpack.c.bf16 %v1577_v20, %v1577_v20  ;;  %v948_v29 = vmax.f32 %v808_v1, %v920_v0  ;;  %v572_v31 = vunpack.c.l.bf16 %v1768_v19 }
  0x6b   : > { %v689_v32 = vunpack.c.h.bf16 %v1768_v19  ;;  %v1578_v33 = vmax.f32 %v1438_v18, %v1550_v50  ;;  %v398_v34 = vrot.slane %v318_v25, 1  ;;  %v399_v8 = vrot.slane %v337_v27, 1  ;;  %v1148_v50 = vld [vmem:[%s1889_s26 + $0x4c] sm:$0x7] }
  0x6c   : > { %v809_v35 = vmax.f32 %v599_v23, %v747_v52  ;;  %1635 = vst.msk [vmem:[%s1971_s7 + $0x38] sm:$0xf] %vm1619_vm1, %v1605_v28  ;;  %v1089_v4 = vmax.f32 %v948_v29, %v1061_v5  ;;  %v1379_v38 = vsel %vm370_vm0, %v1377_v63, %v2170_v16  ;;  %v749_v40 = vrot.slane %v572_v31, 1  ;;  %v278_v5 = vld [vmem:[%s1879_s20 + $0x50] sm:$0xff]  }
  0x6d   : > { %v750_v39 = vrot.slane %v689_v32, 1  ;;  %v1606_v42 = vpack.c.bf16 %v1578_v33, %v1578_v33  ;;  %v1202_v21 = vunpack.c.l.bf16 %v1146_v30  ;;  %v400_v37 = vsel %vm370_vm0, %v398_v34, %v399_v8  ;;  %v1498_v32 = vld [vmem:[%s1894_s29 + $0x4c] sm:$0x7] }
  0x6e   : > { %v949_v43 = vmax.f32 %v809_v35, %v921_v15  ;;  %v1229_v11 = vmax.f32 %v1089_v4, %v1201_v26  ;;  %v1552_v47 = vunpack.c.l.bf16 %v1496_v24  ;;  %v459_v48 = vmax.f32 %v318_v25, %v400_v37  ;;  %v2203_v25 = vld [vmem:[%s1889_s26 + $0x50] sm:$0xff]  }
  0x6f   : > { %v1203_v36 = vunpack.c.l.bf16 %v2177_v9  ;;  %1636 = vst.msk [vmem:[%s1971_s7 + $0x3c] sm:$0x7] %vm1621_vm2, %v1606_v42  ;;  %v751_v53 = vsel %vm370_vm0, %v749_v40, %v750_v39  ;;  %v1320_v54 = vunpack.c.h.bf16 %v2177_v9  ;;  %v319_v55 = vunpack.c.l.bf16 %v277_v41  ;;  %v279_v24 = vld [vmem:[%s1879_s20 + $0x54] sm:$0x7]  ;;  %v868_v4 = vld [vmem:[%s1884_s23 + $0x50] sm:$0xf] }
  0x70   : > { %v1090_v52 = vmax.f32 %v949_v43, %v1062_v22  ;;  %v1439_v57 = vmax.f32 %v1229_v11, %v1379_v38  ;;  %v600_v58 = vmax.f32 %v459_v48, %v572_v31  ;;  %v922_v26 = vunpack.c.l.bf16 %v866_v44  ;;  %v1771_v40 = vld [vmem:[%s1879_s20 + $0x5c] sm:$0x7]  ;;  %v1812_v44 = vld [vmem:[%s1884_s23 + $0x58] sm:$0xf]  ;;  %v869_v11 = vld [vmem:[%s1884_s23 + $0x54] sm:$0x7] }
  0x71   : > { %v573_v60 = vunpack.c.l.bf16 %v1769_v46  ;;  %v1063_v0 = vunpack.c.l.bf16 %v1810_v45  ;;  %v1380_v2 = vrot.slane %v1203_v36, 1  ;;  %v460_v3 = vmax.f32 %v319_v55, %v399_v8 }
  0x72   : > { %v1230_v59 = vmax.f32 %v1090_v52, %v1202_v21  ;;  %v1579_v6 = vmax.f32 %v1439_v57, %v1551_v13  ;;  %v810_v7 = vmax.f32 %v600_v58, %v751_v53  ;;  %v2197_v62 = vrot.slane %v1320_v54, 1  ;;  %v1497_v13 = vld [vmem:[%s1894_s29 + $0x48] sm:$0xf]  ;;  %v1813_v52 = vld [vmem:[%s1884_s23 + $0x5c] sm:$0x7]  ;;  %v1772_v58 = vld [vmem:[%s1879_s20 + $0x60] sm:$0xff]  }
  0x73   : > { %v923_v10 = vunpack.c.l.bf16 %v867_v56  ;;  %v601_v14 = vmax.f32 %v460_v3, %v573_v60  ;;  %v1064_v49 = vunpack.c.l.bf16 %v1811_v61  ;;  %v1204_v63 = vunpack.c.l.bf16 %v1148_v50  ;;  %v280_v53 = vld [vmem:[%s1879_s20 + $0x58] sm:$0xff]  }
  0x74   : > { %v1440_v51 = vmax.f32 %v1230_v59, %v2170_v16  ;;  %v1607_v17 = vpack.c.bf16 %v1579_v6, %v1579_v6  ;;  %v950_v19 = vmax.f32 %v810_v7, %v922_v26  ;;  %v320_v20 = vunpack.c.l.bf16 %v278_v5  ;;  %v1150_v7 = vld [vmem:[%s1889_s26 + $0x54] sm:$0x7] }
  0x75   : > { %v338_v1 = vunpack.c.h.bf16 %v278_v5  ;;  %v811_v22 = vmax.f32 %v601_v14, %v750_v39  ;;  %v574_v18 = vunpack.c.l.bf16 %v1770_v12  ;;  %v690_v23 = vunpack.c.h.bf16 %v1770_v12  ;;  %v1499_v14 = vld [vmem:[%s1894_s29 + $0x50] sm:$0xf] }
  0x76   : > { %v1580_v15 = vmax.f32 %v1440_v51, %v1552_v47  ;;  %1637 = vst.msk [vmem:[%s1971_s7 + $0x40] sm:$0xf] %vm1619_vm1, %v1607_v17  ;;  %v1091_v16 = vmax.f32 %v950_v19, %v1063_v0  ;;  %v1382_v27 = vsel %vm370_vm0, %v1380_v2, %v2197_v62  ;;  %v401_v28 = vrot.slane %v320_v20, 1  ;;  %v2229_v51 = vld [vmem:[%s1889_s26 + $0x58] sm:$0xff]  }
  0x77   : > { %v402_v29 = vrot.slane %v338_v1, 1  ;;  %v951_v31 = vmax.f32 %v811_v22, %v923_v10  ;;  %v752_v33 = vrot.slane %v574_v18, 1  ;;  %v753_v35 = vrot.slane %v690_v23, 1  ;;  %v1500_v1 = vld [vmem:[%s1894_s29 + $0x54] sm:$0x7] }
  0x78   : > { %v1608_v30 = vpack.c.bf16 %v1580_v15, %v1580_v15  ;;  %v1231_v34 = vmax.f32 %v1091_v16, %v1203_v36  ;;  %v1553_v8 = vunpack.c.l.bf16 %v1497_v13  ;;  %v1205_v38 = vunpack.c.l.bf16 %v2203_v25  ;;  %v870_v22 = vld [vmem:[%s1884_s23 + $0x58] sm:$0xf] }
  0x79   : > { %v403_v9 = vsel %vm370_vm0, %v401_v28, %v402_v29  ;;  %v1092_v39 = vmax.f32 %v951_v31, %v1064_v49  ;;  %v1321_v42 = vunpack.c.h.bf16 %v2203_v25  ;;  %v1554_v21 = vunpack.c.l.bf16 %v1498_v32  ;;  %v1773_v28 = vld [vmem:[%s1879_s20 + $0x64] sm:$0x7]  ;;  %v1814_v32 = vld [vmem:[%s1884_s23 + $0x60] sm:$0xf] }
  0x7a   : > { %1638 = vst.msk [vmem:[%s1971_s7 + $0x44] sm:$0x7] %vm1621_vm2, %v1608_v30  ;;  %v461_v41 = vmax.f32 %v320_v20, %v403_v9  ;;  %v1441_v43 = vmax.f32 %v1231_v34, %v1382_v27  ;;  %v754_v37 = vsel %vm370_vm0, %v752_v33, %v753_v35  ;;  %v321_v46 = vunpack.c.l.bf16 %v279_v24  ;;  %v281_v27 = vld [vmem:[%s1879_s20 + $0x5c] sm:$0x7] }
  0x7b   : > { %v1232_v47 = vmax.f32 %v1092_v39, %v1204_v63  ;;  %v924_v45 = vunpack.c.l.bf16 %v868_v4  ;;  %v575_v36 = vunpack.c.l.bf16 %v1771_v40  ;;  %v1383_v55 = vrot.slane %v1205_v38, 1  ;;  %v871_v9 = vld [vmem:[%s1884_s23 + $0x5c] sm:$0x7] }
  0x7c   : > { %v602_v48 = vmax.f32 %v461_v41, %v574_v18  ;;  %v1581_v54 = vmax.f32 %v1441_v43, %v1553_v8  ;;  %v2223_v56 = vrot.slane %v1321_v42, 1  ;;  %v462_v57 = vmax.f32 %v321_v46, %v402_v29  ;;  %v1815_v42 = vld [vmem:[%s1884_s23 + $0x64] sm:$0x7]  ;;  %v1774_v46 = vld [vmem:[%s1879_s20 + $0x68] sm:$0xff]  }
  0x7d   : > { %v1442_v26 = vmax.f32 %v1232_v47, %v2197_v62  ;;  %v1065_v61 = vunpack.c.l.bf16 %v1812_v44  ;;  %v925_v50 = vunpack.c.l.bf16 %v869_v11  ;;  %v1066_v2 = vunpack.c.l.bf16 %v1813_v52  ;;  %v282_v43 = vld [vmem:[%s1879_s20 + $0x60] sm:$0xff]  }
  0x7e   : > { %v812_v60 = vmax.f32 %v602_v48, %v754_v37  ;;  %v1609_v59 = vpack.c.bf16 %v1581_v54, %v1581_v54  ;;  %v603_v0 = vmax.f32 %v462_v57, %v575_v36  ;;  %v322_v3 = vunpack.c.l.bf16 %v280_v53 }
  0x7f   : > { %v1582_v5 = vmax.f32 %v1442_v26, %v1554_v21  ;;  %v339_v10 = vunpack.c.h.bf16 %v280_v53  ;;  %v576_v12 = vunpack.c.l.bf16 %v1772_v58  ;;  %v1385_v62 = vsel %vm370_vm0, %v1383_v55, %v2223_v56 }
  0x80   : > { %v952_v6 = vmax.f32 %v812_v60, %v924_v45  ;;  %1639 = vst.msk [vmem:[%s1971_s7 + $0x48] sm:$0xf] %vm1619_vm1, %v1609_v59  ;;  %v813_v49 = vmax.f32 %v603_v0, %v753_v35  ;;  %v404_v63 = vrot.slane %v322_v3, 1  ;;  %v691_v17 = vunpack.c.h.bf16 %v1772_v58  ;;  %v1152_v58 = vld [vmem:[%s1889_s26 + $0x5c] sm:$0x7] }
  0x81   : > { %v1610_v19 = vpack.c.bf16 %v1582_v5, %v1582_v5  ;;  %v405_v15 = vrot.slane %v339_v10, 1  ;;  %v755_v13 = vrot.slane %v576_v12, 1  ;;  %v1206_v23 = vunpack.c.l.bf16 %v1150_v7  ;;  %v1501_v59 = vld [vmem:[%s1894_s29 + $0x58] sm:$0xf] }
  0x82   : > { %v1093_v20 = vmax.f32 %v952_v6, %v1065_v61  ;;  %v953_v18 = vmax.f32 %v813_v49, %v925_v50  ;;  %v756_v25 = vrot.slane %v691_v17, 1  ;;  %v1207_v16 = vunpack.c.l.bf16 %v2229_v51  ;;  %v1502_v6 = vld [vmem:[%s1894_s29 + $0x5c] sm:$0x7]  ;;  %v283_v17 = vld [vmem:[%s1879_s20 + $0x64] sm:$0x7] }
  0x83   : > { %1640 = vst.msk [vmem:[%s1971_s7 + $0x4c] sm:$0x7] %vm1621_vm2, %v1610_v19  ;;  %v1555_v30 = vunpack.c.l.bf16 %v1499_v14  ;;  %v406_v31 = vsel %vm370_vm0, %v404_v63, %v405_v15  ;;  %v1322_v33 = vunpack.c.h.bf16 %v2229_v51  ;;  %v1556_v24 = vunpack.c.l.bf16 %v1500_v1  ;;  %v872_v63 = vld [vmem:[%s1884_s23 + $0x60] sm:$0xf]  ;;  %v1816_v1 = vld [vmem:[%s1884_s23 + $0x68] sm:$0xf] }
  0x84   : > { %v1233_v29 = vmax.f32 %v1093_v20, %v1205_v38  ;;  %v1094_v35 = vmax.f32 %v953_v18, %v1066_v2  ;;  %v463_v34 = vmax.f32 %v322_v3, %v406_v31  ;;  %v926_v8 = vunpack.c.l.bf16 %v870_v22  ;;  %v2259_v3 = vld [vmem:[%s1889_s26 + $0x60] sm:$0xff]   ;;  %v1775_v22 = vld [vmem:[%s1879_s20 + $0x6c] sm:$0x7] }
  0x85   : > { %v757_v40 = vsel %vm370_vm0, %v755_v13, %v756_v25  ;;  %v323_v39 = vunpack.c.l.bf16 %v281_v27  ;;  %v577_v41 = vunpack.c.l.bf16 %v1773_v28  ;;  %v1067_v37 = vunpack.c.l.bf16 %v1814_v32  ;;  %v873_v32 = vld [vmem:[%s1884_s23 + $0x64] sm:$0x7] }
  0x86   : > { %v1443_v4 = vmax.f32 %v1233_v29, %v1385_v62  ;;  %v1234_v38 = vmax.f32 %v1094_v35, %v1206_v23  ;;  %v604_v21 = vmax.f32 %v463_v34, %v576_v12  ;;  %v1386_v44 = vrot.slane %v1207_v16, 1 }
  0x87   : > { %v2253_v47 = vrot.slane %v1322_v33, 1  ;;  %v464_v48 = vmax.f32 %v323_v39, %v405_v15  ;;  %v927_v45 = vunpack.c.l.bf16 %v871_v9  ;;  %v1068_v53 = vunpack.c.l.bf16 %v1815_v42  ;;  %v1817_v33 = vld [vmem:[%s1884_s23 + $0x6c] sm:$0x7]  ;;  %v1776_v39 = vld [vmem:[%s1879_s20 + $0x70] sm:$0xff]  }
  0x88   : > { %v1583_v11 = vmax.f32 %v1443_v4, %v1555_v30  ;;  %v1444_v36 = vmax.f32 %v1234_v38, %v2223_v56  ;;  %v814_v52 = vmax.f32 %v604_v21, %v757_v40  ;;  %v324_v54 = vunpack.c.l.bf16 %v282_v43  ;;  %v284_v9 = vld [vmem:[%s1879_s20 + $0x68] sm:$0xff]  }
  0x89   : > { %v605_v57 = vmax.f32 %v464_v48, %v577_v41  ;;  %v340_v26 = vunpack.c.h.bf16 %v282_v43  ;;  %v578_v60 = vunpack.c.l.bf16 %v1774_v46  ;;  %v692_v2 = vunpack.c.h.bf16 %v1774_v46 }
  0x8a   : > { %v1611_v55 = vpack.c.bf16 %v1583_v11, %v1583_v11  ;;  %v1584_v61 = vmax.f32 %v1444_v36, %v1556_v24  ;;  %v954_v50 = vmax.f32 %v814_v52, %v926_v8  ;;  %v407_v0 = vrot.slane %v324_v54, 1 }
  0x8b   : > { %v1388_v56 = vsel %vm370_vm0, %v1386_v44, %v2253_v47  ;;  %v815_v5 = vmax.f32 %v605_v57, %v756_v25  ;;  %v408_v7 = vrot.slane %v340_v26, 1  ;;  %v758_v10 = vrot.slane %v578_v60, 1  ;;  %v1155_v26 = vld [vmem:[%s1889_s26 + $0x68] sm:$0xff]  }
  0x8c   : > { %1641 = vst.msk [vmem:[%s1971_s7 + $0x50] sm:$0xf] %vm1619_vm1, %v1611_v55  ;;  %v1612_v12 = vpack.c.bf16 %v1584_v61, %v1584_v61  ;;  %v1095_v62 = vmax.f32 %v954_v50, %v1067_v37  ;;  %v1208_v14 = vunpack.c.l.bf16 %v1152_v58  ;;  %v759_v49 = vrot.slane %v692_v2, 1 }
  0x8d   : > { %v955_v19 = vmax.f32 %v815_v5, %v927_v45  ;;  %v409_v20 = vsel %vm370_vm0, %v407_v0, %v408_v7  ;;  %v1209_v15 = vunpack.c.l.bf16 %v2259_v3  ;;  %v1323_v13 = vunpack.c.h.bf16 %v2259_v3  ;;  %v1154_v45 = vld [vmem:[%s1889_s26 + $0x64] sm:$0x7]  ;;  %v874_v5 = vld [vmem:[%s1884_s23 + $0x68] sm:$0xf] }
  0x8e   : > { %1642 = vst.msk [vmem:[%s1971_s7 + $0x54] sm:$0x7] %vm1621_vm2, %v1612_v12  ;;  %v1235_v18 = vmax.f32 %v1095_v62, %v1207_v16  ;;  %v1557_v23 = vunpack.c.l.bf16 %v1501_v59  ;;  %v1558_v25 = vunpack.c.l.bf16 %v1502_v6  ;;  %v465_v27 = vmax.f32 %v324_v54, %v409_v20  ;;  %v1503_v54 = vld [vmem:[%s1894_s29 + $0x60] sm:$0xf]  ;;  %v285_v59 = vld [vmem:[%s1879_s20 + $0x6c] sm:$0x7] }
  0x8f   : > { %v1096_v28 = vmax.f32 %v955_v19, %v1068_v53  ;;  %v760_v29 = vsel %vm370_vm0, %v758_v10, %v759_v49  ;;  %v928_v30 = vunpack.c.l.bf16 %v872_v63  ;;  %v325_v31 = vunpack.c.l.bf16 %v283_v17  ;;  %v1777_v6 = vld [vmem:[%s1879_s20 + $0x74] sm:$0x7]  ;;  %v1504_v12 = vld [vmem:[%s1894_s29 + $0x64] sm:$0x7]  ;;  %v1818_v17 = vld [vmem:[%s1884_s23 + $0x70] sm:$0xf] }
  0x90   : > { %v1445_v35 = vmax.f32 %v1235_v18, %v1388_v56  ;;  %v606_v24 = vmax.f32 %v465_v27, %v578_v60  ;;  %v1069_v34 = vunpack.c.l.bf16 %v1816_v1  ;;  %v579_v8 = vunpack.c.l.bf16 %v1775_v22 }
  0x91   : > { %v1236_v4 = vmax.f32 %v1096_v28, %v1208_v14  ;;  %v1389_v51 = vrot.slane %v1209_v15, 1  ;;  %v2281_v16 = vrot.slane %v1323_v13, 1  ;;  %v466_v40 = vmax.f32 %v325_v31, %v408_v7 }
  0x92   : > { %v1585_v41 = vmax.f32 %v1445_v35, %v1557_v23  ;;  %v816_v42 = vmax.f32 %v606_v24, %v760_v29  ;;  %v929_v43 = vunpack.c.l.bf16 %v873_v32  ;;  %v1070_v38 = vunpack.c.l.bf16 %v1817_v33  ;;  %v875_v23 = vld [vmem:[%s1884_s23 + $0x6c] sm:$0x7]  ;;  %v1819_v32 = vld [vmem:[%s1884_s23 + $0x74] sm:$0x7] }
  0x93   : > { %v1446_v21 = vmax.f32 %v1236_v4, %v2253_v47  ;;  %v607_v37 = vmax.f32 %v466_v40, %v579_v8  ;;  %v326_v44 = vunpack.c.l.bf16 %v284_v9  ;;  %v341_v46 = vunpack.c.h.bf16 %v284_v9  ;;  %v1156_v4 = vld [vmem:[%s1889_s26 + $0x6c] sm:$0x7]  ;;  %v1505_v40 = vld [vmem:[%s1894_s29 + $0x68] sm:$0xf] }
  0x94   : > { %v1613_v11 = vpack.c.bf16 %v1585_v41, %v1585_v41  ;;  %v956_v48 = vmax.f32 %v816_v42, %v928_v30  ;;  %v580_v36 = vunpack.c.l.bf16 %v1776_v39  ;;  %v693_v52 = vunpack.c.h.bf16 %v1776_v39 }
  0x95   : > { %v1586_v53 = vmax.f32 %v1446_v21, %v1558_v25  ;;  %v817_v55 = vmax.f32 %v607_v37, %v759_v49  ;;  %v410_v57 = vrot.slane %v326_v44, 1  ;;  %v411_v58 = vrot.slane %v341_v46, 1  ;;  %v1506_v46 = vld [vmem:[%s1894_s29 + $0x6c] sm:$0x7] }
  0x96   : > { %1643 = vst.msk [vmem:[%s1971_s7 + $0x58] sm:$0xf] %vm1619_vm1, %v1613_v11  ;;  %v1097_v47 = vmax.f32 %v956_v48, %v1069_v34  ;;  %v1391_v60 = vsel %vm370_vm0, %v1389_v51, %v2281_v16  ;;  %v761_v61 = vrot.slane %v580_v36, 1  ;;  %v762_v50 = vrot.slane %v693_v52, 1 }
  0x97   : > { %v1614_v0 = vpack.c.bf16 %v1586_v53, %v1586_v53  ;;  %v957_v2 = vmax.f32 %v817_v55, %v929_v43  ;;  %v1210_v3 = vunpack.c.l.bf16 %v1154_v45  ;;  %v412_v56 = vsel %vm370_vm0, %v410_v57, %v411_v58 }
  0x98   : > { %v1237_v7 = vmax.f32 %v1097_v47, %v1209_v15  ;;  %v1559_v10 = vunpack.c.l.bf16 %v1503_v54  ;;  %v467_v62 = vmax.f32 %v326_v44, %v412_v56  ;;  %v1211_v14 = vunpack.c.l.bf16 %v1155_v26 }
  0x99   : > { %1644 = vst.msk [vmem:[%s1971_s7 + $0x5c] sm:$0x7] %vm1621_vm2, %v1614_v0  ;;  %v1098_v49 = vmax.f32 %v957_v2, %v1070_v38  ;;  %v763_v63 = vsel %vm370_vm0, %v761_v61, %v762_v50  ;;  %v1324_v19 = vunpack.c.h.bf16 %v1155_v26  ;;  %v327_v20 = vunpack.c.l.bf16 %v285_v59 }
  0x9a   : > { %v1447_v1 = vmax.f32 %v1237_v7, %v1391_v60  ;;  %v608_v13 = vmax.f32 %v467_v62, %v580_v36  ;;  %v930_v22 = vunpack.c.l.bf16 %v874_v5  ;;  %v581_v18 = vunpack.c.l.bf16 %v1777_v6 }
  0x9b   : > { %v1238_v15 = vmax.f32 %v1098_v49, %v1210_v3  ;;  %v1560_v25 = vunpack.c.l.bf16 %v1504_v12  ;;  %v468_v27 = vmax.f32 %v327_v20, %v411_v58  ;;  %v1071_v30 = vunpack.c.l.bf16 %v1818_v17 }
  0x9c   : > { %v1587_v28 = vmax.f32 %v1447_v1, %v1559_v10  ;;  %v818_v29 = vmax.f32 %v608_v13, %v763_v63  ;;  %v1392_v31 = vrot.slane %v1211_v14, 1  ;;  %v1393_v35 = vrot.slane %v1324_v19, 1 }
  0x9d   : > { %v1448_v33 = vmax.f32 %v1238_v15, %v2281_v16  ;;  %v609_v24 = vmax.f32 %v468_v27, %v581_v18  ;;  %v931_v34 = vunpack.c.l.bf16 %v875_v23  ;;  %v1072_v41 = vunpack.c.l.bf16 %v1819_v32 }
  0x9e   : > { %v1615_v8 = vpack.c.bf16 %v1587_v28, %v1587_v28  ;;  %v958_v9 = vmax.f32 %v818_v29, %v930_v22  ;;  %v1394_v38 = vsel %vm370_vm0, %v1392_v31, %v1393_v35  ;;  %v1212_v21 = vunpack.c.l.bf16 %v1156_v4 }
  0x9f   : > { %v1588_v51 = vmax.f32 %v1448_v33, %v1560_v25  ;;  %v819_v39 = vmax.f32 %v609_v24, %v762_v50  ;;  %v1561_v44 = vunpack.c.l.bf16 %v1505_v40  ;;  %v1562_v36 = vunpack.c.l.bf16 %v1506_v46 }
  0xa0   : > { %1645 = vst.msk [vmem:[%s1971_s7 + $0x60] sm:$0xf] %vm1619_vm1, %v1615_v8  ;;  %v1099_v42 = vmax.f32 %v958_v9, %v1071_v30 }
  0xa1   : > { %v1616_v43 = vpack.c.bf16 %v1588_v51, %v1588_v51  ;;  %v959_v16 = vmax.f32 %v819_v39, %v931_v34 }
  0xa2   : > { %v1239_v37 = vmax.f32 %v1099_v42, %v1211_v14 }
  0xa3   : > { %1646 = vst.msk [vmem:[%s1971_s7 + $0x64] sm:$0x7] %vm1621_vm2, %v1616_v43  ;;  %v1100_v11 = vmax.f32 %v959_v16, %v1072_v41 }
  0xa4   : > { %v1449_v48 = vmax.f32 %v1239_v37, %v1394_v38 }
  0xa5   : > { %v1240_v45 = vmax.f32 %v1100_v11, %v1212_v21 }
  0xa6   : > { %v1589_v52 = vmax.f32 %v1449_v48, %v1561_v44 }
  0xa7   : > { %v1450_v53 = vmax.f32 %v1240_v45, %v1393_v35 }
  0xa8   : > { %v1617_v54 = vpack.c.bf16 %v1589_v52, %v1589_v52 }
  0xa9   : > { %v1590_v55 = vmax.f32 %v1450_v53, %v1562_v36 }
  0xaa   : > { %1647 = vst.msk [vmem:[%s1971_s7 + $0x68] sm:$0xf] %vm1619_vm1, %v1617_v54 }
  0xab   : > { %v1618_v57 = vpack.c.bf16 %v1590_v55, %v1590_v55 }
  0xad   : > { %1648 = vst.msk [vmem:[%s1971_s7 + $0x6c] sm:$0x7] %vm1621_vm2, %v1618_v57 }
  0xae PF: > { %s14_s15 = sadd.s32 1, %s1838_s15  }
  0xaf   : > { %p11_p4 = scmp.ge.s32.totalorder %s14_s15, 4  }
  0xb1   :  { %13 = sbr.rel (!%p11_p4) target bundleno = 1 (0x1), region = 77 }

// kernel: zfnet_forward.10
= control target key start
LH: loop header
LB: loop body
LE: loop exit
PB: predicated region body
PF: predicated region fallthrough
CT: control target
= control target key end

     0   :  { %s2757_s0 = inlined_call_operand.vmem [shape: bf16[80,2560], index: 0, kind: input, shape index: {}]   ;;  %s2758_s1 = inlined_call_operand.vmem [shape: bf16[2560,256], index: 1, kind: input, shape index: {}]   ;;  %s2759_s2 = inlined_call_operand.vmem [shape: f32[1,256], index: 2, kind: input, shape index: {}]   ;;  %s2760_s3 = inlined_call_operand.vmem [shape: bf16[80,256], index: 3, kind: output, shape index: {}]  }
   0x1   :  { %2762 = sst [smem:[#allocation7_spill]] %s2757_s0 }
   0x2   :  { %2763 = sst [smem:[#allocation8_spill]] %s2758_s1 }
   0x3   :  { %s2230_s12 = smov 0   ;;  %s2232_s13 = smov 0  }
   0x4   :  { %s2234_s14 = smov 0   ;;  %s2236_s15 = smov 0  }
   0x5   :  { %s2238_s16 = smov 0   ;;  %s2240_s17 = smov 0  }
   0x6   :  { %s2242_s18 = smov 0   ;;  %s2244_s19 = smov 0  }
   0x7   :  { %s2246_s20 = smov 0   ;;  %s2248_s21 = smov 0  }
   0x8   :  { %s2250_s22 = smov 0  }
   0x9 LB: > { %s1621_s23 = sadd.s32 4294967295, %s2207_s22   ;;  %s25_s24 = sadd.s32 1, %s2199_s20  ;;  %s2207_s22 = sphi %s2250_s22, %s13_s22   ;;  %s2203_s21 = sphi %s2248_s21, %s2780_s21   ;;  %s2199_s20 = sphi %s2246_s20, %s2779_s20   ;;  %s2195_s19 = sphi %s2244_s19, %s2778_s19   ;;  %s2191_s18 = sphi %s2242_s18, %s2777_s18   ;;  %s2187_s17 = sphi %s2240_s17, %s2776_s17   ;;  %s2183_s16 = sphi %s2238_s16, %s2775_s16   ;;  %s2179_s15 = sphi %s2236_s15, %s2774_s15   ;;  %s2175_s14 = sphi %s2234_s14, %s2773_s14   ;;  %s2171_s13 = sphi %s2232_s13, %s2772_s13   ;;  %s2167_s12 = sphi %s2230_s12, %s2771_s12  }
   0xa   : > { %p26_p0 = scmp.ge.s32.totalorder %s25_s24, 4  ;;  %s28_s25 = sadd.s32 1, %s2203_s21 }
   0xb   : > { %s41_s26 = sadd.s32 1, %s2187_s17  ;;  %p48_p1 = scmp.ne.s32.totalorder %s2187_s17, %s2183_s16 }
   0xc   : > { %s2782_s24 = smov (%p26_p0, %s25_s24), 0  ;;  %s2784_s25 = smov (!%p26_p0, %s28_s25), %s2203_s21 }
   0xd   : > { %s37_s27 = ssub.s32 %s2199_s20, %s2782_s24  ;;  %p49_p2 = scmp.eq.s32.totalorder %s2207_s22, 0 }
   0xe   : > { %p30_p3 = scmp.ge.s32.totalorder %s2784_s25, 2  ;;  %p39_p4 = scmp.eq.s32.totalorder %s37_s27, 0 }
   0xf   : > { %p2297_p5 = por %p49_p2, %p48_p1  ;;  %s69_s29 = sadd.s32 1, %s2179_s15 }
  0x10   : > { %s2786_s25 = smov (%p30_p3, %s2784_s25), 0  ;;  %p76_p6 = scmp.ne.s32.totalorder %s2179_s15, %s2175_s14 }
  0x11   : > { %2765 = sst [smem:[#allocation6_spill]] %s2786_s25  ;;  %s65_s4 = ssub.s32 %s2203_s21, %s2786_s25 }
  0x12   : > { %s2305_s30 = scalar_select %p39_p4, %s2187_s17, %s41_s26  }
  0x13   : > { %s66_s5 = sor.u32 %s65_s4, %s37_s27  ;;  %p121_p7 = scmp.eq.s32.totalorder %s65_s4, 0 }
  0x14   : > { %p67_p8 = scmp.eq.s32.totalorder %s66_s5, 0  ;;  %p2311_p9 = por %p76_p6, %p49_p2 }
  0x15   : > { %s123_s7 = sadd.s32 1, %s2171_s13  ;;  %p133_p10 = scmp.ne.s32.totalorder %s2171_s13, %s2167_s12 }
  0x16   : > { %s2319_s8 = scalar_select %p67_p8, %s2179_s15, %s69_s29  }
  0x17   : > { %s2322_s9 = scalar_select %p121_p7, %s2171_s13, %s123_s7  }
  0x18   : > { %p134_p11 = scmp.eq.s32.totalorder %s1621_s23, 7  ;;  %p1624_p13 = scmp.ge.s32.totalorder %s2207_s22, 8 }
  0x1a   : > { %p2324_p12 = por %p134_p11, %p133_p10  ;;  %156 = sbr.rel (%p1624_p13) target bundleno = 159 (0x9f), region = 16 }
  0x1f   : > { %159 = sbr.rel (!%p2297_p5) target bundleno = 70 (0x46), region = 20  ;;  %s161_s11 = sand.u32 (%p2297_p5), 1, %s2187_s17  }
  0x20   : > { %s1914_s26 = smul.u32 (%p2297_p5), 20, %s2199_s20  ;;  %s2768_s0 = sld [smem:[#allocation7_spill]] (%p2297_p5) }
  0x21   : > { %s2026_s27 = smul.u32 (%p2297_p5), 200, %s161_s11 }
  0x23   : > { %s2341_s23 = scalar_lea.vmem (%p2297_p5), [#allocation3], %s2026_s27 }
  0x26   : > { %s2336_s5 = scalar_lea.vmem %s2768_s0, %s1914_s26 }
  0x27   : > { %v184_v0 = vld [vmem:[%s2336_s5] sm:$0xff]  ;;  %v186_v1 = vld [vmem:[%s2336_s5 + $0x8] sm:$0xff]  ;;  %v188_v2 = vld [vmem:[%s2336_s5 + $0x50] sm:$0xff] }
  0x28   : > { %185 = vst [vmem:[%s2341_s23] sm:$0xff] %v184_v0  ;;  %v190_v3 = vld [vmem:[%s2336_s5 + $0x58] sm:$0xff]  ;;  %v192_v4 = vld [vmem:[%s2336_s5 + $0xa0] sm:$0xff]  ;;  %v194_v5 = vld [vmem:[%s2336_s5 + $0xa8] sm:$0xff] }
  0x29   : > { %187 = vst [vmem:[%s2341_s23 + $0x8] sm:$0xff] %v186_v1  ;;  %v196_v6 = vld [vmem:[%s2336_s5 + $0xf0] sm:$0xff]  ;;  %v198_v7 = vld [vmem:[%s2336_s5 + $0xf8] sm:$0xff]  ;;  %v200_v8 = vld [vmem:[%s2336_s5 + $0x140] sm:$0xff] }
  0x2a   : > { %189 = vst [vmem:[%s2341_s23 + $0x14] sm:$0xff] %v188_v2  ;;  %v202_v9 = vld [vmem:[%s2336_s5 + $0x148] sm:$0xff]  ;;  %v204_v10 = vld [vmem:[%s2336_s5 + $0x190] sm:$0xff]  ;;  %v206_v11 = vld [vmem:[%s2336_s5 + $0x198] sm:$0xff] }
  0x2b   : > { %191 = vst [vmem:[%s2341_s23 + $0x1c] sm:$0xff] %v190_v3  ;;  %v208_v12 = vld [vmem:[%s2336_s5 + $0x1e0] sm:$0xff]  ;;  %v210_v13 = vld [vmem:[%s2336_s5 + $0x1e8] sm:$0xff]  ;;  %v212_v14 = vld [vmem:[%s2336_s5 + $0x230] sm:$0xff] }
  0x2c   : > { %193 = vst [vmem:[%s2341_s23 + $0x28] sm:$0xff] %v192_v4  ;;  %v214_v15 = vld [vmem:[%s2336_s5 + $0x238] sm:$0xff]  ;;  %v216_v16 = vld [vmem:[%s2336_s5 + $0x280] sm:$0xff]  ;;  %v218_v17 = vld [vmem:[%s2336_s5 + $0x288] sm:$0xff] }
  0x2d   : > { %195 = vst [vmem:[%s2341_s23 + $0x30] sm:$0xff] %v194_v5  ;;  %v220_v18 = vld [vmem:[%s2336_s5 + $0x2d0] sm:$0xff]  ;;  %v222_v19 = vld [vmem:[%s2336_s5 + $0x2d8] sm:$0xff]  ;;  %v1628_v21 = vld [vmem:[%s2336_s5 + $0x60] sm:$0xf] }
  0x2e   : > { %197 = vst [vmem:[%s2341_s23 + $0x3c] sm:$0xff] %v196_v6  ;;  %v1626_v20 = vld [vmem:[%s2336_s5 + $0x10] sm:$0xf]  ;;  %v1632_v23 = vld [vmem:[%s2336_s5 + $0x100] sm:$0xf] }
  0x2f   : > { %199 = vst [vmem:[%s2341_s23 + $0x44] sm:$0xff] %v198_v7  ;;  %v1630_v22 = vld [vmem:[%s2336_s5 + $0xb0] sm:$0xf]  ;;  %v1636_v25 = vld [vmem:[%s2336_s5 + $0x1a0] sm:$0xf] }
  0x30   : > { %201 = vst [vmem:[%s2341_s23 + $0x50] sm:$0xff] %v200_v8  ;;  %v1634_v24 = vld [vmem:[%s2336_s5 + $0x150] sm:$0xf]  ;;  %v1640_v27 = vld [vmem:[%s2336_s5 + $0x240] sm:$0xf] }
  0x31   : > { %203 = vst [vmem:[%s2341_s23 + $0x58] sm:$0xff] %v202_v9  ;;  %v1638_v26 = vld [vmem:[%s2336_s5 + $0x1f0] sm:$0xf]  ;;  %v1644_v29 = vld [vmem:[%s2336_s5 + $0x2e0] sm:$0xf] }
  0x32   : > { %205 = vst [vmem:[%s2341_s23 + $0x64] sm:$0xff] %v204_v10  ;;  %v1642_v28 = vld [vmem:[%s2336_s5 + $0x290] sm:$0xf] }
  0x33   : > { %207 = vst [vmem:[%s2341_s23 + $0x6c] sm:$0xff] %v206_v11 }
  0x34   : > { %209 = vst [vmem:[%s2341_s23 + $0x78] sm:$0xff] %v208_v12 }
  0x35   : > { %211 = vst [vmem:[%s2341_s23 + $0x80] sm:$0xff] %v210_v13 }
  0x36   : > { %213 = vst [vmem:[%s2341_s23 + $0x8c] sm:$0xff] %v212_v14 }
  0x37   : > { %215 = vst [vmem:[%s2341_s23 + $0x94] sm:$0xff] %v214_v15 }
  0x38   : > { %217 = vst [vmem:[%s2341_s23 + $0xa0] sm:$0xff] %v216_v16 }
  0x39   : > { %219 = vst [vmem:[%s2341_s23 + $0xa8] sm:$0xff] %v218_v17 }
  0x3a   : > { %221 = vst [vmem:[%s2341_s23 + $0xb4] sm:$0xff] %v220_v18 }
  0x3b   : > { %223 = vst [vmem:[%s2341_s23 + $0xbc] sm:$0xff] %v222_v19 }
  0x3c   : > { %1627 = vst [vmem:[%s2341_s23 + $0x10] sm:$0xf] %v1626_v20 }
  0x3d   : > { %1629 = vst [vmem:[%s2341_s23 + $0x24] sm:$0xf] %v1628_v21 }
  0x3e   : > { %1631 = vst [vmem:[%s2341_s23 + $0x38] sm:$0xf] %v1630_v22 }
  0x3f   : > { %1633 = vst [vmem:[%s2341_s23 + $0x4c] sm:$0xf] %v1632_v23 }
  0x40   : > { %1635 = vst [vmem:[%s2341_s23 + $0x60] sm:$0xf] %v1634_v24 }
  0x41   : > { %1637 = vst [vmem:[%s2341_s23 + $0x74] sm:$0xf] %v1636_v25 }
  0x42   : > { %1639 = vst [vmem:[%s2341_s23 + $0x88] sm:$0xf] %v1638_v26 }
  0x43   : > { %1641 = vst [vmem:[%s2341_s23 + $0x9c] sm:$0xf] %v1640_v27 }
  0x44   : > { %1643 = vst [vmem:[%s2341_s23 + $0xb0] sm:$0xf] %v1642_v28 }
  0x45   : > { %1645 = vst [vmem:[%s2341_s23 + $0xc4] sm:$0xf] %v1644_v29 }
  0x46 PF: > { %257 = sbr.rel (!%p2311_p9) target bundleno = 159 (0x9f), region = 46  ;;  %s259_s28 = sand.u32 (%p2311_p9), 1, %s2179_s15  }
  0x47   : > { %s1915_s7 = smul.u32 (%p2311_p9), 160, %s2199_s20  ;;  %s2769_s1 = sld [smem:[#allocation8_spill]] (%p2311_p9) }
  0x48   : > { %s2027_s11 = smul.u32 (%p2311_p9), 320, %s259_s28 }
  0x49   : > { %s264_s26 = sadd.s32 (%p2311_p9), %s2203_s21, %s1915_s7 }
  0x4a   : > { %s1647_s27 = sshll.u32 (%p2311_p9), %s264_s26, 2  ;;  %s2413_s6 = scalar_lea.vmem (%p2311_p9), [#allocation4], %s2027_s11 }
  0x4d   : > { %s2408_s0 = scalar_lea.vmem %s2769_s1, %s1647_s27 }
  0x4e   : > { %v283_v30 = vld [vmem:[%s2408_s0] sm:$0xf]  ;;  %v285_v31 = vld [vmem:[%s2408_s0 + $0x8] sm:$0xf]  ;;  %v287_v32 = vld [vmem:[%s2408_s0 + $0x10] sm:$0xf] }
  0x4f   : > { %284 = vst [vmem:[%s2413_s6] sm:$0xf] %v283_v30  ;;  %v289_v33 = vld [vmem:[%s2408_s0 + $0x18] sm:$0xf]  ;;  %v291_v34 = vld [vmem:[%s2408_s0 + $0x20] sm:$0xf] }
  0x50   : > { %286 = vst [vmem:[%s2413_s6 + $0x4] sm:$0xf] %v285_v31  ;;  %v293_v35 = vld [vmem:[%s2408_s0 + $0x28] sm:$0xf]  ;;  %v295_v36 = vld [vmem:[%s2408_s0 + $0x30] sm:$0xf] }
  0x51   : > { %288 = vst [vmem:[%s2413_s6 + $0x8] sm:$0xf] %v287_v32  ;;  %v297_v37 = vld [vmem:[%s2408_s0 + $0x38] sm:$0xf]  ;;  %v299_v38 = vld [vmem:[%s2408_s0 + $0x40] sm:$0xf] }
  0x52   : > { %290 = vst [vmem:[%s2413_s6 + $0xc] sm:$0xf] %v289_v33  ;;  %v301_v39 = vld [vmem:[%s2408_s0 + $0x48] sm:$0xf]  ;;  %v303_v40 = vld [vmem:[%s2408_s0 + $0x50] sm:$0xf] }
  0x53   : > { %292 = vst [vmem:[%s2413_s6 + $0x10] sm:$0xf] %v291_v34  ;;  %v305_v41 = vld [vmem:[%s2408_s0 + $0x58] sm:$0xf]  ;;  %v307_v42 = vld [vmem:[%s2408_s0 + $0x60] sm:$0xf] }
  0x54   : > { %294 = vst [vmem:[%s2413_s6 + $0x14] sm:$0xf] %v293_v35  ;;  %v309_v43 = vld [vmem:[%s2408_s0 + $0x68] sm:$0xf]  ;;  %v311_v44 = vld [vmem:[%s2408_s0 + $0x70] sm:$0xf] }
  0x55   : > { %296 = vst [vmem:[%s2413_s6 + $0x18] sm:$0xf] %v295_v36  ;;  %v313_v45 = vld [vmem:[%s2408_s0 + $0x78] sm:$0xf]  ;;  %v315_v46 = vld [vmem:[%s2408_s0 + $0x80] sm:$0xf] }
  0x56   : > { %298 = vst [vmem:[%s2413_s6 + $0x1c] sm:$0xf] %v297_v37  ;;  %v317_v47 = vld [vmem:[%s2408_s0 + $0x88] sm:$0xf]  ;;  %v319_v48 = vld [vmem:[%s2408_s0 + $0x90] sm:$0xf] }
  0x57   : > { %300 = vst [vmem:[%s2413_s6 + $0x20] sm:$0xf] %v299_v38  ;;  %v321_v49 = vld [vmem:[%s2408_s0 + $0x98] sm:$0xf]  ;;  %v323_v50 = vld [vmem:[%s2408_s0 + $0xa0] sm:$0xf] }
  0x58   : > { %302 = vst [vmem:[%s2413_s6 + $0x24] sm:$0xf] %v301_v39  ;;  %v325_v51 = vld [vmem:[%s2408_s0 + $0xa8] sm:$0xf]  ;;  %v327_v52 = vld [vmem:[%s2408_s0 + $0xb0] sm:$0xf] }
  0x59   : > { %304 = vst [vmem:[%s2413_s6 + $0x28] sm:$0xf] %v303_v40  ;;  %v329_v53 = vld [vmem:[%s2408_s0 + $0xb8] sm:$0xf]  ;;  %v331_v54 = vld [vmem:[%s2408_s0 + $0xc0] sm:$0xf] }
  0x5a   : > { %306 = vst [vmem:[%s2413_s6 + $0x2c] sm:$0xf] %v305_v41  ;;  %v333_v55 = vld [vmem:[%s2408_s0 + $0xc8] sm:$0xf]  ;;  %v335_v56 = vld [vmem:[%s2408_s0 + $0xd0] sm:$0xf] }
  0x5b   : > { %308 = vst [vmem:[%s2413_s6 + $0x30] sm:$0xf] %v307_v42  ;;  %v337_v57 = vld [vmem:[%s2408_s0 + $0xd8] sm:$0xf]  ;;  %v339_v58 = vld [vmem:[%s2408_s0 + $0xe0] sm:$0xf] }
  0x5c   : > { %310 = vst [vmem:[%s2413_s6 + $0x34] sm:$0xf] %v309_v43  ;;  %v341_v59 = vld [vmem:[%s2408_s0 + $0xe8] sm:$0xf]  ;;  %v343_v60 = vld [vmem:[%s2408_s0 + $0xf0] sm:$0xf] }
  0x5d   : > { %312 = vst [vmem:[%s2413_s6 + $0x38] sm:$0xf] %v311_v44  ;;  %v345_v61 = vld [vmem:[%s2408_s0 + $0xf8] sm:$0xf]  ;;  %v347_v62 = vld [vmem:[%s2408_s0 + $0x100] sm:$0xf] }
  0x5e   : > { %314 = vst [vmem:[%s2413_s6 + $0x3c] sm:$0xf] %v313_v45  ;;  %v349_v63 = vld [vmem:[%s2408_s0 + $0x108] sm:$0xf]  ;;  %v351_v0 = vld [vmem:[%s2408_s0 + $0x110] sm:$0xf] }
  0x5f   : > { %316 = vst [vmem:[%s2413_s6 + $0x40] sm:$0xf] %v315_v46  ;;  %v353_v1 = vld [vmem:[%s2408_s0 + $0x118] sm:$0xf]  ;;  %v355_v2 = vld [vmem:[%s2408_s0 + $0x120] sm:$0xf] }
  0x60   : > { %318 = vst [vmem:[%s2413_s6 + $0x44] sm:$0xf] %v317_v47  ;;  %v357_v3 = vld [vmem:[%s2408_s0 + $0x128] sm:$0xf]  ;;  %v359_v4 = vld [vmem:[%s2408_s0 + $0x130] sm:$0xf] }
  0x61   : > { %320 = vst [vmem:[%s2413_s6 + $0x48] sm:$0xf] %v319_v48  ;;  %v361_v5 = vld [vmem:[%s2408_s0 + $0x138] sm:$0xf]  ;;  %v363_v6 = vld [vmem:[%s2408_s0 + $0x140] sm:$0xf] }
  0x62   : > { %322 = vst [vmem:[%s2413_s6 + $0x4c] sm:$0xf] %v321_v49  ;;  %v365_v7 = vld [vmem:[%s2408_s0 + $0x148] sm:$0xf]  ;;  %v367_v8 = vld [vmem:[%s2408_s0 + $0x150] sm:$0xf] }
  0x63   : > { %324 = vst [vmem:[%s2413_s6 + $0x50] sm:$0xf] %v323_v50  ;;  %v369_v9 = vld [vmem:[%s2408_s0 + $0x158] sm:$0xf]  ;;  %v371_v10 = vld [vmem:[%s2408_s0 + $0x160] sm:$0xf] }
  0x64   : > { %326 = vst [vmem:[%s2413_s6 + $0x54] sm:$0xf] %v325_v51  ;;  %v373_v11 = vld [vmem:[%s2408_s0 + $0x168] sm:$0xf]  ;;  %v375_v12 = vld [vmem:[%s2408_s0 + $0x170] sm:$0xf] }
  0x65   : > { %328 = vst [vmem:[%s2413_s6 + $0x58] sm:$0xf] %v327_v52  ;;  %v377_v13 = vld [vmem:[%s2408_s0 + $0x178] sm:$0xf]  ;;  %v379_v14 = vld [vmem:[%s2408_s0 + $0x180] sm:$0xf] }
  0x66   : > { %330 = vst [vmem:[%s2413_s6 + $0x5c] sm:$0xf] %v329_v53  ;;  %v381_v15 = vld [vmem:[%s2408_s0 + $0x188] sm:$0xf]  ;;  %v383_v16 = vld [vmem:[%s2408_s0 + $0x190] sm:$0xf] }
  0x67   : > { %332 = vst [vmem:[%s2413_s6 + $0x60] sm:$0xf] %v331_v54  ;;  %v385_v17 = vld [vmem:[%s2408_s0 + $0x198] sm:$0xf]  ;;  %v387_v18 = vld [vmem:[%s2408_s0 + $0x1a0] sm:$0xf] }
  0x68   : > { %334 = vst [vmem:[%s2413_s6 + $0x64] sm:$0xf] %v333_v55  ;;  %v389_v19 = vld [vmem:[%s2408_s0 + $0x1a8] sm:$0xf]  ;;  %v391_v20 = vld [vmem:[%s2408_s0 + $0x1b0] sm:$0xf] }
  0x69   : > { %336 = vst [vmem:[%s2413_s6 + $0x68] sm:$0xf] %v335_v56  ;;  %v393_v21 = vld [vmem:[%s2408_s0 + $0x1b8] sm:$0xf]  ;;  %v395_v22 = vld [vmem:[%s2408_s0 + $0x1c0] sm:$0xf] }
  0x6a   : > { %338 = vst [vmem:[%s2413_s6 + $0x6c] sm:$0xf] %v337_v57  ;;  %v397_v23 = vld [vmem:[%s2408_s0 + $0x1c8] sm:$0xf]  ;;  %v399_v24 = vld [vmem:[%s2408_s0 + $0x1d0] sm:$0xf] }
  0x6b   : > { %340 = vst [vmem:[%s2413_s6 + $0x70] sm:$0xf] %v339_v58  ;;  %v401_v25 = vld [vmem:[%s2408_s0 + $0x1d8] sm:$0xf]  ;;  %v403_v26 = vld [vmem:[%s2408_s0 + $0x1e0] sm:$0xf] }
  0x6c   : > { %342 = vst [vmem:[%s2413_s6 + $0x74] sm:$0xf] %v341_v59  ;;  %v405_v27 = vld [vmem:[%s2408_s0 + $0x1e8] sm:$0xf]  ;;  %v407_v28 = vld [vmem:[%s2408_s0 + $0x1f0] sm:$0xf] }
  0x6d   : > { %344 = vst [vmem:[%s2413_s6 + $0x78] sm:$0xf] %v343_v60  ;;  %v409_v29 = vld [vmem:[%s2408_s0 + $0x1f8] sm:$0xf]  ;;  %v411_v30 = vld [vmem:[%s2408_s0 + $0x200] sm:$0xf] }
  0x6e   : > { %346 = vst [vmem:[%s2413_s6 + $0x7c] sm:$0xf] %v345_v61  ;;  %v413_v31 = vld [vmem:[%s2408_s0 + $0x208] sm:$0xf]  ;;  %v415_v32 = vld [vmem:[%s2408_s0 + $0x210] sm:$0xf] }
  0x6f   : > { %348 = vst [vmem:[%s2413_s6 + $0x80] sm:$0xf] %v347_v62  ;;  %v417_v33 = vld [vmem:[%s2408_s0 + $0x218] sm:$0xf]  ;;  %v419_v34 = vld [vmem:[%s2408_s0 + $0x220] sm:$0xf] }
  0x70   : > { %350 = vst [vmem:[%s2413_s6 + $0x84] sm:$0xf] %v349_v63  ;;  %v421_v35 = vld [vmem:[%s2408_s0 + $0x228] sm:$0xf]  ;;  %v423_v36 = vld [vmem:[%s2408_s0 + $0x230] sm:$0xf] }
  0x71   : > { %352 = vst [vmem:[%s2413_s6 + $0x88] sm:$0xf] %v351_v0  ;;  %v425_v37 = vld [vmem:[%s2408_s0 + $0x238] sm:$0xf]  ;;  %v427_v38 = vld [vmem:[%s2408_s0 + $0x240] sm:$0xf] }
  0x72   : > { %354 = vst [vmem:[%s2413_s6 + $0x8c] sm:$0xf] %v353_v1  ;;  %v429_v39 = vld [vmem:[%s2408_s0 + $0x248] sm:$0xf]  ;;  %v431_v40 = vld [vmem:[%s2408_s0 + $0x250] sm:$0xf] }
  0x73   : > { %356 = vst [vmem:[%s2413_s6 + $0x90] sm:$0xf] %v355_v2  ;;  %v433_v41 = vld [vmem:[%s2408_s0 + $0x258] sm:$0xf]  ;;  %v435_v42 = vld [vmem:[%s2408_s0 + $0x260] sm:$0xf] }
  0x74   : > { %358 = vst [vmem:[%s2413_s6 + $0x94] sm:$0xf] %v357_v3  ;;  %v437_v43 = vld [vmem:[%s2408_s0 + $0x268] sm:$0xf]  ;;  %v439_v44 = vld [vmem:[%s2408_s0 + $0x270] sm:$0xf] }
  0x75   : > { %360 = vst [vmem:[%s2413_s6 + $0x98] sm:$0xf] %v359_v4  ;;  %v441_v45 = vld [vmem:[%s2408_s0 + $0x278] sm:$0xf] }
  0x76   : > { %362 = vst [vmem:[%s2413_s6 + $0x9c] sm:$0xf] %v361_v5 }
  0x77   : > { %364 = vst [vmem:[%s2413_s6 + $0xa0] sm:$0xf] %v363_v6 }
  0x78   : > { %366 = vst [vmem:[%s2413_s6 + $0xa4] sm:$0xf] %v365_v7 }
  0x79   : > { %368 = vst [vmem:[%s2413_s6 + $0xa8] sm:$0xf] %v367_v8 }
  0x7a   : > { %370 = vst [vmem:[%s2413_s6 + $0xac] sm:$0xf] %v369_v9 }
  0x7b   : > { %372 = vst [vmem:[%s2413_s6 + $0xb0] sm:$0xf] %v371_v10 }
  0x7c   : > { %374 = vst [vmem:[%s2413_s6 + $0xb4] sm:$0xf] %v373_v11 }
  0x7d   : > { %376 = vst [vmem:[%s2413_s6 + $0xb8] sm:$0xf] %v375_v12 }
  0x7e   : > { %378 = vst [vmem:[%s2413_s6 + $0xbc] sm:$0xf] %v377_v13 }
  0x7f   : > { %380 = vst [vmem:[%s2413_s6 + $0xc0] sm:$0xf] %v379_v14 }
  0x80   : > { %382 = vst [vmem:[%s2413_s6 + $0xc4] sm:$0xf] %v381_v15 }
  0x81   : > { %384 = vst [vmem:[%s2413_s6 + $0xc8] sm:$0xf] %v383_v16 }
  0x82   : > { %386 = vst [vmem:[%s2413_s6 + $0xcc] sm:$0xf] %v385_v17 }
  0x83   : > { %388 = vst [vmem:[%s2413_s6 + $0xd0] sm:$0xf] %v387_v18 }
  0x84   : > { %390 = vst [vmem:[%s2413_s6 + $0xd4] sm:$0xf] %v389_v19 }
  0x85   : > { %392 = vst [vmem:[%s2413_s6 + $0xd8] sm:$0xf] %v391_v20 }
  0x86   : > { %394 = vst [vmem:[%s2413_s6 + $0xdc] sm:$0xf] %v393_v21 }
  0x87   : > { %396 = vst [vmem:[%s2413_s6 + $0xe0] sm:$0xf] %v395_v22 }
  0x88   : > { %398 = vst [vmem:[%s2413_s6 + $0xe4] sm:$0xf] %v397_v23 }
  0x89   : > { %400 = vst [vmem:[%s2413_s6 + $0xe8] sm:$0xf] %v399_v24 }
  0x8a   : > { %402 = vst [vmem:[%s2413_s6 + $0xec] sm:$0xf] %v401_v25 }
  0x8b   : > { %404 = vst [vmem:[%s2413_s6 + $0xf0] sm:$0xf] %v403_v26 }
  0x8c   : > { %406 = vst [vmem:[%s2413_s6 + $0xf4] sm:$0xf] %v405_v27 }
  0x8d   : > { %408 = vst [vmem:[%s2413_s6 + $0xf8] sm:$0xf] %v407_v28 }
  0x8e   : > { %410 = vst [vmem:[%s2413_s6 + $0xfc] sm:$0xf] %v409_v29 }
  0x8f   : > { %412 = vst [vmem:[%s2413_s6 + $0x100] sm:$0xf] %v411_v30 }
  0x90   : > { %414 = vst [vmem:[%s2413_s6 + $0x104] sm:$0xf] %v413_v31 }
  0x91   : > { %416 = vst [vmem:[%s2413_s6 + $0x108] sm:$0xf] %v415_v32 }
  0x92   : > { %418 = vst [vmem:[%s2413_s6 + $0x10c] sm:$0xf] %v417_v33 }
  0x93   : > { %420 = vst [vmem:[%s2413_s6 + $0x110] sm:$0xf] %v419_v34 }
  0x94   : > { %422 = vst [vmem:[%s2413_s6 + $0x114] sm:$0xf] %v421_v35 }
  0x95   : > { %424 = vst [vmem:[%s2413_s6 + $0x118] sm:$0xf] %v423_v36 }
  0x96   : > { %426 = vst [vmem:[%s2413_s6 + $0x11c] sm:$0xf] %v425_v37 }
  0x97   : > { %428 = vst [vmem:[%s2413_s6 + $0x120] sm:$0xf] %v427_v38 }
  0x98   : > { %430 = vst [vmem:[%s2413_s6 + $0x124] sm:$0xf] %v429_v39 }
  0x99   : > { %432 = vst [vmem:[%s2413_s6 + $0x128] sm:$0xf] %v431_v40 }
  0x9a   : > { %434 = vst [vmem:[%s2413_s6 + $0x12c] sm:$0xf] %v433_v41 }
  0x9b   : > { %436 = vst [vmem:[%s2413_s6 + $0x130] sm:$0xf] %v435_v42 }
  0x9c   : > { %438 = vst [vmem:[%s2413_s6 + $0x134] sm:$0xf] %v437_v43 }
  0x9d   : > { %440 = vst [vmem:[%s2413_s6 + $0x138] sm:$0xf] %v439_v44 }
  0x9e   : > { %442 = vst [vmem:[%s2413_s6 + $0x13c] sm:$0xf] %v441_v45 }
  0x9f PF: > { %p1648_p0 = scmp.ge.s32.totalorder %s2207_s22, 1  ;;  %p631_p1 = scmp.lt.s32.totalorder %s2207_s22, 9 }
  0xa1   : > { %p632_p2 = pnand %p1648_p0, %p631_p1 }
  0xa2   : > { %s638_s5 = sand.u32 (!%p632_p2), 1, %s2183_s16   ;;  %s645_s23 = sand.u32 (!%p632_p2), 1, %s2175_s14  }
  0xa3   : > { %635 = sbr.rel (%p632_p2) target bundleno = 487 (0x1e7), region = 91  ;;  %s671_s0 = sand.u32 (!%p632_p2), 1, %s2167_s12  }
  0xa4   : > { %s2028_s28 = smul.u32 (!%p632_p2), 200, %s638_s5  ;;  %p677_p3 = scmp.lt.s32.totalorder (!%p632_p2), %s2195_s19, 1 }
  0xa5   : > { %s2029_s7 = smul.u32 (!%p632_p2), 320, %s645_s23  ;;  %p1649_p4 = scmp.ne.s32.totalorder (!%p632_p2), %s2191_s18, 0 }
  0xa6   : > { %s2030_s11 = smul.u32 (!%p632_p2), 40, %s671_s0  ;;  %s2585_s6 = scalar_lea.vmem (!%p632_p2), [#allocation3], %s2028_s28 }
  0xa7   : > { %s2587_s1 = scalar_lea.vmem (!%p632_p2), [#allocation4], %s2029_s7 }
  0xa8   : > { %s2579_s26 = scalar_select %p677_p3, %s2195_s19, 1 }
  0xa9   : > { %s2589_s25 = scalar_lea.vmem [#allocation5], %s2030_s11  ;;  %684 = sbr.rel (%p1649_p4) target bundleno = 185 (0xb9), region = 103 }
  0xaa   : > { %s679_s4 = scalar_lea.vmem %s2759_s2, %s2579_s26 }
  0xae   : > { %v2209_v46 = vmov 0.0  }
  0xaf   : > { %685 = vst [vmem:[#allocation2 + $0x30] sm:$0xff] %v2209_v46 }
  0xb0   : > { %686 = vst [vmem:[#allocation2] sm:$0xff] %v2209_v46 }
  0xb1   : > { %687 = vst [vmem:[#allocation2 + $0x18] sm:$0xff] %v2209_v46 }
  0xb2   : > { %688 = vst [vmem:[#allocation2 + $0x10] sm:$0xff] %v2209_v46 }
  0xb3   : > { %689 = vst [vmem:[#allocation2 + $0x48] sm:$0xff] %v2209_v46 }
  0xb4   : > { %690 = vst [vmem:[#allocation2 + $0x28] sm:$0xff] %v2209_v46 }
  0xb5   : > { %691 = vst [vmem:[#allocation2 + $0x8] sm:$0xff] %v2209_v46 }
  0xb6   : > { %692 = vst [vmem:[#allocation2 + $0x20] sm:$0xff] %v2209_v46 }
  0xb7   : > { %693 = vst [vmem:[#allocation2 + $0x40] sm:$0xff] %v2209_v46 }
  0xb8   : > { %694 = vst [vmem:[#allocation2 + $0x38] sm:$0xff] %v2209_v46 }
  0xb9 PF: > { %v1948_v47 = vld [vmem:[%s2587_s1 + $0x38] sm:$0xff]  ;;  %v1947_v48 = vld [vmem:[%s2587_s1 + $0x30] sm:$0xff]  ;;  %v1946_v51 = vld [vmem:[%s2587_s1 + $0x28] sm:$0xff]  ;;  %p1910_p5 = scmp.ne.s32.totalorder %s2191_s18, 3 }
  0xba   : > { %1185 = vmatpush.bf16.msra.mxu0 %v1948_v47  ;;  %2010 = vmatpush.bf16.msra.mxu1 %v1948_v47  ;;  %v1972_v49 = vld [vmem:[%s2587_s1 + $0xf8] sm:$0xff]  ;;  %v1971_v50 = vld [vmem:[%s2587_s1 + $0xf0] sm:$0xff]  ;;  %v1970_v52 = vld [vmem:[%s2587_s1 + $0xe8] sm:$0xff] }
  0xbb   : > { %2011 = vmatpush.bf16.msra.mxu2 %v1948_v47  ;;  %1287 = vmatpush.bf16.msra.mxu3 %v1972_v49  ;;  %v1945_v53 = vld [vmem:[%s2587_s1 + $0x20] sm:$0xff]  ;;  %v1944_v55 = vld [vmem:[%s2587_s1 + $0x18] sm:$0xff]  ;;  %v1943_v57 = vld [vmem:[%s2587_s1 + $0x10] sm:$0xff] }
  0xbc   : > { %v1969_v54 = vld [vmem:[%s2587_s1 + $0xe0] sm:$0xff]  ;;  %v1968_v56 = vld [vmem:[%s2587_s1 + $0xd8] sm:$0xff]  ;;  %v1967_v58 = vld [vmem:[%s2587_s1 + $0xd0] sm:$0xff] }
  0xbd   : > { %v1942_v59 = vld [vmem:[%s2587_s1 + $0x8] sm:$0xff]  ;;  %v1941_v61 = vld [vmem:[%s2587_s1] sm:$0xff]  ;;  %v1652_v62 = vld [vmem:[%s2585_s6] sm:$0xf] }
  0xbe   : > { %1186 = vmatpush.bf16.msra.mxu0 %v1947_v48  ;;  %2012 = vmatpush.bf16.msra.mxu1 %v1947_v48  ;;  %v1966_v60 = vld [vmem:[%s2587_s1 + $0xc8] sm:$0xff]  ;;  %v1928_v1 = vld [vmem:[%s2585_s6 + $0x60] sm:$0xf0]  ;;  %v1732_v3 = vld [vmem:[%s2585_s6 + $0xa0] sm:$0xf] }
  0xbf   : > { %2013 = vmatpush.bf16.msra.mxu2 %v1947_v48  ;;  %1288 = vmatpush.bf16.msra.mxu3 %v1971_v50  ;;  %v1918_v63 = vld [vmem:[%s2585_s6 + $0x10] sm:$0xf0]  ;;  %v1692_v0 = vld [vmem:[%s2585_s6 + $0x50] sm:$0xf]  ;;  %v1956_v2 = vld [vmem:[%s2587_s1 + $0x78] sm:$0xff] }
  0xc0   : > { %v1938_v4 = vld [vmem:[%s2585_s6 + $0xb0] sm:$0xf0]  ;;  %v1964_v5 = vld [vmem:[%s2587_s1 + $0xb8] sm:$0xff]  ;;  %v1653_v7 = vor.u32 %v1918_v63, %v1652_v62  ;;  %v1693_v8 = vor.u32 %v1928_v1, %v1692_v0  ;;  %v1955_v13 = vld [vmem:[%s2587_s1 + $0x70] sm:$0xff] }
  0xc1   : > { %v1980_v6 = vld [vmem:[%s2587_s1 + $0x138] sm:$0xff]  ;;  %v1733_v9 = vor.u32 %v1938_v4, %v1732_v3  ;;  %v1965_v10 = vld [vmem:[%s2587_s1 + $0xc0] sm:$0xff]  ;;  %v1963_v14 = vld [vmem:[%s2587_s1 + $0xb0] sm:$0xff] }
  0xc2   : > { %1187 = vmatpush.bf16.msra.mxu0 %v1946_v51  ;;  %2014 = vmatpush.bf16.msra.mxu1 %v1946_v51  ;;  %v1917_v11 = vld [vmem:[%s2585_s6 + $0xc] sm:$0xf]  ;;  %v1662_v12 = vld [vmem:[%s2585_s6 + $0x1c] sm:$0xf0]  ;;  %v1954_v17 = vld [vmem:[%s2587_s1 + $0x68] sm:$0xff] }
  0xc3   : > { %2015 = vmatpush.bf16.msra.mxu2 %v1946_v51  ;;  %1289 = vmatpush.bf16.msra.mxu3 %v1970_v52  ;;  %v1979_v15 = vld [vmem:[%s2587_s1 + $0x130] sm:$0xff]  ;;  %v1665_v16 = vor.u32 %v1917_v11, %v1662_v12  ;;  %v1962_v18 = vld [vmem:[%s2587_s1 + $0xa8] sm:$0xff]  ;;  %v1953_v20 = vld [vmem:[%s2587_s1 + $0x60] sm:$0xff] }
  0xc4   : > { %v1978_v19 = vld [vmem:[%s2587_s1 + $0x128] sm:$0xff]  ;;  %v1961_v21 = vld [vmem:[%s2587_s1 + $0xa0] sm:$0xff]  ;;  %v1952_v27 = vld [vmem:[%s2587_s1 + $0x58] sm:$0xff] }
  0xc5   : > { %v1977_v22 = vld [vmem:[%s2587_s1 + $0x120] sm:$0xff]  ;;  %v1923_v24 = vld [vmem:[%s2585_s6 + $0x38] sm:$0xf0]  ;;  %v1712_v25 = vld [vmem:[%s2585_s6 + $0x78] sm:$0xf] }
  0xc6   : > { %1188 = vmatpush.bf16.msra.mxu0 %v1945_v53  ;;  %2016 = vmatpush.bf16.msra.mxu1 %v1945_v53  ;;  %v1672_v23 = vld [vmem:[%s2585_s6 + $0x28] sm:$0xf]  ;;  %v1933_v26 = vld [vmem:[%s2585_s6 + $0x88] sm:$0xf0]  ;;  %v1922_v32 = vld [vmem:[%s2585_s6 + $0x34] sm:$0xf] }
  0xc7   : > { %2017 = vmatpush.bf16.msra.mxu2 %v1945_v53  ;;  %1290 = vmatpush.bf16.msra.mxu3 %v1969_v54  ;;  %v1960_v28 = vld [vmem:[%s2587_s1 + $0x98] sm:$0xff]  ;;  %v1673_v30 = vor.u32 %v1923_v24, %v1672_v23  ;;  %v1713_v31 = vor.u32 %v1933_v26, %v1712_v25  ;;  %v1951_v34 = vld [vmem:[%s2587_s1 + $0x50] sm:$0xff]  ;;  %v1950_v38 = vld [vmem:[%s2587_s1 + $0x48] sm:$0xff] }
  0xc8   : > { %v1976_v29 = vld [vmem:[%s2587_s1 + $0x118] sm:$0xff]  ;;  %v1959_v35 = vld [vmem:[%s2587_s1 + $0x90] sm:$0xff]  ;;  %v1958_v39 = vld [vmem:[%s2587_s1 + $0x88] sm:$0xff] }
  0xc9   : > { %v1682_v33 = vld [vmem:[%s2585_s6 + $0x44] sm:$0xf0]  ;;  %v1975_v36 = vld [vmem:[%s2587_s1 + $0x110] sm:$0xff]  ;;  %v1974_v40 = vld [vmem:[%s2587_s1 + $0x108] sm:$0xff] }
  0xca   : > { %1189 = vmatpush.bf16.msra.mxu0 %v1944_v55  ;;  %2018 = vmatpush.bf16.msra.mxu1 %v1944_v55  ;;  %v1685_v37 = vor.u32 %v1922_v32, %v1682_v33  ;;  %v1957_v41 = vld [vmem:[%s2587_s1 + $0x80] sm:$0xff]  ;;  %v1919_v44 = vld [vmem:[%s2585_s6 + $0x18] sm:$0xf0]  ;;  %v1916_v46 = vld [vmem:[%s2585_s6 + $0x4] sm:$0xf] }
  0xcb   : > { %2019 = vmatpush.bf16.msra.mxu2 %v1944_v55  ;;  %1291 = vmatpush.bf16.msra.mxu3 %v1968_v56  ;;  %v1949_v42 = vld [vmem:[%s2587_s1 + $0x40] sm:$0xff]  ;;  %v1654_v47 = vld [vmem:[%s2585_s6 + $0x14] sm:$0xf0]  ;;  %v1920_v49 = vld [vmem:[%s2585_s6 + $0x20] sm:$0xf0] }
  0xcc   : > { %v1660_v43 = vld [vmem:[%s2585_s6 + $0x8] sm:$0xf]  ;;  %v1668_v48 = vld [vmem:[%s2585_s6 + $0x10] sm:$0xf]  ;;  %v1657_v51 = vor.u32 %v1916_v46, %v1654_v47  ;;  %v1927_v53 = vld [vmem:[%s2585_s6 + $0x5c] sm:$0xf] }
  0xcd   : > { %v1973_v45 = vld [vmem:[%s2587_s1 + $0x100] sm:$0xff]  ;;  %v1661_v50 = vor.u32 %v1919_v44, %v1660_v43  ;;  %v1669_v52 = vor.u32 %v1920_v49, %v1668_v48  ;;  %v1932_v1 = vld [vmem:[%s2585_s6 + $0x84] sm:$0xf]  ;;  %v1700_v4 = vld [vmem:[%s2585_s6 + $0x58] sm:$0xf] }
  0xce   : > { %1190 = vmatpush.bf16.msra.mxu0 %v1943_v57  ;;  %2020 = vmatpush.bf16.msra.mxu1 %v1943_v57  ;;  %v1702_v54 = vld [vmem:[%s2585_s6 + $0x6c] sm:$0xf0]  ;;  %v1740_v25 = vld [vmem:[%s2585_s6 + $0xa8] sm:$0xf]  ;;  %v1939_v26 = vld [vmem:[%s2585_s6 + $0xb8] sm:$0xf0] }
  0xcf   : > { %2021 = vmatpush.bf16.msra.mxu2 %v1943_v57  ;;  %1292 = vmatpush.bf16.msra.mxu3 %v1967_v58  ;;  %v1705_v55 = vor.u32 %v1927_v53, %v1702_v54  ;;  %v1680_v56 = vld [vmem:[%s2585_s6 + $0x30] sm:$0xf]  ;;  %v1924_v57 = vld [vmem:[%s2585_s6 + $0x40] sm:$0xf0]  ;;  %v1921_v58 = vld [vmem:[%s2585_s6 + $0x2c] sm:$0xf] }
  0xd0   : > { %v1681_v62 = vor.u32 %v1924_v57, %v1680_v56  ;;  %v695_v53 = vld [vmem:[#allocation2 + $0x30] sm:$0xff] }
  0xd2   : > { %1191 = vmatpush.bf16.msra.mxu0 %v1942_v59  ;;  %2022 = vmatpush.bf16.msra.mxu1 %v1942_v59 }
  0xd3   : > { %2023 = vmatpush.bf16.msra.mxu2 %v1942_v59  ;;  %1293 = vmatpush.bf16.msra.mxu3 %v1966_v60  ;;  %v1674_v59 = vld [vmem:[%s2585_s6 + $0x3c] sm:$0xf0]  ;;  %v1688_v60 = vld [vmem:[%s2585_s6 + $0x38] sm:$0xf] }
  0xd4   : > { %v1677_v63 = vor.u32 %v1921_v58, %v1674_v59 }
  0xd6   : > { %1192 = vmatpush.bf16.msra.mxu0 %v1941_v61  ;;  %2024 = vmatpush.bf16.msra.mxu1 %v1941_v61 }
  0xd7   : > { %2025 = vmatpush.bf16.msra.mxu2 %v1941_v61  ;;  %1294 = vmatpush.bf16.msra.mxu3 %v1965_v10  ;;  %v1925_v61 = vld [vmem:[%s2585_s6 + $0x48] sm:$0xf0] }
  0xd8   : > { %v1689_v0 = vor.u32 %v1925_v61, %v1688_v60 }
  0xd9   : > { %1193 = vmatmul.bf16.vlgmr.msra.gmra.mxu0 %v1653_v7  ;;  %1203 = vmatmul.bf16.vlgmr.msra.gmra.mxu1 %v1693_v8  ;;  %v1694_v7 = vld [vmem:[%s2585_s6 + $0x64] sm:$0xf0]  ;;  %v1708_v8 = vld [vmem:[%s2585_s6 + $0x60] sm:$0xf] }
  0xda   : > { %1219 = vmatpush.bf16.msrb.mxu1 %v1956_v2  ;;  %1321 = vmatpush.bf16.msrb.mxu0 %v1980_v6  ;;  %v1722_v2 = vld [vmem:[%s2585_s6 + $0x94] sm:$0xf0]  ;;  %v1926_v6 = vld [vmem:[%s2585_s6 + $0x54] sm:$0xf] }
  0xdb   : > { %1253 = vmatpush.bf16.msrb.mxu2 %v1964_v5  ;;  %1295 = vmatmul.bf16.vlgmr.msra.gmra.mxu3 %v1665_v16  ;;  %v1725_v3 = vor.u32 %v1932_v1, %v1722_v2  ;;  %v1929_v5 = vld [vmem:[%s2585_s6 + $0x68] sm:$0xf0]  ;;  %v1697_v11 = vor.u32 %v1926_v6, %v1694_v7  ;;  %v1720_v16 = vld [vmem:[%s2585_s6 + $0x80] sm:$0xf] }
  0xdc   : > { %1213 = vmatmul.bf16.vlgmr.msra.gmra.mxu2 %v1733_v9  ;;  %v1930_v9 = vld [vmem:[%s2585_s6 + $0x70] sm:$0xf0]  ;;  %v1701_v10 = vor.u32 %v1929_v5, %v1700_v4 }
  0xdd   : > { %v1709_v12 = vor.u32 %v1930_v9, %v1708_v8  ;;  %v697_v8 = vld [vmem:[#allocation2 + $0x18] sm:$0xff] }
  0xde   : > { %1220 = vmatpush.bf16.msrb.mxu1 %v1955_v13  ;;  %1322 = vmatpush.bf16.msrb.mxu0 %v1979_v15  ;;  %v1937_v13 = vld [vmem:[%s2585_s6 + $0xac] sm:$0xf] }
  0xdf   : > { %1254 = vmatpush.bf16.msrb.mxu2 %v1963_v14  ;;  %v1742_v14 = vld [vmem:[%s2585_s6 + $0xbc] sm:$0xf0] }
  0xe0   : > { %v1745_v15 = vor.u32 %v1937_v13, %v1742_v14 }
  0xe2   : > { %1221 = vmatpush.bf16.msrb.mxu1 %v1954_v17  ;;  %1323 = vmatpush.bf16.msrb.mxu0 %v1978_v19  ;;  %v1934_v17 = vld [vmem:[%s2585_s6 + $0x90] sm:$0xf0]  ;;  %v1714_v19 = vld [vmem:[%s2585_s6 + $0x8c] sm:$0xf0] }
  0xe3   : > { %1255 = vmatpush.bf16.msrb.mxu2 %v1962_v18  ;;  %v1931_v18 = vld [vmem:[%s2585_s6 + $0x7c] sm:$0xf] }
  0xe4   : > { %v1717_v23 = vor.u32 %v1931_v18, %v1714_v19  ;;  %v698_v18 = vld [vmem:[#allocation2 + $0x10] sm:$0xff] }
  0xe6   : > { %1222 = vmatpush.bf16.msrb.mxu1 %v1953_v20  ;;  %1324 = vmatpush.bf16.msrb.mxu0 %v1977_v22  ;;  %v1728_v20 = vld [vmem:[%s2585_s6 + $0x88] sm:$0xf]  ;;  %v1721_v22 = vor.u32 %v1934_v17, %v1720_v16 }
  0xe7   : > { %1256 = vmatpush.bf16.msrb.mxu2 %v1961_v21  ;;  %v1935_v21 = vld [vmem:[%s2585_s6 + $0x98] sm:$0xf0] }
  0xe8   : > { %v1729_v24 = vor.u32 %v1935_v21, %v1728_v20 }
  0xe9   : > { %1198 = vmatmul.bf16.gmra.mxu0 %v1673_v30  ;;  %1208 = vmatmul.bf16.gmra.mxu1 %v1713_v31  ;;  %v1940_v30 = vld [vmem:[%s2585_s6 + $0xc0] sm:$0xf0]  ;;  %v1741_v31 = vor.u32 %v1939_v26, %v1740_v25 }
  0xea   : > { %1223 = vmatpush.bf16.msrb.mxu1 %v1952_v27  ;;  %1325 = vmatpush.bf16.msrb.mxu0 %v1976_v29  ;;  %v1936_v27 = vld [vmem:[%s2585_s6 + $0xa4] sm:$0xf]  ;;  %v1748_v29 = vld [vmem:[%s2585_s6 + $0xb0] sm:$0xf] }
  0xeb   : > { %1257 = vmatpush.bf16.msrb.mxu2 %v1960_v28  ;;  %1300 = vmatmul.bf16.gmra.mxu3 %v1685_v37  ;;  %v1734_v28 = vld [vmem:[%s2585_s6 + $0xb4] sm:$0xf0]  ;;  %v1749_v33 = vor.u32 %v1940_v30, %v1748_v29 }
  0xec   : > { %v1737_v32 = vor.u32 %v1936_v27, %v1734_v28  ;;  %v699_v28 = vld [vmem:[#allocation2 + $0x48] sm:$0xff] }
  0xee   : > { %1224 = vmatpush.bf16.msrb.mxu1 %v1951_v34  ;;  %1326 = vmatpush.bf16.msrb.mxu0 %v1975_v36 }
  0xef   : > { %1258 = vmatpush.bf16.msrb.mxu2 %v1959_v35 }
  0xf2   : > { %1225 = vmatpush.bf16.msrb.mxu1 %v1950_v38  ;;  %1327 = vmatpush.bf16.msrb.mxu0 %v1974_v40 }
  0xf3   : > { %1259 = vmatpush.bf16.msrb.mxu2 %v1958_v39 }
  0xf6   : > { %1226 = vmatpush.bf16.msrb.mxu1 %v1949_v42  ;;  %1328 = vmatpush.bf16.msrb.mxu0 %v1973_v45 }
  0xf7   : > { %1260 = vmatpush.bf16.msrb.mxu2 %v1957_v41 }
  0xf9   : > { %1227 = vmatmul.bf16.vlgmr.msrb.gmra.mxu1 %v1657_v51  ;;  %1329 = vmatmul.bf16.vlgmr.msrb.gmra.mxu0 %v1669_v52 }
  0xfa   : > { %1261 = vmatmul.bf16.vlgmr.msrb.gmra.mxu2 %v1661_v50 }
  0xfb   : > { %1305 = vmatmul.bf16.gmra.mxu3 %v1705_v55 }
 0x109   : > { %1232 = vmatmul.bf16.gmra.mxu1 %v1677_v63  ;;  %1334 = vmatmul.bf16.gmra.mxu0 %v1689_v0 }
 0x10a   : > { %1266 = vmatmul.bf16.gmra.mxu2 %v1681_v62  ;;  %v696_v62 = vld [vmem:[#allocation2] sm:$0xff] }
 0x10b   : > { %1310 = vmatmul.bf16.gmra.mxu3 %v1725_v3 }
 0x119   : > { %1237 = vmatmul.bf16.gmra.mxu1 %v1697_v11  ;;  %1339 = vmatmul.bf16.gmra.mxu0 %v1709_v12 }
 0x11a   : > { %1271 = vmatmul.bf16.gmra.mxu2 %v1701_v10 }
 0x11b   : > { %1315 = vmatmul.bf16.gmra.mxu3 %v1745_v15 }
 0x129   : > { %1242 = vmatmul.bf16.gmra.mxu1 %v1717_v23  ;;  %1344 = vmatmul.bf16.gmra.mxu0 %v1729_v24 }
 0x12a   : > { %1276 = vmatmul.bf16.gmra.mxu2 %v1721_v22 }
 0x139   : > { %1247 = vmatmul.bf16.gmra.mxu1 %v1737_v32  ;;  %1349 = vmatmul.bf16.gmra.mxu0 %v1749_v33 }
 0x13a   : > { %1281 = vmatmul.bf16.gmra.mxu2 %v1741_v31 }
 0x156   : > { %v1194_v34 = vpop.f32.mrf.mxu0  ;;  %v1204_v35 = vpop.f32.mrf.mxu1 }
 0x15e   : > { %v1196_v36 = vpop.f32.mrf.mxu0  ;;  %v2682_v37 = vpop.f32.mrf.mxu1 }
 0x15f   : > { %v2686_v40 = vpop.f32.mrf.mxu2  ;;  %v1296_v41 = vpop.f32.mrf.mxu3 }
 0x166   : > { %v1199_v38 = vpop.f32.mrf.mxu0  ;;  %v2684_v39 = vpop.f32.mrf.mxu1 }
 0x167   : > { %v2690_v44 = vpop.f32.mrf.mxu2  ;;  %v1298_v45 = vpop.f32.mrf.mxu3 }
 0x16e   : > { %v1201_v42 = vpop.f32.mrf.mxu0  ;;  %v2688_v43 = vpop.f32.mrf.mxu1 }
 0x16f   : > { %v1301_v52 = vpop.f32.mrf.mxu3 }
 0x176   : > { %v1228_v46 = vpop.f32.mrf.mxu1  ;;  %v1330_v47 = vpop.f32.mrf.mxu0 }
 0x177   : > { %v1229_v48 = vadd.f32 %v1228_v46, %v1194_v34  ;;  %v1303_v3 = vpop.f32.mrf.mxu3 }
 0x17d   : > { %v1262_v49 = vpop.f32.mrf.mxu2 }
 0x17e   : > { %v1263_v50 = vadd.f32 %v1262_v49, %v1229_v48  ;;  %v1230_v54 = vpop.f32.mrf.mxu1  ;;  %v1332_v55 = vpop.f32.mrf.mxu0 }
 0x17f   : > { %v1231_v57 = vadd.f32 %v1230_v54, %v1196_v36  ;;  %v1306_v15 = vpop.f32.mrf.mxu3 }
 0x180   : > { %v1297_v51 = vadd.f32 %v1296_v41, %v1263_v50  ;;  %v700_v41 = vld [vmem:[#allocation2 + $0x28] sm:$0xff] }
 0x182   : > { %v1331_v56 = vadd.f32 %v1330_v47, %v1297_v51 }
 0x184   : > { %v1355_v58 = vadd.f32 %v1331_v56, %v695_v53 }
 0x185   : > { %v1264_v59 = vpop.f32.mrf.mxu2 }
 0x186   : > { %1365 = vst [vmem:[#allocation2 + $0x30] sm:$0xff] %v1355_v58  ;;  %v1265_v60 = vadd.f32 %v1264_v59, %v1231_v57  ;;  %v1233_v63 = vpop.f32.mrf.mxu1  ;;  %v1335_v0 = vpop.f32.mrf.mxu0 }
 0x187   : > { %v1234_v2 = vadd.f32 %v1233_v63, %v1199_v38  ;;  %v1308_v26 = vpop.f32.mrf.mxu3 }
 0x188   : > { %v1299_v61 = vadd.f32 %v1298_v45, %v1265_v60 }
 0x18a   : > { %v1333_v1 = vadd.f32 %v1332_v55, %v1299_v61  ;;  %v702_v61 = vld [vmem:[#allocation2 + $0x20] sm:$0xff] }
 0x18c   : > { %v1356_v4 = vadd.f32 %v1333_v1, %v696_v62 }
 0x18d   : > { %v1267_v5 = vpop.f32.mrf.mxu2 }
 0x18e   : > { %1366 = vst [vmem:[#allocation2] sm:$0xff] %v1356_v4  ;;  %v1268_v6 = vadd.f32 %v1267_v5, %v1234_v2  ;;  %v1235_v9 = vpop.f32.mrf.mxu1  ;;  %v1337_v10 = vpop.f32.mrf.mxu0 }
 0x18f   : > { %v1236_v12 = vadd.f32 %v1235_v9, %v1201_v42  ;;  %v1311_v42 = vpop.f32.mrf.mxu3 }
 0x190   : > { %v1302_v7 = vadd.f32 %v1301_v52, %v1268_v6  ;;  %v701_v52 = vld [vmem:[#allocation2 + $0x8] sm:$0xff] }
 0x192   : > { %v1336_v11 = vadd.f32 %v1335_v0, %v1302_v7 }
 0x194   : > { %v1357_v13 = vadd.f32 %v1336_v11, %v697_v8 }
 0x195   : > { %v1269_v14 = vpop.f32.mrf.mxu2 }
 0x196   : > { %1367 = vst [vmem:[#allocation2 + $0x18] sm:$0xff] %v1357_v13  ;;  %v1270_v16 = vadd.f32 %v1269_v14, %v1236_v12  ;;  %v1238_v19 = vpop.f32.mrf.mxu1  ;;  %v1340_v20 = vpop.f32.mrf.mxu0 }
 0x197   : > { %v1239_v22 = vadd.f32 %v1238_v19, %v1204_v35  ;;  %v1313_v55 = vpop.f32.mrf.mxu3 }
 0x198   : > { %v1304_v17 = vadd.f32 %v1303_v3, %v1270_v16 }
 0x19a   : > { %v1338_v21 = vadd.f32 %v1337_v10, %v1304_v17 }
 0x19c   : > { %v1358_v23 = vadd.f32 %v1338_v21, %v698_v18 }
 0x19d   : > { %v1272_v24 = vpop.f32.mrf.mxu2 }
 0x19e   : > { %1368 = vst [vmem:[#allocation2 + $0x10] sm:$0xff] %v1358_v23  ;;  %v1273_v25 = vadd.f32 %v1272_v24, %v1239_v22  ;;  %v1240_v29 = vpop.f32.mrf.mxu1  ;;  %v1342_v30 = vpop.f32.mrf.mxu0 }
 0x19f   : > { %v1241_v32 = vadd.f32 %v1240_v29, %v2682_v37  ;;  %v1316_v1 = vpop.f32.mrf.mxu3 }
 0x1a0   : > { %v1307_v27 = vadd.f32 %v1306_v15, %v1273_v25 }
 0x1a2   : > { %v1341_v31 = vadd.f32 %v1340_v20, %v1307_v27 }
 0x1a4   : > { %v1359_v33 = vadd.f32 %v1341_v31, %v699_v28 }
 0x1a5   : > { %v1274_v34 = vpop.f32.mrf.mxu2 }
 0x1a6   : > { %1369 = vst [vmem:[#allocation2 + $0x48] sm:$0xff] %v1359_v33  ;;  %v1275_v36 = vadd.f32 %v1274_v34, %v1241_v32  ;;  %v1243_v35 = vpop.f32.mrf.mxu1  ;;  %v1345_v47 = vpop.f32.mrf.mxu0 }
 0x1a7   : > { %v1244_v46 = vadd.f32 %v1243_v35, %v2684_v39  ;;  %v1318_v12 = vpop.f32.mrf.mxu3 }
 0x1a8   : > { %v1309_v38 = vadd.f32 %v1308_v26, %v1275_v36 }
 0x1aa   : > { %v1343_v45 = vadd.f32 %v1342_v30, %v1309_v38 }
 0x1ac   : > { %v1360_v48 = vadd.f32 %v1343_v45, %v700_v41 }
 0x1ad   : > { %v1277_v49 = vpop.f32.mrf.mxu2 }
 0x1ae   : > { %1370 = vst [vmem:[#allocation2 + $0x28] sm:$0xff] %v1360_v48  ;;  %v1278_v50 = vadd.f32 %v1277_v49, %v1244_v46  ;;  %v1245_v53 = vpop.f32.mrf.mxu1  ;;  %v1347_v57 = vpop.f32.mrf.mxu0 }
 0x1af   : > { %v1246_v54 = vadd.f32 %v1245_v53, %v2688_v43  ;;  %v703_v43 = vld [vmem:[#allocation2 + $0x40] sm:$0xff] }
 0x1b0   : > { %v1312_v51 = vadd.f32 %v1311_v42, %v1278_v50 }
 0x1b2   : > { %v1346_v37 = vadd.f32 %v1345_v47, %v1312_v51 }
 0x1b4   : > { %v1361_v56 = vadd.f32 %v1346_v37, %v701_v52 }
 0x1b5   : > { %v1279_v58 = vpop.f32.mrf.mxu2 }
 0x1b6   : > { %1371 = vst [vmem:[#allocation2 + $0x8] sm:$0xff] %v1361_v56  ;;  %v1280_v59 = vadd.f32 %v1279_v58, %v1246_v54  ;;  %v1248_v39 = vpop.f32.mrf.mxu1  ;;  %v1350_v4 = vpop.f32.mrf.mxu0 }
 0x1b7   : > { %v1249_v63 = vadd.f32 %v1248_v39, %v2686_v40  ;;  %v704_v40 = vld [vmem:[#allocation2 + $0x38] sm:$0xff] }
 0x1b8   : > { %v1314_v60 = vadd.f32 %v1313_v55, %v1280_v59 }
 0x1ba   : > { %v1348_v62 = vadd.f32 %v1347_v57, %v1314_v60 }
 0x1bc   : > { %v1362_v0 = vadd.f32 %v1348_v62, %v702_v61 }
 0x1bd   : > { %v1282_v2 = vpop.f32.mrf.mxu2 }
 0x1be   : > { %1372 = vst [vmem:[#allocation2 + $0x20] sm:$0xff] %v1362_v0  ;;  %v1283_v3 = vadd.f32 %v1282_v2, %v1249_v63  ;;  %v1250_v6 = vpop.f32.mrf.mxu1  ;;  %v1352_v14 = vpop.f32.mrf.mxu0 }
 0x1bf   : > { %v1251_v8 = vadd.f32 %v1250_v6, %v2690_v44 }
 0x1c0   : > { %v1317_v5 = vadd.f32 %v1316_v1, %v1283_v3 }
 0x1c2   : > { %v1351_v7 = vadd.f32 %v1350_v4, %v1317_v5 }
 0x1c4   : > { %v1363_v9 = vadd.f32 %v1351_v7, %v703_v43 }
 0x1c5   : > { %v1284_v10 = vpop.f32.mrf.mxu2 }
 0x1c6   : > { %1373 = vst [vmem:[#allocation2 + $0x40] sm:$0xff] %v1363_v9  ;;  %v1285_v11 = vadd.f32 %v1284_v10, %v1251_v8 }
 0x1c8   : > { %v1319_v13 = vadd.f32 %v1318_v12, %v1285_v11 }
 0x1ca   : > { %v1353_v15 = vadd.f32 %v1352_v14, %v1319_v13  ;;  %1378 = sbr.rel (%p1910_p5) target bundleno = 475 (0x1db), region = 107 }
 0x1cc   : > { %v1364_v16 = vadd.f32 %v1353_v15, %v704_v40 }
 0x1ce   : > { %1374 = vst [vmem:[#allocation2 + $0x38] sm:$0xff] %v1364_v16 }
 0x1cf   : > { %v1379_v17 = vld [vmem:[#allocation2 + $0x30] sm:$0xff]  ;;  %v1380_v18 = vld [vmem:[#allocation2] sm:$0xff]  ;;  %v1381_v19 = vld [vmem:[#allocation2 + $0x18] sm:$0xff] }
 0x1d0   : > { %v2120_v44 = vld [vmem:[%s679_s4] ss:$0 sm:$0xff]  ;;  %v1382_v20 = vld [vmem:[#allocation2 + $0x10] sm:$0xff]  ;;  %v1383_v21 = vld [vmem:[#allocation2 + $0x48] sm:$0xff] }
 0x1d1   : > { %v1384_v22 = vld [vmem:[#allocation2 + $0x28] sm:$0xff]  ;;  %v1393_v24 = vadd.f32 %v2120_v44, %v1379_v17  ;;  %v1394_v25 = vadd.f32 %v2120_v44, %v1380_v18  ;;  %v1395_v26 = vadd.f32 %v2120_v44, %v1381_v19  ;;  %v1396_v27 = vadd.f32 %v2120_v44, %v1382_v20  ;;  %v1386_v28 = vld [vmem:[#allocation2 + $0x20] sm:$0xff] }
 0x1d2   : > { %v1385_v23 = vld [vmem:[#allocation2 + $0x8] sm:$0xff]  ;;  %v1387_v29 = vld [vmem:[#allocation2 + $0x40] sm:$0xff]  ;;  %v1397_v31 = vadd.f32 %v2120_v44, %v1383_v21  ;;  %v1398_v32 = vadd.f32 %v2120_v44, %v1384_v22  ;;  %v1400_v34 = vadd.f32 %v2120_v44, %v1386_v28 }
 0x1d3   : > { %v1399_v33 = vadd.f32 %v2120_v44, %v1385_v23  ;;  %v1984_v36 = vpack.c.bf16 %v1394_v25, %v1393_v24  ;;  %v1989_v38 = vpack.c.bf16 %v1396_v27, %v1395_v26  ;;  %v1401_v41 = vadd.f32 %v2120_v44, %v1387_v29 }
 0x1d4   : > { %v1994_v35 = vpack.c.bf16 %v1398_v32, %v1397_v31 }
 0x1d5   : > { %v1388_v30 = vld [vmem:[#allocation2 + $0x38] sm:$0xff]  ;;  %v1999_v45 = vpack.c.bf16 %v1400_v34, %v1399_v33  ;;  %1985 = vst [vmem:[%s2589_s25] sm:$0xff] %v1984_v36  }
 0x1d6   : > { %v1402_v42 = vadd.f32 %v2120_v44, %v1388_v30  ;;  %2006 = vst [vmem:[%s2589_s25 + $0x8] sm:$0xff] %v1989_v38  }
 0x1d7   : > { %2007 = vst [vmem:[%s2589_s25 + $0x10] sm:$0xff] %v1994_v35  }
 0x1d8   : > { %v2004_v46 = vpack.c.bf16 %v1402_v42, %v1401_v41  ;;  %2008 = vst [vmem:[%s2589_s25 + $0x18] sm:$0xff] %v1999_v45  }
 0x1da   : > { %2009 = vst [vmem:[%s2589_s25 + $0x20] sm:$0xff] %v2004_v46  }
 0x1db PF: > { %1429 = sbr.rel (!%p2324_p12) target bundleno = 487 (0x1e7), region = 111  ;;  %s1911_s14 = sshll.u32 (%p2324_p12), %s2195_s19, 2 }
 0x1dc   : > { %v1451_v47 = vld [vmem:[%s2589_s25] sm:$0xf] (%p2324_p12)  ;;  %v1453_v48 = vld [vmem:[%s2589_s25 + $0x4] sm:$0xf] (%p2324_p12)  ;;  %s1434_s5 = scalar_lea.vmem (%p2324_p12), %s2760_s3, %s1911_s14 }
 0x1dd   : > { %v1455_v49 = vld [vmem:[%s2589_s25 + $0x8] sm:$0xf] (%p2324_p12)  ;;  %1452 = vst [vmem:[%s1434_s5] sm:$0xf] (%p2324_p12), %v1451_v47  ;;  %v1457_v50 = vld [vmem:[%s2589_s25 + $0xc] sm:$0xf] (%p2324_p12) }
 0x1de   : > { %1454 = vst [vmem:[%s1434_s5 + $0x8] sm:$0xf] (%p2324_p12), %v1453_v48  ;;  %v1459_v51 = vld [vmem:[%s2589_s25 + $0x10] sm:$0xf] (%p2324_p12)  ;;  %v1461_v52 = vld [vmem:[%s2589_s25 + $0x14] sm:$0xf] (%p2324_p12) }
 0x1df   : > { %1456 = vst [vmem:[%s1434_s5 + $0x10] sm:$0xf] (%p2324_p12), %v1455_v49  ;;  %v1463_v53 = vld [vmem:[%s2589_s25 + $0x18] sm:$0xf] (%p2324_p12)  ;;  %v1465_v37 = vld [vmem:[%s2589_s25 + $0x1c] sm:$0xf] (%p2324_p12) }
 0x1e0   : > { %1458 = vst [vmem:[%s1434_s5 + $0x18] sm:$0xf] %v1457_v50 }
 0x1e1   : > { %1460 = vst [vmem:[%s1434_s5 + $0x20] sm:$0xf] %v1459_v51  ;;  %v1467_v54 = vld [vmem:[%s2589_s25 + $0x20] sm:$0xf]  ;;  %v1469_v55 = vld [vmem:[%s2589_s25 + $0x24] sm:$0xf] }
 0x1e2   : > { %1462 = vst [vmem:[%s1434_s5 + $0x28] sm:$0xf] %v1461_v52 }
 0x1e3   : > { %1464 = vst [vmem:[%s1434_s5 + $0x30] sm:$0xf] %v1463_v53 }
 0x1e4   : > { %1466 = vst [vmem:[%s1434_s5 + $0x38] sm:$0xf] %v1465_v37 }
 0x1e5   : > { %1468 = vst [vmem:[%s1434_s5 + $0x40] sm:$0xf] %v1467_v54 }
 0x1e6   : > { %1470 = vst [vmem:[%s1434_s5 + $0x48] sm:$0xf] %v1469_v55 }
 0x1e7 PF: > { %s13_s22 = sadd.s32 1, %s2207_s22   ;;  %s2770_s10 = sld [smem:[#allocation6_spill]] }
 0x1e8   : > { %p10_p6 = scmp.ge.s32.totalorder %s13_s22, 10   ;;  %s2771_s12 = smov %s2171_s13 }
 0x1e9   : > { %s2772_s13 = smov %s2322_s9  ;;  %s2773_s14 = smov %s2179_s15 }
 0x1ea   : > { %s2774_s15 = smov %s2319_s8  ;;  %s2775_s16 = smov %s2187_s17 }
 0x1eb   : > { %s2776_s17 = smov %s2305_s30  ;;  %s2777_s18 = smov %s2199_s20 }
 0x1ec   : > { %s2778_s19 = smov %s2203_s21  ;;  %s2779_s20 = smov %s2782_s24 }
 0x1ed   : > { %s2780_s21 = smov %s2770_s10  ;;  %12 = sbr.rel (!%p10_p6) target bundleno = 9 (0x9), region = 200 }

// kernel: zfnet_forward.11
= control target key start
LH: loop header
LB: loop body
LE: loop exit
PB: predicated region body
PF: predicated region fallthrough
CT: control target
= control target key end

     0   :  { %s662_s15 = smov 0   ;;  %s710_s0 = inlined_call_operand.vmem [shape: bf16[2,3,3,256], index: 0, kind: input, shape index: {}]   ;;  %s711_s1 = inlined_call_operand.vmem [shape: bf16[2,3,3,256], index: 1, kind: input, shape index: {}]   ;;  %s712_s2 = inlined_call_operand.vmem [shape: bf16[2,3,3,256], index: 2, kind: input, shape index: {}]   ;;  %s713_s3 = inlined_call_operand.vmem [shape: bf16[2,3,3,256], index: 3, kind: input, shape index: {}]   ;;  %s714_s4 = inlined_call_operand.vmem [shape: bf16[2,2,2,256], index: 4, kind: output, shape index: {}]  }
   0x1 LB: > { %s592_s16 = sadd.s32 4294967295, %s635_s15   ;;  %p596_p0 = scmp.ge.s32.totalorder %s635_s15, 1  ;;  %s635_s15 = sphi %s662_s15, %s14_s15  }
   0x2   : > { %p192_p1 = scmp.lt.s32.totalorder %s635_s15, 3 }
   0x4   : > { %p193_p2 = pnand %p596_p0, %p192_p1 }
   0x5   : > { %p232_p3 = scmp.lt.s32.totalorder (!%p193_p2), %s592_s16, 1 }
   0x6   : > { %196 = sbr.rel (%p193_p2) target bundleno = 97 (0x61), region = 36 }
   0xb   : > { %s716_s16 = smov (!%p232_p3, %s592_s16), 1  ;;  %vm492_vm0 = vcmask 1040384  }
   0xc   : > { %s673_s17 = smul.u32 12, %s716_s16  ;;  %s601_s30 = sshll.u32 %s716_s16, 2 }
   0xd   : > { %s255_s7 = scalar_lea.vmem %s714_s4, %s601_s30 }
   0xe   : > { %s236_s20 = scalar_lea.vmem %s710_s0, %s673_s17  ;;  %s241_s23 = scalar_lea.vmem %s711_s1, %s673_s17 }
   0xf   : > { %v256_v0 = vld [vmem:[%s236_s20] sm:$0x5]  ;;  %v257_v6 = vld [vmem:[%s236_s20 + $0x4] sm:$0x5]  ;;  %v605_v12 = vld [vmem:[%s236_s20 + $0x8] sm:$0x5]  ;;  %s246_s26 = scalar_lea.vmem %s712_s2, %s673_s17  ;;  %s251_s29 = scalar_lea.vmem %s713_s3, %s673_s17 }
  0x10   : > { %v613_v1 = vld [vmem:[%s236_s20] sm:$0xff]   ;;  %v260_v3 = vunpack.c.l.bf16 %v256_v0  ;;  %v261_v7 = vunpack.c.l.bf16 %v257_v6  ;;  %v297_v14 = vunpack.c.l.bf16 %v605_v12  ;;  %v609_v35 = vld [vmem:[%s241_s23 + $0x8] sm:$0x5] }
  0x11   : > { %v614_v2 = vunpack.c.l.bf16 %v613_v1  ;;  %v615_v4 = vunpack.c.h.bf16 %v613_v1  ;;  %v604_v11 = vld [vmem:[%s236_s20 + $0x4] sm:$0x5]  ;;  %v348_v24 = vld [vmem:[%s241_s23] sm:$0x5]  ;;  %v383_v37 = vunpack.c.l.bf16 %v609_v35 }
  0x12   : > { %v296_v13 = vunpack.c.l.bf16 %v604_v11  ;;  %v606_v19 = vld [vmem:[%s236_s20 + $0x4] sm:$0xff]   ;;  %v354_v28 = vunpack.c.l.bf16 %v348_v24  ;;  %v403_v40 = vld [vmem:[%s246_s26] sm:$0x5] }
  0x13   : > { %v602_v5 = vrot.slane %v614_v2, 9  ;;  %v603_v8 = vrot.slane %v615_v4, 9  ;;  %v323_v20 = vunpack.c.l.bf16 %v606_v19  ;;  %v324_v21 = vunpack.c.h.bf16 %v606_v19  ;;  %v349_v27 = vld [vmem:[%s241_s23 + $0x4] sm:$0x5]  ;;  %v461_v55 = vld [vmem:[%s251_s29] sm:$0x5] }
  0x14   : > { %v355_v29 = vunpack.c.l.bf16 %v349_v27  ;;  %v608_v32 = vld [vmem:[%s241_s23 + $0x4] sm:$0x5]  ;;  %v409_v44 = vunpack.c.l.bf16 %v403_v40  ;;  %v467_v63 = vunpack.c.l.bf16 %v461_v55 }
  0x15   : > { %v272_v9 = vmax.f32 %v260_v3, %v602_v5  ;;  %v273_v10 = vmax.f32 %v261_v7, %v603_v8  ;;  %v382_v36 = vunpack.c.l.bf16 %v608_v32  ;;  %v404_v43 = vld [vmem:[%s246_s26 + $0x4] sm:$0x5] }
  0x16   : > { %v410_v45 = vunpack.c.l.bf16 %v404_v43  ;;  %v617_v48 = vld [vmem:[%s246_s26] sm:$0xff]  }
  0x17   : > { %276 = vst [vmem:[#allocation1] ss:$2 sm:$0xff] %v272_v9  ;;  %v618_v51 = vunpack.c.l.bf16 %v617_v48  ;;  %v619_v52 = vunpack.c.h.bf16 %v617_v48  ;;  %v462_v60 = vld [vmem:[%s251_s29 + $0x4] sm:$0x5] }
  0x18   : > { %280 = vst [vmem:[#allocation1 + $0x10] ss:$2 sm:$0xff] %v273_v10  ;;  %v468_v4 = vunpack.c.l.bf16 %v462_v60 }
  0x1e   : > { %v679_v15 = vld.sshfl [vmem:[#allocation1] sm:$0xff pattern:$0x75316420]  ;;  %v681_v16 = vld.sshfl [vmem:[#allocation1 + $0x8] sm:$0xff pattern:$0x75316420] }
  0x1f   : > { %300 = vst [vmem:[#allocation1] ss:$2 sm:$0xff] %v296_v13  ;;  %v683_v17 = vld.sshfl [vmem:[#allocation1 + $0x10] sm:$0xff pattern:$0x75316420] }
  0x20   : > { %v685_v18 = vld.sshfl [vmem:[#allocation1 + $0x18] sm:$0xff pattern:$0x75316420] }
  0x21   : > { %304 = vst [vmem:[#allocation1 + $0x10] ss:$2 sm:$0xff] %v297_v14 }
  0x26   : > { %v301_v22 = vld.sshfl [vmem:[#allocation1] sm:$0xff pattern:$0x75316420]  ;;  %v302_v23 = vld.sshfl [vmem:[#allocation1 + $0x8] sm:$0xff pattern:$0x75316420] }
  0x27   : > { %327 = vst [vmem:[#allocation1] ss:$2 sm:$0xff] %v323_v20  ;;  %v311_v0 = vmax.f32 %v679_v15, %v301_v22  ;;  %v312_v1 = vmax.f32 %v681_v16, %v302_v23 }
  0x28   : > { %v305_v25 = vld.sshfl [vmem:[#allocation1 + $0x10] sm:$0xff pattern:$0x75316420]  ;;  %v306_v26 = vld.sshfl [vmem:[#allocation1 + $0x18] sm:$0xff pattern:$0x75316420] }
  0x29   : > { %331 = vst [vmem:[#allocation1 + $0x10] ss:$2 sm:$0xff] %v324_v21  ;;  %v313_v2 = vmax.f32 %v683_v17, %v305_v25  ;;  %v314_v3 = vmax.f32 %v685_v18, %v306_v26 }
  0x2e   : > { %v328_v30 = vld.sshfl [vmem:[#allocation1] sm:$0xff pattern:$0x75316420]  ;;  %v329_v31 = vld.sshfl [vmem:[#allocation1 + $0x8] sm:$0xff pattern:$0x75316420] }
  0x2f   : > { %358 = vst [vmem:[#allocation1] ss:$2 sm:$0xff] %v354_v28  ;;  %v334_v58 = vrot.slane %v328_v30, 1  ;;  %v335_v59 = vrot.slane %v329_v31, 1 }
  0x30   : > { %v332_v33 = vld.sshfl [vmem:[#allocation1 + $0x10] sm:$0xff pattern:$0x75316420]  ;;  %v333_v34 = vld.sshfl [vmem:[#allocation1 + $0x18] sm:$0xff pattern:$0x75316420] }
  0x31   : > { %362 = vst [vmem:[#allocation1 + $0x10] ss:$2 sm:$0xff] %v355_v29  ;;  %v336_v61 = vrot.slane %v332_v33, 1  ;;  %v337_v62 = vrot.slane %v333_v34, 1  ;;  %v342_v5 = vmax.f32 %v311_v0, %v334_v58  ;;  %v343_v6 = vmax.f32 %v312_v1, %v335_v59 }
  0x33   : > { %v344_v9 = vmax.f32 %v313_v2, %v336_v61  ;;  %v345_v10 = vmax.f32 %v314_v3, %v337_v62 }
  0x36   : > { %v359_v38 = vld.sshfl [vmem:[#allocation1] sm:$0xff pattern:$0x75316420]  ;;  %v360_v39 = vld.sshfl [vmem:[#allocation1 + $0x8] sm:$0xff pattern:$0x75316420] }
  0x37   : > { %386 = vst [vmem:[#allocation1] ss:$2 sm:$0xff] %v382_v36  ;;  %v369_v11 = vmax.f32 %v342_v5, %v359_v38  ;;  %v370_v12 = vmax.f32 %v343_v6, %v360_v39 }
  0x38   : > { %v363_v41 = vld.sshfl [vmem:[#allocation1 + $0x10] sm:$0xff pattern:$0x75316420]  ;;  %v364_v42 = vld.sshfl [vmem:[#allocation1 + $0x18] sm:$0xff pattern:$0x75316420] }
  0x39   : > { %390 = vst [vmem:[#allocation1 + $0x10] ss:$2 sm:$0xff] %v383_v37  ;;  %v371_v19 = vmax.f32 %v344_v9, %v363_v41  ;;  %v372_v15 = vmax.f32 %v345_v10, %v364_v42 }
  0x3e   : > { %v387_v46 = vld.sshfl [vmem:[#allocation1] sm:$0xff pattern:$0x75316420]  ;;  %v388_v47 = vld.sshfl [vmem:[#allocation1 + $0x8] sm:$0xff pattern:$0x75316420] }
  0x3f   : > { %413 = vst [vmem:[#allocation1] ss:$2 sm:$0xff] %v409_v44  ;;  %v397_v16 = vmax.f32 %v369_v11, %v387_v46  ;;  %v398_v17 = vmax.f32 %v370_v12, %v388_v47 }
  0x40   : > { %v391_v49 = vld.sshfl [vmem:[#allocation1 + $0x10] sm:$0xff pattern:$0x75316420]  ;;  %v392_v50 = vld.sshfl [vmem:[#allocation1 + $0x18] sm:$0xff pattern:$0x75316420] }
  0x41   : > { %417 = vst [vmem:[#allocation1 + $0x10] ss:$2 sm:$0xff] %v410_v45  ;;  %v399_v21 = vmax.f32 %v371_v19, %v391_v49  ;;  %v400_v22 = vmax.f32 %v372_v15, %v392_v50 }
  0x46   : > { %v414_v53 = vld.sshfl [vmem:[#allocation1] sm:$0xff pattern:$0x75316420]  ;;  %v415_v54 = vld.sshfl [vmem:[#allocation1 + $0x8] sm:$0xff pattern:$0x75316420] }
  0x47   : > { %440 = vst [vmem:[#allocation1] ss:$2 sm:$0xff] %v618_v51  ;;  %v424_v23 = vmax.f32 %v397_v16, %v414_v53  ;;  %v425_v24 = vmax.f32 %v398_v17, %v415_v54 }
  0x48   : > { %v418_v56 = vld.sshfl [vmem:[#allocation1 + $0x10] sm:$0xff pattern:$0x75316420]  ;;  %v419_v57 = vld.sshfl [vmem:[#allocation1 + $0x18] sm:$0xff pattern:$0x75316420] }
  0x49   : > { %444 = vst [vmem:[#allocation1 + $0x10] ss:$2 sm:$0xff] %v619_v52  ;;  %v426_v29 = vmax.f32 %v399_v21, %v418_v56  ;;  %v427_v30 = vmax.f32 %v400_v22, %v419_v57 }
  0x4e   : > { %v441_v7 = vld.sshfl [vmem:[#allocation1] sm:$0xff pattern:$0x75316420]  ;;  %v442_v8 = vld.sshfl [vmem:[#allocation1 + $0x8] sm:$0xff pattern:$0x75316420] }
  0x4f   : > { %471 = vst [vmem:[#allocation1] ss:$2 sm:$0xff] %v467_v63  ;;  %v447_v20 = vrot.slane %v441_v7, 1  ;;  %v448_v18 = vrot.slane %v442_v8, 1 }
  0x50   : > { %v445_v13 = vld.sshfl [vmem:[#allocation1 + $0x10] sm:$0xff pattern:$0x75316420]  ;;  %v446_v14 = vld.sshfl [vmem:[#allocation1 + $0x18] sm:$0xff pattern:$0x75316420] }
  0x51   : > { %475 = vst [vmem:[#allocation1 + $0x10] ss:$2 sm:$0xff] %v468_v4  ;;  %v449_v25 = vrot.slane %v445_v13, 1  ;;  %v450_v26 = vrot.slane %v446_v14, 1  ;;  %v455_v27 = vmax.f32 %v424_v23, %v447_v20  ;;  %v456_v28 = vmax.f32 %v425_v24, %v448_v18 }
  0x53   : > { %v457_v35 = vmax.f32 %v426_v29, %v449_v25  ;;  %v458_v36 = vmax.f32 %v427_v30, %v450_v26 }
  0x56   : > { %v472_v31 = vld.sshfl [vmem:[#allocation1] sm:$0xff pattern:$0x75316420]  ;;  %v473_v32 = vld.sshfl [vmem:[#allocation1 + $0x8] sm:$0xff pattern:$0x75316420] }
  0x57   : > { %v482_v33 = vmax.f32 %v455_v27, %v472_v31  ;;  %v483_v34 = vmax.f32 %v456_v28, %v473_v32 }
  0x58   : > { %v476_v37 = vld.sshfl [vmem:[#allocation1 + $0x10] sm:$0xff pattern:$0x75316420]  ;;  %v477_v38 = vld.sshfl [vmem:[#allocation1 + $0x18] sm:$0xff pattern:$0x75316420] }
  0x59   : > { %v486_v39 = vpack.c.bf16 %v483_v34, %v482_v33  ;;  %v484_v40 = vmax.f32 %v457_v35, %v476_v37  ;;  %v485_v41 = vmax.f32 %v458_v36, %v477_v38 }
  0x5b   : > { %v490_v42 = vrot.slane %v486_v39, 3  ;;  %v487_v43 = vpack.c.bf16 %v485_v41, %v484_v40 }
  0x5d   : > { %v495_v44 = vsel %vm492_vm0, %v486_v39, %v490_v42  ;;  %v491_v45 = vrot.slane %v487_v43, 3 }
  0x5e   : > { %501 = vst [vmem:[%s255_s7] sm:$0x3] %v495_v44 }
  0x5f   : > { %v498_v46 = vsel %vm492_vm0, %v487_v43, %v491_v45 }
  0x60   : > { %502 = vst [vmem:[%s255_s7 + $0x2] sm:$0x3] %v498_v46 }
  0x61 PF: > { %s14_s15 = sadd.s32 1, %s635_s15  }
  0x62   : > { %p11_p4 = scmp.ge.s32.totalorder %s14_s15, 4  }
  0x64   :  { %13 = sbr.rel (!%p11_p4) target bundleno = 1 (0x1), region = 85 }

// kernel: zfnet_forward.12
= control target key start
LH: loop header
LB: loop body
LE: loop exit
PB: predicated region body
PF: predicated region fallthrough
CT: control target
= control target key end

     0   :  { %s3005_s0 = inlined_call_operand.vmem [shape: bf16[16,2304], index: 0, kind: input, shape index: {}]   ;;  %s3006_s1 = inlined_call_operand.vmem [shape: bf16[2304,512], index: 1, kind: input, shape index: {}]   ;;  %s3007_s2 = inlined_call_operand.vmem [shape: f32[1,512], index: 2, kind: input, shape index: {}]   ;;  %s3008_s3 = inlined_call_operand.vmem [shape: bf16[16,512], index: 3, kind: output, shape index: {}]  }
   0x1   :  { %3010 = sst [smem:[#allocation7_spill]] %s3005_s0 }
   0x2   :  { %3011 = sst [smem:[#allocation8_spill]] %s3006_s1 }
   0x3   :  { %s2399_s12 = smov 0   ;;  %s2401_s13 = smov 0  }
   0x4   :  { %s2403_s14 = smov 0   ;;  %s2405_s15 = smov 0  }
   0x5   :  { %s2407_s16 = smov 0   ;;  %s2409_s17 = smov 0  }
   0x6   :  { %s2411_s18 = smov 0   ;;  %s2413_s19 = smov 0  }
   0x7   :  { %s2415_s20 = smov 0   ;;  %s2417_s21 = smov 0  }
   0x8   :  { %s2419_s22 = smov 0  }
   0x9 LB: > { %s1666_s23 = sadd.s32 4294967295, %s2376_s22   ;;  %s25_s24 = sadd.s32 1, %s2368_s20  ;;  %s2376_s22 = sphi %s2419_s22, %s13_s22   ;;  %s2372_s21 = sphi %s2417_s21, %s3028_s21   ;;  %s2368_s20 = sphi %s2415_s20, %s3027_s20   ;;  %s2364_s19 = sphi %s2413_s19, %s3026_s19   ;;  %s2360_s18 = sphi %s2411_s18, %s3025_s18   ;;  %s2356_s17 = sphi %s2409_s17, %s3024_s17   ;;  %s2352_s16 = sphi %s2407_s16, %s3023_s16   ;;  %s2348_s15 = sphi %s2405_s15, %s3022_s15   ;;  %s2344_s14 = sphi %s2403_s14, %s3021_s14   ;;  %s2340_s13 = sphi %s2401_s13, %s3020_s13   ;;  %s2336_s12 = sphi %s2399_s12, %s3019_s12  }
   0xa   : > { %p26_p0 = scmp.ge.s32.totalorder %s25_s24, 3  ;;  %s28_s25 = sadd.s32 1, %s2372_s21 }
   0xb   : > { %s41_s26 = sadd.s32 1, %s2356_s17  ;;  %p48_p1 = scmp.ne.s32.totalorder %s2356_s17, %s2352_s16 }
   0xc   : > { %s3030_s24 = smov (%p26_p0, %s25_s24), 0  ;;  %s3032_s25 = smov (!%p26_p0, %s28_s25), %s2372_s21 }
   0xd   : > { %s37_s27 = ssub.s32 %s2368_s20, %s3030_s24  ;;  %p49_p2 = scmp.eq.s32.totalorder %s2376_s22, 0 }
   0xe   : > { %p30_p3 = scmp.ge.s32.totalorder %s3032_s25, 2  ;;  %p39_p4 = scmp.eq.s32.totalorder %s37_s27, 0 }
   0xf   : > { %p2466_p5 = por %p49_p2, %p48_p1  ;;  %s69_s29 = sadd.s32 1, %s2348_s15 }
  0x10   : > { %s3034_s25 = smov (%p30_p3, %s3032_s25), 0  ;;  %p76_p6 = scmp.ne.s32.totalorder %s2348_s15, %s2344_s14 }
  0x11   : > { %3013 = sst [smem:[#allocation6_spill]] %s3034_s25  ;;  %s65_s4 = ssub.s32 %s2372_s21, %s3034_s25 }
  0x12   : > { %s2474_s30 = scalar_select %p39_p4, %s2356_s17, %s41_s26  }
  0x13   : > { %s66_s5 = sor.u32 %s65_s4, %s37_s27  ;;  %p121_p7 = scmp.eq.s32.totalorder %s65_s4, 0 }
  0x14   : > { %p67_p8 = scmp.eq.s32.totalorder %s66_s5, 0  ;;  %p2480_p9 = por %p76_p6, %p49_p2 }
  0x15   : > { %s123_s7 = sadd.s32 1, %s2340_s13  ;;  %p133_p10 = scmp.ne.s32.totalorder %s2340_s13, %s2336_s12 }
  0x16   : > { %s2488_s8 = scalar_select %p67_p8, %s2348_s15, %s69_s29  }
  0x17   : > { %s2491_s9 = scalar_select %p121_p7, %s2340_s13, %s123_s7  }
  0x18   : > { %p134_p11 = scmp.eq.s32.totalorder %s1666_s23, 5  ;;  %p1669_p13 = scmp.ge.s32.totalorder %s2376_s22, 6 }
  0x1a   : > { %p2493_p12 = por %p134_p11, %p133_p10  ;;  %156 = sbr.rel (%p1669_p13) target bundleno = 152 (0x98), region = 16 }
  0x1f   : > { %159 = sbr.rel (!%p2466_p5) target bundleno = 46 (0x2e), region = 20  ;;  %s161_s11 = sand.u32 (%p2466_p5), 1, %s2356_s17  }
  0x20   : > { %s2092_s26 = smul.u32 (%p2466_p5), 24, %s2368_s20  ;;  %s3016_s0 = sld [smem:[#allocation7_spill]] (%p2466_p5) }
  0x21   : > { %s2197_s27 = smul.u32 (%p2466_p5), 48, %s161_s11 }
  0x23   : > { %s163_s23 = scalar_lea.vmem (%p2466_p5), [#allocation3], %s2197_s27 }
  0x26   : > { %s169_s5 = scalar_lea.vmem %s3016_s0, %s2092_s26 }
  0x27   : > { %v182_v0 = vld [vmem:[%s169_s5] sm:$0xff]  ;;  %v184_v1 = vld [vmem:[%s169_s5 + $0x8] sm:$0xff]  ;;  %v186_v2 = vld [vmem:[%s169_s5 + $0x10] sm:$0xff] }
  0x28   : > { %183 = vst [vmem:[%s163_s23] sm:$0xff] %v182_v0  ;;  %v188_v3 = vld [vmem:[%s169_s5 + $0x48] sm:$0xff]  ;;  %v190_v4 = vld [vmem:[%s169_s5 + $0x50] sm:$0xff]  ;;  %v192_v5 = vld [vmem:[%s169_s5 + $0x58] sm:$0xff] }
  0x29   : > { %185 = vst [vmem:[%s163_s23 + $0x8] sm:$0xff] %v184_v1 }
  0x2a   : > { %187 = vst [vmem:[%s163_s23 + $0x10] sm:$0xff] %v186_v2 }
  0x2b   : > { %189 = vst [vmem:[%s163_s23 + $0x18] sm:$0xff] %v188_v3 }
  0x2c   : > { %191 = vst [vmem:[%s163_s23 + $0x20] sm:$0xff] %v190_v4 }
  0x2d   : > { %193 = vst [vmem:[%s163_s23 + $0x28] sm:$0xff] %v192_v5 }
  0x2e PF: > { %199 = sbr.rel (!%p2480_p9) target bundleno = 152 (0x98), region = 43  ;;  %s201_s28 = sand.u32 (%p2480_p9), 1, %s2348_s15  }
  0x2f   : > { %s2198_s7 = smul.u32 (%p2480_p9), 768, %s201_s28  ;;  %s1671_s11 = sshll.u32 (%p2480_p9), %s2372_s21, 1 }
  0x30   : > { %s2093_s26 = smul.u32 (%p2480_p9), 384, %s2368_s20  ;;  %s3017_s1 = sld [smem:[#allocation8_spill]] (%p2480_p9) }
  0x31   : > { %s2518_s6 = scalar_lea.vmem (%p2480_p9), [#allocation4], %s2198_s7 }
  0x32   : > { %s207_s27 = sadd.s32 (%p2480_p9), %s2093_s26, %s1671_s11 }
  0x33   : > { %s1673_s29 = sshll.u32 %s207_s27, 2 }
  0x36   : > { %s2513_s5 = scalar_lea.vmem %s3017_s1, %s1673_s29 }
  0x37   : > { %v428_v6 = vld [vmem:[%s2513_s5] sm:$0xff]  ;;  %v430_v7 = vld [vmem:[%s2513_s5 + $0x10] sm:$0xff] }
  0x38   : > { %v432_v8 = vld [vmem:[%s2513_s5 + $0x20] sm:$0xff]  ;;  %429 = vst [vmem:[%s2518_s6] sm:$0xff] %v428_v6  ;;  %v434_v9 = vld [vmem:[%s2513_s5 + $0x30] sm:$0xff] }
  0x39   : > { %431 = vst [vmem:[%s2518_s6 + $0x8] sm:$0xff] %v430_v7  ;;  %v436_v10 = vld [vmem:[%s2513_s5 + $0x40] sm:$0xff]  ;;  %v438_v11 = vld [vmem:[%s2513_s5 + $0x50] sm:$0xff] }
  0x3a   : > { %433 = vst [vmem:[%s2518_s6 + $0x10] sm:$0xff] %v432_v8  ;;  %v440_v12 = vld [vmem:[%s2513_s5 + $0x60] sm:$0xff]  ;;  %v442_v13 = vld [vmem:[%s2513_s5 + $0x70] sm:$0xff] }
  0x3b   : > { %435 = vst [vmem:[%s2518_s6 + $0x18] sm:$0xff] %v434_v9  ;;  %v444_v14 = vld [vmem:[%s2513_s5 + $0x80] sm:$0xff]  ;;  %v446_v15 = vld [vmem:[%s2513_s5 + $0x90] sm:$0xff] }
  0x3c   : > { %437 = vst [vmem:[%s2518_s6 + $0x20] sm:$0xff] %v436_v10  ;;  %v448_v16 = vld [vmem:[%s2513_s5 + $0xa0] sm:$0xff]  ;;  %v450_v17 = vld [vmem:[%s2513_s5 + $0xb0] sm:$0xff] }
  0x3d   : > { %439 = vst [vmem:[%s2518_s6 + $0x28] sm:$0xff] %v438_v11  ;;  %v452_v18 = vld [vmem:[%s2513_s5 + $0xc0] sm:$0xff]  ;;  %v454_v19 = vld [vmem:[%s2513_s5 + $0xd0] sm:$0xff] }
  0x3e   : > { %441 = vst [vmem:[%s2518_s6 + $0x30] sm:$0xff] %v440_v12  ;;  %v456_v20 = vld [vmem:[%s2513_s5 + $0xe0] sm:$0xff]  ;;  %v458_v21 = vld [vmem:[%s2513_s5 + $0xf0] sm:$0xff] }
  0x3f   : > { %443 = vst [vmem:[%s2518_s6 + $0x38] sm:$0xff] %v442_v13  ;;  %v460_v22 = vld [vmem:[%s2513_s5 + $0x100] sm:$0xff]  ;;  %v462_v23 = vld [vmem:[%s2513_s5 + $0x110] sm:$0xff] }
  0x40   : > { %445 = vst [vmem:[%s2518_s6 + $0x40] sm:$0xff] %v444_v14  ;;  %v464_v24 = vld [vmem:[%s2513_s5 + $0x120] sm:$0xff]  ;;  %v466_v25 = vld [vmem:[%s2513_s5 + $0x130] sm:$0xff] }
  0x41   : > { %447 = vst [vmem:[%s2518_s6 + $0x48] sm:$0xff] %v446_v15  ;;  %v468_v26 = vld [vmem:[%s2513_s5 + $0x140] sm:$0xff]  ;;  %v470_v27 = vld [vmem:[%s2513_s5 + $0x150] sm:$0xff] }
  0x42   : > { %449 = vst [vmem:[%s2518_s6 + $0x50] sm:$0xff] %v448_v16  ;;  %v472_v28 = vld [vmem:[%s2513_s5 + $0x160] sm:$0xff]  ;;  %v474_v29 = vld [vmem:[%s2513_s5 + $0x170] sm:$0xff] }
  0x43   : > { %451 = vst [vmem:[%s2518_s6 + $0x58] sm:$0xff] %v450_v17  ;;  %v476_v30 = vld [vmem:[%s2513_s5 + $0x180] sm:$0xff]  ;;  %v478_v31 = vld [vmem:[%s2513_s5 + $0x190] sm:$0xff] }
  0x44   : > { %453 = vst [vmem:[%s2518_s6 + $0x60] sm:$0xff] %v452_v18  ;;  %v480_v32 = vld [vmem:[%s2513_s5 + $0x1a0] sm:$0xff]  ;;  %v482_v33 = vld [vmem:[%s2513_s5 + $0x1b0] sm:$0xff] }
  0x45   : > { %455 = vst [vmem:[%s2518_s6 + $0x68] sm:$0xff] %v454_v19  ;;  %v484_v34 = vld [vmem:[%s2513_s5 + $0x1c0] sm:$0xff]  ;;  %v486_v35 = vld [vmem:[%s2513_s5 + $0x1d0] sm:$0xff] }
  0x46   : > { %457 = vst [vmem:[%s2518_s6 + $0x70] sm:$0xff] %v456_v20  ;;  %v488_v36 = vld [vmem:[%s2513_s5 + $0x1e0] sm:$0xff]  ;;  %v490_v37 = vld [vmem:[%s2513_s5 + $0x1f0] sm:$0xff] }
  0x47   : > { %459 = vst [vmem:[%s2518_s6 + $0x78] sm:$0xff] %v458_v21  ;;  %v492_v38 = vld [vmem:[%s2513_s5 + $0x200] sm:$0xff]  ;;  %v494_v39 = vld [vmem:[%s2513_s5 + $0x210] sm:$0xff] }
  0x48   : > { %461 = vst [vmem:[%s2518_s6 + $0x80] sm:$0xff] %v460_v22  ;;  %v496_v40 = vld [vmem:[%s2513_s5 + $0x220] sm:$0xff]  ;;  %v498_v41 = vld [vmem:[%s2513_s5 + $0x230] sm:$0xff] }
  0x49   : > { %463 = vst [vmem:[%s2518_s6 + $0x88] sm:$0xff] %v462_v23  ;;  %v500_v42 = vld [vmem:[%s2513_s5 + $0x240] sm:$0xff]  ;;  %v502_v43 = vld [vmem:[%s2513_s5 + $0x250] sm:$0xff] }
  0x4a   : > { %465 = vst [vmem:[%s2518_s6 + $0x90] sm:$0xff] %v464_v24  ;;  %v504_v44 = vld [vmem:[%s2513_s5 + $0x260] sm:$0xff]  ;;  %v506_v45 = vld [vmem:[%s2513_s5 + $0x270] sm:$0xff] }
  0x4b   : > { %467 = vst [vmem:[%s2518_s6 + $0x98] sm:$0xff] %v466_v25  ;;  %v508_v46 = vld [vmem:[%s2513_s5 + $0x280] sm:$0xff]  ;;  %v510_v47 = vld [vmem:[%s2513_s5 + $0x290] sm:$0xff] }
  0x4c   : > { %469 = vst [vmem:[%s2518_s6 + $0xa0] sm:$0xff] %v468_v26  ;;  %v512_v48 = vld [vmem:[%s2513_s5 + $0x2a0] sm:$0xff]  ;;  %v514_v49 = vld [vmem:[%s2513_s5 + $0x2b0] sm:$0xff] }
  0x4d   : > { %471 = vst [vmem:[%s2518_s6 + $0xa8] sm:$0xff] %v470_v27  ;;  %v516_v50 = vld [vmem:[%s2513_s5 + $0x2c0] sm:$0xff]  ;;  %v518_v51 = vld [vmem:[%s2513_s5 + $0x2d0] sm:$0xff] }
  0x4e   : > { %473 = vst [vmem:[%s2518_s6 + $0xb0] sm:$0xff] %v472_v28  ;;  %v520_v52 = vld [vmem:[%s2513_s5 + $0x2e0] sm:$0xff]  ;;  %v522_v53 = vld [vmem:[%s2513_s5 + $0x2f0] sm:$0xff] }
  0x4f   : > { %475 = vst [vmem:[%s2518_s6 + $0xb8] sm:$0xff] %v474_v29  ;;  %v524_v54 = vld [vmem:[%s2513_s5 + $0x300] sm:$0xff]  ;;  %v526_v55 = vld [vmem:[%s2513_s5 + $0x310] sm:$0xff] }
  0x50   : > { %477 = vst [vmem:[%s2518_s6 + $0xc0] sm:$0xff] %v476_v30  ;;  %v528_v56 = vld [vmem:[%s2513_s5 + $0x320] sm:$0xff]  ;;  %v530_v57 = vld [vmem:[%s2513_s5 + $0x330] sm:$0xff] }
  0x51   : > { %479 = vst [vmem:[%s2518_s6 + $0xc8] sm:$0xff] %v478_v31  ;;  %v532_v58 = vld [vmem:[%s2513_s5 + $0x340] sm:$0xff]  ;;  %v534_v59 = vld [vmem:[%s2513_s5 + $0x350] sm:$0xff] }
  0x52   : > { %481 = vst [vmem:[%s2518_s6 + $0xd0] sm:$0xff] %v480_v32  ;;  %v536_v60 = vld [vmem:[%s2513_s5 + $0x360] sm:$0xff]  ;;  %v538_v61 = vld [vmem:[%s2513_s5 + $0x370] sm:$0xff] }
  0x53   : > { %483 = vst [vmem:[%s2518_s6 + $0xd8] sm:$0xff] %v482_v33  ;;  %v540_v62 = vld [vmem:[%s2513_s5 + $0x380] sm:$0xff]  ;;  %v542_v63 = vld [vmem:[%s2513_s5 + $0x390] sm:$0xff] }
  0x54   : > { %485 = vst [vmem:[%s2518_s6 + $0xe0] sm:$0xff] %v484_v34  ;;  %v544_v0 = vld [vmem:[%s2513_s5 + $0x3a0] sm:$0xff]  ;;  %v546_v1 = vld [vmem:[%s2513_s5 + $0x3b0] sm:$0xff] }
  0x55   : > { %487 = vst [vmem:[%s2518_s6 + $0xe8] sm:$0xff] %v486_v35  ;;  %v548_v2 = vld [vmem:[%s2513_s5 + $0x3c0] sm:$0xff]  ;;  %v550_v3 = vld [vmem:[%s2513_s5 + $0x3d0] sm:$0xff] }
  0x56   : > { %489 = vst [vmem:[%s2518_s6 + $0xf0] sm:$0xff] %v488_v36  ;;  %v552_v4 = vld [vmem:[%s2513_s5 + $0x3e0] sm:$0xff]  ;;  %v554_v5 = vld [vmem:[%s2513_s5 + $0x3f0] sm:$0xff] }
  0x57   : > { %491 = vst [vmem:[%s2518_s6 + $0xf8] sm:$0xff] %v490_v37  ;;  %v556_v6 = vld [vmem:[%s2513_s5 + $0x400] sm:$0xff]  ;;  %v558_v7 = vld [vmem:[%s2513_s5 + $0x410] sm:$0xff] }
  0x58   : > { %493 = vst [vmem:[%s2518_s6 + $0x100] sm:$0xff] %v492_v38  ;;  %v560_v8 = vld [vmem:[%s2513_s5 + $0x420] sm:$0xff]  ;;  %v562_v9 = vld [vmem:[%s2513_s5 + $0x430] sm:$0xff] }
  0x59   : > { %495 = vst [vmem:[%s2518_s6 + $0x108] sm:$0xff] %v494_v39  ;;  %v564_v10 = vld [vmem:[%s2513_s5 + $0x440] sm:$0xff]  ;;  %v566_v11 = vld [vmem:[%s2513_s5 + $0x450] sm:$0xff] }
  0x5a   : > { %497 = vst [vmem:[%s2518_s6 + $0x110] sm:$0xff] %v496_v40  ;;  %v568_v12 = vld [vmem:[%s2513_s5 + $0x460] sm:$0xff]  ;;  %v570_v13 = vld [vmem:[%s2513_s5 + $0x470] sm:$0xff] }
  0x5b   : > { %499 = vst [vmem:[%s2518_s6 + $0x118] sm:$0xff] %v498_v41  ;;  %v572_v14 = vld [vmem:[%s2513_s5 + $0x480] sm:$0xff]  ;;  %v574_v15 = vld [vmem:[%s2513_s5 + $0x490] sm:$0xff] }
  0x5c   : > { %501 = vst [vmem:[%s2518_s6 + $0x120] sm:$0xff] %v500_v42  ;;  %v576_v16 = vld [vmem:[%s2513_s5 + $0x4a0] sm:$0xff]  ;;  %v578_v17 = vld [vmem:[%s2513_s5 + $0x4b0] sm:$0xff] }
  0x5d   : > { %503 = vst [vmem:[%s2518_s6 + $0x128] sm:$0xff] %v502_v43  ;;  %v580_v18 = vld [vmem:[%s2513_s5 + $0x4c0] sm:$0xff]  ;;  %v582_v19 = vld [vmem:[%s2513_s5 + $0x4d0] sm:$0xff] }
  0x5e   : > { %505 = vst [vmem:[%s2518_s6 + $0x130] sm:$0xff] %v504_v44  ;;  %v584_v20 = vld [vmem:[%s2513_s5 + $0x4e0] sm:$0xff]  ;;  %v586_v21 = vld [vmem:[%s2513_s5 + $0x4f0] sm:$0xff] }
  0x5f   : > { %507 = vst [vmem:[%s2518_s6 + $0x138] sm:$0xff] %v506_v45  ;;  %v588_v22 = vld [vmem:[%s2513_s5 + $0x500] sm:$0xff]  ;;  %v590_v23 = vld [vmem:[%s2513_s5 + $0x510] sm:$0xff] }
  0x60   : > { %509 = vst [vmem:[%s2518_s6 + $0x140] sm:$0xff] %v508_v46  ;;  %v592_v24 = vld [vmem:[%s2513_s5 + $0x520] sm:$0xff]  ;;  %v594_v25 = vld [vmem:[%s2513_s5 + $0x530] sm:$0xff] }
  0x61   : > { %511 = vst [vmem:[%s2518_s6 + $0x148] sm:$0xff] %v510_v47  ;;  %v596_v26 = vld [vmem:[%s2513_s5 + $0x540] sm:$0xff]  ;;  %v598_v27 = vld [vmem:[%s2513_s5 + $0x550] sm:$0xff] }
  0x62   : > { %513 = vst [vmem:[%s2518_s6 + $0x150] sm:$0xff] %v512_v48  ;;  %v600_v28 = vld [vmem:[%s2513_s5 + $0x560] sm:$0xff]  ;;  %v602_v29 = vld [vmem:[%s2513_s5 + $0x570] sm:$0xff] }
  0x63   : > { %515 = vst [vmem:[%s2518_s6 + $0x158] sm:$0xff] %v514_v49  ;;  %v604_v30 = vld [vmem:[%s2513_s5 + $0x580] sm:$0xff]  ;;  %v606_v31 = vld [vmem:[%s2513_s5 + $0x590] sm:$0xff] }
  0x64   : > { %517 = vst [vmem:[%s2518_s6 + $0x160] sm:$0xff] %v516_v50  ;;  %v608_v32 = vld [vmem:[%s2513_s5 + $0x5a0] sm:$0xff]  ;;  %v610_v33 = vld [vmem:[%s2513_s5 + $0x5b0] sm:$0xff] }
  0x65   : > { %519 = vst [vmem:[%s2518_s6 + $0x168] sm:$0xff] %v518_v51  ;;  %v612_v34 = vld [vmem:[%s2513_s5 + $0x5c0] sm:$0xff]  ;;  %v614_v35 = vld [vmem:[%s2513_s5 + $0x5d0] sm:$0xff] }
  0x66   : > { %521 = vst [vmem:[%s2518_s6 + $0x170] sm:$0xff] %v520_v52  ;;  %v616_v36 = vld [vmem:[%s2513_s5 + $0x5e0] sm:$0xff]  ;;  %v618_v37 = vld [vmem:[%s2513_s5 + $0x5f0] sm:$0xff] }
  0x67   : > { %523 = vst [vmem:[%s2518_s6 + $0x178] sm:$0xff] %v522_v53 }
  0x68   : > { %525 = vst [vmem:[%s2518_s6 + $0x180] sm:$0xff] %v524_v54 }
  0x69   : > { %527 = vst [vmem:[%s2518_s6 + $0x188] sm:$0xff] %v526_v55 }
  0x6a   : > { %529 = vst [vmem:[%s2518_s6 + $0x190] sm:$0xff] %v528_v56 }
  0x6b   : > { %531 = vst [vmem:[%s2518_s6 + $0x198] sm:$0xff] %v530_v57 }
  0x6c   : > { %533 = vst [vmem:[%s2518_s6 + $0x1a0] sm:$0xff] %v532_v58 }
  0x6d   : > { %535 = vst [vmem:[%s2518_s6 + $0x1a8] sm:$0xff] %v534_v59 }
  0x6e   : > { %537 = vst [vmem:[%s2518_s6 + $0x1b0] sm:$0xff] %v536_v60 }
  0x6f   : > { %539 = vst [vmem:[%s2518_s6 + $0x1b8] sm:$0xff] %v538_v61 }
  0x70   : > { %541 = vst [vmem:[%s2518_s6 + $0x1c0] sm:$0xff] %v540_v62 }
  0x71   : > { %543 = vst [vmem:[%s2518_s6 + $0x1c8] sm:$0xff] %v542_v63 }
  0x72   : > { %545 = vst [vmem:[%s2518_s6 + $0x1d0] sm:$0xff] %v544_v0 }
  0x73   : > { %547 = vst [vmem:[%s2518_s6 + $0x1d8] sm:$0xff] %v546_v1 }
  0x74   : > { %549 = vst [vmem:[%s2518_s6 + $0x1e0] sm:$0xff] %v548_v2 }
  0x75   : > { %551 = vst [vmem:[%s2518_s6 + $0x1e8] sm:$0xff] %v550_v3 }
  0x76   : > { %553 = vst [vmem:[%s2518_s6 + $0x1f0] sm:$0xff] %v552_v4 }
  0x77   : > { %555 = vst [vmem:[%s2518_s6 + $0x1f8] sm:$0xff] %v554_v5 }
  0x78   : > { %557 = vst [vmem:[%s2518_s6 + $0x200] sm:$0xff] %v556_v6 }
  0x79   : > { %559 = vst [vmem:[%s2518_s6 + $0x208] sm:$0xff] %v558_v7 }
  0x7a   : > { %561 = vst [vmem:[%s2518_s6 + $0x210] sm:$0xff] %v560_v8 }
  0x7b   : > { %563 = vst [vmem:[%s2518_s6 + $0x218] sm:$0xff] %v562_v9 }
  0x7c   : > { %565 = vst [vmem:[%s2518_s6 + $0x220] sm:$0xff] %v564_v10 }
  0x7d   : > { %567 = vst [vmem:[%s2518_s6 + $0x228] sm:$0xff] %v566_v11 }
  0x7e   : > { %569 = vst [vmem:[%s2518_s6 + $0x230] sm:$0xff] %v568_v12 }
  0x7f   : > { %571 = vst [vmem:[%s2518_s6 + $0x238] sm:$0xff] %v570_v13 }
  0x80   : > { %573 = vst [vmem:[%s2518_s6 + $0x240] sm:$0xff] %v572_v14 }
  0x81   : > { %575 = vst [vmem:[%s2518_s6 + $0x248] sm:$0xff] %v574_v15 }
  0x82   : > { %577 = vst [vmem:[%s2518_s6 + $0x250] sm:$0xff] %v576_v16 }
  0x83   : > { %579 = vst [vmem:[%s2518_s6 + $0x258] sm:$0xff] %v578_v17 }
  0x84   : > { %581 = vst [vmem:[%s2518_s6 + $0x260] sm:$0xff] %v580_v18 }
  0x85   : > { %583 = vst [vmem:[%s2518_s6 + $0x268] sm:$0xff] %v582_v19 }
  0x86   : > { %585 = vst [vmem:[%s2518_s6 + $0x270] sm:$0xff] %v584_v20 }
  0x87   : > { %587 = vst [vmem:[%s2518_s6 + $0x278] sm:$0xff] %v586_v21 }
  0x88   : > { %589 = vst [vmem:[%s2518_s6 + $0x280] sm:$0xff] %v588_v22 }
  0x89   : > { %591 = vst [vmem:[%s2518_s6 + $0x288] sm:$0xff] %v590_v23 }
  0x8a   : > { %593 = vst [vmem:[%s2518_s6 + $0x290] sm:$0xff] %v592_v24 }
  0x8b   : > { %595 = vst [vmem:[%s2518_s6 + $0x298] sm:$0xff] %v594_v25 }
  0x8c   : > { %597 = vst [vmem:[%s2518_s6 + $0x2a0] sm:$0xff] %v596_v26 }
  0x8d   : > { %599 = vst [vmem:[%s2518_s6 + $0x2a8] sm:$0xff] %v598_v27 }
  0x8e   : > { %601 = vst [vmem:[%s2518_s6 + $0x2b0] sm:$0xff] %v600_v28 }
  0x8f   : > { %603 = vst [vmem:[%s2518_s6 + $0x2b8] sm:$0xff] %v602_v29 }
  0x90   : > { %605 = vst [vmem:[%s2518_s6 + $0x2c0] sm:$0xff] %v604_v30 }
  0x91   : > { %607 = vst [vmem:[%s2518_s6 + $0x2c8] sm:$0xff] %v606_v31 }
  0x92   : > { %609 = vst [vmem:[%s2518_s6 + $0x2d0] sm:$0xff] %v608_v32 }
  0x93   : > { %611 = vst [vmem:[%s2518_s6 + $0x2d8] sm:$0xff] %v610_v33 }
  0x94   : > { %613 = vst [vmem:[%s2518_s6 + $0x2e0] sm:$0xff] %v612_v34 }
  0x95   : > { %615 = vst [vmem:[%s2518_s6 + $0x2e8] sm:$0xff] %v614_v35 }
  0x96   : > { %617 = vst [vmem:[%s2518_s6 + $0x2f0] sm:$0xff] %v616_v36 }
  0x97   : > { %619 = vst [vmem:[%s2518_s6 + $0x2f8] sm:$0xff] %v618_v37 }
  0x98 PF: > { %p1674_p0 = scmp.ge.s32.totalorder %s2376_s22, 1  ;;  %p632_p1 = scmp.lt.s32.totalorder %s2376_s22, 7 }
  0x9a   : > { %p633_p2 = pnand %p1674_p0, %p632_p1 }
  0x9b   : > { %s639_s0 = sand.u32 (!%p633_p2), 1, %s2352_s16   ;;  %s646_s23 = sand.u32 (!%p633_p2), 1, %s2344_s14  }
  0x9c   : > { %636 = sbr.rel (%p633_p2) target bundleno = 440 (0x1b8), region = 85  ;;  %s673_s7 = sand.u32 (!%p633_p2), 1, %s2336_s12  }
  0x9d   : > { %s2199_s28 = smul.u32 (!%p633_p2), 48, %s639_s0  ;;  %s1675_s26 = sshll.u32 (!%p633_p2), %s673_s7, 4 }
  0x9e   : > { %s2200_s11 = smul.u32 (!%p633_p2), 768, %s646_s23  ;;  %s1676_s27 = sshll.u32 (!%p633_p2), %s2364_s19, 1 }
  0x9f   : > { %p681_p3 = scmp.lt.s32.totalorder (!%p633_p2), %s1676_s27, 3  ;;  %s2721_s6 = scalar_lea.vmem (!%p633_p2), [#allocation3], %s2199_s28 }
  0xa0   : > { %s2723_s1 = scalar_lea.vmem (!%p633_p2), [#allocation4], %s2200_s11  ;;  %s2725_s25 = scalar_lea.vmem (!%p633_p2), [#allocation5], %s1675_s26 }
  0xa1   : > { %s3036_s27 = smov (!%p681_p3, %s1676_s27), 3  ;;  %p1677_p4 = scmp.ne.s32.totalorder %s2360_s18, 0 }
  0xa2   : > { %s683_s5 = scalar_lea.vmem %s3007_s2, %s3036_s27 }
  0xa3   : > { %690 = sbr.rel (%p1677_p4) target bundleno = 173 (0xad), region = 97 }
  0xa8   : > { %v2378_v38 = vmov 0.0  }
  0xa9   : > { %691 = vst [vmem:[#allocation2 + $0x10] sm:$0xff] %v2378_v38 }
  0xaa   : > { %692 = vst [vmem:[#allocation2] sm:$0xff] %v2378_v38 }
  0xab   : > { %693 = vst [vmem:[#allocation2 + $0x18] sm:$0xff] %v2378_v38 }
  0xac   : > { %694 = vst [vmem:[#allocation2 + $0x8] sm:$0xff] %v2378_v38 }
  0xad PF: > { %v1760_v39 = vld [vmem:[%s2723_s1 + $0x70] sm:$0xf]  ;;  %v2115_v40 = vld [vmem:[%s2723_s1 + $0x74] sm:$0xf0]  ;;  %v1752_v50 = vld [vmem:[%s2723_s1 + $0x60] sm:$0xf] }
  0xae   : > { %v1824_v41 = vld [vmem:[%s2723_s1 + $0xf0] sm:$0xf]  ;;  %v1761_v42 = vor.u32 %v2115_v40, %v1760_v39  ;;  %v2131_v43 = vld [vmem:[%s2723_s1 + $0xf4] sm:$0xf0]  ;;  %v2113_v52 = vld [vmem:[%s2723_s1 + $0x64] sm:$0xf0] }
  0xaf   : > { %v1888_v44 = vld [vmem:[%s2723_s1 + $0x170] sm:$0xf]  ;;  %v2147_v45 = vld [vmem:[%s2723_s1 + $0x174] sm:$0xf0]  ;;  %v1825_v46 = vor.u32 %v2131_v43, %v1824_v41  ;;  %v1816_v53 = vld [vmem:[%s2723_s1 + $0xe0] sm:$0xf]  ;;  %v1753_v55 = vor.u32 %v2113_v52, %v1752_v50 }
  0xb0   : > { %v1889_v47 = vor.u32 %v2147_v45, %v1888_v44  ;;  %v1952_v48 = vld [vmem:[%s2723_s1 + $0x1f0] sm:$0xf]  ;;  %v2163_v49 = vld [vmem:[%s2723_s1 + $0x1f4] sm:$0xf0]  ;;  %1311 = vmatpush.bf16.msra.mxu0 %v1761_v42  ;;  %v2129_v54 = vld [vmem:[%s2723_s1 + $0xe4] sm:$0xf0] }
  0xb1   : > { %v1953_v51 = vor.u32 %v2163_v49, %v1952_v48  ;;  %1325 = vmatpush.bf16.msra.mxu1 %v1825_v46  ;;  %v1817_v56 = vor.u32 %v2129_v54, %v1816_v53  ;;  %v1880_v57 = vld [vmem:[%s2723_s1 + $0x160] sm:$0xf]  ;;  %v2145_v58 = vld [vmem:[%s2723_s1 + $0x164] sm:$0xf0]  ;;  %v1744_v62 = vld [vmem:[%s2723_s1 + $0x50] sm:$0xf] }
  0xb2   : > { %1339 = vmatpush.bf16.msra.mxu2 %v1889_v47  ;;  %v1944_v59 = vld [vmem:[%s2723_s1 + $0x1e0] sm:$0xf]  ;;  %v1881_v60 = vor.u32 %v2145_v58, %v1880_v57  ;;  %v2161_v61 = vld [vmem:[%s2723_s1 + $0x1e4] sm:$0xf0]  ;;  %v2111_v63 = vld [vmem:[%s2723_s1 + $0x54] sm:$0xf0] }
  0xb3   : > { %1353 = vmatpush.bf16.msra.mxu3 %v1953_v51  ;;  %v1945_v0 = vor.u32 %v2161_v61, %v1944_v59  ;;  %v1808_v1 = vld [vmem:[%s2723_s1 + $0xd0] sm:$0xf]  ;;  %v2127_v2 = vld [vmem:[%s2723_s1 + $0xd4] sm:$0xf0]  ;;  %v1745_v4 = vor.u32 %v2111_v63, %v1744_v62  ;;  %v1736_v10 = vld [vmem:[%s2723_s1 + $0x40] sm:$0xf] }
  0xb4   : > { %v1872_v3 = vld [vmem:[%s2723_s1 + $0x150] sm:$0xf]  ;;  %1312 = vmatpush.bf16.msra.mxu0 %v1753_v55  ;;  %v2143_v5 = vld [vmem:[%s2723_s1 + $0x154] sm:$0xf0]  ;;  %v1809_v8 = vor.u32 %v2127_v2, %v1808_v1  ;;  %v2109_v11 = vld [vmem:[%s2723_s1 + $0x44] sm:$0xf0] }
  0xb5   : > { %v1936_v6 = vld [vmem:[%s2723_s1 + $0x1d0] sm:$0xf]  ;;  %v2159_v7 = vld [vmem:[%s2723_s1 + $0x1d4] sm:$0xf0]  ;;  %1326 = vmatpush.bf16.msra.mxu1 %v1817_v56  ;;  %v1873_v9 = vor.u32 %v2143_v5, %v1872_v3  ;;  %v1800_v12 = vld [vmem:[%s2723_s1 + $0xc0] sm:$0xf]  ;;  %v1737_v19 = vor.u32 %v2109_v11, %v1736_v10 }
  0xb6   : > { %1340 = vmatpush.bf16.msra.mxu2 %v1881_v60  ;;  %v1937_v13 = vor.u32 %v2159_v7, %v1936_v6  ;;  %v2125_v14 = vld [vmem:[%s2723_s1 + $0xc4] sm:$0xf0]  ;;  %v1864_v15 = vld [vmem:[%s2723_s1 + $0x140] sm:$0xf]  ;;  %v1728_v22 = vld [vmem:[%s2723_s1 + $0x30] sm:$0xf] }
  0xb7   : > { %1354 = vmatpush.bf16.msra.mxu3 %v1945_v0  ;;  %v2141_v16 = vld [vmem:[%s2723_s1 + $0x144] sm:$0xf0]  ;;  %v1928_v17 = vld [vmem:[%s2723_s1 + $0x1c0] sm:$0xf]  ;;  %v1801_v20 = vor.u32 %v2125_v14, %v1800_v12  ;;  %v2107_v23 = vld [vmem:[%s2723_s1 + $0x34] sm:$0xf0] }
  0xb8   : > { %v2157_v18 = vld [vmem:[%s2723_s1 + $0x1c4] sm:$0xf0]  ;;  %1313 = vmatpush.bf16.msra.mxu0 %v1745_v4  ;;  %v1865_v21 = vor.u32 %v2141_v16, %v1864_v15  ;;  %v1792_v24 = vld [vmem:[%s2723_s1 + $0xb0] sm:$0xf]  ;;  %v2123_v26 = vld [vmem:[%s2723_s1 + $0xb4] sm:$0xf0]  ;;  %v1729_v31 = vor.u32 %v2107_v23, %v1728_v22 }
  0xb9   : > { %1327 = vmatpush.bf16.msra.mxu1 %v1809_v8  ;;  %v1929_v25 = vor.u32 %v2157_v18, %v1928_v17  ;;  %v1856_v27 = vld [vmem:[%s2723_s1 + $0x130] sm:$0xf]  ;;  %v2139_v28 = vld [vmem:[%s2723_s1 + $0x134] sm:$0xf0]  ;;  %v1793_v32 = vor.u32 %v2123_v26, %v1792_v24  ;;  %v1720_v34 = vld [vmem:[%s2723_s1 + $0x20] sm:$0xf] }
  0xba   : > { %1341 = vmatpush.bf16.msra.mxu2 %v1873_v9  ;;  %v1920_v29 = vld [vmem:[%s2723_s1 + $0x1b0] sm:$0xf]  ;;  %v2155_v30 = vld [vmem:[%s2723_s1 + $0x1b4] sm:$0xf0]  ;;  %v1857_v33 = vor.u32 %v2139_v28, %v1856_v27  ;;  %v2105_v35 = vld [vmem:[%s2723_s1 + $0x24] sm:$0xf0] }
  0xbb   : > { %1355 = vmatpush.bf16.msra.mxu3 %v1937_v13  ;;  %v1784_v36 = vld [vmem:[%s2723_s1 + $0xa0] sm:$0xf]  ;;  %v1921_v37 = vor.u32 %v2155_v30, %v1920_v29  ;;  %v2121_v38 = vld [vmem:[%s2723_s1 + $0xa4] sm:$0xf0]  ;;  %v1721_v43 = vor.u32 %v2105_v35, %v1720_v34  ;;  %v1712_v46 = vld [vmem:[%s2723_s1 + $0x10] sm:$0xf] }
  0xbc   : > { %1314 = vmatpush.bf16.msra.mxu0 %v1737_v19  ;;  %v1848_v39 = vld [vmem:[%s2723_s1 + $0x120] sm:$0xf]  ;;  %v2137_v40 = vld [vmem:[%s2723_s1 + $0x124] sm:$0xf0]  ;;  %v1785_v44 = vor.u32 %v2121_v38, %v1784_v36  ;;  %v2103_v47 = vld [vmem:[%s2723_s1 + $0x14] sm:$0xf0] }
  0xbd   : > { %1328 = vmatpush.bf16.msra.mxu1 %v1801_v20  ;;  %v1912_v41 = vld [vmem:[%s2723_s1 + $0x1a0] sm:$0xf]  ;;  %v2153_v42 = vld [vmem:[%s2723_s1 + $0x1a4] sm:$0xf0]  ;;  %v1849_v45 = vor.u32 %v2137_v40, %v1848_v39  ;;  %v1776_v48 = vld [vmem:[%s2723_s1 + $0x90] sm:$0xf]  ;;  %v1713_v55 = vor.u32 %v2103_v47, %v1712_v46 }
  0xbe   : > { %1342 = vmatpush.bf16.msra.mxu2 %v1865_v21  ;;  %v1913_v49 = vor.u32 %v2153_v42, %v1912_v41  ;;  %v2119_v50 = vld [vmem:[%s2723_s1 + $0x94] sm:$0xf0]  ;;  %v1840_v51 = vld [vmem:[%s2723_s1 + $0x110] sm:$0xf]  ;;  %v1704_v56 = vld [vmem:[%s2723_s1] sm:$0xf] }
  0xbf   : > { %1356 = vmatpush.bf16.msra.mxu3 %v1929_v25  ;;  %v2135_v52 = vld [vmem:[%s2723_s1 + $0x114] sm:$0xf0]  ;;  %v1904_v53 = vld [vmem:[%s2723_s1 + $0x190] sm:$0xf]  ;;  %v2101_v57 = vld [vmem:[%s2723_s1 + $0x4] sm:$0xf0]  ;;  %v1777_v58 = vor.u32 %v2119_v50, %v1776_v48 }
  0xc0   : > { %1315 = vmatpush.bf16.msra.mxu0 %v1729_v31  ;;  %v2151_v54 = vld [vmem:[%s2723_s1 + $0x194] sm:$0xf0]  ;;  %v1841_v59 = vor.u32 %v2135_v52, %v1840_v51  ;;  %v1768_v60 = vld [vmem:[%s2723_s1 + $0x80] sm:$0xf]  ;;  %v2117_v61 = vld [vmem:[%s2723_s1 + $0x84] sm:$0xf0]  ;;  %v1705_v6 = vor.u32 %v2101_v57, %v1704_v56 }
  0xc1   : > { %1329 = vmatpush.bf16.msra.mxu1 %v1793_v32  ;;  %v1832_v62 = vld [vmem:[%s2723_s1 + $0x100] sm:$0xf]  ;;  %v1905_v63 = vor.u32 %v2151_v54, %v1904_v53  ;;  %v2133_v0 = vld [vmem:[%s2723_s1 + $0x104] sm:$0xf0]  ;;  %v2016_v3 = vld [vmem:[%s2723_s1 + $0x270] sm:$0xf]  ;;  %v1769_v10 = vor.u32 %v2117_v61, %v1768_v60 }
  0xc2   : > { %1343 = vmatpush.bf16.msra.mxu2 %v1857_v33  ;;  %v1896_v1 = vld [vmem:[%s2723_s1 + $0x180] sm:$0xf]  ;;  %v2149_v2 = vld [vmem:[%s2723_s1 + $0x184] sm:$0xf0]  ;;  %v2179_v4 = vld [vmem:[%s2723_s1 + $0x274] sm:$0xf0]  ;;  %v1833_v11 = vor.u32 %v2133_v0, %v1832_v62 }
  0xc3   : > { %1357 = vmatpush.bf16.msra.mxu3 %v1921_v37  ;;  %v2080_v5 = vld [vmem:[%s2723_s1 + $0x2f0] sm:$0xf]  ;;  %v2195_v7 = vld [vmem:[%s2723_s1 + $0x2f4] sm:$0xf0]  ;;  %v2114_v8 = vld [vmem:[%s2723_s1 + $0x74] sm:$0xf]  ;;  %v1897_v14 = vor.u32 %v2149_v2, %v1896_v1  ;;  %v2017_v15 = vor.u32 %v2179_v4, %v2016_v3 }
  0xc4   : > { %1316 = vmatpush.bf16.msra.mxu0 %v1721_v43  ;;  %v1762_v9 = vld [vmem:[%s2723_s1 + $0x78] sm:$0xf0]  ;;  %v2130_v12 = vld [vmem:[%s2723_s1 + $0xf4] sm:$0xf]  ;;  %v2008_v16 = vld [vmem:[%s2723_s1 + $0x260] sm:$0xf]  ;;  %v2081_v18 = vor.u32 %v2195_v7, %v2080_v5 }
  0xc5   : > { %1330 = vmatpush.bf16.msra.mxu1 %v1785_v44  ;;  %v1826_v13 = vld [vmem:[%s2723_s1 + $0xf8] sm:$0xf0]  ;;  %v2177_v17 = vld [vmem:[%s2723_s1 + $0x264] sm:$0xf0]  ;;  %v1765_v19 = vor.u32 %v2114_v8, %v1762_v9  ;;  %v2072_v20 = vld [vmem:[%s2723_s1 + $0x2e0] sm:$0xf] }
  0xc6   : > { %1344 = vmatpush.bf16.msra.mxu2 %v1849_v45  ;;  %v2193_v21 = vld [vmem:[%s2723_s1 + $0x2e4] sm:$0xf0]  ;;  %v2112_v22 = vld [vmem:[%s2723_s1 + $0x64] sm:$0xf]  ;;  %v1829_v23 = vor.u32 %v2130_v12, %v1826_v13  ;;  %v1754_v24 = vld [vmem:[%s2723_s1 + $0x68] sm:$0xf0]  ;;  %v2009_v30 = vor.u32 %v2177_v17, %v2008_v16 }
  0xc7   : > { %1358 = vmatpush.bf16.msra.mxu3 %v1913_v49  ;;  %v2128_v25 = vld [vmem:[%s2723_s1 + $0xe4] sm:$0xf]  ;;  %v1818_v26 = vld [vmem:[%s2723_s1 + $0xe8] sm:$0xf0]  ;;  %v2000_v27 = vld [vmem:[%s2723_s1 + $0x250] sm:$0xf]  ;;  %v2073_v35 = vor.u32 %v2193_v21, %v2072_v20  ;;  %v1757_v36 = vor.u32 %v2112_v22, %v1754_v24 }
  0xc8   : > { %1317 = vmatpush.bf16.msra.mxu0 %v1713_v55  ;;  %v1680_v28 = vld [vmem:[%s2721_s6] sm:$0xf]  ;;  %v2097_v29 = vld [vmem:[%s2721_s6 + $0x14] sm:$0xf0]  ;;  %v2110_v37 = vld [vmem:[%s2723_s1 + $0x54] sm:$0xf]  ;;  %v1821_v40 = vor.u32 %v2128_v25, %v1818_v26 }
  0xc9   : > { %1331 = vmatpush.bf16.msra.mxu1 %v1777_v58  ;;  %v2175_v31 = vld [vmem:[%s2723_s1 + $0x254] sm:$0xf0]  ;;  %v2064_v32 = vld [vmem:[%s2723_s1 + $0x2d0] sm:$0xf]  ;;  %v2814_v34 = vor.u32 %v2097_v29, %v1680_v28  ;;  %v1746_v38 = vld [vmem:[%s2723_s1 + $0x58] sm:$0xf0] }
  0xca   : > { %1345 = vmatpush.bf16.msra.mxu2 %v1841_v59  ;;  %v2191_v33 = vld [vmem:[%s2723_s1 + $0x2d4] sm:$0xf0]  ;;  %v2126_v39 = vld [vmem:[%s2723_s1 + $0xd4] sm:$0xf]  ;;  %v1810_v41 = vld [vmem:[%s2723_s1 + $0xd8] sm:$0xf0]  ;;  %v2001_v48 = vor.u32 %v2175_v31, %v2000_v27  ;;  %v1749_v52 = vor.u32 %v2110_v37, %v1746_v38 }
  0xcb   : > { %1359 = vmatpush.bf16.msra.mxu3 %v1905_v63  ;;  %v2094_v42 = vld [vmem:[%s2721_s6 + $0x4] sm:$0xf]  ;;  %v1682_v43 = vld [vmem:[%s2721_s6 + $0x18] sm:$0xf0]  ;;  %v1688_v45 = vld [vmem:[%s2721_s6 + $0x8] sm:$0xf]  ;;  %v2065_v51 = vor.u32 %v2191_v33, %v2064_v32  ;;  %v1813_v57 = vor.u32 %v2126_v39, %v1810_v41 }
  0xcc   : > { %1318 = vmatpush.bf16.msra.mxu0 %v1705_v6  ;;  %v2823_v44 = vor.u32 %v2094_v42, %v1682_v43  ;;  %v2098_v46 = vld [vmem:[%s2721_s6 + $0x1c] sm:$0xf0]  ;;  %v2095_v47 = vld [vmem:[%s2721_s6 + $0xc] sm:$0xf]  ;;  %v1690_v50 = vld [vmem:[%s2721_s6 + $0x20] sm:$0xf0] }
  0xcd   : > { %1332 = vmatpush.bf16.msra.mxu1 %v1769_v10  ;;  %v2828_v49 = vor.u32 %v2098_v46, %v1688_v45  ;;  %v1992_v53 = vld [vmem:[%s2723_s1 + $0x240] sm:$0xf]  ;;  %v2173_v54 = vld [vmem:[%s2723_s1 + $0x244] sm:$0xf0]  ;;  %v2834_v56 = vor.u32 %v2095_v47, %v1690_v50  ;;  %v2108_v59 = vld [vmem:[%s2723_s1 + $0x44] sm:$0xf] }
  0xce   : > { %1346 = vmatpush.bf16.msra.mxu2 %v1833_v11  ;;  %v2056_v55 = vld [vmem:[%s2723_s1 + $0x2c0] sm:$0xf]  ;;  %v2189_v58 = vld [vmem:[%s2723_s1 + $0x2c4] sm:$0xf0]  ;;  %v1738_v60 = vld [vmem:[%s2723_s1 + $0x48] sm:$0xf0]  ;;  %v1993_v63 = vor.u32 %v2173_v54, %v1992_v53 }
  0xcf   : > { %1360 = vmatpush.bf16.msra.mxu3 %v1897_v14  ;;  %1319 = vmatmul.bf16.vlgmr.msra.gmra.mxu0 %v2814_v34  ;;  %v2124_v61 = vld [vmem:[%s2723_s1 + $0xc4] sm:$0xf]  ;;  %v1802_v62 = vld [vmem:[%s2723_s1 + $0xc8] sm:$0xf0]  ;;  %v2057_v0 = vor.u32 %v2189_v58, %v2056_v55  ;;  %v1741_v1 = vor.u32 %v2108_v59, %v1738_v60  ;;  %v1984_v2 = vld [vmem:[%s2723_s1 + $0x230] sm:$0xf] }
  0xd0   : > { %1367 = vmatpush.bf16.msrb.mxu0 %v2017_v15  ;;  %1333 = vmatmul.bf16.vlgmr.msra.gmra.mxu1 %v2823_v44  ;;  %v2171_v3 = vld [vmem:[%s2723_s1 + $0x234] sm:$0xf0]  ;;  %v2048_v4 = vld [vmem:[%s2723_s1 + $0x2b0] sm:$0xf]  ;;  %v1805_v5 = vor.u32 %v2124_v61, %v1802_v62  ;;  %v2106_v7 = vld [vmem:[%s2723_s1 + $0x34] sm:$0xf] }
  0xd1   : > { %1381 = vmatpush.bf16.msrb.mxu1 %v2081_v18  ;;  %1347 = vmatmul.bf16.vlgmr.msra.gmra.mxu2 %v2828_v49  ;;  %v2187_v6 = vld [vmem:[%s2723_s1 + $0x2b4] sm:$0xf0]  ;;  %v1730_v8 = vld [vmem:[%s2723_s1 + $0x38] sm:$0xf0]  ;;  %v2122_v9 = vld [vmem:[%s2723_s1 + $0xb4] sm:$0xf]  ;;  %v1985_v11 = vor.u32 %v2171_v3, %v1984_v2 }
  0xd2   : > { %1395 = vmatpush.bf16.msrb.mxu2 %v1765_v19  ;;  %1361 = vmatmul.bf16.vlgmr.msra.gmra.mxu3 %v2834_v56  ;;  %v1794_v10 = vld [vmem:[%s2723_s1 + $0xb8] sm:$0xf0]  ;;  %v2049_v12 = vor.u32 %v2187_v6, %v2048_v4  ;;  %v1733_v13 = vor.u32 %v2106_v7, %v1730_v8  ;;  %v1976_v14 = vld [vmem:[%s2723_s1 + $0x220] sm:$0xf]  ;;  %v2169_v15 = vld [vmem:[%s2723_s1 + $0x224] sm:$0xf0] }
  0xd3   : > { %1409 = vmatpush.bf16.msrb.mxu3 %v1829_v23  ;;  %v2040_v16 = vld [vmem:[%s2723_s1 + $0x2a0] sm:$0xf]  ;;  %v1797_v17 = vor.u32 %v2122_v9, %v1794_v10  ;;  %v2185_v18 = vld [vmem:[%s2723_s1 + $0x2a4] sm:$0xf0]  ;;  %v2104_v19 = vld [vmem:[%s2723_s1 + $0x24] sm:$0xf]  ;;  %v1977_v23 = vor.u32 %v2169_v15, %v1976_v14 }
  0xd4   : > { %1368 = vmatpush.bf16.msrb.mxu0 %v2009_v30  ;;  %v1722_v20 = vld [vmem:[%s2723_s1 + $0x28] sm:$0xf0]  ;;  %v2120_v21 = vld [vmem:[%s2723_s1 + $0xa4] sm:$0xf]  ;;  %v2041_v24 = vor.u32 %v2185_v18, %v2040_v16  ;;  %v1968_v26 = vld [vmem:[%s2723_s1 + $0x210] sm:$0xf] }
  0xd5   : > { %1382 = vmatpush.bf16.msrb.mxu1 %v2073_v35  ;;  %v1786_v22 = vld [vmem:[%s2723_s1 + $0xa8] sm:$0xf0]  ;;  %v1725_v25 = vor.u32 %v2104_v19, %v1722_v20  ;;  %v2167_v27 = vld [vmem:[%s2723_s1 + $0x214] sm:$0xf0]  ;;  %v2032_v28 = vld [vmem:[%s2723_s1 + $0x290] sm:$0xf] }
  0xd6   : > { %1396 = vmatpush.bf16.msrb.mxu2 %v1757_v36  ;;  %v1789_v29 = vor.u32 %v2120_v21, %v1786_v22  ;;  %v2183_v30 = vld [vmem:[%s2723_s1 + $0x294] sm:$0xf0]  ;;  %v2102_v31 = vld [vmem:[%s2723_s1 + $0x14] sm:$0xf]  ;;  %v1714_v32 = vld [vmem:[%s2723_s1 + $0x18] sm:$0xf0]  ;;  %v1969_v36 = vor.u32 %v2167_v27, %v1968_v26 }
  0xd7   : > { %1410 = vmatpush.bf16.msrb.mxu3 %v1821_v40  ;;  %v2118_v33 = vld [vmem:[%s2723_s1 + $0x94] sm:$0xf]  ;;  %v1778_v35 = vld [vmem:[%s2723_s1 + $0x98] sm:$0xf0]  ;;  %v1960_v37 = vld [vmem:[%s2723_s1 + $0x200] sm:$0xf]  ;;  %v2033_v40 = vor.u32 %v2183_v30, %v2032_v28  ;;  %v1717_v41 = vor.u32 %v2102_v31, %v1714_v32 }
  0xd8   : > { %1369 = vmatpush.bf16.msrb.mxu0 %v2001_v48  ;;  %v2165_v38 = vld [vmem:[%s2723_s1 + $0x204] sm:$0xf0]  ;;  %v2024_v39 = vld [vmem:[%s2723_s1 + $0x280] sm:$0xf]  ;;  %v2100_v43 = vld [vmem:[%s2723_s1 + $0x4] sm:$0xf]  ;;  %v1781_v46 = vor.u32 %v2118_v33, %v1778_v35 }
  0xd9   : > { %1383 = vmatpush.bf16.msrb.mxu1 %v2065_v51  ;;  %v2181_v42 = vld [vmem:[%s2723_s1 + $0x284] sm:$0xf0]  ;;  %v1706_v45 = vld [vmem:[%s2723_s1 + $0x8] sm:$0xf0]  ;;  %v2116_v47 = vld [vmem:[%s2723_s1 + $0x84] sm:$0xf]  ;;  %v1961_v54 = vor.u32 %v2165_v38, %v1960_v37 }
  0xda   : > { %1397 = vmatpush.bf16.msrb.mxu2 %v1749_v52  ;;  %v1770_v48 = vld [vmem:[%s2723_s1 + $0x88] sm:$0xf0]  ;;  %v2146_v50 = vld [vmem:[%s2723_s1 + $0x174] sm:$0xf]  ;;  %v1890_v51 = vld [vmem:[%s2723_s1 + $0x178] sm:$0xf0]  ;;  %v2025_v59 = vor.u32 %v2181_v42, %v2024_v39  ;;  %v1709_v60 = vor.u32 %v2100_v43, %v1706_v45 }
  0xdb   : > { %1411 = vmatpush.bf16.msrb.mxu3 %v1813_v57  ;;  %v2162_v52 = vld [vmem:[%s2723_s1 + $0x1f4] sm:$0xf]  ;;  %v1954_v53 = vld [vmem:[%s2723_s1 + $0x1f8] sm:$0xf0]  ;;  %v1696_v62 = vld [vmem:[%s2721_s6 + $0x10] sm:$0xf] }
  0xdc   : > { %1370 = vmatpush.bf16.msrb.mxu0 %v1993_v63  ;;  %v2178_v55 = vld [vmem:[%s2723_s1 + $0x274] sm:$0xf]  ;;  %v2018_v57 = vld [vmem:[%s2723_s1 + $0x278] sm:$0xf0]  ;;  %v2099_v63 = vld [vmem:[%s2721_s6 + $0x24] sm:$0xf0]  ;;  %v1957_v4 = vor.u32 %v2162_v52, %v1954_v53 }
  0xdd   : > { %1384 = vmatpush.bf16.msrb.mxu1 %v2057_v0  ;;  %v2194_v58 = vld [vmem:[%s2723_s1 + $0x2f4] sm:$0xf]  ;;  %v2082_v61 = vld [vmem:[%s2723_s1 + $0x2f8] sm:$0xf0]  ;;  %v1773_v0 = vor.u32 %v2116_v47, %v1770_v48  ;;  %v2144_v6 = vld [vmem:[%s2723_s1 + $0x164] sm:$0xf]  ;;  %v2891_v10 = vor.u32 %v2099_v63, %v1696_v62 }
  0xde   : > { %1398 = vmatpush.bf16.msrb.mxu2 %v1741_v1  ;;  %v1893_v1 = vor.u32 %v2146_v50, %v1890_v51  ;;  %v2096_v2 = vld [vmem:[%s2721_s6 + $0x14] sm:$0xf]  ;;  %v1698_v3 = vld [vmem:[%s2721_s6 + $0x28] sm:$0xf0]  ;;  %v2085_v9 = vor.u32 %v2194_v58, %v2082_v61  ;;  %p2086_p5 = scmp.ne.s32.totalorder %s2360_s18, 2 }
  0xdf   : > { %1412 = vmatpush.bf16.msrb.mxu3 %v1805_v5  ;;  %v2021_v5 = vor.u32 %v2178_v55, %v2018_v57  ;;  %v1882_v7 = vld [vmem:[%s2723_s1 + $0x168] sm:$0xf0]  ;;  %v2160_v8 = vld [vmem:[%s2723_s1 + $0x1e4] sm:$0xf]  ;;  %v2896_v14 = vor.u32 %v2096_v2, %v1698_v3  ;;  %v2142_v20 = vld [vmem:[%s2723_s1 + $0x154] sm:$0xf] }
  0xe0   : > { %1371 = vmatpush.bf16.msrb.mxu0 %v1985_v11  ;;  %v1946_v11 = vld [vmem:[%s2723_s1 + $0x1e8] sm:$0xf0]  ;;  %v2192_v15 = vld [vmem:[%s2723_s1 + $0x2e4] sm:$0xf]  ;;  %v1874_v21 = vld [vmem:[%s2723_s1 + $0x158] sm:$0xf0] }
  0xe1   : > { %1385 = vmatpush.bf16.msrb.mxu1 %v2049_v12  ;;  %v2176_v12 = vld [vmem:[%s2723_s1 + $0x264] sm:$0xf]  ;;  %v2074_v16 = vld [vmem:[%s2723_s1 + $0x2e8] sm:$0xf0]  ;;  %v1949_v18 = vor.u32 %v2160_v8, %v1946_v11  ;;  %v2158_v22 = vld [vmem:[%s2723_s1 + $0x1d4] sm:$0xf] }
  0xe2   : > { %1399 = vmatpush.bf16.msrb.mxu2 %v1733_v13  ;;  %v2010_v13 = vld [vmem:[%s2723_s1 + $0x268] sm:$0xf0]  ;;  %v2002_v26 = vld [vmem:[%s2723_s1 + $0x258] sm:$0xf0]  ;;  %v2190_v27 = vld [vmem:[%s2723_s1 + $0x2d4] sm:$0xf] }
  0xe3   : > { %1413 = vmatpush.bf16.msrb.mxu3 %v1797_v17  ;;  %v1885_v17 = vor.u32 %v2144_v6, %v1882_v7  ;;  %v2013_v19 = vor.u32 %v2176_v12, %v2010_v13  ;;  %v2066_v28 = vld [vmem:[%s2723_s1 + $0x2d8] sm:$0xf0]  ;;  %v2140_v32 = vld [vmem:[%s2723_s1 + $0x144] sm:$0xf]  ;;  %v1866_v33 = vld [vmem:[%s2723_s1 + $0x148] sm:$0xf0] }
  0xe4   : > { %1372 = vmatpush.bf16.msrb.mxu0 %v1977_v23  ;;  %v2077_v23 = vor.u32 %v2192_v15, %v2074_v16  ;;  %v2156_v35 = vld [vmem:[%s2723_s1 + $0x1c4] sm:$0xf]  ;;  %v1994_v38 = vld [vmem:[%s2723_s1 + $0x248] sm:$0xf0]  ;;  %v2138_v43 = vld [vmem:[%s2723_s1 + $0x134] sm:$0xf] }
  0xe5   : > { %1386 = vmatpush.bf16.msrb.mxu1 %v2041_v24  ;;  %v1938_v24 = vld [vmem:[%s2723_s1 + $0x1d8] sm:$0xf0]  ;;  %v2172_v37 = vld [vmem:[%s2723_s1 + $0x244] sm:$0xf]  ;;  %v2058_v39 = vld [vmem:[%s2723_s1 + $0x2c8] sm:$0xf0] }
  0xe6   : > { %1400 = vmatpush.bf16.msrb.mxu2 %v1725_v25  ;;  %v2174_v25 = vld [vmem:[%s2723_s1 + $0x254] sm:$0xf]  ;;  %v1941_v30 = vor.u32 %v2158_v22, %v1938_v24  ;;  %v1997_v42 = vor.u32 %v2172_v37, %v1994_v38  ;;  %v1858_v45 = vld [vmem:[%s2723_s1 + $0x138] sm:$0xf0]  ;;  %v2136_v58 = vld [vmem:[%s2723_s1 + $0x124] sm:$0xf] }
  0xe7   : > { %1414 = vmatpush.bf16.msrb.mxu3 %v1789_v29  ;;  %v1877_v29 = vor.u32 %v2142_v20, %v1874_v21  ;;  %v2005_v31 = vor.u32 %v2174_v25, %v2002_v26  ;;  %v1922_v48 = vld [vmem:[%s2723_s1 + $0x1b8] sm:$0xf0]  ;;  %v2170_v50 = vld [vmem:[%s2723_s1 + $0x234] sm:$0xf]  ;;  %v1914_v62 = vld [vmem:[%s2723_s1 + $0x1a8] sm:$0xf0] }
  0xe8   : > { %1373 = vmatpush.bf16.msrb.mxu0 %v1969_v36  ;;  %v1930_v36 = vld [vmem:[%s2723_s1 + $0x1c8] sm:$0xf0]  ;;  %v1986_v51 = vld [vmem:[%s2723_s1 + $0x238] sm:$0xf0]  ;;  %v2186_v52 = vld [vmem:[%s2723_s1 + $0x2b4] sm:$0xf] }
  0xe9   : > { %1387 = vmatpush.bf16.msrb.mxu1 %v2033_v40  ;;  %v1869_v40 = vor.u32 %v2140_v32, %v1866_v33  ;;  %v2050_v53 = vld [vmem:[%s2723_s1 + $0x2b8] sm:$0xf0]  ;;  %v1989_v57 = vor.u32 %v2170_v50, %v1986_v51  ;;  %v2168_v63 = vld [vmem:[%s2723_s1 + $0x224] sm:$0xf]  ;;  %v2042_v2 = vld [vmem:[%s2723_s1 + $0x2a8] sm:$0xf0] }
  0xea   : > { %1401 = vmatpush.bf16.msrb.mxu2 %v1717_v41  ;;  %v1933_v41 = vor.u32 %v2156_v35, %v1930_v36  ;;  %v2053_v61 = vor.u32 %v2186_v52, %v2050_v53  ;;  %v2134_v6 = vld [vmem:[%s2723_s1 + $0x114] sm:$0xf]  ;;  %v1842_v7 = vld [vmem:[%s2723_s1 + $0x118] sm:$0xf0]  ;;  %v2132_v20 = vld [vmem:[%s2723_s1 + $0x104] sm:$0xf] }
  0xeb   : > { %1415 = vmatpush.bf16.msrb.mxu3 %v1781_v46  ;;  %v2154_v46 = vld [vmem:[%s2723_s1 + $0x1b4] sm:$0xf]  ;;  %v1906_v11 = vld [vmem:[%s2723_s1 + $0x198] sm:$0xf0]  ;;  %v1834_v21 = vld [vmem:[%s2723_s1 + $0x108] sm:$0xf0] }
  0xec   : > { %1374 = vmatpush.bf16.msrb.mxu0 %v1961_v54  ;;  %v1861_v54 = vor.u32 %v2138_v43, %v1858_v45  ;;  %v1925_v55 = vor.u32 %v2154_v46, %v1922_v48  ;;  %v2150_v8 = vld [vmem:[%s2723_s1 + $0x194] sm:$0xf]  ;;  %v1970_v13 = vld [vmem:[%s2723_s1 + $0x218] sm:$0xf0]  ;;  %v2148_v22 = vld [vmem:[%s2723_s1 + $0x184] sm:$0xf] }
  0xed   : > { %1388 = vmatpush.bf16.msrb.mxu1 %v2025_v59  ;;  %v1850_v59 = vld [vmem:[%s2723_s1 + $0x128] sm:$0xf0]  ;;  %v2166_v12 = vld [vmem:[%s2723_s1 + $0x214] sm:$0xf]  ;;  %v2034_v16 = vld [vmem:[%s2723_s1 + $0x298] sm:$0xf0] }
  0xee   : > { %1402 = vmatpush.bf16.msrb.mxu2 %v1709_v60  ;;  %v2152_v60 = vld [vmem:[%s2723_s1 + $0x1a4] sm:$0xf]  ;;  %v1853_v3 = vor.u32 %v2136_v58, %v1850_v59  ;;  %v2182_v15 = vld [vmem:[%s2723_s1 + $0x294] sm:$0xf]  ;;  %v1898_v24 = vld [vmem:[%s2723_s1 + $0x188] sm:$0xf0] }
  0xef   : > { %1416 = vmatpush.bf16.msrb.mxu3 %v1773_v0  ;;  %1375 = vmatmul.bf16.vlgmr.msrb.gmra.mxu0 %v2891_v10  ;;  %v1978_v0 = vld [vmem:[%s2723_s1 + $0x228] sm:$0xf0]  ;;  %v2164_v25 = vld [vmem:[%s2723_s1 + $0x204] sm:$0xf]  ;;  %v695_v46 = vld [vmem:[#allocation2 + $0x10] sm:$0xff] }
  0xf0   : > { %1423 = vmatpush.bf16.msra.mxu0 %v1893_v1  ;;  %1389 = vmatmul.bf16.vlgmr.msrb.gmra.mxu1 %v2896_v14  ;;  %v2184_v1 = vld [vmem:[%s2723_s1 + $0x2a4] sm:$0xf]  ;;  %v1962_v26 = vld [vmem:[%s2723_s1 + $0x208] sm:$0xf0]  ;;  %v697_v53 = vld [vmem:[#allocation2 + $0x18] sm:$0xff] }
  0xf1   : > { %1437 = vmatpush.bf16.msra.mxu1 %v1957_v4  ;;  %1403 = vmatmul.bf16.vlgmr.msrb.gmra.mxu2 %v2814_v34  ;;  %v2069_v34 = vor.u32 %v2190_v27, %v2066_v28  ;;  %v1917_v4 = vor.u32 %v2152_v60, %v1914_v62  ;;  %v2180_v27 = vld [vmem:[%s2723_s1 + $0x284] sm:$0xf]  ;;  %v2026_v28 = vld [vmem:[%s2723_s1 + $0x288] sm:$0xf0] }
  0xf2   : > { %1451 = vmatpush.bf16.msra.mxu2 %v2021_v5  ;;  %1417 = vmatmul.bf16.vlgmr.msrb.gmra.mxu3 %v2823_v44  ;;  %v2188_v44 = vld [vmem:[%s2723_s1 + $0x2c4] sm:$0xf]  ;;  %v1981_v5 = vor.u32 %v2168_v63, %v1978_v0  ;;  %v2029_v32 = vor.u32 %v2180_v27, %v2026_v28 }
  0xf3   : > { %1465 = vmatpush.bf16.msra.mxu3 %v2085_v9  ;;  %v2061_v47 = vor.u32 %v2188_v44, %v2058_v39  ;;  %v2045_v9 = vor.u32 %v2184_v1, %v2042_v2 }
  0xf4   : > { %1424 = vmatpush.bf16.msra.mxu0 %v1885_v17  ;;  %v1845_v17 = vor.u32 %v2134_v6, %v1842_v7  ;;  %v696_v7 = vld [vmem:[#allocation2] sm:$0xff] }
  0xf5   : > { %1438 = vmatpush.bf16.msra.mxu1 %v1949_v18  ;;  %v1909_v18 = vor.u32 %v2150_v8, %v1906_v11 }
  0xf6   : > { %1452 = vmatpush.bf16.msra.mxu2 %v2013_v19  ;;  %v1973_v19 = vor.u32 %v2166_v12, %v1970_v13 }
  0xf7   : > { %1466 = vmatpush.bf16.msra.mxu3 %v2077_v23  ;;  %v2037_v23 = vor.u32 %v2182_v15, %v2034_v16 }
  0xf8   : > { %1425 = vmatpush.bf16.msra.mxu0 %v1877_v29  ;;  %v1837_v29 = vor.u32 %v2132_v20, %v1834_v21 }
  0xf9   : > { %1439 = vmatpush.bf16.msra.mxu1 %v1941_v30  ;;  %v1901_v30 = vor.u32 %v2148_v22, %v1898_v24 }
  0xfa   : > { %1453 = vmatpush.bf16.msra.mxu2 %v2005_v31  ;;  %v1965_v31 = vor.u32 %v2164_v25, %v1962_v26 }
  0xfb   : > { %1467 = vmatpush.bf16.msra.mxu3 %v2069_v34 }
  0xfc   : > { %1426 = vmatpush.bf16.msra.mxu0 %v1869_v40 }
  0xfd   : > { %1440 = vmatpush.bf16.msra.mxu1 %v1933_v41 }
  0xfe   : > { %1454 = vmatpush.bf16.msra.mxu2 %v1997_v42 }
  0xff   : > { %1468 = vmatpush.bf16.msra.mxu3 %v2061_v47 }
 0x100   : > { %1427 = vmatpush.bf16.msra.mxu0 %v1861_v54 }
 0x101   : > { %1441 = vmatpush.bf16.msra.mxu1 %v1925_v55 }
 0x102   : > { %1455 = vmatpush.bf16.msra.mxu2 %v1989_v57 }
 0x103   : > { %1469 = vmatpush.bf16.msra.mxu3 %v2053_v61 }
 0x104   : > { %1428 = vmatpush.bf16.msra.mxu0 %v1853_v3 }
 0x105   : > { %1442 = vmatpush.bf16.msra.mxu1 %v1917_v4 }
 0x106   : > { %1456 = vmatpush.bf16.msra.mxu2 %v1981_v5 }
 0x107   : > { %1470 = vmatpush.bf16.msra.mxu3 %v2045_v9 }
 0x108   : > { %1429 = vmatpush.bf16.msra.mxu0 %v1845_v17  ;;  %v698_v17 = vld [vmem:[#allocation2 + $0x8] sm:$0xff] }
 0x109   : > { %1443 = vmatpush.bf16.msra.mxu1 %v1909_v18 }
 0x10a   : > { %1457 = vmatpush.bf16.msra.mxu2 %v1973_v19 }
 0x10b   : > { %1471 = vmatpush.bf16.msra.mxu3 %v2037_v23 }
 0x10c   : > { %1430 = vmatpush.bf16.msra.mxu0 %v1837_v29 }
 0x10d   : > { %1444 = vmatpush.bf16.msra.mxu1 %v1901_v30 }
 0x10e   : > { %1458 = vmatpush.bf16.msra.mxu2 %v1965_v31 }
 0x10f   : > { %1472 = vmatpush.bf16.msra.mxu3 %v2029_v32  ;;  %1431 = vmatmul.bf16.vlgmr.msra.gmra.mxu0 %v2828_v49 }
 0x110   : > { %1445 = vmatmul.bf16.vlgmr.msra.gmra.mxu1 %v2834_v56 }
 0x111   : > { %1459 = vmatmul.bf16.vlgmr.msra.gmra.mxu2 %v2891_v10 }
 0x112   : > { %1473 = vmatmul.bf16.vlgmr.msra.gmra.mxu3 %v2896_v14 }
 0x14c   : > { %v1320_v33 = vpop.f32.mrf.mxu0 }
 0x14d   : > { %v1334_v35 = vpop.f32.mrf.mxu1 }
 0x14e   : > { %v1335_v34 = vadd.f32 %v1334_v35, %v1320_v33 }
 0x154   : > { %v1322_v36 = vpop.f32.mrf.mxu0  ;;  %v1348_v37 = vpop.f32.mrf.mxu2 }
 0x155   : > { %v1336_v38 = vpop.f32.mrf.mxu1  ;;  %v1349_v44 = vadd.f32 %v1348_v37, %v1335_v34  ;;  %v1362_v39 = vpop.f32.mrf.mxu3 }
 0x156   : > { %v1337_v41 = vadd.f32 %v1336_v38, %v1322_v36 }
 0x157   : > { %v1363_v40 = vadd.f32 %v1362_v39, %v1349_v44 }
 0x15c   : > { %v1350_v43 = vpop.f32.mrf.mxu2 }
 0x15d   : > { %v1351_v56 = vadd.f32 %v1350_v43, %v1337_v41  ;;  %v1364_v10 = vpop.f32.mrf.mxu3 }
 0x15f   : > { %v1365_v14 = vadd.f32 %v1364_v10, %v1351_v56 }
 0x16c   : > { %v1376_v42 = vpop.f32.mrf.mxu0 }
 0x16d   : > { %v1377_v45 = vadd.f32 %v1376_v42, %v1363_v40  ;;  %v1390_v49 = vpop.f32.mrf.mxu1 }
 0x16f   : > { %v1391_v47 = vadd.f32 %v1390_v49, %v1377_v45 }
 0x171   : > { %v1479_v48 = vadd.f32 %v1391_v47, %v695_v46 }
 0x173   : > { %1483 = vst [vmem:[#allocation2 + $0x10] sm:$0xff] %v1479_v48 }
 0x174   : > { %v1378_v50 = vpop.f32.mrf.mxu0  ;;  %v1404_v57 = vpop.f32.mrf.mxu2 }
 0x175   : > { %v1379_v51 = vadd.f32 %v1378_v50, %v1365_v14  ;;  %v1392_v52 = vpop.f32.mrf.mxu1  ;;  %v1418_v58 = vpop.f32.mrf.mxu3 }
 0x176   : > { %v1419_v60 = vadd.f32 %v1418_v58, %v1404_v57 }
 0x177   : > { %v1393_v54 = vadd.f32 %v1392_v52, %v1379_v51 }
 0x179   : > { %v1481_v55 = vadd.f32 %v1393_v54, %v697_v53 }
 0x17b   : > { %1485 = vst [vmem:[#allocation2 + $0x18] sm:$0xff] %v1481_v55 }
 0x17c   : > { %v1406_v59 = vpop.f32.mrf.mxu2 }
 0x17d   : > { %v1420_v61 = vpop.f32.mrf.mxu3 }
 0x17e   : > { %v1421_v3 = vadd.f32 %v1420_v61, %v1406_v59 }
 0x18c   : > { %v1432_v62 = vpop.f32.mrf.mxu0 }
 0x18d   : > { %v1433_v63 = vadd.f32 %v1432_v62, %v1419_v60  ;;  %v1446_v0 = vpop.f32.mrf.mxu1 }
 0x18f   : > { %v1447_v1 = vadd.f32 %v1446_v0, %v1433_v63 }
 0x194   : > { %v1460_v2 = vpop.f32.mrf.mxu2  ;;  %v1434_v6 = vpop.f32.mrf.mxu0 }
 0x195   : > { %v1461_v4 = vadd.f32 %v1460_v2, %v1447_v1  ;;  %v1474_v5 = vpop.f32.mrf.mxu3  ;;  %v1435_v9 = vadd.f32 %v1434_v6, %v1421_v3  ;;  %v1448_v12 = vpop.f32.mrf.mxu1 }
 0x197   : > { %v1475_v8 = vadd.f32 %v1474_v5, %v1461_v4  ;;  %v1449_v13 = vadd.f32 %v1448_v12, %v1435_v9 }
 0x199   : > { %v1480_v11 = vadd.f32 %v1475_v8, %v696_v7 }
 0x19b   : > { %1484 = vst [vmem:[#allocation2] sm:$0xff] %v1480_v11 }
 0x19c   : > { %v1462_v15 = vpop.f32.mrf.mxu2 }
 0x19d   : > { %v1463_v16 = vadd.f32 %v1462_v15, %v1449_v13  ;;  %v1476_v18 = vpop.f32.mrf.mxu3 }
 0x19f   : > { %v1477_v19 = vadd.f32 %v1476_v18, %v1463_v16  ;;  %1490 = sbr.rel (%p2086_p5) target bundleno = 432 (0x1b0), region = 101 }
 0x1a1   : > { %v1482_v20 = vadd.f32 %v1477_v19, %v698_v17 }
 0x1a3   : > { %1486 = vst [vmem:[#allocation2 + $0x8] sm:$0xff] %v1482_v20 }
 0x1a4   : > { %v1491_v21 = vld [vmem:[#allocation2 + $0x10] sm:$0xff]  ;;  %v1492_v22 = vld [vmem:[#allocation2] sm:$0xff]  ;;  %v1493_v26 = vld [vmem:[#allocation2 + $0x18] sm:$0xff] }
 0x1a5   : > { %v1495_v23 = vld [vmem:[%s683_s5] sm:$0x3] }
 0x1a6   : > { %v1497_v24 = vperm.slane %v1495_v23, 0  ;;  %v1498_v25 = vperm.slane %v1495_v23, 1 }
 0x1a8   : > { %v1501_v28 = vadd.f32 %v1497_v24, %v1491_v21  ;;  %v1502_v29 = vadd.f32 %v1498_v25, %v1492_v22  ;;  %v1503_v30 = vadd.f32 %v1497_v24, %v1493_v26 }
 0x1aa   : > { %v1494_v27 = vld [vmem:[#allocation2 + $0x8] sm:$0xff]  ;;  %v1505_v32 = vpack.c.bf16 %v1502_v29, %v1501_v28 }
 0x1ab   : > { %v1504_v31 = vadd.f32 %v1498_v25, %v1494_v27 }
 0x1ac   : > { %1507 = vst [vmem:[%s2725_s25] sm:$0xff] %v1505_v32 }
 0x1ad   : > { %v1506_v33 = vpack.c.bf16 %v1504_v31, %v1503_v30 }
 0x1af   : > { %1508 = vst [vmem:[%s2725_s25 + $0x8] sm:$0xff] %v1506_v33 }
 0x1b0 PF: > { %1515 = sbr.rel (!%p2493_p12) target bundleno = 440 (0x1b8), region = 105  ;;  %s2196_s14 = sshll.u32 (%p2493_p12), %s2364_s19, 3 }
 0x1b1   : > { %s1521_s0 = scalar_lea.vmem (%p2493_p12), %s3008_s3, %s2196_s14 }
 0x1b3   : > { %v1552_v35 = vld [vmem:[%s2725_s25] sm:$0xff] (%p2493_p12) }
 0x1b4   : > { %1553 = vst [vmem:[%s1521_s0] sm:$0xff] (%p2493_p12), %v1552_v35 }
 0x1b6   : > { %v1554_v34 = vld [vmem:[%s2725_s25 + $0x8] sm:$0xff] }
 0x1b7   : > { %1555 = vst [vmem:[%s1521_s0 + $0x10] sm:$0xff] %v1554_v34 }
 0x1b8 PF: > { %s13_s22 = sadd.s32 1, %s2376_s22   ;;  %s3018_s25 = sld [smem:[#allocation6_spill]] }
 0x1b9   : > { %p10_p6 = scmp.ge.s32.totalorder %s13_s22, 8   ;;  %s3019_s12 = smov %s2340_s13 }
 0x1ba   : > { %s3020_s13 = smov %s2491_s9  ;;  %s3021_s14 = smov %s2348_s15 }
 0x1bb   : > { %s3022_s15 = smov %s2488_s8  ;;  %s3023_s16 = smov %s2356_s17 }
 0x1bc   : > { %s3024_s17 = smov %s2474_s30  ;;  %s3025_s18 = smov %s2368_s20 }
 0x1bd   : > { %s3026_s19 = smov %s2372_s21  ;;  %s3027_s20 = smov %s3030_s24 }
 0x1be   : > { %s3028_s21 = smov %s3018_s25  ;;  %12 = sbr.rel (!%p10_p6) target bundleno = 9 (0x9), region = 185 }

// kernel: zfnet_forward.13
= control target key start
LH: loop header
LB: loop body
LE: loop exit
PB: predicated region body
PF: predicated region fallthrough
CT: control target
= control target key end

     0   :  { %s4633_s0 = inlined_call_operand.vmem [shape: bf16[16,4608], index: 0, kind: input, shape index: {}]   ;;  %s4634_s1 = inlined_call_operand.vmem [shape: bf16[4608,1024], index: 1, kind: input, shape index: {}]   ;;  %s4635_s2 = inlined_call_operand.vmem [shape: f32[1,1024], index: 2, kind: input, shape index: {}]   ;;  %s4636_s3 = inlined_call_operand.vmem [shape: bf16[16,1024], index: 3, kind: output, shape index: {}]  }
   0x1   :  { %4638 = sst [smem:[#allocation7_spill]] %s4633_s0 }
   0x2   :  { %4639 = sst [smem:[#allocation8_spill]] %s4634_s1 }
   0x3   :  { %s3627_s12 = smov 0   ;;  %s3629_s13 = smov 0  }
   0x4   :  { %s3631_s14 = smov 0   ;;  %s3633_s15 = smov 0  }
   0x5   :  { %s3635_s16 = smov 0   ;;  %s3637_s17 = smov 0  }
   0x6   :  { %s3639_s18 = smov 0   ;;  %s3641_s19 = smov 0  }
   0x7   :  { %s3643_s20 = smov 0   ;;  %s3645_s21 = smov 0  }
   0x8   :  { %s3647_s22 = smov 0  }
   0x9 LB: > { %s2414_s23 = sadd.s32 4294967295, %s3604_s22   ;;  %s25_s24 = sadd.s32 1, %s3596_s20  ;;  %s3604_s22 = sphi %s3647_s22, %s13_s22   ;;  %s3600_s21 = sphi %s3645_s21, %s4656_s21   ;;  %s3596_s20 = sphi %s3643_s20, %s4655_s20   ;;  %s3592_s19 = sphi %s3641_s19, %s4654_s19   ;;  %s3588_s18 = sphi %s3639_s18, %s4653_s18   ;;  %s3584_s17 = sphi %s3637_s17, %s4652_s17   ;;  %s3580_s16 = sphi %s3635_s16, %s4651_s16   ;;  %s3576_s15 = sphi %s3633_s15, %s4650_s15   ;;  %s3572_s14 = sphi %s3631_s14, %s4649_s14   ;;  %s3568_s13 = sphi %s3629_s13, %s4648_s13   ;;  %s3564_s12 = sphi %s3627_s12, %s4647_s12  }
   0xa   : > { %p26_p0 = scmp.ge.s32.totalorder %s25_s24, 6  ;;  %s28_s25 = sadd.s32 1, %s3600_s21 }
   0xb   : > { %s41_s26 = sadd.s32 1, %s3584_s17  ;;  %p48_p1 = scmp.ne.s32.totalorder %s3584_s17, %s3580_s16 }
   0xc   : > { %s4658_s24 = smov (%p26_p0, %s25_s24), 0  ;;  %s4660_s25 = smov (!%p26_p0, %s28_s25), %s3600_s21 }
   0xd   : > { %s37_s27 = ssub.s32 %s3596_s20, %s4658_s24  ;;  %p49_p2 = scmp.eq.s32.totalorder %s3604_s22, 0 }
   0xe   : > { %p30_p3 = scmp.ge.s32.totalorder %s4660_s25, 2  ;;  %p39_p4 = scmp.eq.s32.totalorder %s37_s27, 0 }
   0xf   : > { %p3694_p5 = por %p49_p2, %p48_p1  ;;  %s69_s29 = sadd.s32 1, %s3576_s15 }
  0x10   : > { %s4662_s25 = smov (%p30_p3, %s4660_s25), 0  ;;  %p76_p6 = scmp.ne.s32.totalorder %s3576_s15, %s3572_s14 }
  0x11   : > { %4641 = sst [smem:[#allocation6_spill]] %s4662_s25  ;;  %s65_s4 = ssub.s32 %s3600_s21, %s4662_s25 }
  0x12   : > { %s3702_s30 = scalar_select %p39_p4, %s3584_s17, %s41_s26  }
  0x13   : > { %s66_s5 = sor.u32 %s65_s4, %s37_s27  ;;  %p121_p7 = scmp.eq.s32.totalorder %s65_s4, 0 }
  0x14   : > { %p67_p8 = scmp.eq.s32.totalorder %s66_s5, 0  ;;  %p3708_p9 = por %p76_p6, %p49_p2 }
  0x15   : > { %s123_s7 = sadd.s32 1, %s3568_s13  ;;  %p133_p10 = scmp.ne.s32.totalorder %s3568_s13, %s3564_s12 }
  0x16   : > { %s3716_s8 = scalar_select %p67_p8, %s3576_s15, %s69_s29  }
  0x17   : > { %s3719_s9 = scalar_select %p121_p7, %s3568_s13, %s123_s7  }
  0x18   : > { %p134_p11 = scmp.eq.s32.totalorder %s2414_s23, 11  ;;  %p2417_p13 = scmp.ge.s32.totalorder %s3604_s22, 12 }
  0x1a   : > { %p3721_p12 = por %p134_p11, %p133_p10  ;;  %156 = sbr.rel (%p2417_p13) target bundleno = 248 (0xf8), region = 16 }
  0x1f   : > { %159 = sbr.rel (!%p3694_p5) target bundleno = 46 (0x2e), region = 20  ;;  %s161_s11 = sand.u32 (%p3694_p5), 1, %s3584_s17  }
  0x20   : > { %s3224_s26 = smul.u32 (%p3694_p5), 24, %s3596_s20  ;;  %s4644_s0 = sld [smem:[#allocation7_spill]] (%p3694_p5) }
  0x21   : > { %s3425_s27 = smul.u32 (%p3694_p5), 48, %s161_s11 }
  0x23   : > { %s163_s23 = scalar_lea.vmem (%p3694_p5), [#allocation3], %s3425_s27 }
  0x26   : > { %s169_s5 = scalar_lea.vmem %s4644_s0, %s3224_s26 }
  0x27   : > { %v182_v0 = vld [vmem:[%s169_s5] sm:$0xff]  ;;  %v184_v1 = vld [vmem:[%s169_s5 + $0x8] sm:$0xff]  ;;  %v186_v2 = vld [vmem:[%s169_s5 + $0x10] sm:$0xff] }
  0x28   : > { %183 = vst [vmem:[%s163_s23] sm:$0xff] %v182_v0  ;;  %v188_v3 = vld [vmem:[%s169_s5 + $0x90] sm:$0xff]  ;;  %v190_v4 = vld [vmem:[%s169_s5 + $0x98] sm:$0xff]  ;;  %v192_v5 = vld [vmem:[%s169_s5 + $0xa0] sm:$0xff] }
  0x29   : > { %185 = vst [vmem:[%s163_s23 + $0x8] sm:$0xff] %v184_v1 }
  0x2a   : > { %187 = vst [vmem:[%s163_s23 + $0x10] sm:$0xff] %v186_v2 }
  0x2b   : > { %189 = vst [vmem:[%s163_s23 + $0x18] sm:$0xff] %v188_v3 }
  0x2c   : > { %191 = vst [vmem:[%s163_s23 + $0x20] sm:$0xff] %v190_v4 }
  0x2d   : > { %193 = vst [vmem:[%s163_s23 + $0x28] sm:$0xff] %v192_v5 }
  0x2e PF: > { %199 = sbr.rel (!%p3708_p9) target bundleno = 248 (0xf8), region = 43  ;;  %s201_s28 = sand.u32 (%p3708_p9), 1, %s3576_s15  }
  0x2f   : > { %s3426_s7 = smul.u32 (%p3708_p9), 1536, %s201_s28  ;;  %s2419_s11 = sshll.u32 (%p3708_p9), %s3600_s21, 2 }
  0x30   : > { %s3225_s26 = smul.u32 (%p3708_p9), 768, %s3596_s20  ;;  %s4645_s1 = sld [smem:[#allocation8_spill]] (%p3708_p9) }
  0x31   : > { %s3746_s6 = scalar_lea.vmem (%p3708_p9), [#allocation4], %s3426_s7 }
  0x32   : > { %s207_s27 = sadd.s32 (%p3708_p9), %s3225_s26, %s2419_s11 }
  0x33   : > { %s2421_s29 = sshll.u32 %s207_s27, 2 }
  0x36   : > { %s3741_s5 = scalar_lea.vmem %s4645_s1, %s2421_s29 }
  0x37   : > { %v222_v6 = vld [vmem:[%s3741_s5] sm:$0xff]  ;;  %v224_v7 = vld [vmem:[%s3741_s5 + $0x8] sm:$0xff] }
  0x38   : > { %v226_v8 = vld [vmem:[%s3741_s5 + $0x20] sm:$0xff]  ;;  %223 = vst [vmem:[%s3746_s6] sm:$0xff] %v222_v6  ;;  %v228_v9 = vld [vmem:[%s3741_s5 + $0x28] sm:$0xff] }
  0x39   : > { %225 = vst [vmem:[%s3746_s6 + $0x8] sm:$0xff] %v224_v7  ;;  %v230_v10 = vld [vmem:[%s3741_s5 + $0x40] sm:$0xff]  ;;  %v232_v11 = vld [vmem:[%s3741_s5 + $0x48] sm:$0xff] }
  0x3a   : > { %227 = vst [vmem:[%s3746_s6 + $0x10] sm:$0xff] %v226_v8  ;;  %v234_v12 = vld [vmem:[%s3741_s5 + $0x60] sm:$0xff]  ;;  %v236_v13 = vld [vmem:[%s3741_s5 + $0x68] sm:$0xff] }
  0x3b   : > { %229 = vst [vmem:[%s3746_s6 + $0x18] sm:$0xff] %v228_v9  ;;  %v238_v14 = vld [vmem:[%s3741_s5 + $0x80] sm:$0xff]  ;;  %v240_v15 = vld [vmem:[%s3741_s5 + $0x88] sm:$0xff] }
  0x3c   : > { %231 = vst [vmem:[%s3746_s6 + $0x20] sm:$0xff] %v230_v10  ;;  %v242_v16 = vld [vmem:[%s3741_s5 + $0xa0] sm:$0xff]  ;;  %v244_v17 = vld [vmem:[%s3741_s5 + $0xa8] sm:$0xff] }
  0x3d   : > { %233 = vst [vmem:[%s3746_s6 + $0x28] sm:$0xff] %v232_v11  ;;  %v246_v18 = vld [vmem:[%s3741_s5 + $0xc0] sm:$0xff]  ;;  %v248_v19 = vld [vmem:[%s3741_s5 + $0xc8] sm:$0xff] }
  0x3e   : > { %235 = vst [vmem:[%s3746_s6 + $0x30] sm:$0xff] %v234_v12  ;;  %v250_v20 = vld [vmem:[%s3741_s5 + $0xe0] sm:$0xff]  ;;  %v252_v21 = vld [vmem:[%s3741_s5 + $0xe8] sm:$0xff] }
  0x3f   : > { %237 = vst [vmem:[%s3746_s6 + $0x38] sm:$0xff] %v236_v13  ;;  %v254_v22 = vld [vmem:[%s3741_s5 + $0x100] sm:$0xff]  ;;  %v256_v23 = vld [vmem:[%s3741_s5 + $0x108] sm:$0xff] }
  0x40   : > { %239 = vst [vmem:[%s3746_s6 + $0x40] sm:$0xff] %v238_v14  ;;  %v258_v24 = vld [vmem:[%s3741_s5 + $0x120] sm:$0xff]  ;;  %v260_v25 = vld [vmem:[%s3741_s5 + $0x128] sm:$0xff] }
  0x41   : > { %241 = vst [vmem:[%s3746_s6 + $0x48] sm:$0xff] %v240_v15  ;;  %v262_v26 = vld [vmem:[%s3741_s5 + $0x140] sm:$0xff]  ;;  %v264_v27 = vld [vmem:[%s3741_s5 + $0x148] sm:$0xff] }
  0x42   : > { %243 = vst [vmem:[%s3746_s6 + $0x50] sm:$0xff] %v242_v16  ;;  %v266_v28 = vld [vmem:[%s3741_s5 + $0x160] sm:$0xff]  ;;  %v268_v29 = vld [vmem:[%s3741_s5 + $0x168] sm:$0xff] }
  0x43   : > { %245 = vst [vmem:[%s3746_s6 + $0x58] sm:$0xff] %v244_v17  ;;  %v270_v30 = vld [vmem:[%s3741_s5 + $0x180] sm:$0xff]  ;;  %v272_v31 = vld [vmem:[%s3741_s5 + $0x188] sm:$0xff] }
  0x44   : > { %247 = vst [vmem:[%s3746_s6 + $0x60] sm:$0xff] %v246_v18  ;;  %v274_v32 = vld [vmem:[%s3741_s5 + $0x1a0] sm:$0xff]  ;;  %v276_v33 = vld [vmem:[%s3741_s5 + $0x1a8] sm:$0xff] }
  0x45   : > { %249 = vst [vmem:[%s3746_s6 + $0x68] sm:$0xff] %v248_v19  ;;  %v278_v34 = vld [vmem:[%s3741_s5 + $0x1c0] sm:$0xff]  ;;  %v280_v35 = vld [vmem:[%s3741_s5 + $0x1c8] sm:$0xff] }
  0x46   : > { %251 = vst [vmem:[%s3746_s6 + $0x70] sm:$0xff] %v250_v20  ;;  %v282_v36 = vld [vmem:[%s3741_s5 + $0x1e0] sm:$0xff]  ;;  %v284_v37 = vld [vmem:[%s3741_s5 + $0x1e8] sm:$0xff] }
  0x47   : > { %253 = vst [vmem:[%s3746_s6 + $0x78] sm:$0xff] %v252_v21  ;;  %v286_v38 = vld [vmem:[%s3741_s5 + $0x200] sm:$0xff]  ;;  %v288_v39 = vld [vmem:[%s3741_s5 + $0x208] sm:$0xff] }
  0x48   : > { %255 = vst [vmem:[%s3746_s6 + $0x80] sm:$0xff] %v254_v22  ;;  %v290_v40 = vld [vmem:[%s3741_s5 + $0x220] sm:$0xff]  ;;  %v292_v41 = vld [vmem:[%s3741_s5 + $0x228] sm:$0xff] }
  0x49   : > { %257 = vst [vmem:[%s3746_s6 + $0x88] sm:$0xff] %v256_v23  ;;  %v294_v42 = vld [vmem:[%s3741_s5 + $0x240] sm:$0xff]  ;;  %v296_v43 = vld [vmem:[%s3741_s5 + $0x248] sm:$0xff] }
  0x4a   : > { %259 = vst [vmem:[%s3746_s6 + $0x90] sm:$0xff] %v258_v24  ;;  %v298_v44 = vld [vmem:[%s3741_s5 + $0x260] sm:$0xff]  ;;  %v300_v45 = vld [vmem:[%s3741_s5 + $0x268] sm:$0xff] }
  0x4b   : > { %261 = vst [vmem:[%s3746_s6 + $0x98] sm:$0xff] %v260_v25  ;;  %v302_v46 = vld [vmem:[%s3741_s5 + $0x280] sm:$0xff]  ;;  %v304_v47 = vld [vmem:[%s3741_s5 + $0x288] sm:$0xff] }
  0x4c   : > { %263 = vst [vmem:[%s3746_s6 + $0xa0] sm:$0xff] %v262_v26  ;;  %v306_v48 = vld [vmem:[%s3741_s5 + $0x2a0] sm:$0xff]  ;;  %v308_v49 = vld [vmem:[%s3741_s5 + $0x2a8] sm:$0xff] }
  0x4d   : > { %265 = vst [vmem:[%s3746_s6 + $0xa8] sm:$0xff] %v264_v27  ;;  %v310_v50 = vld [vmem:[%s3741_s5 + $0x2c0] sm:$0xff]  ;;  %v312_v51 = vld [vmem:[%s3741_s5 + $0x2c8] sm:$0xff] }
  0x4e   : > { %267 = vst [vmem:[%s3746_s6 + $0xb0] sm:$0xff] %v266_v28  ;;  %v314_v52 = vld [vmem:[%s3741_s5 + $0x2e0] sm:$0xff]  ;;  %v316_v53 = vld [vmem:[%s3741_s5 + $0x2e8] sm:$0xff] }
  0x4f   : > { %269 = vst [vmem:[%s3746_s6 + $0xb8] sm:$0xff] %v268_v29  ;;  %v318_v54 = vld [vmem:[%s3741_s5 + $0x300] sm:$0xff]  ;;  %v320_v55 = vld [vmem:[%s3741_s5 + $0x308] sm:$0xff] }
  0x50   : > { %271 = vst [vmem:[%s3746_s6 + $0xc0] sm:$0xff] %v270_v30  ;;  %v322_v56 = vld [vmem:[%s3741_s5 + $0x320] sm:$0xff]  ;;  %v324_v57 = vld [vmem:[%s3741_s5 + $0x328] sm:$0xff] }
  0x51   : > { %273 = vst [vmem:[%s3746_s6 + $0xc8] sm:$0xff] %v272_v31  ;;  %v326_v58 = vld [vmem:[%s3741_s5 + $0x340] sm:$0xff]  ;;  %v328_v59 = vld [vmem:[%s3741_s5 + $0x348] sm:$0xff] }
  0x52   : > { %275 = vst [vmem:[%s3746_s6 + $0xd0] sm:$0xff] %v274_v32  ;;  %v330_v60 = vld [vmem:[%s3741_s5 + $0x360] sm:$0xff]  ;;  %v332_v61 = vld [vmem:[%s3741_s5 + $0x368] sm:$0xff] }
  0x53   : > { %277 = vst [vmem:[%s3746_s6 + $0xd8] sm:$0xff] %v276_v33  ;;  %v334_v62 = vld [vmem:[%s3741_s5 + $0x380] sm:$0xff]  ;;  %v336_v63 = vld [vmem:[%s3741_s5 + $0x388] sm:$0xff] }
  0x54   : > { %279 = vst [vmem:[%s3746_s6 + $0xe0] sm:$0xff] %v278_v34  ;;  %v338_v0 = vld [vmem:[%s3741_s5 + $0x3a0] sm:$0xff]  ;;  %v340_v1 = vld [vmem:[%s3741_s5 + $0x3a8] sm:$0xff] }
  0x55   : > { %281 = vst [vmem:[%s3746_s6 + $0xe8] sm:$0xff] %v280_v35  ;;  %v342_v2 = vld [vmem:[%s3741_s5 + $0x3c0] sm:$0xff]  ;;  %v344_v3 = vld [vmem:[%s3741_s5 + $0x3c8] sm:$0xff] }
  0x56   : > { %283 = vst [vmem:[%s3746_s6 + $0xf0] sm:$0xff] %v282_v36  ;;  %v346_v4 = vld [vmem:[%s3741_s5 + $0x3e0] sm:$0xff]  ;;  %v348_v5 = vld [vmem:[%s3741_s5 + $0x3e8] sm:$0xff] }
  0x57   : > { %285 = vst [vmem:[%s3746_s6 + $0xf8] sm:$0xff] %v284_v37  ;;  %v350_v6 = vld [vmem:[%s3741_s5 + $0x400] sm:$0xff]  ;;  %v352_v7 = vld [vmem:[%s3741_s5 + $0x408] sm:$0xff] }
  0x58   : > { %287 = vst [vmem:[%s3746_s6 + $0x100] sm:$0xff] %v286_v38  ;;  %v354_v8 = vld [vmem:[%s3741_s5 + $0x420] sm:$0xff]  ;;  %v356_v9 = vld [vmem:[%s3741_s5 + $0x428] sm:$0xff] }
  0x59   : > { %289 = vst [vmem:[%s3746_s6 + $0x108] sm:$0xff] %v288_v39  ;;  %v358_v10 = vld [vmem:[%s3741_s5 + $0x440] sm:$0xff]  ;;  %v360_v11 = vld [vmem:[%s3741_s5 + $0x448] sm:$0xff] }
  0x5a   : > { %291 = vst [vmem:[%s3746_s6 + $0x110] sm:$0xff] %v290_v40  ;;  %v362_v12 = vld [vmem:[%s3741_s5 + $0x460] sm:$0xff]  ;;  %v364_v13 = vld [vmem:[%s3741_s5 + $0x468] sm:$0xff] }
  0x5b   : > { %293 = vst [vmem:[%s3746_s6 + $0x118] sm:$0xff] %v292_v41  ;;  %v366_v14 = vld [vmem:[%s3741_s5 + $0x480] sm:$0xff]  ;;  %v368_v15 = vld [vmem:[%s3741_s5 + $0x488] sm:$0xff] }
  0x5c   : > { %295 = vst [vmem:[%s3746_s6 + $0x120] sm:$0xff] %v294_v42  ;;  %v370_v16 = vld [vmem:[%s3741_s5 + $0x4a0] sm:$0xff]  ;;  %v372_v17 = vld [vmem:[%s3741_s5 + $0x4a8] sm:$0xff] }
  0x5d   : > { %297 = vst [vmem:[%s3746_s6 + $0x128] sm:$0xff] %v296_v43  ;;  %v374_v18 = vld [vmem:[%s3741_s5 + $0x4c0] sm:$0xff]  ;;  %v376_v19 = vld [vmem:[%s3741_s5 + $0x4c8] sm:$0xff] }
  0x5e   : > { %299 = vst [vmem:[%s3746_s6 + $0x130] sm:$0xff] %v298_v44  ;;  %v378_v20 = vld [vmem:[%s3741_s5 + $0x4e0] sm:$0xff]  ;;  %v380_v21 = vld [vmem:[%s3741_s5 + $0x4e8] sm:$0xff] }
  0x5f   : > { %301 = vst [vmem:[%s3746_s6 + $0x138] sm:$0xff] %v300_v45  ;;  %v382_v22 = vld [vmem:[%s3741_s5 + $0x500] sm:$0xff]  ;;  %v384_v23 = vld [vmem:[%s3741_s5 + $0x508] sm:$0xff] }
  0x60   : > { %303 = vst [vmem:[%s3746_s6 + $0x140] sm:$0xff] %v302_v46  ;;  %v386_v24 = vld [vmem:[%s3741_s5 + $0x520] sm:$0xff]  ;;  %v388_v25 = vld [vmem:[%s3741_s5 + $0x528] sm:$0xff] }
  0x61   : > { %305 = vst [vmem:[%s3746_s6 + $0x148] sm:$0xff] %v304_v47  ;;  %v390_v26 = vld [vmem:[%s3741_s5 + $0x540] sm:$0xff]  ;;  %v392_v27 = vld [vmem:[%s3741_s5 + $0x548] sm:$0xff] }
  0x62   : > { %307 = vst [vmem:[%s3746_s6 + $0x150] sm:$0xff] %v306_v48  ;;  %v394_v28 = vld [vmem:[%s3741_s5 + $0x560] sm:$0xff]  ;;  %v396_v29 = vld [vmem:[%s3741_s5 + $0x568] sm:$0xff] }
  0x63   : > { %309 = vst [vmem:[%s3746_s6 + $0x158] sm:$0xff] %v308_v49  ;;  %v398_v30 = vld [vmem:[%s3741_s5 + $0x580] sm:$0xff]  ;;  %v400_v31 = vld [vmem:[%s3741_s5 + $0x588] sm:$0xff] }
  0x64   : > { %311 = vst [vmem:[%s3746_s6 + $0x160] sm:$0xff] %v310_v50  ;;  %v402_v32 = vld [vmem:[%s3741_s5 + $0x5a0] sm:$0xff]  ;;  %v404_v33 = vld [vmem:[%s3741_s5 + $0x5a8] sm:$0xff] }
  0x65   : > { %313 = vst [vmem:[%s3746_s6 + $0x168] sm:$0xff] %v312_v51  ;;  %v406_v34 = vld [vmem:[%s3741_s5 + $0x5c0] sm:$0xff]  ;;  %v408_v35 = vld [vmem:[%s3741_s5 + $0x5c8] sm:$0xff] }
  0x66   : > { %315 = vst [vmem:[%s3746_s6 + $0x170] sm:$0xff] %v314_v52  ;;  %v410_v36 = vld [vmem:[%s3741_s5 + $0x5e0] sm:$0xff]  ;;  %v412_v37 = vld [vmem:[%s3741_s5 + $0x5e8] sm:$0xff] }
  0x67   : > { %317 = vst [vmem:[%s3746_s6 + $0x178] sm:$0xff] %v316_v53  ;;  %v414_v38 = vld [vmem:[%s3741_s5 + $0x600] sm:$0xff]  ;;  %v416_v39 = vld [vmem:[%s3741_s5 + $0x608] sm:$0xff] }
  0x68   : > { %319 = vst [vmem:[%s3746_s6 + $0x180] sm:$0xff] %v318_v54  ;;  %v418_v40 = vld [vmem:[%s3741_s5 + $0x620] sm:$0xff]  ;;  %v420_v41 = vld [vmem:[%s3741_s5 + $0x628] sm:$0xff] }
  0x69   : > { %321 = vst [vmem:[%s3746_s6 + $0x188] sm:$0xff] %v320_v55  ;;  %v422_v42 = vld [vmem:[%s3741_s5 + $0x640] sm:$0xff]  ;;  %v424_v43 = vld [vmem:[%s3741_s5 + $0x648] sm:$0xff] }
  0x6a   : > { %323 = vst [vmem:[%s3746_s6 + $0x190] sm:$0xff] %v322_v56  ;;  %v426_v44 = vld [vmem:[%s3741_s5 + $0x660] sm:$0xff]  ;;  %v428_v45 = vld [vmem:[%s3741_s5 + $0x668] sm:$0xff] }
  0x6b   : > { %325 = vst [vmem:[%s3746_s6 + $0x198] sm:$0xff] %v324_v57  ;;  %v430_v46 = vld [vmem:[%s3741_s5 + $0x680] sm:$0xff]  ;;  %v432_v47 = vld [vmem:[%s3741_s5 + $0x688] sm:$0xff] }
  0x6c   : > { %327 = vst [vmem:[%s3746_s6 + $0x1a0] sm:$0xff] %v326_v58  ;;  %v434_v48 = vld [vmem:[%s3741_s5 + $0x6a0] sm:$0xff]  ;;  %v436_v49 = vld [vmem:[%s3741_s5 + $0x6a8] sm:$0xff] }
  0x6d   : > { %329 = vst [vmem:[%s3746_s6 + $0x1a8] sm:$0xff] %v328_v59  ;;  %v438_v50 = vld [vmem:[%s3741_s5 + $0x6c0] sm:$0xff]  ;;  %v440_v51 = vld [vmem:[%s3741_s5 + $0x6c8] sm:$0xff] }
  0x6e   : > { %331 = vst [vmem:[%s3746_s6 + $0x1b0] sm:$0xff] %v330_v60  ;;  %v442_v52 = vld [vmem:[%s3741_s5 + $0x6e0] sm:$0xff]  ;;  %v444_v53 = vld [vmem:[%s3741_s5 + $0x6e8] sm:$0xff] }
  0x6f   : > { %333 = vst [vmem:[%s3746_s6 + $0x1b8] sm:$0xff] %v332_v61  ;;  %v446_v54 = vld [vmem:[%s3741_s5 + $0x700] sm:$0xff]  ;;  %v448_v55 = vld [vmem:[%s3741_s5 + $0x708] sm:$0xff] }
  0x70   : > { %335 = vst [vmem:[%s3746_s6 + $0x1c0] sm:$0xff] %v334_v62  ;;  %v450_v56 = vld [vmem:[%s3741_s5 + $0x720] sm:$0xff]  ;;  %v452_v57 = vld [vmem:[%s3741_s5 + $0x728] sm:$0xff] }
  0x71   : > { %337 = vst [vmem:[%s3746_s6 + $0x1c8] sm:$0xff] %v336_v63  ;;  %v454_v58 = vld [vmem:[%s3741_s5 + $0x740] sm:$0xff]  ;;  %v456_v59 = vld [vmem:[%s3741_s5 + $0x748] sm:$0xff] }
  0x72   : > { %339 = vst [vmem:[%s3746_s6 + $0x1d0] sm:$0xff] %v338_v0  ;;  %v458_v60 = vld [vmem:[%s3741_s5 + $0x760] sm:$0xff]  ;;  %v460_v61 = vld [vmem:[%s3741_s5 + $0x768] sm:$0xff] }
  0x73   : > { %341 = vst [vmem:[%s3746_s6 + $0x1d8] sm:$0xff] %v340_v1  ;;  %v462_v62 = vld [vmem:[%s3741_s5 + $0x780] sm:$0xff]  ;;  %v464_v63 = vld [vmem:[%s3741_s5 + $0x788] sm:$0xff] }
  0x74   : > { %343 = vst [vmem:[%s3746_s6 + $0x1e0] sm:$0xff] %v342_v2  ;;  %v466_v0 = vld [vmem:[%s3741_s5 + $0x7a0] sm:$0xff]  ;;  %v468_v1 = vld [vmem:[%s3741_s5 + $0x7a8] sm:$0xff] }
  0x75   : > { %345 = vst [vmem:[%s3746_s6 + $0x1e8] sm:$0xff] %v344_v3  ;;  %v470_v2 = vld [vmem:[%s3741_s5 + $0x7c0] sm:$0xff]  ;;  %v472_v3 = vld [vmem:[%s3741_s5 + $0x7c8] sm:$0xff] }
  0x76   : > { %347 = vst [vmem:[%s3746_s6 + $0x1f0] sm:$0xff] %v346_v4  ;;  %v474_v4 = vld [vmem:[%s3741_s5 + $0x7e0] sm:$0xff] }
  0x77   : > { %349 = vst [vmem:[%s3746_s6 + $0x1f8] sm:$0xff] %v348_v5  ;;  %v476_v5 = vld [vmem:[%s3741_s5 + $0x7e8] sm:$0xff] }
  0x78   : > { %351 = vst [vmem:[%s3746_s6 + $0x200] sm:$0xff] %v350_v6  ;;  %v478_v6 = vld [vmem:[%s3741_s5 + $0x800] sm:$0xff] }
  0x79   : > { %353 = vst [vmem:[%s3746_s6 + $0x208] sm:$0xff] %v352_v7  ;;  %v480_v7 = vld [vmem:[%s3741_s5 + $0x808] sm:$0xff] }
  0x7a   : > { %355 = vst [vmem:[%s3746_s6 + $0x210] sm:$0xff] %v354_v8  ;;  %v482_v8 = vld [vmem:[%s3741_s5 + $0x820] sm:$0xff] }
  0x7b   : > { %357 = vst [vmem:[%s3746_s6 + $0x218] sm:$0xff] %v356_v9  ;;  %v484_v9 = vld [vmem:[%s3741_s5 + $0x828] sm:$0xff] }
  0x7c   : > { %359 = vst [vmem:[%s3746_s6 + $0x220] sm:$0xff] %v358_v10  ;;  %v486_v10 = vld [vmem:[%s3741_s5 + $0x840] sm:$0xff] }
  0x7d   : > { %361 = vst [vmem:[%s3746_s6 + $0x228] sm:$0xff] %v360_v11  ;;  %v488_v11 = vld [vmem:[%s3741_s5 + $0x848] sm:$0xff] }
  0x7e   : > { %363 = vst [vmem:[%s3746_s6 + $0x230] sm:$0xff] %v362_v12  ;;  %v490_v12 = vld [vmem:[%s3741_s5 + $0x860] sm:$0xff] }
  0x7f   : > { %365 = vst [vmem:[%s3746_s6 + $0x238] sm:$0xff] %v364_v13  ;;  %v492_v13 = vld [vmem:[%s3741_s5 + $0x868] sm:$0xff] }
  0x80   : > { %367 = vst [vmem:[%s3746_s6 + $0x240] sm:$0xff] %v366_v14  ;;  %v494_v14 = vld [vmem:[%s3741_s5 + $0x880] sm:$0xff] }
  0x81   : > { %369 = vst [vmem:[%s3746_s6 + $0x248] sm:$0xff] %v368_v15  ;;  %v496_v15 = vld [vmem:[%s3741_s5 + $0x888] sm:$0xff] }
  0x82   : > { %371 = vst [vmem:[%s3746_s6 + $0x250] sm:$0xff] %v370_v16  ;;  %v498_v16 = vld [vmem:[%s3741_s5 + $0x8a0] sm:$0xff] }
  0x83   : > { %373 = vst [vmem:[%s3746_s6 + $0x258] sm:$0xff] %v372_v17  ;;  %v500_v17 = vld [vmem:[%s3741_s5 + $0x8a8] sm:$0xff] }
  0x84   : > { %375 = vst [vmem:[%s3746_s6 + $0x260] sm:$0xff] %v374_v18  ;;  %v502_v18 = vld [vmem:[%s3741_s5 + $0x8c0] sm:$0xff] }
  0x85   : > { %377 = vst [vmem:[%s3746_s6 + $0x268] sm:$0xff] %v376_v19  ;;  %v504_v19 = vld [vmem:[%s3741_s5 + $0x8c8] sm:$0xff] }
  0x86   : > { %379 = vst [vmem:[%s3746_s6 + $0x270] sm:$0xff] %v378_v20  ;;  %v506_v20 = vld [vmem:[%s3741_s5 + $0x8e0] sm:$0xff] }
  0x87   : > { %381 = vst [vmem:[%s3746_s6 + $0x278] sm:$0xff] %v380_v21  ;;  %v508_v21 = vld [vmem:[%s3741_s5 + $0x8e8] sm:$0xff] }
  0x88   : > { %383 = vst [vmem:[%s3746_s6 + $0x280] sm:$0xff] %v382_v22  ;;  %v510_v22 = vld [vmem:[%s3741_s5 + $0x900] sm:$0xff] }
  0x89   : > { %385 = vst [vmem:[%s3746_s6 + $0x288] sm:$0xff] %v384_v23  ;;  %v512_v23 = vld [vmem:[%s3741_s5 + $0x908] sm:$0xff] }
  0x8a   : > { %387 = vst [vmem:[%s3746_s6 + $0x290] sm:$0xff] %v386_v24  ;;  %v514_v24 = vld [vmem:[%s3741_s5 + $0x920] sm:$0xff] }
  0x8b   : > { %389 = vst [vmem:[%s3746_s6 + $0x298] sm:$0xff] %v388_v25  ;;  %v516_v25 = vld [vmem:[%s3741_s5 + $0x928] sm:$0xff] }
  0x8c   : > { %391 = vst [vmem:[%s3746_s6 + $0x2a0] sm:$0xff] %v390_v26  ;;  %v518_v26 = vld [vmem:[%s3741_s5 + $0x940] sm:$0xff] }
  0x8d   : > { %393 = vst [vmem:[%s3746_s6 + $0x2a8] sm:$0xff] %v392_v27  ;;  %v520_v27 = vld [vmem:[%s3741_s5 + $0x948] sm:$0xff] }
  0x8e   : > { %395 = vst [vmem:[%s3746_s6 + $0x2b0] sm:$0xff] %v394_v28  ;;  %v522_v28 = vld [vmem:[%s3741_s5 + $0x960] sm:$0xff] }
  0x8f   : > { %397 = vst [vmem:[%s3746_s6 + $0x2b8] sm:$0xff] %v396_v29  ;;  %v524_v29 = vld [vmem:[%s3741_s5 + $0x968] sm:$0xff] }
  0x90   : > { %399 = vst [vmem:[%s3746_s6 + $0x2c0] sm:$0xff] %v398_v30  ;;  %v526_v30 = vld [vmem:[%s3741_s5 + $0x980] sm:$0xff] }
  0x91   : > { %401 = vst [vmem:[%s3746_s6 + $0x2c8] sm:$0xff] %v400_v31  ;;  %v528_v31 = vld [vmem:[%s3741_s5 + $0x988] sm:$0xff] }
  0x92   : > { %403 = vst [vmem:[%s3746_s6 + $0x2d0] sm:$0xff] %v402_v32  ;;  %v530_v32 = vld [vmem:[%s3741_s5 + $0x9a0] sm:$0xff] }
  0x93   : > { %405 = vst [vmem:[%s3746_s6 + $0x2d8] sm:$0xff] %v404_v33  ;;  %v532_v33 = vld [vmem:[%s3741_s5 + $0x9a8] sm:$0xff] }
  0x94   : > { %407 = vst [vmem:[%s3746_s6 + $0x2e0] sm:$0xff] %v406_v34  ;;  %v534_v34 = vld [vmem:[%s3741_s5 + $0x9c0] sm:$0xff] }
  0x95   : > { %409 = vst [vmem:[%s3746_s6 + $0x2e8] sm:$0xff] %v408_v35  ;;  %v536_v35 = vld [vmem:[%s3741_s5 + $0x9c8] sm:$0xff] }
  0x96   : > { %411 = vst [vmem:[%s3746_s6 + $0x2f0] sm:$0xff] %v410_v36  ;;  %v538_v36 = vld [vmem:[%s3741_s5 + $0x9e0] sm:$0xff] }
  0x97   : > { %413 = vst [vmem:[%s3746_s6 + $0x2f8] sm:$0xff] %v412_v37  ;;  %v540_v37 = vld [vmem:[%s3741_s5 + $0x9e8] sm:$0xff] }
  0x98   : > { %415 = vst [vmem:[%s3746_s6 + $0x300] sm:$0xff] %v414_v38  ;;  %v542_v38 = vld [vmem:[%s3741_s5 + $0xa00] sm:$0xff] }
  0x99   : > { %417 = vst [vmem:[%s3746_s6 + $0x308] sm:$0xff] %v416_v39  ;;  %v544_v39 = vld [vmem:[%s3741_s5 + $0xa08] sm:$0xff] }
  0x9a   : > { %419 = vst [vmem:[%s3746_s6 + $0x310] sm:$0xff] %v418_v40  ;;  %v546_v40 = vld [vmem:[%s3741_s5 + $0xa20] sm:$0xff] }
  0x9b   : > { %421 = vst [vmem:[%s3746_s6 + $0x318] sm:$0xff] %v420_v41  ;;  %v548_v41 = vld [vmem:[%s3741_s5 + $0xa28] sm:$0xff] }
  0x9c   : > { %423 = vst [vmem:[%s3746_s6 + $0x320] sm:$0xff] %v422_v42  ;;  %v550_v42 = vld [vmem:[%s3741_s5 + $0xa40] sm:$0xff] }
  0x9d   : > { %425 = vst [vmem:[%s3746_s6 + $0x328] sm:$0xff] %v424_v43  ;;  %v552_v43 = vld [vmem:[%s3741_s5 + $0xa48] sm:$0xff] }
  0x9e   : > { %427 = vst [vmem:[%s3746_s6 + $0x330] sm:$0xff] %v426_v44  ;;  %v554_v44 = vld [vmem:[%s3741_s5 + $0xa60] sm:$0xff] }
  0x9f   : > { %429 = vst [vmem:[%s3746_s6 + $0x338] sm:$0xff] %v428_v45  ;;  %v556_v45 = vld [vmem:[%s3741_s5 + $0xa68] sm:$0xff] }
  0xa0   : > { %431 = vst [vmem:[%s3746_s6 + $0x340] sm:$0xff] %v430_v46  ;;  %v558_v46 = vld [vmem:[%s3741_s5 + $0xa80] sm:$0xff] }
  0xa1   : > { %433 = vst [vmem:[%s3746_s6 + $0x348] sm:$0xff] %v432_v47  ;;  %v560_v47 = vld [vmem:[%s3741_s5 + $0xa88] sm:$0xff] }
  0xa2   : > { %435 = vst [vmem:[%s3746_s6 + $0x350] sm:$0xff] %v434_v48  ;;  %v562_v48 = vld [vmem:[%s3741_s5 + $0xaa0] sm:$0xff] }
  0xa3   : > { %437 = vst [vmem:[%s3746_s6 + $0x358] sm:$0xff] %v436_v49  ;;  %v564_v49 = vld [vmem:[%s3741_s5 + $0xaa8] sm:$0xff] }
  0xa4   : > { %439 = vst [vmem:[%s3746_s6 + $0x360] sm:$0xff] %v438_v50  ;;  %v566_v50 = vld [vmem:[%s3741_s5 + $0xac0] sm:$0xff] }
  0xa5   : > { %441 = vst [vmem:[%s3746_s6 + $0x368] sm:$0xff] %v440_v51  ;;  %v568_v51 = vld [vmem:[%s3741_s5 + $0xac8] sm:$0xff] }
  0xa6   : > { %443 = vst [vmem:[%s3746_s6 + $0x370] sm:$0xff] %v442_v52  ;;  %v570_v52 = vld [vmem:[%s3741_s5 + $0xae0] sm:$0xff] }
  0xa7   : > { %445 = vst [vmem:[%s3746_s6 + $0x378] sm:$0xff] %v444_v53  ;;  %v572_v53 = vld [vmem:[%s3741_s5 + $0xae8] sm:$0xff] }
  0xa8   : > { %447 = vst [vmem:[%s3746_s6 + $0x380] sm:$0xff] %v446_v54  ;;  %v574_v54 = vld [vmem:[%s3741_s5 + $0xb00] sm:$0xff] }
  0xa9   : > { %449 = vst [vmem:[%s3746_s6 + $0x388] sm:$0xff] %v448_v55  ;;  %v576_v55 = vld [vmem:[%s3741_s5 + $0xb08] sm:$0xff] }
  0xaa   : > { %451 = vst [vmem:[%s3746_s6 + $0x390] sm:$0xff] %v450_v56  ;;  %v578_v56 = vld [vmem:[%s3741_s5 + $0xb20] sm:$0xff] }
  0xab   : > { %453 = vst [vmem:[%s3746_s6 + $0x398] sm:$0xff] %v452_v57  ;;  %v580_v57 = vld [vmem:[%s3741_s5 + $0xb28] sm:$0xff] }
  0xac   : > { %455 = vst [vmem:[%s3746_s6 + $0x3a0] sm:$0xff] %v454_v58  ;;  %v582_v58 = vld [vmem:[%s3741_s5 + $0xb40] sm:$0xff] }
  0xad   : > { %457 = vst [vmem:[%s3746_s6 + $0x3a8] sm:$0xff] %v456_v59  ;;  %v584_v59 = vld [vmem:[%s3741_s5 + $0xb48] sm:$0xff] }
  0xae   : > { %459 = vst [vmem:[%s3746_s6 + $0x3b0] sm:$0xff] %v458_v60  ;;  %v586_v60 = vld [vmem:[%s3741_s5 + $0xb60] sm:$0xff] }
  0xaf   : > { %461 = vst [vmem:[%s3746_s6 + $0x3b8] sm:$0xff] %v460_v61  ;;  %v588_v61 = vld [vmem:[%s3741_s5 + $0xb68] sm:$0xff] }
  0xb0   : > { %463 = vst [vmem:[%s3746_s6 + $0x3c0] sm:$0xff] %v462_v62  ;;  %v590_v62 = vld [vmem:[%s3741_s5 + $0xb80] sm:$0xff] }
  0xb1   : > { %465 = vst [vmem:[%s3746_s6 + $0x3c8] sm:$0xff] %v464_v63  ;;  %v592_v63 = vld [vmem:[%s3741_s5 + $0xb88] sm:$0xff] }
  0xb2   : > { %467 = vst [vmem:[%s3746_s6 + $0x3d0] sm:$0xff] %v466_v0  ;;  %v594_v0 = vld [vmem:[%s3741_s5 + $0xba0] sm:$0xff] }
  0xb3   : > { %469 = vst [vmem:[%s3746_s6 + $0x3d8] sm:$0xff] %v468_v1  ;;  %v596_v1 = vld [vmem:[%s3741_s5 + $0xba8] sm:$0xff] }
  0xb4   : > { %471 = vst [vmem:[%s3746_s6 + $0x3e0] sm:$0xff] %v470_v2  ;;  %v598_v2 = vld [vmem:[%s3741_s5 + $0xbc0] sm:$0xff] }
  0xb5   : > { %473 = vst [vmem:[%s3746_s6 + $0x3e8] sm:$0xff] %v472_v3  ;;  %v600_v3 = vld [vmem:[%s3741_s5 + $0xbc8] sm:$0xff] }
  0xb6   : > { %475 = vst [vmem:[%s3746_s6 + $0x3f0] sm:$0xff] %v474_v4  ;;  %v602_v4 = vld [vmem:[%s3741_s5 + $0xbe0] sm:$0xff] }
  0xb7   : > { %477 = vst [vmem:[%s3746_s6 + $0x3f8] sm:$0xff] %v476_v5  ;;  %v604_v5 = vld [vmem:[%s3741_s5 + $0xbe8] sm:$0xff] }
  0xb8   : > { %479 = vst [vmem:[%s3746_s6 + $0x400] sm:$0xff] %v478_v6 }
  0xb9   : > { %481 = vst [vmem:[%s3746_s6 + $0x408] sm:$0xff] %v480_v7 }
  0xba   : > { %483 = vst [vmem:[%s3746_s6 + $0x410] sm:$0xff] %v482_v8 }
  0xbb   : > { %485 = vst [vmem:[%s3746_s6 + $0x418] sm:$0xff] %v484_v9 }
  0xbc   : > { %487 = vst [vmem:[%s3746_s6 + $0x420] sm:$0xff] %v486_v10 }
  0xbd   : > { %489 = vst [vmem:[%s3746_s6 + $0x428] sm:$0xff] %v488_v11 }
  0xbe   : > { %491 = vst [vmem:[%s3746_s6 + $0x430] sm:$0xff] %v490_v12 }
  0xbf   : > { %493 = vst [vmem:[%s3746_s6 + $0x438] sm:$0xff] %v492_v13 }
  0xc0   : > { %495 = vst [vmem:[%s3746_s6 + $0x440] sm:$0xff] %v494_v14 }
  0xc1   : > { %497 = vst [vmem:[%s3746_s6 + $0x448] sm:$0xff] %v496_v15 }
  0xc2   : > { %499 = vst [vmem:[%s3746_s6 + $0x450] sm:$0xff] %v498_v16 }
  0xc3   : > { %501 = vst [vmem:[%s3746_s6 + $0x458] sm:$0xff] %v500_v17 }
  0xc4   : > { %503 = vst [vmem:[%s3746_s6 + $0x460] sm:$0xff] %v502_v18 }
  0xc5   : > { %505 = vst [vmem:[%s3746_s6 + $0x468] sm:$0xff] %v504_v19 }
  0xc6   : > { %507 = vst [vmem:[%s3746_s6 + $0x470] sm:$0xff] %v506_v20 }
  0xc7   : > { %509 = vst [vmem:[%s3746_s6 + $0x478] sm:$0xff] %v508_v21 }
  0xc8   : > { %511 = vst [vmem:[%s3746_s6 + $0x480] sm:$0xff] %v510_v22 }
  0xc9   : > { %513 = vst [vmem:[%s3746_s6 + $0x488] sm:$0xff] %v512_v23 }
  0xca   : > { %515 = vst [vmem:[%s3746_s6 + $0x490] sm:$0xff] %v514_v24 }
  0xcb   : > { %517 = vst [vmem:[%s3746_s6 + $0x498] sm:$0xff] %v516_v25 }
  0xcc   : > { %519 = vst [vmem:[%s3746_s6 + $0x4a0] sm:$0xff] %v518_v26 }
  0xcd   : > { %521 = vst [vmem:[%s3746_s6 + $0x4a8] sm:$0xff] %v520_v27 }
  0xce   : > { %523 = vst [vmem:[%s3746_s6 + $0x4b0] sm:$0xff] %v522_v28 }
  0xcf   : > { %525 = vst [vmem:[%s3746_s6 + $0x4b8] sm:$0xff] %v524_v29 }
  0xd0   : > { %527 = vst [vmem:[%s3746_s6 + $0x4c0] sm:$0xff] %v526_v30 }
  0xd1   : > { %529 = vst [vmem:[%s3746_s6 + $0x4c8] sm:$0xff] %v528_v31 }
  0xd2   : > { %531 = vst [vmem:[%s3746_s6 + $0x4d0] sm:$0xff] %v530_v32 }
  0xd3   : > { %533 = vst [vmem:[%s3746_s6 + $0x4d8] sm:$0xff] %v532_v33 }
  0xd4   : > { %535 = vst [vmem:[%s3746_s6 + $0x4e0] sm:$0xff] %v534_v34 }
  0xd5   : > { %537 = vst [vmem:[%s3746_s6 + $0x4e8] sm:$0xff] %v536_v35 }
  0xd6   : > { %539 = vst [vmem:[%s3746_s6 + $0x4f0] sm:$0xff] %v538_v36 }
  0xd7   : > { %541 = vst [vmem:[%s3746_s6 + $0x4f8] sm:$0xff] %v540_v37 }
  0xd8   : > { %543 = vst [vmem:[%s3746_s6 + $0x500] sm:$0xff] %v542_v38 }
  0xd9   : > { %545 = vst [vmem:[%s3746_s6 + $0x508] sm:$0xff] %v544_v39 }
  0xda   : > { %547 = vst [vmem:[%s3746_s6 + $0x510] sm:$0xff] %v546_v40 }
  0xdb   : > { %549 = vst [vmem:[%s3746_s6 + $0x518] sm:$0xff] %v548_v41 }
  0xdc   : > { %551 = vst [vmem:[%s3746_s6 + $0x520] sm:$0xff] %v550_v42 }
  0xdd   : > { %553 = vst [vmem:[%s3746_s6 + $0x528] sm:$0xff] %v552_v43 }
  0xde   : > { %555 = vst [vmem:[%s3746_s6 + $0x530] sm:$0xff] %v554_v44 }
  0xdf   : > { %557 = vst [vmem:[%s3746_s6 + $0x538] sm:$0xff] %v556_v45 }
  0xe0   : > { %559 = vst [vmem:[%s3746_s6 + $0x540] sm:$0xff] %v558_v46 }
  0xe1   : > { %561 = vst [vmem:[%s3746_s6 + $0x548] sm:$0xff] %v560_v47 }
  0xe2   : > { %563 = vst [vmem:[%s3746_s6 + $0x550] sm:$0xff] %v562_v48 }
  0xe3   : > { %565 = vst [vmem:[%s3746_s6 + $0x558] sm:$0xff] %v564_v49 }
  0xe4   : > { %567 = vst [vmem:[%s3746_s6 + $0x560] sm:$0xff] %v566_v50 }
  0xe5   : > { %569 = vst [vmem:[%s3746_s6 + $0x568] sm:$0xff] %v568_v51 }
  0xe6   : > { %571 = vst [vmem:[%s3746_s6 + $0x570] sm:$0xff] %v570_v52 }
  0xe7   : > { %573 = vst [vmem:[%s3746_s6 + $0x578] sm:$0xff] %v572_v53 }
  0xe8   : > { %575 = vst [vmem:[%s3746_s6 + $0x580] sm:$0xff] %v574_v54 }
  0xe9   : > { %577 = vst [vmem:[%s3746_s6 + $0x588] sm:$0xff] %v576_v55 }
  0xea   : > { %579 = vst [vmem:[%s3746_s6 + $0x590] sm:$0xff] %v578_v56 }
  0xeb   : > { %581 = vst [vmem:[%s3746_s6 + $0x598] sm:$0xff] %v580_v57 }
  0xec   : > { %583 = vst [vmem:[%s3746_s6 + $0x5a0] sm:$0xff] %v582_v58 }
  0xed   : > { %585 = vst [vmem:[%s3746_s6 + $0x5a8] sm:$0xff] %v584_v59 }
  0xee   : > { %587 = vst [vmem:[%s3746_s6 + $0x5b0] sm:$0xff] %v586_v60 }
  0xef   : > { %589 = vst [vmem:[%s3746_s6 + $0x5b8] sm:$0xff] %v588_v61 }
  0xf0   : > { %591 = vst [vmem:[%s3746_s6 + $0x5c0] sm:$0xff] %v590_v62 }
  0xf1   : > { %593 = vst [vmem:[%s3746_s6 + $0x5c8] sm:$0xff] %v592_v63 }
  0xf2   : > { %595 = vst [vmem:[%s3746_s6 + $0x5d0] sm:$0xff] %v594_v0 }
  0xf3   : > { %597 = vst [vmem:[%s3746_s6 + $0x5d8] sm:$0xff] %v596_v1 }
  0xf4   : > { %599 = vst [vmem:[%s3746_s6 + $0x5e0] sm:$0xff] %v598_v2 }
  0xf5   : > { %601 = vst [vmem:[%s3746_s6 + $0x5e8] sm:$0xff] %v600_v3 }
  0xf6   : > { %603 = vst [vmem:[%s3746_s6 + $0x5f0] sm:$0xff] %v602_v4 }
  0xf7   : > { %605 = vst [vmem:[%s3746_s6 + $0x5f8] sm:$0xff] %v604_v5 }
  0xf8 PF: > { %p2422_p0 = scmp.ge.s32.totalorder %s3604_s22, 1  ;;  %p618_p1 = scmp.lt.s32.totalorder %s3604_s22, 13 }
  0xfa   : > { %p619_p2 = pnand %p2422_p0, %p618_p1 }
  0xfb   : > { %s625_s0 = sand.u32 (!%p619_p2), 1, %s3580_s16   ;;  %s632_s23 = sand.u32 (!%p619_p2), 1, %s3572_s14  }
  0xfc   : > { %622 = sbr.rel (%p619_p2) target bundleno = 636 (0x27c), region = 70  ;;  %s659_s7 = sand.u32 (!%p619_p2), 1, %s3564_s12  }
  0xfd   : > { %s3427_s28 = smul.u32 (!%p619_p2), 48, %s625_s0  ;;  %s2423_s26 = sshll.u32 (!%p619_p2), %s659_s7, 5 }
  0xfe   : > { %s3428_s11 = smul.u32 (!%p619_p2), 1536, %s632_s23  ;;  %s2424_s27 = sshll.u32 (!%p619_p2), %s3592_s19, 2 }
  0xff   : > { %p667_p3 = scmp.lt.s32.totalorder (!%p619_p2), %s2424_s27, 7  ;;  %s4141_s6 = scalar_lea.vmem (!%p619_p2), [#allocation3], %s3427_s28 }
 0x100   : > { %s4143_s1 = scalar_lea.vmem (!%p619_p2), [#allocation4], %s3428_s11  ;;  %s4145_s25 = scalar_lea.vmem (!%p619_p2), [#allocation5], %s2423_s26 }
 0x101   : > { %s4664_s27 = smov (!%p667_p3, %s2424_s27), 7  ;;  %p2425_p4 = scmp.ne.s32.totalorder %s3588_s18, 0 }
 0x102   : > { %s669_s5 = scalar_lea.vmem %s4635_s2, %s4664_s27 }
 0x103   : > { %676 = sbr.rel (%p2425_p4) target bundleno = 273 (0x111), region = 82 }
 0x108   : > { %v3606_v6 = vmov 0.0  }
 0x109   : > { %677 = vst [vmem:[#allocation2 + $0x30] sm:$0xff] %v3606_v6 }
 0x10a   : > { %678 = vst [vmem:[#allocation2] sm:$0xff] %v3606_v6 }
 0x10b   : > { %679 = vst [vmem:[#allocation2 + $0x18] sm:$0xff] %v3606_v6 }
 0x10c   : > { %680 = vst [vmem:[#allocation2 + $0x10] sm:$0xff] %v3606_v6 }
 0x10d   : > { %681 = vst [vmem:[#allocation2 + $0x8] sm:$0xff] %v3606_v6 }
 0x10e   : > { %682 = vst [vmem:[#allocation2 + $0x20] sm:$0xff] %v3606_v6 }
 0x10f   : > { %683 = vst [vmem:[#allocation2 + $0x28] sm:$0xff] %v3606_v6 }
 0x110   : > { %684 = vst [vmem:[#allocation2 + $0x38] sm:$0xff] %v3606_v6 }
 0x111 PF: > { %v2564_v7 = vld [vmem:[%s4143_s1 + $0xe0] sm:$0xf]  ;;  %v3262_v8 = vld [vmem:[%s4143_s1 + $0xec] sm:$0xf0]  ;;  %p3218_p5 = scmp.ne.s32.totalorder %s3588_s18, 5 }
 0x112   : > { %v2692_v9 = vld [vmem:[%s4143_s1 + $0x1e0] sm:$0xf]  ;;  %v2565_v10 = vor.u32 %v3262_v8, %v2564_v7  ;;  %v3294_v11 = vld [vmem:[%s4143_s1 + $0x1ec] sm:$0xf0] }
 0x113   : > { %v2820_v12 = vld [vmem:[%s4143_s1 + $0x2e0] sm:$0xf]  ;;  %v3326_v13 = vld [vmem:[%s4143_s1 + $0x2ec] sm:$0xf0]  ;;  %v2693_v14 = vor.u32 %v3294_v11, %v2692_v9 }
 0x114   : > { %v2821_v15 = vor.u32 %v3326_v13, %v2820_v12  ;;  %v2948_v16 = vld [vmem:[%s4143_s1 + $0x3e0] sm:$0xf]  ;;  %v3358_v17 = vld [vmem:[%s4143_s1 + $0x3ec] sm:$0xf0]  ;;  %1881 = vmatpush.bf16.msra.mxu0 %v2565_v10 }
 0x115   : > { %v2548_v18 = vld [vmem:[%s4143_s1 + $0xc0] sm:$0xf]  ;;  %v2949_v19 = vor.u32 %v3358_v17, %v2948_v16  ;;  %v3258_v20 = vld [vmem:[%s4143_s1 + $0xcc] sm:$0xf0]  ;;  %1895 = vmatpush.bf16.msra.mxu1 %v2693_v14 }
 0x116   : > { %v2676_v21 = vld [vmem:[%s4143_s1 + $0x1c0] sm:$0xf]  ;;  %v3290_v22 = vld [vmem:[%s4143_s1 + $0x1cc] sm:$0xf0]  ;;  %1909 = vmatpush.bf16.msra.mxu2 %v2821_v15  ;;  %v2549_v23 = vor.u32 %v3258_v20, %v2548_v18 }
 0x117   : > { %v2677_v24 = vor.u32 %v3290_v22, %v2676_v21  ;;  %v2804_v25 = vld [vmem:[%s4143_s1 + $0x2c0] sm:$0xf]  ;;  %v3322_v26 = vld [vmem:[%s4143_s1 + $0x2cc] sm:$0xf0]  ;;  %1923 = vmatpush.bf16.msra.mxu3 %v2949_v19 }
 0x118   : > { %v2932_v27 = vld [vmem:[%s4143_s1 + $0x3c0] sm:$0xf]  ;;  %v2805_v28 = vor.u32 %v3322_v26, %v2804_v25  ;;  %v3354_v29 = vld [vmem:[%s4143_s1 + $0x3cc] sm:$0xf0]  ;;  %1882 = vmatpush.bf16.msra.mxu0 %v2549_v23 }
 0x119   : > { %v2532_v30 = vld [vmem:[%s4143_s1 + $0xa0] sm:$0xf]  ;;  %v3254_v31 = vld [vmem:[%s4143_s1 + $0xac] sm:$0xf0]  ;;  %v2933_v32 = vor.u32 %v3354_v29, %v2932_v27  ;;  %1896 = vmatpush.bf16.msra.mxu1 %v2677_v24 }
 0x11a   : > { %v2660_v33 = vld [vmem:[%s4143_s1 + $0x1a0] sm:$0xf]  ;;  %v3286_v34 = vld [vmem:[%s4143_s1 + $0x1ac] sm:$0xf0]  ;;  %v2533_v36 = vor.u32 %v3254_v31, %v2532_v30  ;;  %1910 = vmatpush.bf16.msra.mxu2 %v2805_v28 }
 0x11b   : > { %v2788_v35 = vld [vmem:[%s4143_s1 + $0x2a0] sm:$0xf]  ;;  %v3318_v37 = vld [vmem:[%s4143_s1 + $0x2ac] sm:$0xf0]  ;;  %v2661_v40 = vor.u32 %v3286_v34, %v2660_v33  ;;  %1924 = vmatpush.bf16.msra.mxu3 %v2933_v32 }
 0x11c   : > { %v2916_v38 = vld [vmem:[%s4143_s1 + $0x3a0] sm:$0xf]  ;;  %v3350_v39 = vld [vmem:[%s4143_s1 + $0x3ac] sm:$0xf0]  ;;  %v2789_v41 = vor.u32 %v3318_v37, %v2788_v35  ;;  %1883 = vmatpush.bf16.msra.mxu0 %v2533_v36 }
 0x11d   : > { %v2516_v42 = vld [vmem:[%s4143_s1 + $0x80] sm:$0xf]  ;;  %v3250_v43 = vld [vmem:[%s4143_s1 + $0x8c] sm:$0xf0]  ;;  %v2917_v45 = vor.u32 %v3350_v39, %v2916_v38  ;;  %1897 = vmatpush.bf16.msra.mxu1 %v2661_v40  ;;  %v3260_v40 = vld [vmem:[%s4143_s1 + $0xe4] sm:$0xf] }
 0x11e   : > { %v2644_v44 = vld [vmem:[%s4143_s1 + $0x180] sm:$0xf]  ;;  %v3282_v46 = vld [vmem:[%s4143_s1 + $0x18c] sm:$0xf0]  ;;  %v2517_v51 = vor.u32 %v3250_v43, %v2516_v42  ;;  %1911 = vmatpush.bf16.msra.mxu2 %v2789_v41  ;;  %v2566_v41 = vld [vmem:[%s4143_s1 + $0xf0] sm:$0xf0] }
 0x11f   : > { %v2772_v47 = vld [vmem:[%s4143_s1 + $0x280] sm:$0xf]  ;;  %v3314_v48 = vld [vmem:[%s4143_s1 + $0x28c] sm:$0xf0]  ;;  %v2645_v52 = vor.u32 %v3282_v46, %v2644_v44  ;;  %1925 = vmatpush.bf16.msra.mxu3 %v2917_v45  ;;  %v3292_v44 = vld [vmem:[%s4143_s1 + $0x1e4] sm:$0xf] }
 0x120   : > { %v2900_v49 = vld [vmem:[%s4143_s1 + $0x380] sm:$0xf]  ;;  %v3346_v50 = vld [vmem:[%s4143_s1 + $0x38c] sm:$0xf0]  ;;  %v2773_v53 = vor.u32 %v3314_v48, %v2772_v47  ;;  %1884 = vmatpush.bf16.msra.mxu0 %v2517_v51  ;;  %v2694_v45 = vld [vmem:[%s4143_s1 + $0x1f0] sm:$0xf0] }
 0x121   : > { %v2500_v54 = vld [vmem:[%s4143_s1 + $0x60] sm:$0xf]  ;;  %v3246_v55 = vld [vmem:[%s4143_s1 + $0x6c] sm:$0xf0]  ;;  %v2901_v57 = vor.u32 %v3346_v50, %v2900_v49  ;;  %1898 = vmatpush.bf16.msra.mxu1 %v2645_v52  ;;  %v2569_v50 = vor.u32 %v3260_v40, %v2566_v41  ;;  %v2502_v40 = vld [vmem:[%s4143_s1 + $0x70] sm:$0xf0] }
 0x122   : > { %v2628_v56 = vld [vmem:[%s4143_s1 + $0x160] sm:$0xf]  ;;  %v3278_v58 = vld [vmem:[%s4143_s1 + $0x16c] sm:$0xf0]  ;;  %v2501_v63 = vor.u32 %v3246_v55, %v2500_v54  ;;  %1912 = vmatpush.bf16.msra.mxu2 %v2773_v53  ;;  %v2697_v54 = vor.u32 %v3292_v44, %v2694_v45  ;;  %v3256_v55 = vld [vmem:[%s4143_s1 + $0xc4] sm:$0xf] }
 0x123   : > { %v2756_v59 = vld [vmem:[%s4143_s1 + $0x260] sm:$0xf]  ;;  %v3310_v60 = vld [vmem:[%s4143_s1 + $0x26c] sm:$0xf0]  ;;  %v2629_v0 = vor.u32 %v3278_v58, %v2628_v56  ;;  %1926 = vmatpush.bf16.msra.mxu3 %v2901_v57  ;;  %v2550_v56 = vld [vmem:[%s4143_s1 + $0xd0] sm:$0xf0] }
 0x124   : > { %v2884_v61 = vld [vmem:[%s4143_s1 + $0x360] sm:$0xf]  ;;  %v3342_v62 = vld [vmem:[%s4143_s1 + $0x36c] sm:$0xf0]  ;;  %v2757_v1 = vor.u32 %v3310_v60, %v2756_v59  ;;  %1885 = vmatpush.bf16.msra.mxu0 %v2501_v63  ;;  %v3288_v57 = vld [vmem:[%s4143_s1 + $0x1c4] sm:$0xf] }
 0x125   : > { %v2484_v2 = vld [vmem:[%s4143_s1 + $0x40] sm:$0xf]  ;;  %v3242_v3 = vld [vmem:[%s4143_s1 + $0x4c] sm:$0xf0]  ;;  %v2885_v5 = vor.u32 %v3342_v62, %v2884_v61  ;;  %1899 = vmatpush.bf16.msra.mxu1 %v2629_v0  ;;  %v2678_v58 = vld [vmem:[%s4143_s1 + $0x1d0] sm:$0xf0] }
 0x126   : > { %v2612_v4 = vld [vmem:[%s4143_s1 + $0x140] sm:$0xf]  ;;  %v3274_v6 = vld [vmem:[%s4143_s1 + $0x14c] sm:$0xf0]  ;;  %v2485_v11 = vor.u32 %v3242_v3, %v2484_v2  ;;  %1913 = vmatpush.bf16.msra.mxu2 %v2757_v1  ;;  %v3229_v60 = vld [vmem:[%s4141_s6 + $0x14] sm:$0xf0]  ;;  %v2553_v3 = vor.u32 %v3256_v55, %v2550_v56 }
 0x127   : > { %v2740_v7 = vld [vmem:[%s4143_s1 + $0x240] sm:$0xf]  ;;  %v3306_v8 = vld [vmem:[%s4143_s1 + $0x24c] sm:$0xf0]  ;;  %v2613_v12 = vor.u32 %v3274_v6, %v2612_v4  ;;  %1927 = vmatpush.bf16.msra.mxu3 %v2885_v5  ;;  %v3252_v5 = vld [vmem:[%s4143_s1 + $0xa4] sm:$0xf] }
 0x128   : > { %v2868_v9 = vld [vmem:[%s4143_s1 + $0x340] sm:$0xf]  ;;  %v3338_v10 = vld [vmem:[%s4143_s1 + $0x34c] sm:$0xf0]  ;;  %v2741_v13 = vor.u32 %v3306_v8, %v2740_v7  ;;  %1886 = vmatpush.bf16.msra.mxu0 %v2485_v11  ;;  %v2534_v6 = vld [vmem:[%s4143_s1 + $0xb0] sm:$0xf0]  ;;  %v2681_v7 = vor.u32 %v3288_v57, %v2678_v58 }
 0x129   : > { %v2468_v14 = vld [vmem:[%s4143_s1 + $0x20] sm:$0xf]  ;;  %v3238_v15 = vld [vmem:[%s4143_s1 + $0x2c] sm:$0xf0]  ;;  %v2869_v17 = vor.u32 %v3338_v10, %v2868_v9  ;;  %1900 = vmatpush.bf16.msra.mxu1 %v2613_v12  ;;  %v3284_v8 = vld [vmem:[%s4143_s1 + $0x1a4] sm:$0xf] }
 0x12a   : > { %v2596_v16 = vld [vmem:[%s4143_s1 + $0x120] sm:$0xf]  ;;  %v3270_v18 = vld [vmem:[%s4143_s1 + $0x12c] sm:$0xf0]  ;;  %v2469_v23 = vor.u32 %v3238_v15, %v2468_v14  ;;  %1914 = vmatpush.bf16.msra.mxu2 %v2741_v13  ;;  %v3226_v9 = vld [vmem:[%s4141_s6 + $0x4] sm:$0xf] }
 0x12b   : > { %v2724_v19 = vld [vmem:[%s4143_s1 + $0x220] sm:$0xf]  ;;  %v3302_v20 = vld [vmem:[%s4143_s1 + $0x22c] sm:$0xf0]  ;;  %v2597_v26 = vor.u32 %v3270_v18, %v2596_v16  ;;  %1928 = vmatpush.bf16.msra.mxu3 %v2869_v17  ;;  %v2430_v10 = vld [vmem:[%s4141_s6 + $0x18] sm:$0xf0] }
 0x12c   : > { %v2852_v21 = vld [vmem:[%s4143_s1 + $0x320] sm:$0xf]  ;;  %v3334_v22 = vld [vmem:[%s4143_s1 + $0x32c] sm:$0xf0]  ;;  %v2725_v27 = vor.u32 %v3302_v20, %v2724_v19  ;;  %1887 = vmatpush.bf16.msra.mxu0 %v2469_v23  ;;  %v2662_v11 = vld [vmem:[%s4143_s1 + $0x1b0] sm:$0xf0]  ;;  %v4243_v12 = vor.u32 %v3226_v9, %v2430_v10  ;;  %v2537_v20 = vor.u32 %v3252_v5, %v2534_v6 }
 0x12d   : > { %v2452_v24 = vld [vmem:[%s4143_s1] sm:$0xf]  ;;  %v3234_v25 = vld [vmem:[%s4143_s1 + $0xc] sm:$0xf0]  ;;  %v2853_v31 = vor.u32 %v3334_v22, %v2852_v21  ;;  %1901 = vmatpush.bf16.msra.mxu1 %v2597_v26  ;;  %v2436_v13 = vld [vmem:[%s4141_s6 + $0x8] sm:$0xf] }
 0x12e   : > { %v2580_v28 = vld [vmem:[%s4143_s1 + $0x100] sm:$0xf]  ;;  %v3266_v29 = vld [vmem:[%s4143_s1 + $0x10c] sm:$0xf0]  ;;  %v2453_v38 = vor.u32 %v3234_v25, %v2452_v24  ;;  %1915 = vmatpush.bf16.msra.mxu2 %v2725_v27  ;;  %v3248_v23 = vld [vmem:[%s4143_s1 + $0x84] sm:$0xf]  ;;  %v2665_v24 = vor.u32 %v3284_v8, %v2662_v11 }
 0x12f   : > { %v2708_v30 = vld [vmem:[%s4143_s1 + $0x200] sm:$0xf]  ;;  %v3298_v32 = vld [vmem:[%s4143_s1 + $0x20c] sm:$0xf0]  ;;  %v2581_v42 = vor.u32 %v3266_v29, %v2580_v28  ;;  %1929 = vmatpush.bf16.msra.mxu3 %v2853_v31  ;;  %v2518_v25 = vld [vmem:[%s4143_s1 + $0x90] sm:$0xf0] }
 0x130   : > { %v2836_v33 = vld [vmem:[%s4143_s1 + $0x300] sm:$0xf]  ;;  %v3330_v34 = vld [vmem:[%s4143_s1 + $0x30c] sm:$0xf0]  ;;  %v2709_v43 = vor.u32 %v3298_v32, %v2708_v30  ;;  %1888 = vmatpush.bf16.msra.mxu0 %v2453_v38  ;;  %v3227_v26 = vld [vmem:[%s4141_s6 + $0xc] sm:$0xf] }
 0x131   : > { %v3076_v35 = vld [vmem:[%s4143_s1 + $0x4e0] sm:$0xf]  ;;  %v3390_v36 = vld [vmem:[%s4143_s1 + $0x4ec] sm:$0xf0]  ;;  %v2837_v46 = vor.u32 %v3330_v34, %v2836_v33  ;;  %1902 = vmatpush.bf16.msra.mxu1 %v2581_v42  ;;  %v2438_v27 = vld [vmem:[%s4141_s6 + $0x20] sm:$0xf0]  ;;  %v2521_v33 = vor.u32 %v3248_v23, %v2518_v25 }
 0x132   : > { %v3204_v37 = vld [vmem:[%s4143_s1 + $0x5e0] sm:$0xf]  ;;  %v3422_v39 = vld [vmem:[%s4143_s1 + $0x5ec] sm:$0xf0]  ;;  %v3077_v47 = vor.u32 %v3390_v36, %v3076_v35  ;;  %1916 = vmatpush.bf16.msra.mxu2 %v2709_v43  ;;  %v3280_v28 = vld [vmem:[%s4143_s1 + $0x184] sm:$0xf]  ;;  %v4261_v30 = vor.u32 %v3227_v26, %v2438_v27 }
 0x133   : > { %v3060_v48 = vld [vmem:[%s4143_s1 + $0x4c0] sm:$0xf]  ;;  %v3205_v49 = vor.u32 %v3422_v39, %v3204_v37  ;;  %v3386_v51 = vld [vmem:[%s4143_s1 + $0x4cc] sm:$0xf0]  ;;  %1930 = vmatpush.bf16.msra.mxu3 %v2837_v46  ;;  %v2646_v29 = vld [vmem:[%s4143_s1 + $0x190] sm:$0xf0] }
 0x134   : > { %v3188_v52 = vld [vmem:[%s4143_s1 + $0x5c0] sm:$0xf]  ;;  %v3418_v53 = vld [vmem:[%s4143_s1 + $0x5cc] sm:$0xf0]  ;;  %1937 = vmatpush.bf16.msrb.mxu0 %v3077_v47  ;;  %v3061_v61 = vor.u32 %v3386_v51, %v3060_v48  ;;  %1903 = vmatmul.bf16.vlgmr.msra.gmra.mxu1 %v4243_v12  ;;  %v2649_v37 = vor.u32 %v3280_v28, %v2646_v29  ;;  %v3244_v39 = vld [vmem:[%s4143_s1 + $0x64] sm:$0xf] }
 0x135   : > { %v2428_v59 = vld [vmem:[%s4141_s6] sm:$0xf]  ;;  %1951 = vmatpush.bf16.msrb.mxu1 %v3205_v49  ;;  %v3189_v2 = vor.u32 %v3418_v53, %v3188_v52  ;;  %v3276_v41 = vld [vmem:[%s4143_s1 + $0x164] sm:$0xf]  ;;  %v2630_v42 = vld [vmem:[%s4143_s1 + $0x170] sm:$0xf0]  ;;  %v2505_v45 = vor.u32 %v3244_v39, %v2502_v40 }
 0x136   : > { %v3044_v62 = vld [vmem:[%s4143_s1 + $0x4a0] sm:$0xf]  ;;  %v3382_v63 = vld [vmem:[%s4143_s1 + $0x4ac] sm:$0xf0]  ;;  %v4233_v1 = vor.u32 %v3229_v60, %v2428_v59  ;;  %1965 = vmatpush.bf16.msrb.mxu2 %v2569_v50  ;;  %1931 = vmatmul.bf16.vlgmr.msra.gmra.mxu3 %v4261_v30  ;;  %v2633_v49 = vor.u32 %v3276_v41, %v2630_v42  ;;  %v3240_v51 = vld [vmem:[%s4143_s1 + $0x44] sm:$0xf] }
 0x137   : > { %v3172_v0 = vld [vmem:[%s4143_s1 + $0x5a0] sm:$0xf]  ;;  %v3414_v4 = vld [vmem:[%s4143_s1 + $0x5ac] sm:$0xf0]  ;;  %1979 = vmatpush.bf16.msrb.mxu3 %v2697_v54  ;;  %v3045_v15 = vor.u32 %v3382_v63, %v3044_v62  ;;  %v2486_v52 = vld [vmem:[%s4143_s1 + $0x50] sm:$0xf0] }
 0x138   : > { %1889 = vmatmul.bf16.vlgmr.msra.gmra.mxu0 %v4233_v1  ;;  %v3230_v14 = vld [vmem:[%s4141_s6 + $0x1c] sm:$0xf0]  ;;  %v3173_v19 = vor.u32 %v3414_v4, %v3172_v0  ;;  %v3272_v53 = vld [vmem:[%s4143_s1 + $0x144] sm:$0xf]  ;;  %v2614_v54 = vld [vmem:[%s4143_s1 + $0x150] sm:$0xf0]  ;;  %v2489_v57 = vor.u32 %v3240_v51, %v2486_v52 }
 0x139   : > { %1938 = vmatpush.bf16.msrb.mxu0 %v3061_v61  ;;  %v3028_v16 = vld [vmem:[%s4143_s1 + $0x480] sm:$0xf]  ;;  %v3378_v17 = vld [vmem:[%s4143_s1 + $0x48c] sm:$0xf0]  ;;  %v4249_v18 = vor.u32 %v3230_v14, %v2436_v13  ;;  %1952 = vmatpush.bf16.msrb.mxu1 %v3189_v2  ;;  %v2617_v61 = vor.u32 %v3272_v53, %v2614_v54  ;;  %v3236_v63 = vld [vmem:[%s4143_s1 + $0x24] sm:$0xf] }
 0x13a   : > { %1966 = vmatpush.bf16.msrb.mxu2 %v2553_v3  ;;  %v3156_v21 = vld [vmem:[%s4143_s1 + $0x580] sm:$0xf]  ;;  %v3410_v22 = vld [vmem:[%s4143_s1 + $0x58c] sm:$0xf0]  ;;  %v3029_v31 = vor.u32 %v3378_v17, %v3028_v16  ;;  %v2470_v0 = vld [vmem:[%s4143_s1 + $0x30] sm:$0xf0] }
 0x13b   : > { %1980 = vmatpush.bf16.msrb.mxu3 %v2681_v7  ;;  %1917 = vmatmul.bf16.vlgmr.msra.gmra.mxu2 %v4249_v18  ;;  %v3157_v32 = vor.u32 %v3410_v22, %v3156_v21  ;;  %v3012_v34 = vld [vmem:[%s4143_s1 + $0x460] sm:$0xf]  ;;  %v3374_v35 = vld [vmem:[%s4143_s1 + $0x46c] sm:$0xf0]  ;;  %v3268_v2 = vld [vmem:[%s4143_s1 + $0x124] sm:$0xf]  ;;  %v2473_v9 = vor.u32 %v3236_v63, %v2470_v0 }
 0x13c   : > { %v3140_v36 = vld [vmem:[%s4143_s1 + $0x560] sm:$0xf]  ;;  %v3406_v38 = vld [vmem:[%s4143_s1 + $0x56c] sm:$0xf0]  ;;  %v3013_v43 = vor.u32 %v3374_v35, %v3012_v34  ;;  %v2598_v3 = vld [vmem:[%s4143_s1 + $0x130] sm:$0xf0] }
 0x13d   : > { %1939 = vmatpush.bf16.msrb.mxu0 %v3045_v15  ;;  %1953 = vmatpush.bf16.msrb.mxu1 %v3173_v19  ;;  %v3141_v44 = vor.u32 %v3406_v38, %v3140_v36  ;;  %v2996_v46 = vld [vmem:[%s4143_s1 + $0x440] sm:$0xf]  ;;  %v3370_v47 = vld [vmem:[%s4143_s1 + $0x44c] sm:$0xf0]  ;;  %v3232_v11 = vld [vmem:[%s4143_s1 + $0x4] sm:$0xf]  ;;  %v2601_v14 = vor.u32 %v3268_v2, %v2598_v3 }
 0x13e   : > { %1967 = vmatpush.bf16.msrb.mxu2 %v2537_v20  ;;  %v3124_v48 = vld [vmem:[%s4143_s1 + $0x540] sm:$0xf]  ;;  %v3402_v50 = vld [vmem:[%s4143_s1 + $0x54c] sm:$0xf0]  ;;  %v2997_v55 = vor.u32 %v3370_v47, %v2996_v46  ;;  %v2454_v13 = vld [vmem:[%s4143_s1 + $0x10] sm:$0xf0] }
 0x13f   : > { %1981 = vmatpush.bf16.msrb.mxu3 %v2665_v24  ;;  %v3125_v56 = vor.u32 %v3402_v50, %v3124_v48  ;;  %v2980_v58 = vld [vmem:[%s4143_s1 + $0x420] sm:$0xf]  ;;  %v3366_v59 = vld [vmem:[%s4143_s1 + $0x42c] sm:$0xf0]  ;;  %v3264_v15 = vld [vmem:[%s4143_s1 + $0x104] sm:$0xf]  ;;  %v2457_v27 = vor.u32 %v3232_v11, %v2454_v13 }
 0x140   : > { %v3108_v60 = vld [vmem:[%s4143_s1 + $0x520] sm:$0xf]  ;;  %v3398_v62 = vld [vmem:[%s4143_s1 + $0x52c] sm:$0xf0]  ;;  %v2981_v4 = vor.u32 %v3366_v59, %v2980_v58  ;;  %v2582_v16 = vld [vmem:[%s4143_s1 + $0x110] sm:$0xf0] }
 0x141   : > { %1940 = vmatpush.bf16.msrb.mxu0 %v3029_v31  ;;  %1954 = vmatpush.bf16.msrb.mxu1 %v3157_v32  ;;  %v2964_v5 = vld [vmem:[%s4143_s1 + $0x400] sm:$0xf]  ;;  %v3362_v6 = vld [vmem:[%s4143_s1 + $0x40c] sm:$0xf0]  ;;  %v3109_v8 = vor.u32 %v3398_v62, %v3108_v60  ;;  %v3324_v17 = vld [vmem:[%s4143_s1 + $0x2e4] sm:$0xf]  ;;  %v2585_v32 = vor.u32 %v3264_v15, %v2582_v16 }
 0x142   : > { %1968 = vmatpush.bf16.msrb.mxu2 %v2521_v33  ;;  %v3092_v7 = vld [vmem:[%s4143_s1 + $0x500] sm:$0xf]  ;;  %v3394_v10 = vld [vmem:[%s4143_s1 + $0x50c] sm:$0xf0]  ;;  %v2822_v19 = vld [vmem:[%s4143_s1 + $0x2f0] sm:$0xf0]  ;;  %v2965_v22 = vor.u32 %v3362_v6, %v2964_v5 }
 0x143   : > { %1982 = vmatpush.bf16.msrb.mxu3 %v2649_v37  ;;  %v3356_v20 = vld [vmem:[%s4143_s1 + $0x3e4] sm:$0xf]  ;;  %v2950_v21 = vld [vmem:[%s4143_s1 + $0x3f0] sm:$0xf0]  ;;  %v3093_v26 = vor.u32 %v3394_v10, %v3092_v7  ;;  %v2444_v29 = vld [vmem:[%s4141_s6 + $0x10] sm:$0xf]  ;;  %v2825_v33 = vor.u32 %v3324_v17, %v2822_v19 }
 0x144   : > { %v3388_v23 = vld [vmem:[%s4143_s1 + $0x4e4] sm:$0xf]  ;;  %v3078_v24 = vld [vmem:[%s4143_s1 + $0x4f0] sm:$0xf0]  ;;  %v3231_v31 = vld [vmem:[%s4141_s6 + $0x24] sm:$0xf0]  ;;  %v2953_v36 = vor.u32 %v3356_v20, %v2950_v21 }
 0x145   : > { %1941 = vmatpush.bf16.msrb.mxu0 %v3013_v43  ;;  %1955 = vmatpush.bf16.msrb.mxu1 %v3141_v44  ;;  %v3420_v25 = vld [vmem:[%s4143_s1 + $0x5e4] sm:$0xf]  ;;  %v3206_v28 = vld [vmem:[%s4143_s1 + $0x5f0] sm:$0xf0]  ;;  %v2446_v35 = vld [vmem:[%s4141_s6 + $0x28] sm:$0xf0]  ;;  %v3081_v37 = vor.u32 %v3388_v23, %v3078_v24  ;;  %v4311_v42 = vor.u32 %v3231_v31, %v2444_v29 }
 0x146   : > { %1969 = vmatpush.bf16.msrb.mxu2 %v2505_v45  ;;  %v3228_v34 = vld [vmem:[%s4141_s6 + $0x14] sm:$0xf]  ;;  %v3209_v41 = vor.u32 %v3420_v25, %v3206_v28 }
 0x147   : > { %1983 = vmatpush.bf16.msrb.mxu3 %v2633_v49  ;;  %v3320_v38 = vld [vmem:[%s4143_s1 + $0x2c4] sm:$0xf]  ;;  %v2806_v39 = vld [vmem:[%s4143_s1 + $0x2d0] sm:$0xf0]  ;;  %v4316_v46 = vor.u32 %v3228_v34, %v2446_v35 }
 0x148   : > { %v3352_v40 = vld [vmem:[%s4143_s1 + $0x3c4] sm:$0xf]  ;;  %v2934_v43 = vld [vmem:[%s4143_s1 + $0x3d0] sm:$0xf0]  ;;  %v2809_v49 = vor.u32 %v3320_v38, %v2806_v39 }
 0x149   : > { %1942 = vmatpush.bf16.msrb.mxu0 %v2997_v55  ;;  %1956 = vmatpush.bf16.msrb.mxu1 %v3125_v56  ;;  %v3384_v44 = vld [vmem:[%s4143_s1 + $0x4c4] sm:$0xf]  ;;  %v3062_v45 = vld [vmem:[%s4143_s1 + $0x4d0] sm:$0xf0]  ;;  %v2937_v50 = vor.u32 %v3352_v40, %v2934_v43 }
 0x14a   : > { %1970 = vmatpush.bf16.msrb.mxu2 %v2489_v57  ;;  %v3416_v47 = vld [vmem:[%s4143_s1 + $0x5c4] sm:$0xf]  ;;  %v3190_v48 = vld [vmem:[%s4143_s1 + $0x5d0] sm:$0xf0]  ;;  %v3065_v51 = vor.u32 %v3384_v44, %v3062_v45 }
 0x14b   : > { %1984 = vmatpush.bf16.msrb.mxu3 %v2617_v61  ;;  %v3316_v52 = vld [vmem:[%s4143_s1 + $0x2a4] sm:$0xf]  ;;  %v2790_v53 = vld [vmem:[%s4143_s1 + $0x2b0] sm:$0xf0]  ;;  %v3193_v55 = vor.u32 %v3416_v47, %v3190_v48 }
 0x14c   : > { %v3348_v54 = vld [vmem:[%s4143_s1 + $0x3a4] sm:$0xf]  ;;  %v2918_v56 = vld [vmem:[%s4143_s1 + $0x3b0] sm:$0xf0]  ;;  %v2793_v61 = vor.u32 %v3316_v52, %v2790_v53 }
 0x14d   : > { %1943 = vmatpush.bf16.msrb.mxu0 %v2981_v4  ;;  %1957 = vmatpush.bf16.msrb.mxu1 %v3109_v8  ;;  %v3380_v57 = vld [vmem:[%s4143_s1 + $0x4a4] sm:$0xf]  ;;  %v3046_v58 = vld [vmem:[%s4143_s1 + $0x4b0] sm:$0xf0]  ;;  %v2921_v62 = vor.u32 %v3348_v54, %v2918_v56 }
 0x14e   : > { %1971 = vmatpush.bf16.msrb.mxu2 %v2473_v9  ;;  %v3412_v59 = vld [vmem:[%s4143_s1 + $0x5a4] sm:$0xf]  ;;  %v3174_v60 = vld [vmem:[%s4143_s1 + $0x5b0] sm:$0xf0]  ;;  %v3049_v63 = vor.u32 %v3380_v57, %v3046_v58 }
 0x14f   : > { %1985 = vmatpush.bf16.msrb.mxu3 %v2601_v14  ;;  %v3312_v0 = vld [vmem:[%s4143_s1 + $0x284] sm:$0xf]  ;;  %v2774_v2 = vld [vmem:[%s4143_s1 + $0x290] sm:$0xf0]  ;;  %v3177_v4 = vor.u32 %v3412_v59, %v3174_v60 }
 0x150   : > { %v3344_v3 = vld [vmem:[%s4143_s1 + $0x384] sm:$0xf]  ;;  %v2902_v5 = vld [vmem:[%s4143_s1 + $0x390] sm:$0xf0]  ;;  %v2777_v10 = vor.u32 %v3312_v0, %v2774_v2  ;;  %v3263_v0 = vld [vmem:[%s4143_s1 + $0xf4] sm:$0xf0] }
 0x151   : > { %1944 = vmatpush.bf16.msrb.mxu0 %v2965_v22  ;;  %1958 = vmatpush.bf16.msrb.mxu1 %v3093_v26  ;;  %v3376_v6 = vld [vmem:[%s4143_s1 + $0x484] sm:$0xf]  ;;  %v3030_v7 = vld [vmem:[%s4143_s1 + $0x490] sm:$0xf0]  ;;  %v2905_v11 = vor.u32 %v3344_v3, %v2902_v5  ;;  %v2700_v2 = vld [vmem:[%s4143_s1 + $0x1e8] sm:$0xf] }
 0x152   : > { %1972 = vmatpush.bf16.msrb.mxu2 %v2457_v27  ;;  %v3408_v8 = vld [vmem:[%s4143_s1 + $0x584] sm:$0xf]  ;;  %v3158_v9 = vld [vmem:[%s4143_s1 + $0x590] sm:$0xf0]  ;;  %v3033_v13 = vor.u32 %v3376_v6, %v3030_v7  ;;  %v2828_v5 = vld [vmem:[%s4143_s1 + $0x2e8] sm:$0xf] }
 0x153   : > { %1986 = vmatpush.bf16.msrb.mxu3 %v2585_v32  ;;  %v3308_v14 = vld [vmem:[%s4143_s1 + $0x264] sm:$0xf]  ;;  %v2758_v15 = vld [vmem:[%s4143_s1 + $0x270] sm:$0xf0]  ;;  %v3161_v17 = vor.u32 %v3408_v8, %v3158_v9  ;;  %v3327_v6 = vld [vmem:[%s4143_s1 + $0x2f4] sm:$0xf0] }
 0x154   : > { %1945 = vmatmul.bf16.vlgmr.msrb.gmra.mxu0 %v4311_v42  ;;  %1959 = vmatmul.bf16.vlgmr.msrb.gmra.mxu1 %v4316_v46  ;;  %v3340_v16 = vld [vmem:[%s4143_s1 + $0x364] sm:$0xf]  ;;  %v2886_v19 = vld [vmem:[%s4143_s1 + $0x370] sm:$0xf0]  ;;  %v2761_v24 = vor.u32 %v3308_v14, %v2758_v15  ;;  %v2956_v9 = vld [vmem:[%s4143_s1 + $0x3e8] sm:$0xf]  ;;  %v2829_v15 = vor.u32 %v3327_v6, %v2828_v5 }
 0x155   : > { %1993 = vmatpush.bf16.msra.mxu0 %v2825_v33  ;;  %2007 = vmatpush.bf16.msra.mxu1 %v2953_v36  ;;  %v3372_v20 = vld [vmem:[%s4143_s1 + $0x464] sm:$0xf]  ;;  %v3014_v21 = vld [vmem:[%s4143_s1 + $0x470] sm:$0xf0]  ;;  %v2889_v25 = vor.u32 %v3340_v16, %v2886_v19  ;;  %v2556_v16 = vld [vmem:[%s4143_s1 + $0xc8] sm:$0xf] }
 0x156   : > { %2021 = vmatpush.bf16.msra.mxu2 %v3081_v37  ;;  %1987 = vmatmul.bf16.vlgmr.msrb.gmra.mxu3 %v4243_v12  ;;  %v3404_v22 = vld [vmem:[%s4143_s1 + $0x564] sm:$0xf]  ;;  %v3142_v23 = vld [vmem:[%s4143_s1 + $0x570] sm:$0xf0]  ;;  %v3017_v26 = vor.u32 %v3372_v20, %v3014_v21  ;;  %v2684_v19 = vld [vmem:[%s4143_s1 + $0x1c8] sm:$0xf] }
 0x157   : > { %2035 = vmatpush.bf16.msra.mxu3 %v3209_v41  ;;  %1973 = vmatmul.bf16.vlgmr.msrb.gmra.mxu2 %v4233_v1  ;;  %v3304_v27 = vld [vmem:[%s4143_s1 + $0x244] sm:$0xf]  ;;  %v2742_v28 = vld [vmem:[%s4143_s1 + $0x250] sm:$0xf0]  ;;  %v3145_v31 = vor.u32 %v3404_v22, %v3142_v23  ;;  %v3291_v21 = vld [vmem:[%s4143_s1 + $0x1d4] sm:$0xf0] }
 0x158   : > { %v3336_v29 = vld [vmem:[%s4143_s1 + $0x344] sm:$0xf]  ;;  %v2870_v32 = vld [vmem:[%s4143_s1 + $0x350] sm:$0xf0]  ;;  %v2745_v37 = vor.u32 %v3304_v27, %v2742_v28  ;;  %v2812_v22 = vld [vmem:[%s4143_s1 + $0x2c8] sm:$0xf]  ;;  %v2685_v27 = vor.u32 %v3291_v21, %v2684_v19 }
 0x159   : > { %1994 = vmatpush.bf16.msra.mxu0 %v2809_v49  ;;  %2008 = vmatpush.bf16.msra.mxu1 %v2937_v50  ;;  %v3368_v33 = vld [vmem:[%s4143_s1 + $0x444] sm:$0xf]  ;;  %v2998_v34 = vld [vmem:[%s4143_s1 + $0x450] sm:$0xf0]  ;;  %v2873_v38 = vor.u32 %v3336_v29, %v2870_v32  ;;  %v3323_v23 = vld [vmem:[%s4143_s1 + $0x2d4] sm:$0xf0] }
 0x15a   : > { %2022 = vmatpush.bf16.msra.mxu2 %v3065_v51  ;;  %v3400_v35 = vld [vmem:[%s4143_s1 + $0x544] sm:$0xf]  ;;  %v3126_v36 = vld [vmem:[%s4143_s1 + $0x550] sm:$0xf0]  ;;  %v3001_v39 = vor.u32 %v3368_v33, %v2998_v34  ;;  %v2813_v28 = vor.u32 %v3323_v23, %v2812_v22  ;;  %v2540_v29 = vld [vmem:[%s4143_s1 + $0xa8] sm:$0xf] }
 0x15b   : > { %2036 = vmatpush.bf16.msra.mxu3 %v3193_v55  ;;  %v3300_v40 = vld [vmem:[%s4143_s1 + $0x224] sm:$0xf]  ;;  %v2726_v41 = vld [vmem:[%s4143_s1 + $0x230] sm:$0xf0]  ;;  %v3129_v44 = vor.u32 %v3400_v35, %v3126_v36  ;;  %v2668_v32 = vld [vmem:[%s4143_s1 + $0x1a8] sm:$0xf] }
 0x15c   : > { %v3332_v43 = vld [vmem:[%s4143_s1 + $0x324] sm:$0xf]  ;;  %v2854_v45 = vld [vmem:[%s4143_s1 + $0x330] sm:$0xf0]  ;;  %v2729_v51 = vor.u32 %v3300_v40, %v2726_v41  ;;  %v3287_v34 = vld [vmem:[%s4143_s1 + $0x1b4] sm:$0xf0] }
 0x15d   : > { %1995 = vmatpush.bf16.msra.mxu0 %v2793_v61  ;;  %2009 = vmatpush.bf16.msra.mxu1 %v2921_v62  ;;  %v3364_v47 = vld [vmem:[%s4143_s1 + $0x424] sm:$0xf]  ;;  %v2982_v48 = vld [vmem:[%s4143_s1 + $0x430] sm:$0xf0]  ;;  %v2857_v54 = vor.u32 %v3332_v43, %v2854_v45  ;;  %v2796_v35 = vld [vmem:[%s4143_s1 + $0x2a8] sm:$0xf]  ;;  %v2669_v40 = vor.u32 %v3287_v34, %v2668_v32 }
 0x15e   : > { %2023 = vmatpush.bf16.msra.mxu2 %v3049_v63  ;;  %v3396_v49 = vld [vmem:[%s4143_s1 + $0x524] sm:$0xf]  ;;  %v3110_v50 = vld [vmem:[%s4143_s1 + $0x530] sm:$0xf0]  ;;  %v2985_v55 = vor.u32 %v3364_v47, %v2982_v48  ;;  %v2572_v63 = vld [vmem:[%s4143_s1 + $0xe8] sm:$0xf] }
 0x15f   : > { %2037 = vmatpush.bf16.msra.mxu3 %v3177_v4  ;;  %v3296_v52 = vld [vmem:[%s4143_s1 + $0x204] sm:$0xf]  ;;  %v2710_v53 = vld [vmem:[%s4143_s1 + $0x210] sm:$0xf0]  ;;  %v3113_v59 = vor.u32 %v3396_v49, %v3110_v50  ;;  %v3295_v4 = vld [vmem:[%s4143_s1 + $0x1f4] sm:$0xf0] }
 0x160   : > { %v3328_v56 = vld [vmem:[%s4143_s1 + $0x304] sm:$0xf]  ;;  %v2838_v57 = vld [vmem:[%s4143_s1 + $0x310] sm:$0xf0]  ;;  %v2713_v3 = vor.u32 %v3296_v52, %v2710_v53  ;;  %v2701_v14 = vor.u32 %v3295_v4, %v2700_v2  ;;  %v3319_v36 = vld [vmem:[%s4143_s1 + $0x2b4] sm:$0xf0] }
 0x161   : > { %1996 = vmatpush.bf16.msra.mxu0 %v2777_v10  ;;  %2010 = vmatpush.bf16.msra.mxu1 %v2905_v11  ;;  %v3360_v58 = vld [vmem:[%s4143_s1 + $0x404] sm:$0xf]  ;;  %v2966_v60 = vld [vmem:[%s4143_s1 + $0x410] sm:$0xf0]  ;;  %v2841_v7 = vor.u32 %v3328_v56, %v2838_v57  ;;  %v3359_v10 = vld [vmem:[%s4143_s1 + $0x3f4] sm:$0xf0]  ;;  %v2797_v41 = vor.u32 %v3319_v36, %v2796_v35 }
 0x162   : > { %2024 = vmatpush.bf16.msra.mxu2 %v3033_v13  ;;  %v3392_v61 = vld [vmem:[%s4143_s1 + $0x504] sm:$0xf]  ;;  %v3094_v62 = vld [vmem:[%s4143_s1 + $0x510] sm:$0xf0]  ;;  %v2969_v8 = vor.u32 %v3360_v58, %v2966_v60  ;;  %v2573_v13 = vor.u32 %v3263_v0, %v2572_v63  ;;  %v2957_v20 = vor.u32 %v3359_v10, %v2956_v9  ;;  %v2524_v43 = vld [vmem:[%s4143_s1 + $0x88] sm:$0xf] }
 0x163   : > { %2038 = vmatpush.bf16.msra.mxu3 %v3161_v17  ;;  %v3097_v11 = vor.u32 %v3392_v61, %v3094_v62  ;;  %v3259_v17 = vld [vmem:[%s4143_s1 + $0xd4] sm:$0xf0]  ;;  %v2652_v45 = vld [vmem:[%s4143_s1 + $0x188] sm:$0xf] }
 0x164   : > { %v3283_v48 = vld [vmem:[%s4143_s1 + $0x194] sm:$0xf0]  ;;  %v2780_v49 = vld [vmem:[%s4143_s1 + $0x288] sm:$0xf] }
 0x165   : > { %1997 = vmatpush.bf16.msra.mxu0 %v2761_v24  ;;  %2011 = vmatpush.bf16.msra.mxu1 %v2889_v25  ;;  %v2940_v24 = vld [vmem:[%s4143_s1 + $0x3c8] sm:$0xf]  ;;  %v3355_v25 = vld [vmem:[%s4143_s1 + $0x3d4] sm:$0xf0] }
 0x166   : > { %2025 = vmatpush.bf16.msra.mxu2 %v3017_v26  ;;  %v2557_v26 = vor.u32 %v3259_v17, %v2556_v16  ;;  %v2941_v33 = vor.u32 %v3355_v25, %v2940_v24  ;;  %v3315_v50 = vld [vmem:[%s4143_s1 + $0x294] sm:$0xf0]  ;;  %v2508_v56 = vld [vmem:[%s4143_s1 + $0x68] sm:$0xf] }
 0x167   : > { %2039 = vmatpush.bf16.msra.mxu3 %v3145_v31  ;;  %v3255_v31 = vld [vmem:[%s4143_s1 + $0xb4] sm:$0xf0]  ;;  %v2636_v58 = vld [vmem:[%s4143_s1 + $0x168] sm:$0xf] }
 0x168   : > { %v3347_v52 = vld [vmem:[%s4143_s1 + $0x394] sm:$0xf0]  ;;  %v2764_v61 = vld [vmem:[%s4143_s1 + $0x268] sm:$0xf] }
 0x169   : > { %1998 = vmatpush.bf16.msra.mxu0 %v2745_v37  ;;  %2012 = vmatpush.bf16.msra.mxu1 %v2873_v38  ;;  %v2924_v37 = vld [vmem:[%s4143_s1 + $0x3a8] sm:$0xf]  ;;  %v3351_v38 = vld [vmem:[%s4143_s1 + $0x3b4] sm:$0xf0] }
 0x16a   : > { %2026 = vmatpush.bf16.msra.mxu2 %v3001_v39  ;;  %v2541_v39 = vor.u32 %v3255_v31, %v2540_v29  ;;  %v2925_v47 = vor.u32 %v3351_v38, %v2924_v37  ;;  %v3247_v57 = vld [vmem:[%s4143_s1 + $0x74] sm:$0xf0]  ;;  %v2892_v63 = vld [vmem:[%s4143_s1 + $0x368] sm:$0xf] }
 0x16b   : > { %2040 = vmatpush.bf16.msra.mxu3 %v3129_v44  ;;  %v3251_v44 = vld [vmem:[%s4143_s1 + $0x94] sm:$0xf0]  ;;  %v2509_v2 = vor.u32 %v3247_v57, %v2508_v56  ;;  %v2492_v5 = vld [vmem:[%s4143_s1 + $0x48] sm:$0xf] }
 0x16c   : > { %v2525_v53 = vor.u32 %v3251_v44, %v2524_v43  ;;  %v3279_v60 = vld [vmem:[%s4143_s1 + $0x174] sm:$0xf0]  ;;  %v2748_v10 = vld [vmem:[%s4143_s1 + $0x248] sm:$0xf] }
 0x16d   : > { %1999 = vmatpush.bf16.msra.mxu0 %v2729_v51  ;;  %2013 = vmatpush.bf16.msra.mxu1 %v2857_v54  ;;  %v2908_v51 = vld [vmem:[%s4143_s1 + $0x388] sm:$0xf]  ;;  %v2653_v54 = vor.u32 %v3283_v48, %v2652_v45  ;;  %v3311_v62 = vld [vmem:[%s4143_s1 + $0x274] sm:$0xf0]  ;;  %v3261_v48 = vld [vmem:[%s4143_s1 + $0xec] sm:$0xf] }
 0x16e   : > { %2027 = vmatpush.bf16.msra.mxu2 %v2985_v55  ;;  %v2781_v55 = vor.u32 %v3315_v50, %v2780_v49  ;;  %v3343_v0 = vld [vmem:[%s4143_s1 + $0x374] sm:$0xf0]  ;;  %v2765_v4 = vor.u32 %v3311_v62, %v2764_v61  ;;  %v2476_v19 = vld [vmem:[%s4143_s1 + $0x28] sm:$0xf]  ;;  %v2574_v49 = vld [vmem:[%s4143_s1 + $0xf8] sm:$0xf0] }
 0x16f   : > { %2041 = vmatpush.bf16.msra.mxu3 %v3113_v59  ;;  %v2909_v59 = vor.u32 %v3347_v52, %v2908_v51  ;;  %v3243_v6 = vld [vmem:[%s4143_s1 + $0x54] sm:$0xf0]  ;;  %v2604_v21 = vld [vmem:[%s4143_s1 + $0x128] sm:$0xf]  ;;  %v3293_v52 = vld [vmem:[%s4143_s1 + $0x1ec] sm:$0xf]  ;;  %v2577_v57 = vor.u32 %v3261_v48, %v2574_v49 }
 0x170   : > { %v3275_v9 = vld [vmem:[%s4143_s1 + $0x154] sm:$0xf0]  ;;  %v2732_v24 = vld [vmem:[%s4143_s1 + $0x228] sm:$0xf] }
 0x171   : > { %2000 = vmatpush.bf16.msra.mxu0 %v2713_v3  ;;  %2014 = vmatpush.bf16.msra.mxu1 %v2841_v7  ;;  %v2637_v3 = vor.u32 %v3279_v60, %v2636_v58  ;;  %v2620_v7 = vld [vmem:[%s4143_s1 + $0x148] sm:$0xf]  ;;  %v3271_v23 = vld [vmem:[%s4143_s1 + $0x134] sm:$0xf0] }
 0x172   : > { %2028 = vmatpush.bf16.msra.mxu2 %v2969_v8  ;;  %v2893_v8 = vor.u32 %v3343_v0, %v2892_v63  ;;  %v2621_v16 = vor.u32 %v3275_v9, %v2620_v7  ;;  %v3303_v25 = vld [vmem:[%s4143_s1 + $0x234] sm:$0xf0]  ;;  %v2460_v29 = vld [vmem:[%s4143_s1 + $0x8] sm:$0xf]  ;;  %v2605_v32 = vor.u32 %v3271_v23, %v2604_v21  ;;  %v3257_v63 = vld [vmem:[%s4143_s1 + $0xcc] sm:$0xf] }
 0x173   : > { %2042 = vmatpush.bf16.msra.mxu3 %v3097_v11  ;;  %v3307_v11 = vld [vmem:[%s4143_s1 + $0x254] sm:$0xf0]  ;;  %v2588_v34 = vld [vmem:[%s4143_s1 + $0x108] sm:$0xf]  ;;  %v2558_v0 = vld [vmem:[%s4143_s1 + $0xd8] sm:$0xf0] }
 0x174   : > { %2001 = vmatmul.bf16.vlgmr.msra.gmra.mxu0 %v4249_v18  ;;  %2015 = vmatmul.bf16.vlgmr.msra.gmra.mxu1 %v4261_v30  ;;  %v2749_v17 = vor.u32 %v3307_v11, %v2748_v10  ;;  %v3235_v31 = vld [vmem:[%s4143_s1 + $0x14] sm:$0xf0]  ;;  %v2716_v36 = vld [vmem:[%s4143_s1 + $0x208] sm:$0xf] }
 0x175   : > { %2049 = vmatpush.bf16.msrb.mxu0 %v2573_v13  ;;  %2063 = vmatpush.bf16.msrb.mxu1 %v2701_v14  ;;  %v2876_v13 = vld [vmem:[%s4143_s1 + $0x348] sm:$0xf]  ;;  %v3339_v14 = vld [vmem:[%s4143_s1 + $0x354] sm:$0xf0]  ;;  %v2461_v45 = vor.u32 %v3235_v31, %v2460_v29  ;;  %v2654_v29 = vld [vmem:[%s4143_s1 + $0x198] sm:$0xf0] }
 0x176   : > { %2077 = vmatpush.bf16.msrb.mxu2 %v2829_v15  ;;  %2043 = vmatmul.bf16.vlgmr.msra.gmra.mxu3 %v4316_v46  ;;  %v2493_v15 = vor.u32 %v3243_v6, %v2492_v5  ;;  %v2877_v22 = vor.u32 %v3339_v14, %v2876_v13  ;;  %v3267_v35 = vld [vmem:[%s4143_s1 + $0x114] sm:$0xf0]  ;;  %v3212_v44 = vld [vmem:[%s4143_s1 + $0x5e8] sm:$0xf]  ;;  %v2561_v6 = vor.u32 %v3257_v63, %v2558_v0  ;;  %v3253_v13 = vld [vmem:[%s4143_s1 + $0xac] sm:$0xf] }
 0x177   : > { %2091 = vmatpush.bf16.msrb.mxu3 %v2957_v20  ;;  %2029 = vmatmul.bf16.vlgmr.msra.gmra.mxu2 %v4311_v42  ;;  %v3239_v20 = vld [vmem:[%s4143_s1 + $0x34] sm:$0xf0]  ;;  %v2589_v50 = vor.u32 %v3267_v35, %v2588_v34  ;;  %v3068_v58 = vld [vmem:[%s4143_s1 + $0x4c8] sm:$0xf]  ;;  %v2542_v14 = vld [vmem:[%s4143_s1 + $0xb8] sm:$0xf0] }
 0x178   : > { %v3299_v38 = vld [vmem:[%s4143_s1 + $0x214] sm:$0xf0]  ;;  %v3196_v60 = vld [vmem:[%s4143_s1 + $0x5c8] sm:$0xf] }
 0x179   : > { %2050 = vmatpush.bf16.msrb.mxu0 %v2557_v26  ;;  %2064 = vmatpush.bf16.msrb.mxu1 %v2685_v27  ;;  %v2860_v26 = vld [vmem:[%s4143_s1 + $0x328] sm:$0xf]  ;;  %v3335_v27 = vld [vmem:[%s4143_s1 + $0x334] sm:$0xf0]  ;;  %v2717_v51 = vor.u32 %v3299_v38, %v2716_v36 }
 0x17a   : > { %2078 = vmatpush.bf16.msrb.mxu2 %v2813_v28  ;;  %v2477_v28 = vor.u32 %v3239_v20, %v2476_v19  ;;  %v2861_v37 = vor.u32 %v3335_v27, %v2860_v26  ;;  %v3391_v43 = vld [vmem:[%s4143_s1 + $0x4f4] sm:$0xf0]  ;;  %v3052_v7 = vld [vmem:[%s4143_s1 + $0x4a8] sm:$0xf]  ;;  %v2545_v20 = vor.u32 %v3253_v13, %v2542_v14  ;;  %v3249_v26 = vld [vmem:[%s4143_s1 + $0x8c] sm:$0xf] }
 0x17b   : > { %2092 = vmatpush.bf16.msrb.mxu3 %v2941_v33  ;;  %v2733_v33 = vor.u32 %v3303_v25, %v2732_v24  ;;  %v3419_v62 = vld [vmem:[%s4143_s1 + $0x5d4] sm:$0xf0]  ;;  %v3180_v9 = vld [vmem:[%s4143_s1 + $0x5a8] sm:$0xf]  ;;  %v2526_v27 = vld [vmem:[%s4143_s1 + $0x98] sm:$0xf0] }
 0x17c   : > { %v3197_v5 = vor.u32 %v3419_v62, %v3196_v60  ;;  %v3415_v11 = vld [vmem:[%s4143_s1 + $0x5b4] sm:$0xf0]  ;;  %v3036_v21 = vld [vmem:[%s4143_s1 + $0x488] sm:$0xf]  ;;  %v3233_v14 = vld [vmem:[%s4143_s1 + $0xc] sm:$0xf] }
 0x17d   : > { %2051 = vmatpush.bf16.msrb.mxu0 %v2541_v39  ;;  %2065 = vmatpush.bf16.msrb.mxu1 %v2669_v40  ;;  %v2844_v39 = vld [vmem:[%s4143_s1 + $0x308] sm:$0xf]  ;;  %v3331_v40 = vld [vmem:[%s4143_s1 + $0x314] sm:$0xf0]  ;;  %v3181_v19 = vor.u32 %v3415_v11, %v3180_v9 }
 0x17e   : > { %2079 = vmatpush.bf16.msrb.mxu2 %v2797_v41  ;;  %v3084_v41 = vld [vmem:[%s4143_s1 + $0x4e8] sm:$0xf]  ;;  %v3411_v25 = vld [vmem:[%s4143_s1 + $0x594] sm:$0xf0] }
 0x17f   : > { %2093 = vmatpush.bf16.msrb.mxu3 %v2925_v47  ;;  %v3423_v47 = vld [vmem:[%s4143_s1 + $0x5f4] sm:$0xf0]  ;;  %v3164_v23 = vld [vmem:[%s4143_s1 + $0x588] sm:$0xf] }
 0x180   : > { %v3213_v56 = vor.u32 %v3423_v47, %v3212_v44  ;;  %v3020_v34 = vld [vmem:[%s4143_s1 + $0x468] sm:$0xf]  ;;  %v3375_v35 = vld [vmem:[%s4143_s1 + $0x474] sm:$0xf0] }
 0x181   : > { %2052 = vmatpush.bf16.msrb.mxu0 %v2525_v53  ;;  %2066 = vmatpush.bf16.msrb.mxu1 %v2653_v54  ;;  %v2702_v53 = vld [vmem:[%s4143_s1 + $0x1f8] sm:$0xf0]  ;;  %v2845_v54 = vor.u32 %v3331_v40, %v2844_v39  ;;  %v3148_v36 = vld [vmem:[%s4143_s1 + $0x568] sm:$0xf]  ;;  %v3407_v38 = vld [vmem:[%s4143_s1 + $0x574] sm:$0xf0]  ;;  %v3021_v44 = vor.u32 %v3375_v35, %v3020_v34 }
 0x182   : > { %2080 = vmatpush.bf16.msrb.mxu2 %v2781_v55  ;;  %v3085_v55 = vor.u32 %v3391_v43, %v3084_v41  ;;  %v2705_v61 = vor.u32 %v3293_v52, %v2702_v53  ;;  %v3245_v39 = vld [vmem:[%s4143_s1 + $0x6c] sm:$0xf]  ;;  %v2510_v40 = vld [vmem:[%s4143_s1 + $0x78] sm:$0xf0]  ;;  %v3004_v48 = vld [vmem:[%s4143_s1 + $0x448] sm:$0xf] }
 0x183   : > { %2094 = vmatpush.bf16.msrb.mxu3 %v2909_v59  ;;  %v3387_v59 = vld [vmem:[%s4143_s1 + $0x4d4] sm:$0xf0]  ;;  %v3277_v41 = vld [vmem:[%s4143_s1 + $0x16c] sm:$0xf]  ;;  %v2638_v43 = vld [vmem:[%s4143_s1 + $0x178] sm:$0xf0]  ;;  %v2513_v47 = vor.u32 %v3245_v39, %v2510_v40 }
 0x184   : > { %v3371_v49 = vld [vmem:[%s4143_s1 + $0x454] sm:$0xf0]  ;;  %v3241_v53 = vld [vmem:[%s4143_s1 + $0x4c] sm:$0xf]  ;;  %v2988_v60 = vld [vmem:[%s4143_s1 + $0x428] sm:$0xf] }
 0x185   : > { %2053 = vmatpush.bf16.msrb.mxu0 %v2509_v2  ;;  %2067 = vmatpush.bf16.msrb.mxu1 %v2637_v3  ;;  %v3289_v2 = vld [vmem:[%s4143_s1 + $0x1cc] sm:$0xf]  ;;  %v2686_v3 = vld [vmem:[%s4143_s1 + $0x1d8] sm:$0xf0]  ;;  %v3403_v52 = vld [vmem:[%s4143_s1 + $0x554] sm:$0xf0] }
 0x186   : > { %2081 = vmatpush.bf16.msrb.mxu2 %v2765_v4  ;;  %v3069_v4 = vor.u32 %v3387_v59, %v3068_v58  ;;  %v2689_v10 = vor.u32 %v3289_v2, %v2686_v3  ;;  %v3116_v62 = vld [vmem:[%s4143_s1 + $0x528] sm:$0xf]  ;;  %v3399_v0 = vld [vmem:[%s4143_s1 + $0x534] sm:$0xf0]  ;;  %v3237_v2 = vld [vmem:[%s4143_s1 + $0x2c] sm:$0xf] }
 0x187   : > { %2095 = vmatpush.bf16.msrb.mxu3 %v2893_v8  ;;  %v3383_v8 = vld [vmem:[%s4143_s1 + $0x4b4] sm:$0xf0]  ;;  %v2478_v3 = vld [vmem:[%s4143_s1 + $0x38] sm:$0xf0]  ;;  %v3117_v9 = vor.u32 %v3399_v0, %v3116_v62  ;;  %v3100_v11 = vld [vmem:[%s4143_s1 + $0x508] sm:$0xf] }
 0x188   : > { %v3395_v13 = vld [vmem:[%s4143_s1 + $0x514] sm:$0xf0]  ;;  %v2942_v40 = vld [vmem:[%s4143_s1 + $0x3d8] sm:$0xf0]  ;;  %v3313_v62 = vld [vmem:[%s4143_s1 + $0x28c] sm:$0xf] }
 0x189   : > { %2054 = vmatpush.bf16.msrb.mxu0 %v2493_v15  ;;  %2068 = vmatpush.bf16.msrb.mxu1 %v2621_v16  ;;  %v3285_v15 = vld [vmem:[%s4143_s1 + $0x1ac] sm:$0xf]  ;;  %v2670_v16 = vld [vmem:[%s4143_s1 + $0x1b8] sm:$0xf0] }
 0x18a   : > { %2082 = vmatpush.bf16.msrb.mxu2 %v2749_v17  ;;  %v3053_v17 = vor.u32 %v3383_v8, %v3052_v7  ;;  %v2673_v24 = vor.u32 %v3285_v15, %v2670_v16  ;;  %v2972_v7 = vld [vmem:[%s4143_s1 + $0x408] sm:$0xf]  ;;  %v3363_v8 = vld [vmem:[%s4143_s1 + $0x414] sm:$0xf0]  ;;  %v2462_v16 = vld [vmem:[%s4143_s1 + $0x18] sm:$0xf0] }
 0x18b   : > { %2096 = vmatpush.bf16.msrb.mxu3 %v2877_v22  ;;  %v3379_v22 = vld [vmem:[%s4143_s1 + $0x494] sm:$0xf0]  ;;  %v3345_v0 = vld [vmem:[%s4143_s1 + $0x38c] sm:$0xf] }
 0x18c   : > { %v3037_v31 = vor.u32 %v3379_v22, %v3036_v21  ;;  %v2830_v21 = vld [vmem:[%s4143_s1 + $0x2f8] sm:$0xf0]  ;;  %v3357_v22 = vld [vmem:[%s4143_s1 + $0x3ec] sm:$0xf] }
 0x18d   : > { %2055 = vmatpush.bf16.msrb.mxu0 %v2477_v28  ;;  %2069 = vmatpush.bf16.msrb.mxu1 %v2605_v32  ;;  %v3281_v28 = vld [vmem:[%s4143_s1 + $0x18c] sm:$0xf]  ;;  %v3165_v32 = vor.u32 %v3411_v25, %v3164_v23  ;;  %v2973_v23 = vor.u32 %v3363_v8, %v2972_v7 }
 0x18e   : > { %2083 = vmatpush.bf16.msrb.mxu2 %v2733_v33  ;;  %v2529_v33 = vor.u32 %v3249_v26, %v2526_v27  ;;  %v3389_v25 = vld [vmem:[%s4143_s1 + $0x4ec] sm:$0xf]  ;;  %v3086_v26 = vld [vmem:[%s4143_s1 + $0x4f8] sm:$0xf0]  ;;  %v3101_v27 = vor.u32 %v3395_v13, %v3100_v11 }
 0x18f   : > { %2097 = vmatpush.bf16.msrb.mxu3 %v2861_v37  ;;  %v2657_v37 = vor.u32 %v3281_v28, %v2654_v29  ;;  %v2465_v28 = vor.u32 %v3233_v14, %v2462_v16  ;;  %v3421_v29 = vld [vmem:[%s4143_s1 + $0x5ec] sm:$0xf]  ;;  %v3089_v35 = vor.u32 %v3389_v25, %v3086_v26  ;;  %v2894_v14 = vld [vmem:[%s4143_s1 + $0x378] sm:$0xf0] }
 0x190   : > { %v3341_v11 = vld [vmem:[%s4143_s1 + $0x36c] sm:$0xf]  ;;  %v3022_v16 = vld [vmem:[%s4143_s1 + $0x478] sm:$0xf0] }
 0x191   : > { %2056 = vmatpush.bf16.msrb.mxu0 %v2461_v45  ;;  %2070 = vmatpush.bf16.msrb.mxu1 %v2589_v50  ;;  %v3149_v45 = vor.u32 %v3407_v38, %v3148_v36  ;;  %v3132_v50 = vld [vmem:[%s4143_s1 + $0x548] sm:$0xf]  ;;  %v3321_v36 = vld [vmem:[%s4143_s1 + $0x2cc] sm:$0xf] }
 0x192   : > { %2084 = vmatpush.bf16.msrb.mxu2 %v2717_v51  ;;  %v2641_v51 = vor.u32 %v3277_v41, %v2638_v43  ;;  %v3133_v58 = vor.u32 %v3403_v52, %v3132_v50  ;;  %v3353_v38 = vld [vmem:[%s4143_s1 + $0x3cc] sm:$0xf]  ;;  %v3070_v43 = vld [vmem:[%s4143_s1 + $0x4d8] sm:$0xf0] }
 0x193   : > { %2098 = vmatpush.bf16.msrb.mxu3 %v2845_v54  ;;  %v2494_v54 = vld [vmem:[%s4143_s1 + $0x58] sm:$0xf0]  ;;  %v3385_v41 = vld [vmem:[%s4143_s1 + $0x4cc] sm:$0xf] }
 0x194   : > { %2057 = vmatmul.bf16.vlgmr.msrb.gmra.mxu0 %v4233_v1  ;;  %2071 = vmatmul.bf16.vlgmr.msrb.gmra.mxu1 %v4243_v12  ;;  %v2497_v59 = vor.u32 %v3241_v53, %v2494_v54  ;;  %v3317_v50 = vld [vmem:[%s4143_s1 + $0x2ac] sm:$0xf]  ;;  %v2926_v54 = vld [vmem:[%s4143_s1 + $0x3b8] sm:$0xf0] }
 0x195   : > { %2105 = vmatpush.bf16.msra.mxu0 %v3085_v55  ;;  %2119 = vmatpush.bf16.msra.mxu1 %v3213_v56  ;;  %v3273_v55 = vld [vmem:[%s4143_s1 + $0x14c] sm:$0xf]  ;;  %v2622_v56 = vld [vmem:[%s4143_s1 + $0x158] sm:$0xf0] }
 0x196   : > { %2133 = vmatpush.bf16.msra.mxu2 %v2577_v57  ;;  %2099 = vmatmul.bf16.vlgmr.msrb.gmra.mxu3 %v4261_v30  ;;  %v3005_v57 = vor.u32 %v3371_v49, %v3004_v48  ;;  %v2625_v63 = vor.u32 %v3273_v55, %v2622_v56  ;;  %v2945_v48 = vor.u32 %v3353_v38, %v2942_v40  ;;  %v3349_v52 = vld [vmem:[%s4143_s1 + $0x3ac] sm:$0xf]  ;;  %v3054_v56 = vld [vmem:[%s4143_s1 + $0x4b8] sm:$0xf0] }
 0x197   : > { %2147 = vmatpush.bf16.msra.mxu3 %v2705_v61  ;;  %2085 = vmatmul.bf16.vlgmr.msrb.gmra.mxu2 %v4249_v18  ;;  %v3367_v61 = vld [vmem:[%s4143_s1 + $0x434] sm:$0xf0]  ;;  %v3073_v49 = vor.u32 %v3385_v41, %v3070_v43  ;;  %v3381_v55 = vld [vmem:[%s4143_s1 + $0x4ac] sm:$0xf]  ;;  %v2734_v38 = vld [vmem:[%s4143_s1 + $0x238] sm:$0xf0] }
 0x198   : > { %v3337_v25 = vld [vmem:[%s4143_s1 + $0x34c] sm:$0xf]  ;;  %v2862_v41 = vld [vmem:[%s4143_s1 + $0x338] sm:$0xf0] }
 0x199   : > { %2106 = vmatpush.bf16.msra.mxu0 %v3069_v4  ;;  %2120 = vmatpush.bf16.msra.mxu1 %v3197_v5  ;;  %v3269_v4 = vld [vmem:[%s4143_s1 + $0x12c] sm:$0xf]  ;;  %v2606_v5 = vld [vmem:[%s4143_s1 + $0x138] sm:$0xf0] }
 0x19a   : > { %2134 = vmatpush.bf16.msra.mxu2 %v2561_v6  ;;  %v2989_v6 = vor.u32 %v3367_v61, %v2988_v60  ;;  %v2609_v15 = vor.u32 %v3269_v4, %v2606_v5  ;;  %v2929_v60 = vor.u32 %v3349_v52, %v2926_v54  ;;  %v3057_v61 = vor.u32 %v3381_v55, %v3054_v56  ;;  %v3038_v4 = vld [vmem:[%s4143_s1 + $0x498] sm:$0xf0]  ;;  %v3365_v43 = vld [vmem:[%s4143_s1 + $0x42c] sm:$0xf] }
 0x19b   : > { %2148 = vmatpush.bf16.msra.mxu3 %v2689_v10  ;;  %v2481_v10 = vor.u32 %v3237_v2, %v2478_v3  ;;  %v2910_v2 = vld [vmem:[%s4143_s1 + $0x398] sm:$0xf0]  ;;  %v3377_v3 = vld [vmem:[%s4143_s1 + $0x48c] sm:$0xf] }
 0x19c   : > { %v3166_v5 = vld [vmem:[%s4143_s1 + $0x598] sm:$0xf0]  ;;  %v2913_v7 = vor.u32 %v3345_v0, %v2910_v2  ;;  %v3041_v8 = vor.u32 %v3377_v3, %v3038_v4  ;;  %v3297_v52 = vld [vmem:[%s4143_s1 + $0x20c] sm:$0xf] }
 0x19d   : > { %2107 = vmatpush.bf16.msra.mxu0 %v3053_v17  ;;  %2121 = vmatpush.bf16.msra.mxu1 %v3181_v19  ;;  %v3265_v17 = vld [vmem:[%s4143_s1 + $0x10c] sm:$0xf]  ;;  %v2590_v19 = vld [vmem:[%s4143_s1 + $0x118] sm:$0xf0] }
 0x19e   : > { %2135 = vmatpush.bf16.msra.mxu2 %v2545_v20  ;;  %v3325_v20 = vld [vmem:[%s4143_s1 + $0x2ec] sm:$0xf]  ;;  %v2846_v56 = vld [vmem:[%s4143_s1 + $0x318] sm:$0xf0] }
 0x19f   : > { %2149 = vmatpush.bf16.msra.mxu3 %v2673_v24  ;;  %v2958_v24 = vld [vmem:[%s4143_s1 + $0x3f8] sm:$0xf0]  ;;  %v3329_v54 = vld [vmem:[%s4143_s1 + $0x30c] sm:$0xf] }
 0x1a0   : > { %v2961_v34 = vor.u32 %v3357_v22, %v2958_v24  ;;  %v2750_v24 = vld [vmem:[%s4143_s1 + $0x258] sm:$0xf0] }
 0x1a1   : > { %2108 = vmatpush.bf16.msra.mxu0 %v3037_v31  ;;  %2122 = vmatpush.bf16.msra.mxu1 %v3165_v32  ;;  %v3214_v31 = vld [vmem:[%s4143_s1 + $0x5f8] sm:$0xf0]  ;;  %v2593_v32 = vor.u32 %v3265_v17, %v2590_v19  ;;  %v3405_v17 = vld [vmem:[%s4143_s1 + $0x56c] sm:$0xf] }
 0x1a2   : > { %2136 = vmatpush.bf16.msra.mxu2 %v2529_v33  ;;  %v2833_v33 = vor.u32 %v3325_v20, %v2830_v21  ;;  %v3217_v39 = vor.u32 %v3421_v29, %v3214_v31  ;;  %v3150_v19 = vld [vmem:[%s4143_s1 + $0x578] sm:$0xf0]  ;;  %v2897_v21 = vor.u32 %v3341_v11, %v2894_v14  ;;  %v3401_v31 = vld [vmem:[%s4143_s1 + $0x54c] sm:$0xf] }
 0x1a3   : > { %2150 = vmatpush.bf16.msra.mxu3 %v2657_v37  ;;  %v2814_v37 = vld [vmem:[%s4143_s1 + $0x2d8] sm:$0xf0]  ;;  %v3153_v26 = vor.u32 %v3405_v17, %v3150_v19 }
 0x1a4   : > { %v3006_v29 = vld [vmem:[%s4143_s1 + $0x458] sm:$0xf0] }
 0x1a5   : > { %2109 = vmatpush.bf16.msra.mxu0 %v3021_v44  ;;  %2123 = vmatpush.bf16.msra.mxu1 %v3149_v45  ;;  %v3417_v44 = vld [vmem:[%s4143_s1 + $0x5cc] sm:$0xf]  ;;  %v3198_v45 = vld [vmem:[%s4143_s1 + $0x5d8] sm:$0xf0] }
 0x1a6   : > { %2137 = vmatpush.bf16.msra.mxu2 %v2513_v47  ;;  %v2817_v47 = vor.u32 %v3321_v36, %v2814_v37  ;;  %v3201_v53 = vor.u32 %v3417_v44, %v3198_v45  ;;  %v3301_v37 = vld [vmem:[%s4143_s1 + $0x22c] sm:$0xf]  ;;  %v2990_v44 = vld [vmem:[%s4143_s1 + $0x438] sm:$0xf0] }
 0x1a7   : > { %2151 = vmatpush.bf16.msra.mxu3 %v2641_v51  ;;  %v2798_v51 = vld [vmem:[%s4143_s1 + $0x2b8] sm:$0xf0] }
 0x1a9   : > { %2110 = vmatpush.bf16.msra.mxu0 %v3005_v57  ;;  %2124 = vmatpush.bf16.msra.mxu1 %v3133_v58  ;;  %v3413_v57 = vld [vmem:[%s4143_s1 + $0x5ac] sm:$0xf]  ;;  %v3182_v58 = vld [vmem:[%s4143_s1 + $0x5b8] sm:$0xf0] }
 0x1aa   : > { %2138 = vmatpush.bf16.msra.mxu2 %v2497_v59  ;;  %v2801_v59 = vor.u32 %v3317_v50, %v2798_v51  ;;  %v2993_v51 = vor.u32 %v3365_v43, %v2990_v44 }
 0x1ab   : > { %2152 = vmatpush.bf16.msra.mxu3 %v2625_v63  ;;  %v2782_v63 = vld [vmem:[%s4143_s1 + $0x298] sm:$0xf0] }
 0x1ad   : > { %2111 = vmatpush.bf16.msra.mxu0 %v2989_v6  ;;  %2125 = vmatpush.bf16.msra.mxu1 %v3117_v9  ;;  %v2785_v6 = vor.u32 %v3313_v62, %v2782_v63  ;;  %v3309_v9 = vld [vmem:[%s4143_s1 + $0x26c] sm:$0xf]  ;;  %v2849_v62 = vor.u32 %v3329_v54, %v2846_v56 }
 0x1ae   : > { %2139 = vmatpush.bf16.msra.mxu2 %v2481_v10  ;;  %v2766_v10 = vld [vmem:[%s4143_s1 + $0x278] sm:$0xf0] }
 0x1af   : > { %2153 = vmatpush.bf16.msra.mxu3 %v2609_v15  ;;  %v3373_v15 = vld [vmem:[%s4143_s1 + $0x46c] sm:$0xf]  ;;  %v2769_v20 = vor.u32 %v3309_v9, %v2766_v10 }
 0x1b0   : > { %v3025_v22 = vor.u32 %v3373_v15, %v3022_v16 }
 0x1b1   : > { %2112 = vmatpush.bf16.msra.mxu0 %v2973_v23  ;;  %2126 = vmatpush.bf16.msra.mxu1 %v3101_v27  ;;  %v3305_v23 = vld [vmem:[%s4143_s1 + $0x24c] sm:$0xf]  ;;  %v2878_v27 = vld [vmem:[%s4143_s1 + $0x358] sm:$0xf0]  ;;  %v1904_v45 = vpop.f32.mrf.mxu1 }
 0x1b2   : > { %2140 = vmatpush.bf16.msra.mxu2 %v2465_v28  ;;  %v3369_v28 = vld [vmem:[%s4143_s1 + $0x44c] sm:$0xf] }
 0x1b3   : > { %2154 = vmatpush.bf16.msra.mxu3 %v2593_v32  ;;  %v3134_v32 = vld [vmem:[%s4143_s1 + $0x558] sm:$0xf0] }
 0x1b4   : > { %2113 = vmatmul.bf16.vlgmr.msra.gmra.mxu0 %v4311_v42  ;;  %2127 = vmatmul.bf16.vlgmr.msra.gmra.mxu1 %v4316_v46  ;;  %v3137_v40 = vor.u32 %v3401_v31, %v3134_v32 }
 0x1b5   : > { %2161 = vmatpush.bf16.msrb.mxu0 %v2833_v33  ;;  %2175 = vmatpush.bf16.msrb.mxu1 %v2961_v34  ;;  %v2753_v33 = vor.u32 %v3305_v23, %v2750_v24  ;;  %v2881_v34 = vor.u32 %v3337_v25, %v2878_v27  ;;  %v1890_v36 = vpop.f32.mrf.mxu0 }
 0x1b6   : > { %2189 = vmatpush.bf16.msrb.mxu2 %v3089_v35  ;;  %2155 = vmatmul.bf16.vlgmr.msra.gmra.mxu3 %v4243_v12  ;;  %v3409_v12 = vld [vmem:[%s4143_s1 + $0x58c] sm:$0xf]  ;;  %v3009_v35 = vor.u32 %v3369_v28, %v3006_v29  ;;  %v1905_v0 = vadd.f32 %v1904_v45, %v1890_v36 }
 0x1b7   : > { %2203 = vmatpush.bf16.msrb.mxu3 %v3217_v39  ;;  %2141 = vmatmul.bf16.vlgmr.msra.gmra.mxu2 %v4233_v1  ;;  %v3185_v1 = vor.u32 %v3413_v57, %v3182_v58  ;;  %v3169_v13 = vor.u32 %v3409_v12, %v3166_v5  ;;  %v3333_v39 = vld [vmem:[%s4143_s1 + $0x32c] sm:$0xf]  ;;  %v2974_v58 = vld [vmem:[%s4143_s1 + $0x418] sm:$0xf0] }
 0x1b8   : > { %v2865_v50 = vor.u32 %v3333_v39, %v2862_v41  ;;  %v3361_v57 = vld [vmem:[%s4143_s1 + $0x40c] sm:$0xf] }
 0x1b9   : > { %2162 = vmatpush.bf16.msrb.mxu0 %v2817_v47  ;;  %2176 = vmatpush.bf16.msrb.mxu1 %v2945_v48  ;;  %v3397_v47 = vld [vmem:[%s4143_s1 + $0x52c] sm:$0xf]  ;;  %v3118_v48 = vld [vmem:[%s4143_s1 + $0x538] sm:$0xf0]  ;;  %v2977_v63 = vor.u32 %v3361_v57, %v2974_v58  ;;  %v1906_v4 = vpop.f32.mrf.mxu1  ;;  %v1932_v5 = vpop.f32.mrf.mxu3 }
 0x1ba   : > { %2190 = vmatpush.bf16.msrb.mxu2 %v3073_v49  ;;  %v2737_v49 = vor.u32 %v3301_v37, %v2734_v38  ;;  %v3121_v55 = vor.u32 %v3397_v47, %v3118_v48  ;;  %v686_v37 = vld [vmem:[#allocation2] sm:$0xff] }
 0x1bb   : > { %2204 = vmatpush.bf16.msrb.mxu3 %v3201_v53  ;;  %v2718_v53 = vld [vmem:[%s4143_s1 + $0x218] sm:$0xf0]  ;;  %v690_v48 = vld [vmem:[#allocation2 + $0x20] sm:$0xff] }
 0x1bd   : > { %2163 = vmatpush.bf16.msrb.mxu0 %v2801_v59  ;;  %2177 = vmatpush.bf16.msrb.mxu1 %v2929_v60  ;;  %v3393_v59 = vld [vmem:[%s4143_s1 + $0x50c] sm:$0xf]  ;;  %v3102_v60 = vld [vmem:[%s4143_s1 + $0x518] sm:$0xf0]  ;;  %v1892_v2 = vpop.f32.mrf.mxu0 }
 0x1be   : > { %2191 = vmatpush.bf16.msrb.mxu2 %v3057_v61  ;;  %v2721_v61 = vor.u32 %v3297_v52, %v2718_v53  ;;  %v1918_v3 = vpop.f32.mrf.mxu2 }
 0x1bf   : > { %2205 = vmatpush.bf16.msrb.mxu3 %v3185_v1  ;;  %v3105_v1 = vor.u32 %v3393_v59, %v3102_v60  ;;  %v1919_v12 = vadd.f32 %v1918_v3, %v1905_v0 }
 0x1c1   : > { %2164 = vmatpush.bf16.msrb.mxu0 %v2785_v6  ;;  %2178 = vmatpush.bf16.msrb.mxu1 %v2913_v7  ;;  %v1933_v6 = vadd.f32 %v1932_v5, %v1919_v12  ;;  %v1907_v7 = vadd.f32 %v1906_v4, %v1892_v2  ;;  %v1934_v16 = vpop.f32.mrf.mxu3 }
 0x1c2   : > { %2192 = vmatpush.bf16.msrb.mxu2 %v3041_v8 }
 0x1c3   : > { %2206 = vmatpush.bf16.msrb.mxu3 %v3169_v13  ;;  %v685_v13 = vld [vmem:[#allocation2 + $0x30] sm:$0xff] }
 0x1c5   : > { %2165 = vmatpush.bf16.msrb.mxu0 %v2769_v20  ;;  %2179 = vmatpush.bf16.msrb.mxu1 %v2897_v21  ;;  %v689_v21 = vld [vmem:[#allocation2 + $0x8] sm:$0xff] }
 0x1c6   : > { %2193 = vmatpush.bf16.msrb.mxu2 %v3025_v22  ;;  %v1920_v9 = vpop.f32.mrf.mxu2 }
 0x1c7   : > { %2207 = vmatpush.bf16.msrb.mxu3 %v3153_v26  ;;  %v1921_v14 = vadd.f32 %v1920_v9, %v1907_v7  ;;  %v691_v9 = vld [vmem:[#allocation2 + $0x28] sm:$0xff] }
 0x1c9   : > { %2166 = vmatpush.bf16.msrb.mxu0 %v2753_v33  ;;  %2180 = vmatpush.bf16.msrb.mxu1 %v2881_v34 }
 0x1ca   : > { %2194 = vmatpush.bf16.msrb.mxu2 %v3009_v35 }
 0x1cb   : > { %2208 = vmatpush.bf16.msrb.mxu3 %v3137_v40 }
 0x1cd   : > { %2167 = vmatpush.bf16.msrb.mxu0 %v2737_v49  ;;  %2181 = vmatpush.bf16.msrb.mxu1 %v2865_v50 }
 0x1ce   : > { %2195 = vmatpush.bf16.msrb.mxu2 %v2993_v51 }
 0x1cf   : > { %2209 = vmatpush.bf16.msrb.mxu3 %v3121_v55 }
 0x1d1   : > { %2168 = vmatpush.bf16.msrb.mxu0 %v2721_v61  ;;  %2182 = vmatpush.bf16.msrb.mxu1 %v2849_v62  ;;  %v1946_v8 = vpop.f32.mrf.mxu0  ;;  %v1960_v11 = vpop.f32.mrf.mxu1 }
 0x1d2   : > { %2196 = vmatpush.bf16.msrb.mxu2 %v2977_v63  ;;  %v1947_v10 = vadd.f32 %v1946_v8, %v1933_v6 }
 0x1d3   : > { %2210 = vmatpush.bf16.msrb.mxu3 %v3105_v1  ;;  %v687_v1 = vld [vmem:[#allocation2 + $0x18] sm:$0xff] }
 0x1d4   : > { %2169 = vmatmul.bf16.vlgmr.msrb.gmra.mxu0 %v4249_v18  ;;  %2183 = vmatmul.bf16.vlgmr.msrb.gmra.mxu1 %v4261_v30  ;;  %v1961_v15 = vadd.f32 %v1960_v11, %v1947_v10  ;;  %v1935_v18 = vadd.f32 %v1934_v16, %v1921_v14 }
 0x1d5   : > { %2197 = vmatmul.bf16.vlgmr.msrb.gmra.mxu2 %v4311_v42 }
 0x1d6   : > { %2211 = vmatmul.bf16.vlgmr.msrb.gmra.mxu3 %v4316_v46  ;;  %v2217_v17 = vadd.f32 %v1961_v15, %v685_v13 }
 0x1d8   : > { %2225 = vst [vmem:[#allocation2 + $0x30] sm:$0xff] %v2217_v17 }
 0x1d9   : > { %v1948_v19 = vpop.f32.mrf.mxu0  ;;  %v1962_v30 = vpop.f32.mrf.mxu1 }
 0x1da   : > { %v1949_v20 = vadd.f32 %v1948_v19, %v1935_v18  ;;  %v1974_v46 = vpop.f32.mrf.mxu2  ;;  %v1988_v23 = vpop.f32.mrf.mxu3 }
 0x1db   : > { %v1989_v24 = vadd.f32 %v1988_v23, %v1974_v46 }
 0x1dc   : > { %v1963_v42 = vadd.f32 %v1962_v30, %v1949_v20 }
 0x1de   : > { %v2221_v22 = vadd.f32 %v1963_v42, %v689_v21 }
 0x1e0   : > { %2229 = vst [vmem:[#allocation2 + $0x8] sm:$0xff] %v2221_v22 }
 0x1e2   : > { %v1976_v25 = vpop.f32.mrf.mxu2  ;;  %v1990_v26 = vpop.f32.mrf.mxu3 }
 0x1e3   : > { %v1991_v33 = vadd.f32 %v1990_v26, %v1976_v25 }
 0x1f1   : > { %v2002_v27 = vpop.f32.mrf.mxu0  ;;  %v2016_v29 = vpop.f32.mrf.mxu1 }
 0x1f2   : > { %v2003_v28 = vadd.f32 %v2002_v27, %v1989_v24  ;;  %v688_v24 = vld [vmem:[#allocation2 + $0x10] sm:$0xff] }
 0x1f4   : > { %v2017_v31 = vadd.f32 %v2016_v29, %v2003_v28 }
 0x1f9   : > { %v2004_v35 = vpop.f32.mrf.mxu0  ;;  %v2044_v36 = vpop.f32.mrf.mxu3 }
 0x1fa   : > { %v2030_v32 = vpop.f32.mrf.mxu2  ;;  %v2005_v38 = vadd.f32 %v2004_v35, %v1991_v33  ;;  %v2018_v40 = vpop.f32.mrf.mxu1  ;;  %v692_v33 = vld [vmem:[#allocation2 + $0x38] sm:$0xff] }
 0x1fb   : > { %v2031_v34 = vadd.f32 %v2030_v32, %v2017_v31 }
 0x1fc   : > { %v2019_v43 = vadd.f32 %v2018_v40, %v2005_v38 }
 0x1fd   : > { %v2045_v39 = vadd.f32 %v2044_v36, %v2031_v34 }
 0x1ff   : > { %v2218_v41 = vadd.f32 %v2045_v39, %v686_v37 }
 0x201   : > { %2226 = vst [vmem:[#allocation2] sm:$0xff] %v2218_v41  ;;  %v2046_v47 = vpop.f32.mrf.mxu3 }
 0x202   : > { %v2032_v44 = vpop.f32.mrf.mxu2 }
 0x203   : > { %v2033_v45 = vadd.f32 %v2032_v44, %v2019_v43 }
 0x205   : > { %v2047_v49 = vadd.f32 %v2046_v47, %v2033_v45 }
 0x207   : > { %v2222_v50 = vadd.f32 %v2047_v49, %v690_v48 }
 0x209   : > { %2230 = vst [vmem:[#allocation2 + $0x20] sm:$0xff] %v2222_v50 }
 0x211   : > { %v2058_v51 = vpop.f32.mrf.mxu0  ;;  %v2072_v52 = vpop.f32.mrf.mxu1 }
 0x212   : > { %v2073_v53 = vadd.f32 %v2072_v52, %v2058_v51 }
 0x219   : > { %v2060_v54 = vpop.f32.mrf.mxu0  ;;  %v2074_v56 = vpop.f32.mrf.mxu1 }
 0x21a   : > { %v2086_v55 = vpop.f32.mrf.mxu2  ;;  %v2100_v58 = vpop.f32.mrf.mxu3  ;;  %v2075_v60 = vadd.f32 %v2074_v56, %v2060_v54 }
 0x21b   : > { %v2087_v57 = vadd.f32 %v2086_v55, %v2073_v53 }
 0x21d   : > { %v2101_v59 = vadd.f32 %v2100_v58, %v2087_v57 }
 0x222   : > { %v2088_v62 = vpop.f32.mrf.mxu2  ;;  %v2102_v4 = vpop.f32.mrf.mxu3 }
 0x223   : > { %v2089_v2 = vadd.f32 %v2088_v62, %v2075_v60 }
 0x225   : > { %v2103_v5 = vadd.f32 %v2102_v4, %v2089_v2 }
 0x231   : > { %v2114_v61 = vpop.f32.mrf.mxu0  ;;  %v2128_v0 = vpop.f32.mrf.mxu1 }
 0x232   : > { %v2115_v63 = vadd.f32 %v2114_v61, %v2101_v59 }
 0x234   : > { %v2129_v3 = vadd.f32 %v2128_v0, %v2115_v63 }
 0x236   : > { %v2219_v12 = vadd.f32 %v2129_v3, %v687_v1 }
 0x238   : > { %2227 = vst [vmem:[#allocation2 + $0x18] sm:$0xff] %v2219_v12 }
 0x239   : > { %v2116_v6 = vpop.f32.mrf.mxu0  ;;  %v2130_v8 = vpop.f32.mrf.mxu1 }
 0x23a   : > { %v2117_v7 = vadd.f32 %v2116_v6, %v2103_v5  ;;  %v2142_v13 = vpop.f32.mrf.mxu2  ;;  %v2156_v14 = vpop.f32.mrf.mxu3 }
 0x23b   : > { %v2157_v16 = vadd.f32 %v2156_v14, %v2142_v13 }
 0x23c   : > { %v2131_v10 = vadd.f32 %v2130_v8, %v2117_v7 }
 0x23e   : > { %v2223_v11 = vadd.f32 %v2131_v10, %v691_v9 }
 0x240   : > { %2231 = vst [vmem:[#allocation2 + $0x28] sm:$0xff] %v2223_v11 }
 0x242   : > { %v2144_v15 = vpop.f32.mrf.mxu2  ;;  %v2158_v17 = vpop.f32.mrf.mxu3 }
 0x243   : > { %v2159_v42 = vadd.f32 %v2158_v17, %v2144_v15 }
 0x251   : > { %v2170_v18 = vpop.f32.mrf.mxu0  ;;  %v2184_v20 = vpop.f32.mrf.mxu1 }
 0x252   : > { %v2171_v19 = vadd.f32 %v2170_v18, %v2157_v16 }
 0x254   : > { %v2185_v30 = vadd.f32 %v2184_v20, %v2171_v19 }
 0x258   : > { %v2198_v21 = vpop.f32.mrf.mxu2 }
 0x259   : > { %v2199_v22 = vadd.f32 %v2198_v21, %v2185_v30  ;;  %v2212_v46 = vpop.f32.mrf.mxu3  ;;  %v2172_v23 = vpop.f32.mrf.mxu0 }
 0x25a   : > { %v2173_v26 = vadd.f32 %v2172_v23, %v2159_v42  ;;  %v2186_v28 = vpop.f32.mrf.mxu1 }
 0x25b   : > { %v2213_v25 = vadd.f32 %v2212_v46, %v2199_v22 }
 0x25c   : > { %v2187_v29 = vadd.f32 %v2186_v28, %v2173_v26 }
 0x25d   : > { %v2220_v27 = vadd.f32 %v2213_v25, %v688_v24 }
 0x25f   : > { %2228 = vst [vmem:[#allocation2 + $0x10] sm:$0xff] %v2220_v27 }
 0x260   : > { %v2200_v31 = vpop.f32.mrf.mxu2 }
 0x261   : > { %v2201_v32 = vadd.f32 %v2200_v31, %v2187_v29  ;;  %v2214_v34 = vpop.f32.mrf.mxu3 }
 0x263   : > { %v2215_v35 = vadd.f32 %v2214_v34, %v2201_v32  ;;  %2236 = sbr.rel (%p3218_p5) target bundleno = 628 (0x274), region = 86 }
 0x265   : > { %v2224_v36 = vadd.f32 %v2215_v35, %v692_v33 }
 0x267   : > { %2232 = vst [vmem:[#allocation2 + $0x38] sm:$0xff] %v2224_v36 }
 0x268   : > { %v2237_v37 = vld [vmem:[#allocation2 + $0x30] sm:$0xff]  ;;  %v2238_v38 = vld [vmem:[#allocation2] sm:$0xff]  ;;  %v2239_v43 = vld [vmem:[#allocation2 + $0x18] sm:$0xff] }
 0x269   : > { %v2245_v39 = vld [vmem:[%s669_s5] sm:$0xf]  ;;  %v2240_v44 = vld [vmem:[#allocation2 + $0x10] sm:$0xff]  ;;  %v2241_v48 = vld [vmem:[#allocation2 + $0x8] sm:$0xff] }
 0x26a   : > { %v2247_v40 = vperm.slane %v2245_v39, 0  ;;  %v2248_v41 = vperm.slane %v2245_v39, 1  ;;  %v2249_v45 = vperm.slane %v2245_v39, 2  ;;  %v2250_v47 = vperm.slane %v2245_v39, 3  ;;  %v2242_v49 = vld [vmem:[#allocation2 + $0x20] sm:$0xff]  ;;  %v2243_v50 = vld [vmem:[#allocation2 + $0x28] sm:$0xff] }
 0x26c   : > { %v2255_v51 = vadd.f32 %v2247_v40, %v2237_v37  ;;  %v2256_v52 = vadd.f32 %v2248_v41, %v2238_v38  ;;  %v2257_v53 = vadd.f32 %v2249_v45, %v2239_v43  ;;  %v2258_v54 = vadd.f32 %v2250_v47, %v2240_v44 }
 0x26d   : > { %v2259_v56 = vadd.f32 %v2247_v40, %v2241_v48  ;;  %v2260_v57 = vadd.f32 %v2248_v41, %v2242_v49  ;;  %v2261_v58 = vadd.f32 %v2249_v45, %v2243_v50 }
 0x26e   : > { %v2244_v55 = vld [vmem:[#allocation2 + $0x38] sm:$0xff]  ;;  %v2263_v60 = vpack.c.bf16 %v2256_v52, %v2255_v51  ;;  %v2264_v61 = vpack.c.bf16 %v2258_v54, %v2257_v53 }
 0x26f   : > { %v2262_v59 = vadd.f32 %v2250_v47, %v2244_v55  ;;  %v2265_v62 = vpack.c.bf16 %v2260_v57, %v2259_v56 }
 0x270   : > { %2267 = vst [vmem:[%s4145_s25] sm:$0xff] %v2263_v60 }
 0x271   : > { %v2266_v63 = vpack.c.bf16 %v2262_v59, %v2261_v58  ;;  %2268 = vst [vmem:[%s4145_s25 + $0x8] sm:$0xff] %v2264_v61 }
 0x272   : > { %2269 = vst [vmem:[%s4145_s25 + $0x10] sm:$0xff] %v2265_v62 }
 0x273   : > { %2270 = vst [vmem:[%s4145_s25 + $0x18] sm:$0xff] %v2266_v63 }
 0x274 PF: > { %2277 = sbr.rel (!%p3721_p12) target bundleno = 636 (0x27c), region = 90  ;;  %s3424_s14 = sshll.u32 (%p3721_p12), %s3592_s19, 4 }
 0x275   : > { %s2283_s0 = scalar_lea.vmem (%p3721_p12), %s4636_s3, %s3424_s14 }
 0x277   : > { %v2296_v0 = vld [vmem:[%s4145_s25] sm:$0xff] (%p3721_p12) }
 0x278   : > { %v2298_v1 = vld [vmem:[%s4145_s25 + $0x8] sm:$0xff] (%p3721_p12)  ;;  %2297 = vst [vmem:[%s2283_s0] sm:$0xff] (%p3721_p12), %v2296_v0 }
 0x279   : > { %v2300_v2 = vld [vmem:[%s4145_s25 + $0x10] sm:$0xff]  ;;  %2299 = vst [vmem:[%s2283_s0 + $0x8] sm:$0xff] %v2298_v1 }
 0x27a   : > { %v2302_v3 = vld [vmem:[%s4145_s25 + $0x18] sm:$0xff]  ;;  %2301 = vst [vmem:[%s2283_s0 + $0x20] sm:$0xff] %v2300_v2 }
 0x27b   : > { %2303 = vst [vmem:[%s2283_s0 + $0x28] sm:$0xff] %v2302_v3 }
 0x27c PF: > { %s13_s22 = sadd.s32 1, %s3604_s22   ;;  %s4646_s10 = sld [smem:[#allocation6_spill]] }
 0x27d   : > { %p10_p6 = scmp.ge.s32.totalorder %s13_s22, 14   ;;  %s4647_s12 = smov %s3568_s13 }
 0x27e   : > { %s4648_s13 = smov %s3719_s9  ;;  %s4649_s14 = smov %s3576_s15 }
 0x27f   : > { %s4650_s15 = smov %s3716_s8  ;;  %s4651_s16 = smov %s3584_s17 }
 0x280   : > { %s4652_s17 = smov %s3702_s30  ;;  %s4653_s18 = smov %s3596_s20 }
 0x281   : > { %s4654_s19 = smov %s3600_s21  ;;  %s4655_s20 = smov %s4658_s24 }
 0x282   : > { %s4656_s21 = smov %s4646_s10  ;;  %12 = sbr.rel (!%p10_p6) target bundleno = 9 (0x9), region = 155 }

// kernel: zfnet_forward.14
= control target key start
LH: loop header
LB: loop body
LE: loop exit
PB: predicated region body
PF: predicated region fallthrough
CT: control target
= control target key end

     0   :  { %s5877_s0 = inlined_call_operand.vmem [shape: bf16[16,9216], index: 0, kind: input, shape index: {}]   ;;  %s5878_s1 = inlined_call_operand.vmem [shape: bf16[9216,1024], index: 1, kind: input, shape index: {}]   ;;  %s5879_s2 = inlined_call_operand.vmem [shape: f32[1,1024], index: 2, kind: input, shape index: {}]   ;;  %s5880_s3 = inlined_call_operand.vmem [shape: bf16[16,1024], index: 3, kind: output, shape index: {}]  }
   0x1   :  { %5882 = sst [smem:[#allocation7_spill]] %s5877_s0 }
   0x2   :  { %5883 = sst [smem:[#allocation8_spill]] %s5878_s1 }
   0x3   :  { %s4599_s12 = smov 0   ;;  %s4601_s13 = smov 0  }
   0x4   :  { %s4603_s14 = smov 0   ;;  %s4605_s15 = smov 0  }
   0x5   :  { %s4607_s16 = smov 0   ;;  %s4609_s17 = smov 0  }
   0x6   :  { %s4611_s18 = smov 0   ;;  %s4613_s19 = smov 0  }
   0x7   :  { %s4615_s20 = smov 0   ;;  %s4617_s21 = smov 0  }
   0x8   :  { %s4619_s22 = smov 0  }
   0x9 LB: > { %s3054_s23 = sadd.s32 4294967295, %s4576_s22   ;;  %s25_s24 = sadd.s32 1, %s4568_s20  ;;  %s4576_s22 = sphi %s4619_s22, %s13_s22   ;;  %s4572_s21 = sphi %s4617_s21, %s5900_s21   ;;  %s4568_s20 = sphi %s4615_s20, %s5899_s20   ;;  %s4564_s19 = sphi %s4613_s19, %s5898_s19   ;;  %s4560_s18 = sphi %s4611_s18, %s5897_s18   ;;  %s4556_s17 = sphi %s4609_s17, %s5896_s17   ;;  %s4552_s16 = sphi %s4607_s16, %s5895_s16   ;;  %s4548_s15 = sphi %s4605_s15, %s5894_s15   ;;  %s4544_s14 = sphi %s4603_s14, %s5893_s14   ;;  %s4540_s13 = sphi %s4601_s13, %s5892_s13   ;;  %s4536_s12 = sphi %s4599_s12, %s5891_s12  }
   0xa   : > { %p26_p0 = scmp.ge.s32.totalorder %s25_s24, 9  ;;  %s28_s25 = sadd.s32 1, %s4572_s21 }
   0xb   : > { %s41_s26 = sadd.s32 1, %s4556_s17  ;;  %p48_p1 = scmp.ne.s32.totalorder %s4556_s17, %s4552_s16 }
   0xc   : > { %s5902_s24 = smov (%p26_p0, %s25_s24), 0  ;;  %s5904_s25 = smov (!%p26_p0, %s28_s25), %s4572_s21 }
   0xd   : > { %s37_s27 = ssub.s32 %s4568_s20, %s5902_s24  ;;  %p49_p2 = scmp.eq.s32.totalorder %s4576_s22, 0 }
   0xe   : > { %p30_p3 = scmp.ge.s32.totalorder %s5904_s25, 2  ;;  %p39_p4 = scmp.eq.s32.totalorder %s37_s27, 0 }
   0xf   : > { %p4666_p5 = por %p49_p2, %p48_p1  ;;  %s69_s29 = sadd.s32 1, %s4548_s15 }
  0x10   : > { %s5906_s25 = smov (%p30_p3, %s5904_s25), 0  ;;  %p76_p6 = scmp.ne.s32.totalorder %s4548_s15, %s4544_s14 }
  0x11   : > { %5885 = sst [smem:[#allocation6_spill]] %s5906_s25  ;;  %s65_s4 = ssub.s32 %s4572_s21, %s5906_s25 }
  0x12   : > { %s4674_s30 = scalar_select %p39_p4, %s4556_s17, %s41_s26  }
  0x13   : > { %s66_s5 = sor.u32 %s65_s4, %s37_s27  ;;  %p121_p7 = scmp.eq.s32.totalorder %s65_s4, 0 }
  0x14   : > { %p67_p8 = scmp.eq.s32.totalorder %s66_s5, 0  ;;  %p4680_p9 = por %p76_p6, %p49_p2 }
  0x15   : > { %s123_s7 = sadd.s32 1, %s4540_s13  ;;  %p133_p10 = scmp.ne.s32.totalorder %s4540_s13, %s4536_s12 }
  0x16   : > { %s4688_s8 = scalar_select %p67_p8, %s4548_s15, %s69_s29  }
  0x17   : > { %s4691_s9 = scalar_select %p121_p7, %s4540_s13, %s123_s7  }
  0x18   : > { %p134_p11 = scmp.eq.s32.totalorder %s3054_s23, 17  ;;  %p3057_p13 = scmp.ge.s32.totalorder %s4576_s22, 18 }
  0x1a   : > { %p4693_p12 = por %p134_p11, %p133_p10  ;;  %156 = sbr.rel (%p3057_p13) target bundleno = 315 (0x13b), region = 16 }
  0x1f   : > { %159 = sbr.rel (!%p4666_p5) target bundleno = 49 (0x31), region = 20  ;;  %s161_s11 = sand.u32 (%p4666_p5), 1, %s4556_s17  }
  0x20   : > { %s4134_s26 = sshll.u32 (%p4666_p5), %s4568_s20, 5  ;;  %s3058_s27 = sshll.u32 (%p4666_p5), %s161_s11, 6 }
  0x21   : > { %s5888_s0 = sld [smem:[#allocation7_spill]] (%p4666_p5)  ;;  %s163_s23 = scalar_lea.vmem (%p4666_p5), [#allocation3], %s3058_s27 }
  0x27   : > { %s169_s5 = scalar_lea.vmem %s5888_s0, %s4134_s26 }
  0x28   : > { %v182_v0 = vld [vmem:[%s169_s5] sm:$0xff]  ;;  %v184_v1 = vld [vmem:[%s169_s5 + $0x8] sm:$0xff]  ;;  %v186_v2 = vld [vmem:[%s169_s5 + $0x10] sm:$0xff] }
  0x29   : > { %183 = vst [vmem:[%s163_s23] sm:$0xff] %v182_v0  ;;  %v188_v3 = vld [vmem:[%s169_s5 + $0x18] sm:$0xff]  ;;  %v190_v4 = vld [vmem:[%s169_s5 + $0x120] sm:$0xff]  ;;  %v192_v5 = vld [vmem:[%s169_s5 + $0x128] sm:$0xff] }
  0x2a   : > { %185 = vst [vmem:[%s163_s23 + $0x8] sm:$0xff] %v184_v1  ;;  %v194_v6 = vld [vmem:[%s169_s5 + $0x130] sm:$0xff]  ;;  %v196_v7 = vld [vmem:[%s169_s5 + $0x138] sm:$0xff] }
  0x2b   : > { %187 = vst [vmem:[%s163_s23 + $0x10] sm:$0xff] %v186_v2 }
  0x2c   : > { %189 = vst [vmem:[%s163_s23 + $0x18] sm:$0xff] %v188_v3 }
  0x2d   : > { %191 = vst [vmem:[%s163_s23 + $0x20] sm:$0xff] %v190_v4 }
  0x2e   : > { %193 = vst [vmem:[%s163_s23 + $0x28] sm:$0xff] %v192_v5 }
  0x2f   : > { %195 = vst [vmem:[%s163_s23 + $0x30] sm:$0xff] %v194_v6 }
  0x30   : > { %197 = vst [vmem:[%s163_s23 + $0x38] sm:$0xff] %v196_v7 }
  0x31 PF: > { %203 = sbr.rel (!%p4680_p9) target bundleno = 315 (0x13b), region = 43  ;;  %s205_s28 = sand.u32 (%p4680_p9), 1, %s4548_s15  }
  0x32   : > { %s3063_s7 = sshll.u32 (%p4680_p9), %s4572_s21, 2  ;;  %s3061_s11 = sshll.u32 (%p4680_p9), %s205_s28, 11 }
  0x33   : > { %s4135_s26 = sshll.u32 (%p4680_p9), %s4568_s20, 10  ;;  %s5889_s1 = sld [smem:[#allocation8_spill]] (%p4680_p9) }
  0x34   : > { %s211_s27 = sadd.s32 (%p4680_p9), %s4135_s26, %s3063_s7  ;;  %s4718_s6 = scalar_lea.vmem (%p4680_p9), [#allocation4], %s3061_s11 }
  0x35   : > { %s3065_s29 = sshll.u32 (%p4680_p9), %s211_s27, 2 }
  0x39   : > { %s4713_s5 = scalar_lea.vmem %s5889_s1, %s3065_s29 }
  0x3a   : > { %v226_v8 = vld [vmem:[%s4713_s5] sm:$0xff]  ;;  %v228_v9 = vld [vmem:[%s4713_s5 + $0x8] sm:$0xff] }
  0x3b   : > { %v230_v10 = vld [vmem:[%s4713_s5 + $0x20] sm:$0xff]  ;;  %227 = vst [vmem:[%s4718_s6] sm:$0xff] %v226_v8  ;;  %v232_v11 = vld [vmem:[%s4713_s5 + $0x28] sm:$0xff] }
  0x3c   : > { %229 = vst [vmem:[%s4718_s6 + $0x8] sm:$0xff] %v228_v9  ;;  %v234_v12 = vld [vmem:[%s4713_s5 + $0x40] sm:$0xff]  ;;  %v236_v13 = vld [vmem:[%s4713_s5 + $0x48] sm:$0xff] }
  0x3d   : > { %231 = vst [vmem:[%s4718_s6 + $0x10] sm:$0xff] %v230_v10  ;;  %v238_v14 = vld [vmem:[%s4713_s5 + $0x60] sm:$0xff]  ;;  %v240_v15 = vld [vmem:[%s4713_s5 + $0x68] sm:$0xff] }
  0x3e   : > { %233 = vst [vmem:[%s4718_s6 + $0x18] sm:$0xff] %v232_v11  ;;  %v242_v16 = vld [vmem:[%s4713_s5 + $0x80] sm:$0xff]  ;;  %v244_v17 = vld [vmem:[%s4713_s5 + $0x88] sm:$0xff] }
  0x3f   : > { %235 = vst [vmem:[%s4718_s6 + $0x20] sm:$0xff] %v234_v12  ;;  %v246_v18 = vld [vmem:[%s4713_s5 + $0xa0] sm:$0xff]  ;;  %v248_v19 = vld [vmem:[%s4713_s5 + $0xa8] sm:$0xff] }
  0x40   : > { %237 = vst [vmem:[%s4718_s6 + $0x28] sm:$0xff] %v236_v13  ;;  %v250_v20 = vld [vmem:[%s4713_s5 + $0xc0] sm:$0xff]  ;;  %v252_v21 = vld [vmem:[%s4713_s5 + $0xc8] sm:$0xff] }
  0x41   : > { %239 = vst [vmem:[%s4718_s6 + $0x30] sm:$0xff] %v238_v14  ;;  %v254_v22 = vld [vmem:[%s4713_s5 + $0xe0] sm:$0xff]  ;;  %v256_v23 = vld [vmem:[%s4713_s5 + $0xe8] sm:$0xff] }
  0x42   : > { %241 = vst [vmem:[%s4718_s6 + $0x38] sm:$0xff] %v240_v15  ;;  %v258_v24 = vld [vmem:[%s4713_s5 + $0x100] sm:$0xff]  ;;  %v260_v25 = vld [vmem:[%s4713_s5 + $0x108] sm:$0xff] }
  0x43   : > { %243 = vst [vmem:[%s4718_s6 + $0x40] sm:$0xff] %v242_v16  ;;  %v262_v26 = vld [vmem:[%s4713_s5 + $0x120] sm:$0xff]  ;;  %v264_v27 = vld [vmem:[%s4713_s5 + $0x128] sm:$0xff] }
  0x44   : > { %245 = vst [vmem:[%s4718_s6 + $0x48] sm:$0xff] %v244_v17  ;;  %v266_v28 = vld [vmem:[%s4713_s5 + $0x140] sm:$0xff]  ;;  %v268_v29 = vld [vmem:[%s4713_s5 + $0x148] sm:$0xff] }
  0x45   : > { %247 = vst [vmem:[%s4718_s6 + $0x50] sm:$0xff] %v246_v18  ;;  %v270_v30 = vld [vmem:[%s4713_s5 + $0x160] sm:$0xff]  ;;  %v272_v31 = vld [vmem:[%s4713_s5 + $0x168] sm:$0xff] }
  0x46   : > { %249 = vst [vmem:[%s4718_s6 + $0x58] sm:$0xff] %v248_v19  ;;  %v274_v32 = vld [vmem:[%s4713_s5 + $0x180] sm:$0xff]  ;;  %v276_v33 = vld [vmem:[%s4713_s5 + $0x188] sm:$0xff] }
  0x47   : > { %251 = vst [vmem:[%s4718_s6 + $0x60] sm:$0xff] %v250_v20  ;;  %v278_v34 = vld [vmem:[%s4713_s5 + $0x1a0] sm:$0xff]  ;;  %v280_v35 = vld [vmem:[%s4713_s5 + $0x1a8] sm:$0xff] }
  0x48   : > { %253 = vst [vmem:[%s4718_s6 + $0x68] sm:$0xff] %v252_v21  ;;  %v282_v36 = vld [vmem:[%s4713_s5 + $0x1c0] sm:$0xff]  ;;  %v284_v37 = vld [vmem:[%s4713_s5 + $0x1c8] sm:$0xff] }
  0x49   : > { %255 = vst [vmem:[%s4718_s6 + $0x70] sm:$0xff] %v254_v22  ;;  %v286_v38 = vld [vmem:[%s4713_s5 + $0x1e0] sm:$0xff]  ;;  %v288_v39 = vld [vmem:[%s4713_s5 + $0x1e8] sm:$0xff] }
  0x4a   : > { %257 = vst [vmem:[%s4718_s6 + $0x78] sm:$0xff] %v256_v23  ;;  %v290_v40 = vld [vmem:[%s4713_s5 + $0x200] sm:$0xff]  ;;  %v292_v41 = vld [vmem:[%s4713_s5 + $0x208] sm:$0xff] }
  0x4b   : > { %259 = vst [vmem:[%s4718_s6 + $0x80] sm:$0xff] %v258_v24  ;;  %v294_v42 = vld [vmem:[%s4713_s5 + $0x220] sm:$0xff]  ;;  %v296_v43 = vld [vmem:[%s4713_s5 + $0x228] sm:$0xff] }
  0x4c   : > { %261 = vst [vmem:[%s4718_s6 + $0x88] sm:$0xff] %v260_v25  ;;  %v298_v44 = vld [vmem:[%s4713_s5 + $0x240] sm:$0xff]  ;;  %v300_v45 = vld [vmem:[%s4713_s5 + $0x248] sm:$0xff] }
  0x4d   : > { %263 = vst [vmem:[%s4718_s6 + $0x90] sm:$0xff] %v262_v26  ;;  %v302_v46 = vld [vmem:[%s4713_s5 + $0x260] sm:$0xff]  ;;  %v304_v47 = vld [vmem:[%s4713_s5 + $0x268] sm:$0xff] }
  0x4e   : > { %265 = vst [vmem:[%s4718_s6 + $0x98] sm:$0xff] %v264_v27  ;;  %v306_v48 = vld [vmem:[%s4713_s5 + $0x280] sm:$0xff]  ;;  %v308_v49 = vld [vmem:[%s4713_s5 + $0x288] sm:$0xff] }
  0x4f   : > { %267 = vst [vmem:[%s4718_s6 + $0xa0] sm:$0xff] %v266_v28  ;;  %v310_v50 = vld [vmem:[%s4713_s5 + $0x2a0] sm:$0xff]  ;;  %v312_v51 = vld [vmem:[%s4713_s5 + $0x2a8] sm:$0xff] }
  0x50   : > { %269 = vst [vmem:[%s4718_s6 + $0xa8] sm:$0xff] %v268_v29  ;;  %v314_v52 = vld [vmem:[%s4713_s5 + $0x2c0] sm:$0xff]  ;;  %v316_v53 = vld [vmem:[%s4713_s5 + $0x2c8] sm:$0xff] }
  0x51   : > { %271 = vst [vmem:[%s4718_s6 + $0xb0] sm:$0xff] %v270_v30  ;;  %v318_v54 = vld [vmem:[%s4713_s5 + $0x2e0] sm:$0xff]  ;;  %v320_v55 = vld [vmem:[%s4713_s5 + $0x2e8] sm:$0xff] }
  0x52   : > { %273 = vst [vmem:[%s4718_s6 + $0xb8] sm:$0xff] %v272_v31  ;;  %v322_v56 = vld [vmem:[%s4713_s5 + $0x300] sm:$0xff]  ;;  %v324_v57 = vld [vmem:[%s4713_s5 + $0x308] sm:$0xff] }
  0x53   : > { %275 = vst [vmem:[%s4718_s6 + $0xc0] sm:$0xff] %v274_v32  ;;  %v326_v58 = vld [vmem:[%s4713_s5 + $0x320] sm:$0xff]  ;;  %v328_v59 = vld [vmem:[%s4713_s5 + $0x328] sm:$0xff] }
  0x54   : > { %277 = vst [vmem:[%s4718_s6 + $0xc8] sm:$0xff] %v276_v33  ;;  %v330_v60 = vld [vmem:[%s4713_s5 + $0x340] sm:$0xff]  ;;  %v332_v61 = vld [vmem:[%s4713_s5 + $0x348] sm:$0xff] }
  0x55   : > { %279 = vst [vmem:[%s4718_s6 + $0xd0] sm:$0xff] %v278_v34  ;;  %v334_v62 = vld [vmem:[%s4713_s5 + $0x360] sm:$0xff]  ;;  %v336_v63 = vld [vmem:[%s4713_s5 + $0x368] sm:$0xff] }
  0x56   : > { %281 = vst [vmem:[%s4718_s6 + $0xd8] sm:$0xff] %v280_v35  ;;  %v338_v0 = vld [vmem:[%s4713_s5 + $0x380] sm:$0xff]  ;;  %v340_v1 = vld [vmem:[%s4713_s5 + $0x388] sm:$0xff] }
  0x57   : > { %283 = vst [vmem:[%s4718_s6 + $0xe0] sm:$0xff] %v282_v36  ;;  %v342_v2 = vld [vmem:[%s4713_s5 + $0x3a0] sm:$0xff]  ;;  %v344_v3 = vld [vmem:[%s4713_s5 + $0x3a8] sm:$0xff] }
  0x58   : > { %285 = vst [vmem:[%s4718_s6 + $0xe8] sm:$0xff] %v284_v37  ;;  %v346_v4 = vld [vmem:[%s4713_s5 + $0x3c0] sm:$0xff]  ;;  %v348_v5 = vld [vmem:[%s4713_s5 + $0x3c8] sm:$0xff] }
  0x59   : > { %287 = vst [vmem:[%s4718_s6 + $0xf0] sm:$0xff] %v286_v38  ;;  %v350_v6 = vld [vmem:[%s4713_s5 + $0x3e0] sm:$0xff]  ;;  %v352_v7 = vld [vmem:[%s4713_s5 + $0x3e8] sm:$0xff] }
  0x5a   : > { %289 = vst [vmem:[%s4718_s6 + $0xf8] sm:$0xff] %v288_v39  ;;  %v354_v8 = vld [vmem:[%s4713_s5 + $0x400] sm:$0xff]  ;;  %v356_v9 = vld [vmem:[%s4713_s5 + $0x408] sm:$0xff] }
  0x5b   : > { %291 = vst [vmem:[%s4718_s6 + $0x100] sm:$0xff] %v290_v40  ;;  %v358_v10 = vld [vmem:[%s4713_s5 + $0x420] sm:$0xff]  ;;  %v360_v11 = vld [vmem:[%s4713_s5 + $0x428] sm:$0xff] }
  0x5c   : > { %293 = vst [vmem:[%s4718_s6 + $0x108] sm:$0xff] %v292_v41  ;;  %v362_v12 = vld [vmem:[%s4713_s5 + $0x440] sm:$0xff]  ;;  %v364_v13 = vld [vmem:[%s4713_s5 + $0x448] sm:$0xff] }
  0x5d   : > { %295 = vst [vmem:[%s4718_s6 + $0x110] sm:$0xff] %v294_v42  ;;  %v366_v14 = vld [vmem:[%s4713_s5 + $0x460] sm:$0xff]  ;;  %v368_v15 = vld [vmem:[%s4713_s5 + $0x468] sm:$0xff] }
  0x5e   : > { %297 = vst [vmem:[%s4718_s6 + $0x118] sm:$0xff] %v296_v43  ;;  %v370_v16 = vld [vmem:[%s4713_s5 + $0x480] sm:$0xff]  ;;  %v372_v17 = vld [vmem:[%s4713_s5 + $0x488] sm:$0xff] }
  0x5f   : > { %299 = vst [vmem:[%s4718_s6 + $0x120] sm:$0xff] %v298_v44  ;;  %v374_v18 = vld [vmem:[%s4713_s5 + $0x4a0] sm:$0xff]  ;;  %v376_v19 = vld [vmem:[%s4713_s5 + $0x4a8] sm:$0xff] }
  0x60   : > { %301 = vst [vmem:[%s4718_s6 + $0x128] sm:$0xff] %v300_v45  ;;  %v378_v20 = vld [vmem:[%s4713_s5 + $0x4c0] sm:$0xff]  ;;  %v380_v21 = vld [vmem:[%s4713_s5 + $0x4c8] sm:$0xff] }
  0x61   : > { %303 = vst [vmem:[%s4718_s6 + $0x130] sm:$0xff] %v302_v46  ;;  %v382_v22 = vld [vmem:[%s4713_s5 + $0x4e0] sm:$0xff]  ;;  %v384_v23 = vld [vmem:[%s4713_s5 + $0x4e8] sm:$0xff] }
  0x62   : > { %305 = vst [vmem:[%s4718_s6 + $0x138] sm:$0xff] %v304_v47  ;;  %v386_v24 = vld [vmem:[%s4713_s5 + $0x500] sm:$0xff]  ;;  %v388_v25 = vld [vmem:[%s4713_s5 + $0x508] sm:$0xff] }
  0x63   : > { %307 = vst [vmem:[%s4718_s6 + $0x140] sm:$0xff] %v306_v48  ;;  %v390_v26 = vld [vmem:[%s4713_s5 + $0x520] sm:$0xff]  ;;  %v392_v27 = vld [vmem:[%s4713_s5 + $0x528] sm:$0xff] }
  0x64   : > { %309 = vst [vmem:[%s4718_s6 + $0x148] sm:$0xff] %v308_v49  ;;  %v394_v28 = vld [vmem:[%s4713_s5 + $0x540] sm:$0xff]  ;;  %v396_v29 = vld [vmem:[%s4713_s5 + $0x548] sm:$0xff] }
  0x65   : > { %311 = vst [vmem:[%s4718_s6 + $0x150] sm:$0xff] %v310_v50  ;;  %v398_v30 = vld [vmem:[%s4713_s5 + $0x560] sm:$0xff]  ;;  %v400_v31 = vld [vmem:[%s4713_s5 + $0x568] sm:$0xff] }
  0x66   : > { %313 = vst [vmem:[%s4718_s6 + $0x158] sm:$0xff] %v312_v51  ;;  %v402_v32 = vld [vmem:[%s4713_s5 + $0x580] sm:$0xff]  ;;  %v404_v33 = vld [vmem:[%s4713_s5 + $0x588] sm:$0xff] }
  0x67   : > { %315 = vst [vmem:[%s4718_s6 + $0x160] sm:$0xff] %v314_v52  ;;  %v406_v34 = vld [vmem:[%s4713_s5 + $0x5a0] sm:$0xff]  ;;  %v408_v35 = vld [vmem:[%s4713_s5 + $0x5a8] sm:$0xff] }
  0x68   : > { %317 = vst [vmem:[%s4718_s6 + $0x168] sm:$0xff] %v316_v53  ;;  %v410_v36 = vld [vmem:[%s4713_s5 + $0x5c0] sm:$0xff]  ;;  %v412_v37 = vld [vmem:[%s4713_s5 + $0x5c8] sm:$0xff] }
  0x69   : > { %319 = vst [vmem:[%s4718_s6 + $0x170] sm:$0xff] %v318_v54  ;;  %v414_v38 = vld [vmem:[%s4713_s5 + $0x5e0] sm:$0xff]  ;;  %v416_v39 = vld [vmem:[%s4713_s5 + $0x5e8] sm:$0xff] }
  0x6a   : > { %321 = vst [vmem:[%s4718_s6 + $0x178] sm:$0xff] %v320_v55  ;;  %v418_v40 = vld [vmem:[%s4713_s5 + $0x600] sm:$0xff]  ;;  %v420_v41 = vld [vmem:[%s4713_s5 + $0x608] sm:$0xff] }
  0x6b   : > { %323 = vst [vmem:[%s4718_s6 + $0x180] sm:$0xff] %v322_v56  ;;  %v422_v42 = vld [vmem:[%s4713_s5 + $0x620] sm:$0xff]  ;;  %v424_v43 = vld [vmem:[%s4713_s5 + $0x628] sm:$0xff] }
  0x6c   : > { %325 = vst [vmem:[%s4718_s6 + $0x188] sm:$0xff] %v324_v57  ;;  %v426_v44 = vld [vmem:[%s4713_s5 + $0x640] sm:$0xff]  ;;  %v428_v45 = vld [vmem:[%s4713_s5 + $0x648] sm:$0xff] }
  0x6d   : > { %327 = vst [vmem:[%s4718_s6 + $0x190] sm:$0xff] %v326_v58  ;;  %v430_v46 = vld [vmem:[%s4713_s5 + $0x660] sm:$0xff]  ;;  %v432_v47 = vld [vmem:[%s4713_s5 + $0x668] sm:$0xff] }
  0x6e   : > { %329 = vst [vmem:[%s4718_s6 + $0x198] sm:$0xff] %v328_v59  ;;  %v434_v48 = vld [vmem:[%s4713_s5 + $0x680] sm:$0xff]  ;;  %v436_v49 = vld [vmem:[%s4713_s5 + $0x688] sm:$0xff] }
  0x6f   : > { %331 = vst [vmem:[%s4718_s6 + $0x1a0] sm:$0xff] %v330_v60  ;;  %v438_v50 = vld [vmem:[%s4713_s5 + $0x6a0] sm:$0xff]  ;;  %v440_v51 = vld [vmem:[%s4713_s5 + $0x6a8] sm:$0xff] }
  0x70   : > { %333 = vst [vmem:[%s4718_s6 + $0x1a8] sm:$0xff] %v332_v61  ;;  %v442_v52 = vld [vmem:[%s4713_s5 + $0x6c0] sm:$0xff]  ;;  %v444_v53 = vld [vmem:[%s4713_s5 + $0x6c8] sm:$0xff] }
  0x71   : > { %335 = vst [vmem:[%s4718_s6 + $0x1b0] sm:$0xff] %v334_v62  ;;  %v446_v54 = vld [vmem:[%s4713_s5 + $0x6e0] sm:$0xff]  ;;  %v448_v55 = vld [vmem:[%s4713_s5 + $0x6e8] sm:$0xff] }
  0x72   : > { %337 = vst [vmem:[%s4718_s6 + $0x1b8] sm:$0xff] %v336_v63  ;;  %v450_v56 = vld [vmem:[%s4713_s5 + $0x700] sm:$0xff]  ;;  %v452_v57 = vld [vmem:[%s4713_s5 + $0x708] sm:$0xff] }
  0x73   : > { %339 = vst [vmem:[%s4718_s6 + $0x1c0] sm:$0xff] %v338_v0  ;;  %v454_v58 = vld [vmem:[%s4713_s5 + $0x720] sm:$0xff]  ;;  %v456_v59 = vld [vmem:[%s4713_s5 + $0x728] sm:$0xff] }
  0x74   : > { %341 = vst [vmem:[%s4718_s6 + $0x1c8] sm:$0xff] %v340_v1  ;;  %v458_v60 = vld [vmem:[%s4713_s5 + $0x740] sm:$0xff]  ;;  %v460_v61 = vld [vmem:[%s4713_s5 + $0x748] sm:$0xff] }
  0x75   : > { %343 = vst [vmem:[%s4718_s6 + $0x1d0] sm:$0xff] %v342_v2  ;;  %v462_v62 = vld [vmem:[%s4713_s5 + $0x760] sm:$0xff]  ;;  %v464_v63 = vld [vmem:[%s4713_s5 + $0x768] sm:$0xff] }
  0x76   : > { %345 = vst [vmem:[%s4718_s6 + $0x1d8] sm:$0xff] %v344_v3  ;;  %v466_v0 = vld [vmem:[%s4713_s5 + $0x780] sm:$0xff]  ;;  %v468_v1 = vld [vmem:[%s4713_s5 + $0x788] sm:$0xff] }
  0x77   : > { %347 = vst [vmem:[%s4718_s6 + $0x1e0] sm:$0xff] %v346_v4  ;;  %v470_v2 = vld [vmem:[%s4713_s5 + $0x7a0] sm:$0xff]  ;;  %v472_v3 = vld [vmem:[%s4713_s5 + $0x7a8] sm:$0xff] }
  0x78   : > { %349 = vst [vmem:[%s4718_s6 + $0x1e8] sm:$0xff] %v348_v5  ;;  %v474_v4 = vld [vmem:[%s4713_s5 + $0x7c0] sm:$0xff]  ;;  %v476_v5 = vld [vmem:[%s4713_s5 + $0x7c8] sm:$0xff] }
  0x79   : > { %351 = vst [vmem:[%s4718_s6 + $0x1f0] sm:$0xff] %v350_v6  ;;  %v478_v6 = vld [vmem:[%s4713_s5 + $0x7e0] sm:$0xff] }
  0x7a   : > { %353 = vst [vmem:[%s4718_s6 + $0x1f8] sm:$0xff] %v352_v7  ;;  %v480_v7 = vld [vmem:[%s4713_s5 + $0x7e8] sm:$0xff] }
  0x7b   : > { %355 = vst [vmem:[%s4718_s6 + $0x200] sm:$0xff] %v354_v8  ;;  %v482_v8 = vld [vmem:[%s4713_s5 + $0x800] sm:$0xff] }
  0x7c   : > { %357 = vst [vmem:[%s4718_s6 + $0x208] sm:$0xff] %v356_v9  ;;  %v484_v9 = vld [vmem:[%s4713_s5 + $0x808] sm:$0xff] }
  0x7d   : > { %359 = vst [vmem:[%s4718_s6 + $0x210] sm:$0xff] %v358_v10  ;;  %v486_v10 = vld [vmem:[%s4713_s5 + $0x820] sm:$0xff] }
  0x7e   : > { %361 = vst [vmem:[%s4718_s6 + $0x218] sm:$0xff] %v360_v11  ;;  %v488_v11 = vld [vmem:[%s4713_s5 + $0x828] sm:$0xff] }
  0x7f   : > { %363 = vst [vmem:[%s4718_s6 + $0x220] sm:$0xff] %v362_v12  ;;  %v490_v12 = vld [vmem:[%s4713_s5 + $0x840] sm:$0xff] }
  0x80   : > { %365 = vst [vmem:[%s4718_s6 + $0x228] sm:$0xff] %v364_v13  ;;  %v492_v13 = vld [vmem:[%s4713_s5 + $0x848] sm:$0xff] }
  0x81   : > { %367 = vst [vmem:[%s4718_s6 + $0x230] sm:$0xff] %v366_v14  ;;  %v494_v14 = vld [vmem:[%s4713_s5 + $0x860] sm:$0xff] }
  0x82   : > { %369 = vst [vmem:[%s4718_s6 + $0x238] sm:$0xff] %v368_v15  ;;  %v496_v15 = vld [vmem:[%s4713_s5 + $0x868] sm:$0xff] }
  0x83   : > { %371 = vst [vmem:[%s4718_s6 + $0x240] sm:$0xff] %v370_v16  ;;  %v498_v16 = vld [vmem:[%s4713_s5 + $0x880] sm:$0xff] }
  0x84   : > { %373 = vst [vmem:[%s4718_s6 + $0x248] sm:$0xff] %v372_v17  ;;  %v500_v17 = vld [vmem:[%s4713_s5 + $0x888] sm:$0xff] }
  0x85   : > { %375 = vst [vmem:[%s4718_s6 + $0x250] sm:$0xff] %v374_v18  ;;  %v502_v18 = vld [vmem:[%s4713_s5 + $0x8a0] sm:$0xff] }
  0x86   : > { %377 = vst [vmem:[%s4718_s6 + $0x258] sm:$0xff] %v376_v19  ;;  %v504_v19 = vld [vmem:[%s4713_s5 + $0x8a8] sm:$0xff] }
  0x87   : > { %379 = vst [vmem:[%s4718_s6 + $0x260] sm:$0xff] %v378_v20  ;;  %v506_v20 = vld [vmem:[%s4713_s5 + $0x8c0] sm:$0xff] }
  0x88   : > { %381 = vst [vmem:[%s4718_s6 + $0x268] sm:$0xff] %v380_v21  ;;  %v508_v21 = vld [vmem:[%s4713_s5 + $0x8c8] sm:$0xff] }
  0x89   : > { %383 = vst [vmem:[%s4718_s6 + $0x270] sm:$0xff] %v382_v22  ;;  %v510_v22 = vld [vmem:[%s4713_s5 + $0x8e0] sm:$0xff] }
  0x8a   : > { %385 = vst [vmem:[%s4718_s6 + $0x278] sm:$0xff] %v384_v23  ;;  %v512_v23 = vld [vmem:[%s4713_s5 + $0x8e8] sm:$0xff] }
  0x8b   : > { %387 = vst [vmem:[%s4718_s6 + $0x280] sm:$0xff] %v386_v24  ;;  %v514_v24 = vld [vmem:[%s4713_s5 + $0x900] sm:$0xff] }
  0x8c   : > { %389 = vst [vmem:[%s4718_s6 + $0x288] sm:$0xff] %v388_v25  ;;  %v516_v25 = vld [vmem:[%s4713_s5 + $0x908] sm:$0xff] }
  0x8d   : > { %391 = vst [vmem:[%s4718_s6 + $0x290] sm:$0xff] %v390_v26  ;;  %v518_v26 = vld [vmem:[%s4713_s5 + $0x920] sm:$0xff] }
  0x8e   : > { %393 = vst [vmem:[%s4718_s6 + $0x298] sm:$0xff] %v392_v27  ;;  %v520_v27 = vld [vmem:[%s4713_s5 + $0x928] sm:$0xff] }
  0x8f   : > { %395 = vst [vmem:[%s4718_s6 + $0x2a0] sm:$0xff] %v394_v28  ;;  %v522_v28 = vld [vmem:[%s4713_s5 + $0x940] sm:$0xff] }
  0x90   : > { %397 = vst [vmem:[%s4718_s6 + $0x2a8] sm:$0xff] %v396_v29  ;;  %v524_v29 = vld [vmem:[%s4713_s5 + $0x948] sm:$0xff] }
  0x91   : > { %399 = vst [vmem:[%s4718_s6 + $0x2b0] sm:$0xff] %v398_v30  ;;  %v526_v30 = vld [vmem:[%s4713_s5 + $0x960] sm:$0xff] }
  0x92   : > { %401 = vst [vmem:[%s4718_s6 + $0x2b8] sm:$0xff] %v400_v31  ;;  %v528_v31 = vld [vmem:[%s4713_s5 + $0x968] sm:$0xff] }
  0x93   : > { %403 = vst [vmem:[%s4718_s6 + $0x2c0] sm:$0xff] %v402_v32  ;;  %v530_v32 = vld [vmem:[%s4713_s5 + $0x980] sm:$0xff] }
  0x94   : > { %405 = vst [vmem:[%s4718_s6 + $0x2c8] sm:$0xff] %v404_v33  ;;  %v532_v33 = vld [vmem:[%s4713_s5 + $0x988] sm:$0xff] }
  0x95   : > { %407 = vst [vmem:[%s4718_s6 + $0x2d0] sm:$0xff] %v406_v34  ;;  %v534_v34 = vld [vmem:[%s4713_s5 + $0x9a0] sm:$0xff] }
  0x96   : > { %409 = vst [vmem:[%s4718_s6 + $0x2d8] sm:$0xff] %v408_v35  ;;  %v536_v35 = vld [vmem:[%s4713_s5 + $0x9a8] sm:$0xff] }
  0x97   : > { %411 = vst [vmem:[%s4718_s6 + $0x2e0] sm:$0xff] %v410_v36  ;;  %v538_v36 = vld [vmem:[%s4713_s5 + $0x9c0] sm:$0xff] }
  0x98   : > { %413 = vst [vmem:[%s4718_s6 + $0x2e8] sm:$0xff] %v412_v37  ;;  %v540_v37 = vld [vmem:[%s4713_s5 + $0x9c8] sm:$0xff] }
  0x99   : > { %415 = vst [vmem:[%s4718_s6 + $0x2f0] sm:$0xff] %v414_v38  ;;  %v542_v38 = vld [vmem:[%s4713_s5 + $0x9e0] sm:$0xff] }
  0x9a   : > { %417 = vst [vmem:[%s4718_s6 + $0x2f8] sm:$0xff] %v416_v39  ;;  %v544_v39 = vld [vmem:[%s4713_s5 + $0x9e8] sm:$0xff] }
  0x9b   : > { %419 = vst [vmem:[%s4718_s6 + $0x300] sm:$0xff] %v418_v40  ;;  %v546_v40 = vld [vmem:[%s4713_s5 + $0xa00] sm:$0xff] }
  0x9c   : > { %421 = vst [vmem:[%s4718_s6 + $0x308] sm:$0xff] %v420_v41  ;;  %v548_v41 = vld [vmem:[%s4713_s5 + $0xa08] sm:$0xff] }
  0x9d   : > { %423 = vst [vmem:[%s4718_s6 + $0x310] sm:$0xff] %v422_v42  ;;  %v550_v42 = vld [vmem:[%s4713_s5 + $0xa20] sm:$0xff] }
  0x9e   : > { %425 = vst [vmem:[%s4718_s6 + $0x318] sm:$0xff] %v424_v43  ;;  %v552_v43 = vld [vmem:[%s4713_s5 + $0xa28] sm:$0xff] }
  0x9f   : > { %427 = vst [vmem:[%s4718_s6 + $0x320] sm:$0xff] %v426_v44  ;;  %v554_v44 = vld [vmem:[%s4713_s5 + $0xa40] sm:$0xff] }
  0xa0   : > { %429 = vst [vmem:[%s4718_s6 + $0x328] sm:$0xff] %v428_v45  ;;  %v556_v45 = vld [vmem:[%s4713_s5 + $0xa48] sm:$0xff] }
  0xa1   : > { %431 = vst [vmem:[%s4718_s6 + $0x330] sm:$0xff] %v430_v46  ;;  %v558_v46 = vld [vmem:[%s4713_s5 + $0xa60] sm:$0xff] }
  0xa2   : > { %433 = vst [vmem:[%s4718_s6 + $0x338] sm:$0xff] %v432_v47  ;;  %v560_v47 = vld [vmem:[%s4713_s5 + $0xa68] sm:$0xff] }
  0xa3   : > { %435 = vst [vmem:[%s4718_s6 + $0x340] sm:$0xff] %v434_v48  ;;  %v562_v48 = vld [vmem:[%s4713_s5 + $0xa80] sm:$0xff] }
  0xa4   : > { %437 = vst [vmem:[%s4718_s6 + $0x348] sm:$0xff] %v436_v49  ;;  %v564_v49 = vld [vmem:[%s4713_s5 + $0xa88] sm:$0xff] }
  0xa5   : > { %439 = vst [vmem:[%s4718_s6 + $0x350] sm:$0xff] %v438_v50  ;;  %v566_v50 = vld [vmem:[%s4713_s5 + $0xaa0] sm:$0xff] }
  0xa6   : > { %441 = vst [vmem:[%s4718_s6 + $0x358] sm:$0xff] %v440_v51  ;;  %v568_v51 = vld [vmem:[%s4713_s5 + $0xaa8] sm:$0xff] }
  0xa7   : > { %443 = vst [vmem:[%s4718_s6 + $0x360] sm:$0xff] %v442_v52  ;;  %v570_v52 = vld [vmem:[%s4713_s5 + $0xac0] sm:$0xff] }
  0xa8   : > { %445 = vst [vmem:[%s4718_s6 + $0x368] sm:$0xff] %v444_v53  ;;  %v572_v53 = vld [vmem:[%s4713_s5 + $0xac8] sm:$0xff] }
  0xa9   : > { %447 = vst [vmem:[%s4718_s6 + $0x370] sm:$0xff] %v446_v54  ;;  %v574_v54 = vld [vmem:[%s4713_s5 + $0xae0] sm:$0xff] }
  0xaa   : > { %449 = vst [vmem:[%s4718_s6 + $0x378] sm:$0xff] %v448_v55  ;;  %v576_v55 = vld [vmem:[%s4713_s5 + $0xae8] sm:$0xff] }
  0xab   : > { %451 = vst [vmem:[%s4718_s6 + $0x380] sm:$0xff] %v450_v56  ;;  %v578_v56 = vld [vmem:[%s4713_s5 + $0xb00] sm:$0xff] }
  0xac   : > { %453 = vst [vmem:[%s4718_s6 + $0x388] sm:$0xff] %v452_v57  ;;  %v580_v57 = vld [vmem:[%s4713_s5 + $0xb08] sm:$0xff] }
  0xad   : > { %455 = vst [vmem:[%s4718_s6 + $0x390] sm:$0xff] %v454_v58  ;;  %v582_v58 = vld [vmem:[%s4713_s5 + $0xb20] sm:$0xff] }
  0xae   : > { %457 = vst [vmem:[%s4718_s6 + $0x398] sm:$0xff] %v456_v59  ;;  %v584_v59 = vld [vmem:[%s4713_s5 + $0xb28] sm:$0xff] }
  0xaf   : > { %459 = vst [vmem:[%s4718_s6 + $0x3a0] sm:$0xff] %v458_v60  ;;  %v586_v60 = vld [vmem:[%s4713_s5 + $0xb40] sm:$0xff] }
  0xb0   : > { %461 = vst [vmem:[%s4718_s6 + $0x3a8] sm:$0xff] %v460_v61  ;;  %v588_v61 = vld [vmem:[%s4713_s5 + $0xb48] sm:$0xff] }
  0xb1   : > { %463 = vst [vmem:[%s4718_s6 + $0x3b0] sm:$0xff] %v462_v62  ;;  %v590_v62 = vld [vmem:[%s4713_s5 + $0xb60] sm:$0xff] }
  0xb2   : > { %465 = vst [vmem:[%s4718_s6 + $0x3b8] sm:$0xff] %v464_v63  ;;  %v592_v63 = vld [vmem:[%s4713_s5 + $0xb68] sm:$0xff] }
  0xb3   : > { %467 = vst [vmem:[%s4718_s6 + $0x3c0] sm:$0xff] %v466_v0  ;;  %v594_v0 = vld [vmem:[%s4713_s5 + $0xb80] sm:$0xff] }
  0xb4   : > { %469 = vst [vmem:[%s4718_s6 + $0x3c8] sm:$0xff] %v468_v1  ;;  %v596_v1 = vld [vmem:[%s4713_s5 + $0xb88] sm:$0xff] }
  0xb5   : > { %471 = vst [vmem:[%s4718_s6 + $0x3d0] sm:$0xff] %v470_v2  ;;  %v598_v2 = vld [vmem:[%s4713_s5 + $0xba0] sm:$0xff] }
  0xb6   : > { %473 = vst [vmem:[%s4718_s6 + $0x3d8] sm:$0xff] %v472_v3  ;;  %v600_v3 = vld [vmem:[%s4713_s5 + $0xba8] sm:$0xff] }
  0xb7   : > { %475 = vst [vmem:[%s4718_s6 + $0x3e0] sm:$0xff] %v474_v4  ;;  %v602_v4 = vld [vmem:[%s4713_s5 + $0xbc0] sm:$0xff] }
  0xb8   : > { %477 = vst [vmem:[%s4718_s6 + $0x3e8] sm:$0xff] %v476_v5  ;;  %v604_v5 = vld [vmem:[%s4713_s5 + $0xbc8] sm:$0xff] }
  0xb9   : > { %479 = vst [vmem:[%s4718_s6 + $0x3f0] sm:$0xff] %v478_v6  ;;  %v606_v6 = vld [vmem:[%s4713_s5 + $0xbe0] sm:$0xff] }
  0xba   : > { %481 = vst [vmem:[%s4718_s6 + $0x3f8] sm:$0xff] %v480_v7  ;;  %v608_v7 = vld [vmem:[%s4713_s5 + $0xbe8] sm:$0xff] }
  0xbb   : > { %483 = vst [vmem:[%s4718_s6 + $0x400] sm:$0xff] %v482_v8  ;;  %v610_v8 = vld [vmem:[%s4713_s5 + $0xc00] sm:$0xff] }
  0xbc   : > { %485 = vst [vmem:[%s4718_s6 + $0x408] sm:$0xff] %v484_v9  ;;  %v612_v9 = vld [vmem:[%s4713_s5 + $0xc08] sm:$0xff] }
  0xbd   : > { %487 = vst [vmem:[%s4718_s6 + $0x410] sm:$0xff] %v486_v10  ;;  %v614_v10 = vld [vmem:[%s4713_s5 + $0xc20] sm:$0xff] }
  0xbe   : > { %489 = vst [vmem:[%s4718_s6 + $0x418] sm:$0xff] %v488_v11  ;;  %v616_v11 = vld [vmem:[%s4713_s5 + $0xc28] sm:$0xff] }
  0xbf   : > { %491 = vst [vmem:[%s4718_s6 + $0x420] sm:$0xff] %v490_v12  ;;  %v618_v12 = vld [vmem:[%s4713_s5 + $0xc40] sm:$0xff] }
  0xc0   : > { %493 = vst [vmem:[%s4718_s6 + $0x428] sm:$0xff] %v492_v13  ;;  %v620_v13 = vld [vmem:[%s4713_s5 + $0xc48] sm:$0xff] }
  0xc1   : > { %495 = vst [vmem:[%s4718_s6 + $0x430] sm:$0xff] %v494_v14  ;;  %v622_v14 = vld [vmem:[%s4713_s5 + $0xc60] sm:$0xff] }
  0xc2   : > { %497 = vst [vmem:[%s4718_s6 + $0x438] sm:$0xff] %v496_v15  ;;  %v624_v15 = vld [vmem:[%s4713_s5 + $0xc68] sm:$0xff] }
  0xc3   : > { %499 = vst [vmem:[%s4718_s6 + $0x440] sm:$0xff] %v498_v16  ;;  %v626_v16 = vld [vmem:[%s4713_s5 + $0xc80] sm:$0xff] }
  0xc4   : > { %501 = vst [vmem:[%s4718_s6 + $0x448] sm:$0xff] %v500_v17  ;;  %v628_v17 = vld [vmem:[%s4713_s5 + $0xc88] sm:$0xff] }
  0xc5   : > { %503 = vst [vmem:[%s4718_s6 + $0x450] sm:$0xff] %v502_v18  ;;  %v630_v18 = vld [vmem:[%s4713_s5 + $0xca0] sm:$0xff] }
  0xc6   : > { %505 = vst [vmem:[%s4718_s6 + $0x458] sm:$0xff] %v504_v19  ;;  %v632_v19 = vld [vmem:[%s4713_s5 + $0xca8] sm:$0xff] }
  0xc7   : > { %507 = vst [vmem:[%s4718_s6 + $0x460] sm:$0xff] %v506_v20  ;;  %v634_v20 = vld [vmem:[%s4713_s5 + $0xcc0] sm:$0xff] }
  0xc8   : > { %509 = vst [vmem:[%s4718_s6 + $0x468] sm:$0xff] %v508_v21  ;;  %v636_v21 = vld [vmem:[%s4713_s5 + $0xcc8] sm:$0xff] }
  0xc9   : > { %511 = vst [vmem:[%s4718_s6 + $0x470] sm:$0xff] %v510_v22  ;;  %v638_v22 = vld [vmem:[%s4713_s5 + $0xce0] sm:$0xff] }
  0xca   : > { %513 = vst [vmem:[%s4718_s6 + $0x478] sm:$0xff] %v512_v23  ;;  %v640_v23 = vld [vmem:[%s4713_s5 + $0xce8] sm:$0xff] }
  0xcb   : > { %515 = vst [vmem:[%s4718_s6 + $0x480] sm:$0xff] %v514_v24  ;;  %v642_v24 = vld [vmem:[%s4713_s5 + $0xd00] sm:$0xff] }
  0xcc   : > { %517 = vst [vmem:[%s4718_s6 + $0x488] sm:$0xff] %v516_v25  ;;  %v644_v25 = vld [vmem:[%s4713_s5 + $0xd08] sm:$0xff] }
  0xcd   : > { %519 = vst [vmem:[%s4718_s6 + $0x490] sm:$0xff] %v518_v26  ;;  %v646_v26 = vld [vmem:[%s4713_s5 + $0xd20] sm:$0xff] }
  0xce   : > { %521 = vst [vmem:[%s4718_s6 + $0x498] sm:$0xff] %v520_v27  ;;  %v648_v27 = vld [vmem:[%s4713_s5 + $0xd28] sm:$0xff] }
  0xcf   : > { %523 = vst [vmem:[%s4718_s6 + $0x4a0] sm:$0xff] %v522_v28  ;;  %v650_v28 = vld [vmem:[%s4713_s5 + $0xd40] sm:$0xff] }
  0xd0   : > { %525 = vst [vmem:[%s4718_s6 + $0x4a8] sm:$0xff] %v524_v29  ;;  %v652_v29 = vld [vmem:[%s4713_s5 + $0xd48] sm:$0xff] }
  0xd1   : > { %527 = vst [vmem:[%s4718_s6 + $0x4b0] sm:$0xff] %v526_v30  ;;  %v654_v30 = vld [vmem:[%s4713_s5 + $0xd60] sm:$0xff] }
  0xd2   : > { %529 = vst [vmem:[%s4718_s6 + $0x4b8] sm:$0xff] %v528_v31  ;;  %v656_v31 = vld [vmem:[%s4713_s5 + $0xd68] sm:$0xff] }
  0xd3   : > { %531 = vst [vmem:[%s4718_s6 + $0x4c0] sm:$0xff] %v530_v32  ;;  %v658_v32 = vld [vmem:[%s4713_s5 + $0xd80] sm:$0xff] }
  0xd4   : > { %533 = vst [vmem:[%s4718_s6 + $0x4c8] sm:$0xff] %v532_v33  ;;  %v660_v33 = vld [vmem:[%s4713_s5 + $0xd88] sm:$0xff] }
  0xd5   : > { %535 = vst [vmem:[%s4718_s6 + $0x4d0] sm:$0xff] %v534_v34  ;;  %v662_v34 = vld [vmem:[%s4713_s5 + $0xda0] sm:$0xff] }
  0xd6   : > { %537 = vst [vmem:[%s4718_s6 + $0x4d8] sm:$0xff] %v536_v35  ;;  %v664_v35 = vld [vmem:[%s4713_s5 + $0xda8] sm:$0xff] }
  0xd7   : > { %539 = vst [vmem:[%s4718_s6 + $0x4e0] sm:$0xff] %v538_v36  ;;  %v666_v36 = vld [vmem:[%s4713_s5 + $0xdc0] sm:$0xff] }
  0xd8   : > { %541 = vst [vmem:[%s4718_s6 + $0x4e8] sm:$0xff] %v540_v37  ;;  %v668_v37 = vld [vmem:[%s4713_s5 + $0xdc8] sm:$0xff] }
  0xd9   : > { %543 = vst [vmem:[%s4718_s6 + $0x4f0] sm:$0xff] %v542_v38  ;;  %v670_v38 = vld [vmem:[%s4713_s5 + $0xde0] sm:$0xff] }
  0xda   : > { %545 = vst [vmem:[%s4718_s6 + $0x4f8] sm:$0xff] %v544_v39  ;;  %v672_v39 = vld [vmem:[%s4713_s5 + $0xde8] sm:$0xff] }
  0xdb   : > { %547 = vst [vmem:[%s4718_s6 + $0x500] sm:$0xff] %v546_v40  ;;  %v674_v40 = vld [vmem:[%s4713_s5 + $0xe00] sm:$0xff] }
  0xdc   : > { %549 = vst [vmem:[%s4718_s6 + $0x508] sm:$0xff] %v548_v41  ;;  %v676_v41 = vld [vmem:[%s4713_s5 + $0xe08] sm:$0xff] }
  0xdd   : > { %551 = vst [vmem:[%s4718_s6 + $0x510] sm:$0xff] %v550_v42  ;;  %v678_v42 = vld [vmem:[%s4713_s5 + $0xe20] sm:$0xff] }
  0xde   : > { %553 = vst [vmem:[%s4718_s6 + $0x518] sm:$0xff] %v552_v43  ;;  %v680_v43 = vld [vmem:[%s4713_s5 + $0xe28] sm:$0xff] }
  0xdf   : > { %555 = vst [vmem:[%s4718_s6 + $0x520] sm:$0xff] %v554_v44  ;;  %v682_v44 = vld [vmem:[%s4713_s5 + $0xe40] sm:$0xff] }
  0xe0   : > { %557 = vst [vmem:[%s4718_s6 + $0x528] sm:$0xff] %v556_v45  ;;  %v684_v45 = vld [vmem:[%s4713_s5 + $0xe48] sm:$0xff] }
  0xe1   : > { %559 = vst [vmem:[%s4718_s6 + $0x530] sm:$0xff] %v558_v46  ;;  %v686_v46 = vld [vmem:[%s4713_s5 + $0xe60] sm:$0xff] }
  0xe2   : > { %561 = vst [vmem:[%s4718_s6 + $0x538] sm:$0xff] %v560_v47  ;;  %v688_v47 = vld [vmem:[%s4713_s5 + $0xe68] sm:$0xff] }
  0xe3   : > { %563 = vst [vmem:[%s4718_s6 + $0x540] sm:$0xff] %v562_v48  ;;  %v690_v48 = vld [vmem:[%s4713_s5 + $0xe80] sm:$0xff] }
  0xe4   : > { %565 = vst [vmem:[%s4718_s6 + $0x548] sm:$0xff] %v564_v49  ;;  %v692_v49 = vld [vmem:[%s4713_s5 + $0xe88] sm:$0xff] }
  0xe5   : > { %567 = vst [vmem:[%s4718_s6 + $0x550] sm:$0xff] %v566_v50  ;;  %v694_v50 = vld [vmem:[%s4713_s5 + $0xea0] sm:$0xff] }
  0xe6   : > { %569 = vst [vmem:[%s4718_s6 + $0x558] sm:$0xff] %v568_v51  ;;  %v696_v51 = vld [vmem:[%s4713_s5 + $0xea8] sm:$0xff] }
  0xe7   : > { %571 = vst [vmem:[%s4718_s6 + $0x560] sm:$0xff] %v570_v52  ;;  %v698_v52 = vld [vmem:[%s4713_s5 + $0xec0] sm:$0xff] }
  0xe8   : > { %573 = vst [vmem:[%s4718_s6 + $0x568] sm:$0xff] %v572_v53  ;;  %v700_v53 = vld [vmem:[%s4713_s5 + $0xec8] sm:$0xff] }
  0xe9   : > { %575 = vst [vmem:[%s4718_s6 + $0x570] sm:$0xff] %v574_v54  ;;  %v702_v54 = vld [vmem:[%s4713_s5 + $0xee0] sm:$0xff] }
  0xea   : > { %577 = vst [vmem:[%s4718_s6 + $0x578] sm:$0xff] %v576_v55  ;;  %v704_v55 = vld [vmem:[%s4713_s5 + $0xee8] sm:$0xff] }
  0xeb   : > { %579 = vst [vmem:[%s4718_s6 + $0x580] sm:$0xff] %v578_v56  ;;  %v706_v56 = vld [vmem:[%s4713_s5 + $0xf00] sm:$0xff] }
  0xec   : > { %581 = vst [vmem:[%s4718_s6 + $0x588] sm:$0xff] %v580_v57  ;;  %v708_v57 = vld [vmem:[%s4713_s5 + $0xf08] sm:$0xff] }
  0xed   : > { %583 = vst [vmem:[%s4718_s6 + $0x590] sm:$0xff] %v582_v58  ;;  %v710_v58 = vld [vmem:[%s4713_s5 + $0xf20] sm:$0xff] }
  0xee   : > { %585 = vst [vmem:[%s4718_s6 + $0x598] sm:$0xff] %v584_v59  ;;  %v712_v59 = vld [vmem:[%s4713_s5 + $0xf28] sm:$0xff] }
  0xef   : > { %587 = vst [vmem:[%s4718_s6 + $0x5a0] sm:$0xff] %v586_v60  ;;  %v714_v60 = vld [vmem:[%s4713_s5 + $0xf40] sm:$0xff] }
  0xf0   : > { %589 = vst [vmem:[%s4718_s6 + $0x5a8] sm:$0xff] %v588_v61  ;;  %v716_v61 = vld [vmem:[%s4713_s5 + $0xf48] sm:$0xff] }
  0xf1   : > { %591 = vst [vmem:[%s4718_s6 + $0x5b0] sm:$0xff] %v590_v62  ;;  %v718_v62 = vld [vmem:[%s4713_s5 + $0xf60] sm:$0xff] }
  0xf2   : > { %593 = vst [vmem:[%s4718_s6 + $0x5b8] sm:$0xff] %v592_v63  ;;  %v720_v63 = vld [vmem:[%s4713_s5 + $0xf68] sm:$0xff] }
  0xf3   : > { %595 = vst [vmem:[%s4718_s6 + $0x5c0] sm:$0xff] %v594_v0  ;;  %v722_v0 = vld [vmem:[%s4713_s5 + $0xf80] sm:$0xff] }
  0xf4   : > { %597 = vst [vmem:[%s4718_s6 + $0x5c8] sm:$0xff] %v596_v1  ;;  %v724_v1 = vld [vmem:[%s4713_s5 + $0xf88] sm:$0xff] }
  0xf5   : > { %599 = vst [vmem:[%s4718_s6 + $0x5d0] sm:$0xff] %v598_v2  ;;  %v726_v2 = vld [vmem:[%s4713_s5 + $0xfa0] sm:$0xff] }
  0xf6   : > { %601 = vst [vmem:[%s4718_s6 + $0x5d8] sm:$0xff] %v600_v3  ;;  %v728_v3 = vld [vmem:[%s4713_s5 + $0xfa8] sm:$0xff] }
  0xf7   : > { %603 = vst [vmem:[%s4718_s6 + $0x5e0] sm:$0xff] %v602_v4  ;;  %v730_v4 = vld [vmem:[%s4713_s5 + $0xfc0] sm:$0xff] }
  0xf8   : > { %605 = vst [vmem:[%s4718_s6 + $0x5e8] sm:$0xff] %v604_v5  ;;  %v732_v5 = vld [vmem:[%s4713_s5 + $0xfc8] sm:$0xff] }
  0xf9   : > { %607 = vst [vmem:[%s4718_s6 + $0x5f0] sm:$0xff] %v606_v6  ;;  %v734_v6 = vld [vmem:[%s4713_s5 + $0xfe0] sm:$0xff] }
  0xfa   : > { %609 = vst [vmem:[%s4718_s6 + $0x5f8] sm:$0xff] %v608_v7  ;;  %v736_v7 = vld [vmem:[%s4713_s5 + $0xfe8] sm:$0xff] }
  0xfb   : > { %611 = vst [vmem:[%s4718_s6 + $0x600] sm:$0xff] %v610_v8 }
  0xfc   : > { %613 = vst [vmem:[%s4718_s6 + $0x608] sm:$0xff] %v612_v9 }
  0xfd   : > { %615 = vst [vmem:[%s4718_s6 + $0x610] sm:$0xff] %v614_v10 }
  0xfe   : > { %617 = vst [vmem:[%s4718_s6 + $0x618] sm:$0xff] %v616_v11 }
  0xff   : > { %619 = vst [vmem:[%s4718_s6 + $0x620] sm:$0xff] %v618_v12 }
 0x100   : > { %621 = vst [vmem:[%s4718_s6 + $0x628] sm:$0xff] %v620_v13 }
 0x101   : > { %623 = vst [vmem:[%s4718_s6 + $0x630] sm:$0xff] %v622_v14 }
 0x102   : > { %625 = vst [vmem:[%s4718_s6 + $0x638] sm:$0xff] %v624_v15 }
 0x103   : > { %627 = vst [vmem:[%s4718_s6 + $0x640] sm:$0xff] %v626_v16 }
 0x104   : > { %629 = vst [vmem:[%s4718_s6 + $0x648] sm:$0xff] %v628_v17 }
 0x105   : > { %631 = vst [vmem:[%s4718_s6 + $0x650] sm:$0xff] %v630_v18 }
 0x106   : > { %633 = vst [vmem:[%s4718_s6 + $0x658] sm:$0xff] %v632_v19 }
 0x107   : > { %635 = vst [vmem:[%s4718_s6 + $0x660] sm:$0xff] %v634_v20 }
 0x108   : > { %637 = vst [vmem:[%s4718_s6 + $0x668] sm:$0xff] %v636_v21 }
 0x109   : > { %639 = vst [vmem:[%s4718_s6 + $0x670] sm:$0xff] %v638_v22 }
 0x10a   : > { %641 = vst [vmem:[%s4718_s6 + $0x678] sm:$0xff] %v640_v23 }
 0x10b   : > { %643 = vst [vmem:[%s4718_s6 + $0x680] sm:$0xff] %v642_v24 }
 0x10c   : > { %645 = vst [vmem:[%s4718_s6 + $0x688] sm:$0xff] %v644_v25 }
 0x10d   : > { %647 = vst [vmem:[%s4718_s6 + $0x690] sm:$0xff] %v646_v26 }
 0x10e   : > { %649 = vst [vmem:[%s4718_s6 + $0x698] sm:$0xff] %v648_v27 }
 0x10f   : > { %651 = vst [vmem:[%s4718_s6 + $0x6a0] sm:$0xff] %v650_v28 }
 0x110   : > { %653 = vst [vmem:[%s4718_s6 + $0x6a8] sm:$0xff] %v652_v29 }
 0x111   : > { %655 = vst [vmem:[%s4718_s6 + $0x6b0] sm:$0xff] %v654_v30 }
 0x112   : > { %657 = vst [vmem:[%s4718_s6 + $0x6b8] sm:$0xff] %v656_v31 }
 0x113   : > { %659 = vst [vmem:[%s4718_s6 + $0x6c0] sm:$0xff] %v658_v32 }
 0x114   : > { %661 = vst [vmem:[%s4718_s6 + $0x6c8] sm:$0xff] %v660_v33 }
 0x115   : > { %663 = vst [vmem:[%s4718_s6 + $0x6d0] sm:$0xff] %v662_v34 }
 0x116   : > { %665 = vst [vmem:[%s4718_s6 + $0x6d8] sm:$0xff] %v664_v35 }
 0x117   : > { %667 = vst [vmem:[%s4718_s6 + $0x6e0] sm:$0xff] %v666_v36 }
 0x118   : > { %669 = vst [vmem:[%s4718_s6 + $0x6e8] sm:$0xff] %v668_v37 }
 0x119   : > { %671 = vst [vmem:[%s4718_s6 + $0x6f0] sm:$0xff] %v670_v38 }
 0x11a   : > { %673 = vst [vmem:[%s4718_s6 + $0x6f8] sm:$0xff] %v672_v39 }
 0x11b   : > { %675 = vst [vmem:[%s4718_s6 + $0x700] sm:$0xff] %v674_v40 }
 0x11c   : > { %677 = vst [vmem:[%s4718_s6 + $0x708] sm:$0xff] %v676_v41 }
 0x11d   : > { %679 = vst [vmem:[%s4718_s6 + $0x710] sm:$0xff] %v678_v42 }
 0x11e   : > { %681 = vst [vmem:[%s4718_s6 + $0x718] sm:$0xff] %v680_v43 }
 0x11f   : > { %683 = vst [vmem:[%s4718_s6 + $0x720] sm:$0xff] %v682_v44 }
 0x120   : > { %685 = vst [vmem:[%s4718_s6 + $0x728] sm:$0xff] %v684_v45 }
 0x121   : > { %687 = vst [vmem:[%s4718_s6 + $0x730] sm:$0xff] %v686_v46 }
 0x122   : > { %689 = vst [vmem:[%s4718_s6 + $0x738] sm:$0xff] %v688_v47 }
 0x123   : > { %691 = vst [vmem:[%s4718_s6 + $0x740] sm:$0xff] %v690_v48 }
 0x124   : > { %693 = vst [vmem:[%s4718_s6 + $0x748] sm:$0xff] %v692_v49 }
 0x125   : > { %695 = vst [vmem:[%s4718_s6 + $0x750] sm:$0xff] %v694_v50 }
 0x126   : > { %697 = vst [vmem:[%s4718_s6 + $0x758] sm:$0xff] %v696_v51 }
 0x127   : > { %699 = vst [vmem:[%s4718_s6 + $0x760] sm:$0xff] %v698_v52 }
 0x128   : > { %701 = vst [vmem:[%s4718_s6 + $0x768] sm:$0xff] %v700_v53 }
 0x129   : > { %703 = vst [vmem:[%s4718_s6 + $0x770] sm:$0xff] %v702_v54 }
 0x12a   : > { %705 = vst [vmem:[%s4718_s6 + $0x778] sm:$0xff] %v704_v55 }
 0x12b   : > { %707 = vst [vmem:[%s4718_s6 + $0x780] sm:$0xff] %v706_v56 }
 0x12c   : > { %709 = vst [vmem:[%s4718_s6 + $0x788] sm:$0xff] %v708_v57 }
 0x12d   : > { %711 = vst [vmem:[%s4718_s6 + $0x790] sm:$0xff] %v710_v58 }
 0x12e   : > { %713 = vst [vmem:[%s4718_s6 + $0x798] sm:$0xff] %v712_v59 }
 0x12f   : > { %715 = vst [vmem:[%s4718_s6 + $0x7a0] sm:$0xff] %v714_v60 }
 0x130   : > { %717 = vst [vmem:[%s4718_s6 + $0x7a8] sm:$0xff] %v716_v61 }
 0x131   : > { %719 = vst [vmem:[%s4718_s6 + $0x7b0] sm:$0xff] %v718_v62 }
 0x132   : > { %721 = vst [vmem:[%s4718_s6 + $0x7b8] sm:$0xff] %v720_v63 }
 0x133   : > { %723 = vst [vmem:[%s4718_s6 + $0x7c0] sm:$0xff] %v722_v0 }
 0x134   : > { %725 = vst [vmem:[%s4718_s6 + $0x7c8] sm:$0xff] %v724_v1 }
 0x135   : > { %727 = vst [vmem:[%s4718_s6 + $0x7d0] sm:$0xff] %v726_v2 }
 0x136   : > { %729 = vst [vmem:[%s4718_s6 + $0x7d8] sm:$0xff] %v728_v3 }
 0x137   : > { %731 = vst [vmem:[%s4718_s6 + $0x7e0] sm:$0xff] %v730_v4 }
 0x138   : > { %733 = vst [vmem:[%s4718_s6 + $0x7e8] sm:$0xff] %v732_v5 }
 0x139   : > { %735 = vst [vmem:[%s4718_s6 + $0x7f0] sm:$0xff] %v734_v6 }
 0x13a   : > { %737 = vst [vmem:[%s4718_s6 + $0x7f8] sm:$0xff] %v736_v7 }
 0x13b PF: > { %p3066_p0 = scmp.ge.s32.totalorder %s4576_s22, 1  ;;  %p750_p1 = scmp.lt.s32.totalorder %s4576_s22, 19 }
 0x13d   : > { %p751_p2 = pnand %p3066_p0, %p750_p1 }
 0x13e   : > { %s757_s0 = sand.u32 (!%p751_p2), 1, %s4552_s16   ;;  %s764_s23 = sand.u32 (!%p751_p2), 1, %s4544_s14  }
 0x13f   : > { %754 = sbr.rel (%p751_p2) target bundleno = 769 (0x301), region = 70  ;;  %s3067_s28 = sshll.u32 (!%p751_p2), %s757_s0, 6 }
 0x140   : > { %s3068_s7 = sshll.u32 (!%p751_p2), %s764_s23, 11  ;;  %s791_s11 = sand.u32 (!%p751_p2), 1, %s4536_s12  }
 0x141   : > { %s3070_s26 = sshll.u32 (!%p751_p2), %s4564_s19, 2  ;;  %s3069_s27 = sshll.u32 (!%p751_p2), %s791_s11, 5 }
 0x142   : > { %p799_p3 = scmp.lt.s32.totalorder (!%p751_p2), %s3070_s26, 7  ;;  %s5241_s6 = scalar_lea.vmem (!%p751_p2), [#allocation3], %s3067_s28 }
 0x143   : > { %s5243_s1 = scalar_lea.vmem (!%p751_p2), [#allocation4], %s3068_s7  ;;  %s5245_s25 = scalar_lea.vmem (!%p751_p2), [#allocation5], %s3069_s27 }
 0x144   : > { %s5908_s26 = smov (!%p799_p3, %s3070_s26), 7  ;;  %p3071_p4 = scmp.ne.s32.totalorder %s4560_s18, 0 }
 0x145   : > { %s801_s5 = scalar_lea.vmem %s5879_s2, %s5908_s26 }
 0x146   : > { %808 = sbr.rel (%p3071_p4) target bundleno = 340 (0x154), region = 82 }
 0x14b   : > { %v4578_v8 = vmov 0.0  }
 0x14c   : > { %809 = vst [vmem:[#allocation2 + $0x30] sm:$0xff] %v4578_v8 }
 0x14d   : > { %810 = vst [vmem:[#allocation2] sm:$0xff] %v4578_v8 }
 0x14e   : > { %811 = vst [vmem:[#allocation2 + $0x18] sm:$0xff] %v4578_v8 }
 0x14f   : > { %812 = vst [vmem:[#allocation2 + $0x10] sm:$0xff] %v4578_v8 }
 0x150   : > { %813 = vst [vmem:[#allocation2 + $0x8] sm:$0xff] %v4578_v8 }
 0x151   : > { %814 = vst [vmem:[#allocation2 + $0x20] sm:$0xff] %v4578_v8 }
 0x152   : > { %815 = vst [vmem:[#allocation2 + $0x28] sm:$0xff] %v4578_v8 }
 0x153   : > { %816 = vst [vmem:[#allocation2 + $0x38] sm:$0xff] %v4578_v8 }
 0x154 PF: > { %v3218_v9 = vld [vmem:[%s5243_s1 + $0xe0] sm:$0xf]  ;;  %v4174_v10 = vld [vmem:[%s5243_s1 + $0xec] sm:$0xf0]  ;;  %p4128_p5 = scmp.ne.s32.totalorder %s4560_s18, 8 }
 0x155   : > { %v3346_v11 = vld [vmem:[%s5243_s1 + $0x1e0] sm:$0xf]  ;;  %v3219_v12 = vor.u32 %v4174_v10, %v3218_v9  ;;  %v4206_v13 = vld [vmem:[%s5243_s1 + $0x1ec] sm:$0xf0] }
 0x156   : > { %v3474_v14 = vld [vmem:[%s5243_s1 + $0x2e0] sm:$0xf]  ;;  %v4238_v15 = vld [vmem:[%s5243_s1 + $0x2ec] sm:$0xf0]  ;;  %v3347_v16 = vor.u32 %v4206_v13, %v3346_v11 }
 0x157   : > { %v3475_v17 = vor.u32 %v4238_v15, %v3474_v14  ;;  %v3602_v18 = vld [vmem:[%s5243_s1 + $0x3e0] sm:$0xf]  ;;  %v4270_v19 = vld [vmem:[%s5243_s1 + $0x3ec] sm:$0xf0]  ;;  %2409 = vmatpush.bf16.msra.mxu0 %v3219_v12 }
 0x158   : > { %v3202_v20 = vld [vmem:[%s5243_s1 + $0xc0] sm:$0xf]  ;;  %v3603_v21 = vor.u32 %v4270_v19, %v3602_v18  ;;  %v4170_v22 = vld [vmem:[%s5243_s1 + $0xcc] sm:$0xf0]  ;;  %2423 = vmatpush.bf16.msra.mxu1 %v3347_v16 }
 0x159   : > { %v3330_v23 = vld [vmem:[%s5243_s1 + $0x1c0] sm:$0xf]  ;;  %v4202_v24 = vld [vmem:[%s5243_s1 + $0x1cc] sm:$0xf0]  ;;  %2437 = vmatpush.bf16.msra.mxu2 %v3475_v17  ;;  %v3203_v25 = vor.u32 %v4170_v22, %v3202_v20 }
 0x15a   : > { %v3331_v26 = vor.u32 %v4202_v24, %v3330_v23  ;;  %v3458_v27 = vld [vmem:[%s5243_s1 + $0x2c0] sm:$0xf]  ;;  %v4234_v28 = vld [vmem:[%s5243_s1 + $0x2cc] sm:$0xf0]  ;;  %2451 = vmatpush.bf16.msra.mxu3 %v3603_v21 }
 0x15b   : > { %v3586_v29 = vld [vmem:[%s5243_s1 + $0x3c0] sm:$0xf]  ;;  %v3459_v30 = vor.u32 %v4234_v28, %v3458_v27  ;;  %v4266_v31 = vld [vmem:[%s5243_s1 + $0x3cc] sm:$0xf0]  ;;  %2410 = vmatpush.bf16.msra.mxu0 %v3203_v25 }
 0x15c   : > { %v3186_v32 = vld [vmem:[%s5243_s1 + $0xa0] sm:$0xf]  ;;  %v4166_v33 = vld [vmem:[%s5243_s1 + $0xac] sm:$0xf0]  ;;  %v3587_v34 = vor.u32 %v4266_v31, %v3586_v29  ;;  %2424 = vmatpush.bf16.msra.mxu1 %v3331_v26 }
 0x15d   : > { %v3314_v35 = vld [vmem:[%s5243_s1 + $0x1a0] sm:$0xf]  ;;  %v4198_v36 = vld [vmem:[%s5243_s1 + $0x1ac] sm:$0xf0]  ;;  %v3187_v38 = vor.u32 %v4166_v33, %v3186_v32  ;;  %2438 = vmatpush.bf16.msra.mxu2 %v3459_v30 }
 0x15e   : > { %v3442_v37 = vld [vmem:[%s5243_s1 + $0x2a0] sm:$0xf]  ;;  %v4230_v39 = vld [vmem:[%s5243_s1 + $0x2ac] sm:$0xf0]  ;;  %v3315_v42 = vor.u32 %v4198_v36, %v3314_v35  ;;  %2452 = vmatpush.bf16.msra.mxu3 %v3587_v34 }
 0x15f   : > { %v3570_v40 = vld [vmem:[%s5243_s1 + $0x3a0] sm:$0xf]  ;;  %v4262_v41 = vld [vmem:[%s5243_s1 + $0x3ac] sm:$0xf0]  ;;  %v3443_v43 = vor.u32 %v4230_v39, %v3442_v37  ;;  %2411 = vmatpush.bf16.msra.mxu0 %v3187_v38 }
 0x160   : > { %v3170_v44 = vld [vmem:[%s5243_s1 + $0x80] sm:$0xf]  ;;  %v4162_v45 = vld [vmem:[%s5243_s1 + $0x8c] sm:$0xf0]  ;;  %v3571_v47 = vor.u32 %v4262_v41, %v3570_v40  ;;  %2425 = vmatpush.bf16.msra.mxu1 %v3315_v42 }
 0x161   : > { %v3298_v46 = vld [vmem:[%s5243_s1 + $0x180] sm:$0xf]  ;;  %v4194_v48 = vld [vmem:[%s5243_s1 + $0x18c] sm:$0xf0]  ;;  %v3171_v53 = vor.u32 %v4162_v45, %v3170_v44  ;;  %2439 = vmatpush.bf16.msra.mxu2 %v3443_v43 }
 0x162   : > { %v3426_v49 = vld [vmem:[%s5243_s1 + $0x280] sm:$0xf]  ;;  %v4226_v50 = vld [vmem:[%s5243_s1 + $0x28c] sm:$0xf0]  ;;  %v3299_v54 = vor.u32 %v4194_v48, %v3298_v46  ;;  %2453 = vmatpush.bf16.msra.mxu3 %v3571_v47 }
 0x163   : > { %v3554_v51 = vld [vmem:[%s5243_s1 + $0x380] sm:$0xf]  ;;  %v4258_v52 = vld [vmem:[%s5243_s1 + $0x38c] sm:$0xf0]  ;;  %v3427_v55 = vor.u32 %v4226_v50, %v3426_v49  ;;  %2412 = vmatpush.bf16.msra.mxu0 %v3171_v53 }
 0x164   : > { %v3154_v56 = vld [vmem:[%s5243_s1 + $0x60] sm:$0xf]  ;;  %v4158_v57 = vld [vmem:[%s5243_s1 + $0x6c] sm:$0xf0]  ;;  %v3555_v59 = vor.u32 %v4258_v52, %v3554_v51  ;;  %2426 = vmatpush.bf16.msra.mxu1 %v3299_v54 }
 0x165   : > { %v3282_v58 = vld [vmem:[%s5243_s1 + $0x160] sm:$0xf]  ;;  %v4190_v60 = vld [vmem:[%s5243_s1 + $0x16c] sm:$0xf0]  ;;  %v3155_v1 = vor.u32 %v4158_v57, %v3154_v56  ;;  %2440 = vmatpush.bf16.msra.mxu2 %v3427_v55 }
 0x166   : > { %v3410_v61 = vld [vmem:[%s5243_s1 + $0x260] sm:$0xf]  ;;  %v4222_v62 = vld [vmem:[%s5243_s1 + $0x26c] sm:$0xf0]  ;;  %v3283_v2 = vor.u32 %v4190_v60, %v3282_v58  ;;  %2454 = vmatpush.bf16.msra.mxu3 %v3555_v59 }
 0x167   : > { %v3538_v63 = vld [vmem:[%s5243_s1 + $0x360] sm:$0xf]  ;;  %v4254_v0 = vld [vmem:[%s5243_s1 + $0x36c] sm:$0xf0]  ;;  %v3411_v3 = vor.u32 %v4222_v62, %v3410_v61  ;;  %2413 = vmatpush.bf16.msra.mxu0 %v3155_v1 }
 0x168   : > { %v3138_v4 = vld [vmem:[%s5243_s1 + $0x40] sm:$0xf]  ;;  %v4154_v5 = vld [vmem:[%s5243_s1 + $0x4c] sm:$0xf0]  ;;  %v3539_v7 = vor.u32 %v4254_v0, %v3538_v63  ;;  %2427 = vmatpush.bf16.msra.mxu1 %v3283_v2  ;;  %v3082_v63 = vld [vmem:[%s5241_s6 + $0x8] sm:$0xf] }
 0x169   : > { %v3266_v6 = vld [vmem:[%s5243_s1 + $0x140] sm:$0xf]  ;;  %v4186_v8 = vld [vmem:[%s5243_s1 + $0x14c] sm:$0xf0]  ;;  %v3139_v13 = vor.u32 %v4154_v5, %v3138_v4  ;;  %2441 = vmatpush.bf16.msra.mxu2 %v3411_v3  ;;  %v4141_v4 = vld [vmem:[%s5241_s6 + $0x24] sm:$0xf0] }
 0x16a   : > { %v3394_v9 = vld [vmem:[%s5243_s1 + $0x240] sm:$0xf]  ;;  %v4218_v10 = vld [vmem:[%s5243_s1 + $0x24c] sm:$0xf0]  ;;  %v3267_v14 = vor.u32 %v4186_v8, %v3266_v6  ;;  %2455 = vmatpush.bf16.msra.mxu3 %v3539_v7 }
 0x16b   : > { %v3522_v11 = vld [vmem:[%s5243_s1 + $0x340] sm:$0xf]  ;;  %v4250_v12 = vld [vmem:[%s5243_s1 + $0x34c] sm:$0xf0]  ;;  %v3395_v15 = vor.u32 %v4218_v10, %v3394_v9  ;;  %2414 = vmatpush.bf16.msra.mxu0 %v3139_v13  ;;  %v5339_v10 = vor.u32 %v4141_v4, %v3082_v63 }
 0x16c   : > { %v3122_v16 = vld [vmem:[%s5243_s1 + $0x20] sm:$0xf]  ;;  %v4150_v17 = vld [vmem:[%s5243_s1 + $0x2c] sm:$0xf0]  ;;  %v3523_v19 = vor.u32 %v4250_v12, %v3522_v11  ;;  %2428 = vmatpush.bf16.msra.mxu1 %v3267_v14 }
 0x16d   : > { %v3250_v18 = vld [vmem:[%s5243_s1 + $0x120] sm:$0xf]  ;;  %v4182_v20 = vld [vmem:[%s5243_s1 + $0x12c] sm:$0xf0]  ;;  %v3123_v25 = vor.u32 %v4150_v17, %v3122_v16  ;;  %2442 = vmatpush.bf16.msra.mxu2 %v3395_v15  ;;  %v4136_v15 = vld [vmem:[%s5241_s6 + $0x4] sm:$0xf] }
 0x16e   : > { %v3378_v21 = vld [vmem:[%s5243_s1 + $0x220] sm:$0xf]  ;;  %v4214_v22 = vld [vmem:[%s5243_s1 + $0x22c] sm:$0xf0]  ;;  %v3251_v28 = vor.u32 %v4182_v20, %v3250_v18  ;;  %2456 = vmatpush.bf16.msra.mxu3 %v3523_v19  ;;  %v3076_v16 = vld [vmem:[%s5241_s6 + $0x20] sm:$0xf0] }
 0x16f   : > { %v3506_v23 = vld [vmem:[%s5243_s1 + $0x320] sm:$0xf]  ;;  %v4246_v24 = vld [vmem:[%s5243_s1 + $0x32c] sm:$0xf0]  ;;  %v3379_v29 = vor.u32 %v4214_v22, %v3378_v21  ;;  %2415 = vmatpush.bf16.msra.mxu0 %v3123_v25  ;;  %v4137_v17 = vld [vmem:[%s5241_s6 + $0xc] sm:$0xf]  ;;  %v5349_v19 = vor.u32 %v4136_v15, %v3076_v16 }
 0x170   : > { %v3106_v26 = vld [vmem:[%s5243_s1] sm:$0xf]  ;;  %v4146_v27 = vld [vmem:[%s5243_s1 + $0xc] sm:$0xf0]  ;;  %v3507_v33 = vor.u32 %v4246_v24, %v3506_v23  ;;  %2429 = vmatpush.bf16.msra.mxu1 %v3251_v28  ;;  %v3084_v20 = vld [vmem:[%s5241_s6 + $0x28] sm:$0xf0] }
 0x171   : > { %v3234_v30 = vld [vmem:[%s5243_s1 + $0x100] sm:$0xf]  ;;  %v4178_v31 = vld [vmem:[%s5243_s1 + $0x10c] sm:$0xf0]  ;;  %v3107_v40 = vor.u32 %v4146_v27, %v3106_v26  ;;  %2443 = vmatpush.bf16.msra.mxu2 %v3379_v29  ;;  %v5355_v26 = vor.u32 %v4137_v17, %v3084_v20 }
 0x172   : > { %v3362_v32 = vld [vmem:[%s5243_s1 + $0x200] sm:$0xf]  ;;  %v4210_v34 = vld [vmem:[%s5243_s1 + $0x20c] sm:$0xf0]  ;;  %v3235_v44 = vor.u32 %v4178_v31, %v3234_v30  ;;  %2457 = vmatpush.bf16.msra.mxu3 %v3507_v33 }
 0x173   : > { %v3490_v35 = vld [vmem:[%s5243_s1 + $0x300] sm:$0xf]  ;;  %v4242_v36 = vld [vmem:[%s5243_s1 + $0x30c] sm:$0xf0]  ;;  %v3363_v45 = vor.u32 %v4210_v34, %v3362_v32  ;;  %2416 = vmatpush.bf16.msra.mxu0 %v3107_v40 }
 0x174   : > { %v3730_v37 = vld [vmem:[%s5243_s1 + $0x4e0] sm:$0xf]  ;;  %v4302_v38 = vld [vmem:[%s5243_s1 + $0x4ec] sm:$0xf0]  ;;  %v3491_v48 = vor.u32 %v4242_v36, %v3490_v35  ;;  %2430 = vmatpush.bf16.msra.mxu1 %v3235_v44 }
 0x175   : > { %v3858_v39 = vld [vmem:[%s5243_s1 + $0x5e0] sm:$0xf]  ;;  %v4334_v41 = vld [vmem:[%s5243_s1 + $0x5ec] sm:$0xf0]  ;;  %v3731_v49 = vor.u32 %v4302_v38, %v3730_v37  ;;  %2444 = vmatpush.bf16.msra.mxu2 %v3363_v45 }
 0x176   : > { %v3986_v42 = vld [vmem:[%s5243_s1 + $0x6e0] sm:$0xf]  ;;  %v4366_v43 = vld [vmem:[%s5243_s1 + $0x6ec] sm:$0xf0]  ;;  %v3859_v52 = vor.u32 %v4334_v41, %v3858_v39  ;;  %2458 = vmatpush.bf16.msra.mxu3 %v3491_v48 }
 0x177   : > { %v4114_v46 = vld [vmem:[%s5243_s1 + $0x7e0] sm:$0xf]  ;;  %v4398_v47 = vld [vmem:[%s5243_s1 + $0x7ec] sm:$0xf0]  ;;  %v3987_v53 = vor.u32 %v4366_v43, %v3986_v42  ;;  %2465 = vmatpush.bf16.msrb.mxu0 %v3731_v49  ;;  %2431 = vmatmul.bf16.vlgmr.msra.gmra.mxu1 %v5349_v19 }
 0x178   : > { %v3714_v50 = vld [vmem:[%s5243_s1 + $0x4c0] sm:$0xf]  ;;  %v4298_v51 = vld [vmem:[%s5243_s1 + $0x4cc] sm:$0xf0]  ;;  %v4115_v57 = vor.u32 %v4398_v47, %v4114_v46  ;;  %2479 = vmatpush.bf16.msrb.mxu1 %v3859_v52  ;;  %2445 = vmatmul.bf16.vlgmr.msra.gmra.mxu2 %v5339_v10 }
 0x179   : > { %v3842_v54 = vld [vmem:[%s5243_s1 + $0x5c0] sm:$0xf]  ;;  %v4330_v55 = vld [vmem:[%s5243_s1 + $0x5cc] sm:$0xf0]  ;;  %v3715_v0 = vor.u32 %v4298_v51, %v3714_v50  ;;  %2493 = vmatpush.bf16.msrb.mxu2 %v3987_v53  ;;  %2459 = vmatmul.bf16.vlgmr.msra.gmra.mxu3 %v5355_v26 }
 0x17a   : > { %v3970_v56 = vld [vmem:[%s5243_s1 + $0x6c0] sm:$0xf]  ;;  %v4362_v58 = vld [vmem:[%s5243_s1 + $0x6cc] sm:$0xf0]  ;;  %v3843_v5 = vor.u32 %v4330_v55, %v3842_v54  ;;  %2507 = vmatpush.bf16.msrb.mxu3 %v4115_v57 }
 0x17b   : > { %v4098_v59 = vld [vmem:[%s5243_s1 + $0x7c0] sm:$0xf]  ;;  %v4394_v60 = vld [vmem:[%s5243_s1 + $0x7cc] sm:$0xf0]  ;;  %v3971_v6 = vor.u32 %v4362_v58, %v3970_v56  ;;  %2466 = vmatpush.bf16.msrb.mxu0 %v3715_v0 }
 0x17c   : > { %v3074_v61 = vld [vmem:[%s5241_s6] sm:$0xf]  ;;  %v4294_v2 = vld [vmem:[%s5243_s1 + $0x4ac] sm:$0xf0]  ;;  %v4099_v11 = vor.u32 %v4394_v60, %v4098_v59  ;;  %2480 = vmatpush.bf16.msrb.mxu1 %v3843_v5 }
 0x17d   : > { %v4140_v62 = vld [vmem:[%s5241_s6 + $0x1c] sm:$0xf0]  ;;  %v4326_v8 = vld [vmem:[%s5243_s1 + $0x5ac] sm:$0xf0]  ;;  %2494 = vmatpush.bf16.msrb.mxu2 %v3971_v6 }
 0x17e   : > { %v3698_v1 = vld [vmem:[%s5243_s1 + $0x4a0] sm:$0xf]  ;;  %v5333_v3 = vor.u32 %v4140_v62, %v3074_v61  ;;  %v4358_v12 = vld [vmem:[%s5243_s1 + $0x6ac] sm:$0xf0]  ;;  %2508 = vmatpush.bf16.msrb.mxu3 %v4099_v11 }
 0x17f   : > { %v3826_v7 = vld [vmem:[%s5243_s1 + $0x5a0] sm:$0xf]  ;;  %v4390_v14 = vld [vmem:[%s5243_s1 + $0x7ac] sm:$0xf0]  ;;  %v3699_v18 = vor.u32 %v4294_v2, %v3698_v1 }
 0x180   : > { %v3954_v9 = vld [vmem:[%s5243_s1 + $0x6a0] sm:$0xf]  ;;  %2417 = vmatmul.bf16.vlgmr.msra.gmra.mxu0 %v5333_v3  ;;  %v3827_v21 = vor.u32 %v4326_v8, %v3826_v7  ;;  %v4290_v24 = vld [vmem:[%s5243_s1 + $0x48c] sm:$0xf0] }
 0x181   : > { %v4082_v13 = vld [vmem:[%s5243_s1 + $0x7a0] sm:$0xf]  ;;  %v3955_v22 = vor.u32 %v4358_v12, %v3954_v9  ;;  %v4322_v28 = vld [vmem:[%s5243_s1 + $0x58c] sm:$0xf0]  ;;  %2467 = vmatpush.bf16.msrb.mxu0 %v3699_v18  ;;  %v4172_v18 = vld [vmem:[%s5243_s1 + $0xe4] sm:$0xf] }
 0x182   : > { %v3682_v23 = vld [vmem:[%s5243_s1 + $0x480] sm:$0xf]  ;;  %v4083_v27 = vor.u32 %v4390_v14, %v4082_v13  ;;  %v4354_v30 = vld [vmem:[%s5243_s1 + $0x68c] sm:$0xf0]  ;;  %2481 = vmatpush.bf16.msrb.mxu1 %v3827_v21  ;;  %v3220_v21 = vld [vmem:[%s5243_s1 + $0xf0] sm:$0xf0] }
 0x183   : > { %v3810_v25 = vld [vmem:[%s5243_s1 + $0x580] sm:$0xf]  ;;  %v4386_v32 = vld [vmem:[%s5243_s1 + $0x78c] sm:$0xf0]  ;;  %v3683_v33 = vor.u32 %v4290_v24, %v3682_v23  ;;  %2495 = vmatpush.bf16.msrb.mxu2 %v3955_v22  ;;  %v4204_v22 = vld [vmem:[%s5243_s1 + $0x1e4] sm:$0xf] }
 0x184   : > { %v3938_v29 = vld [vmem:[%s5243_s1 + $0x680] sm:$0xf]  ;;  %v3811_v34 = vor.u32 %v4322_v28, %v3810_v25  ;;  %v4286_v37 = vld [vmem:[%s5243_s1 + $0x46c] sm:$0xf0]  ;;  %2509 = vmatpush.bf16.msrb.mxu3 %v4083_v27  ;;  %v3348_v23 = vld [vmem:[%s5243_s1 + $0x1f0] sm:$0xf0] }
 0x185   : > { %v4066_v31 = vld [vmem:[%s5243_s1 + $0x780] sm:$0xf]  ;;  %v3939_v35 = vor.u32 %v4354_v30, %v3938_v29  ;;  %v4318_v40 = vld [vmem:[%s5243_s1 + $0x56c] sm:$0xf0]  ;;  %2468 = vmatpush.bf16.msrb.mxu0 %v3683_v33  ;;  %v4236_v24 = vld [vmem:[%s5243_s1 + $0x2e4] sm:$0xf] }
 0x186   : > { %v3666_v36 = vld [vmem:[%s5243_s1 + $0x460] sm:$0xf]  ;;  %v4067_v39 = vor.u32 %v4386_v32, %v4066_v31  ;;  %v4350_v42 = vld [vmem:[%s5243_s1 + $0x66c] sm:$0xf0]  ;;  %2482 = vmatpush.bf16.msrb.mxu1 %v3811_v34  ;;  %v3476_v25 = vld [vmem:[%s5243_s1 + $0x2f0] sm:$0xf0] }
 0x187   : > { %v3794_v38 = vld [vmem:[%s5243_s1 + $0x560] sm:$0xf]  ;;  %v4382_v44 = vld [vmem:[%s5243_s1 + $0x76c] sm:$0xf0]  ;;  %v3667_v45 = vor.u32 %v4286_v37, %v3666_v36  ;;  %2496 = vmatpush.bf16.msrb.mxu2 %v3939_v35  ;;  %v4268_v27 = vld [vmem:[%s5243_s1 + $0x3e4] sm:$0xf] }
 0x188   : > { %v3922_v41 = vld [vmem:[%s5243_s1 + $0x660] sm:$0xf]  ;;  %v3795_v46 = vor.u32 %v4318_v40, %v3794_v38  ;;  %v4282_v49 = vld [vmem:[%s5243_s1 + $0x44c] sm:$0xf0]  ;;  %2510 = vmatpush.bf16.msrb.mxu3 %v4067_v39  ;;  %v3604_v29 = vld [vmem:[%s5243_s1 + $0x3f0] sm:$0xf0]  ;;  %v3223_v38 = vor.u32 %v4172_v18, %v3220_v21 }
 0x189   : > { %v4050_v43 = vld [vmem:[%s5243_s1 + $0x760] sm:$0xf]  ;;  %v3923_v47 = vor.u32 %v4350_v42, %v3922_v41  ;;  %v4314_v52 = vld [vmem:[%s5243_s1 + $0x54c] sm:$0xf0]  ;;  %2469 = vmatpush.bf16.msrb.mxu0 %v3667_v45  ;;  %v3098_v34 = vld [vmem:[%s5241_s6 + $0x18] sm:$0xf]  ;;  %v3351_v42 = vor.u32 %v4204_v22, %v3348_v23 }
 0x18a   : > { %v3650_v48 = vld [vmem:[%s5243_s1 + $0x440] sm:$0xf]  ;;  %v4051_v51 = vor.u32 %v4382_v44, %v4050_v43  ;;  %v4346_v54 = vld [vmem:[%s5243_s1 + $0x64c] sm:$0xf0]  ;;  %2483 = vmatpush.bf16.msrb.mxu1 %v3795_v46  ;;  %v4143_v35 = vld [vmem:[%s5241_s6 + $0x34] sm:$0xf0]  ;;  %v3479_v43 = vor.u32 %v4236_v24, %v3476_v25 }
 0x18b   : > { %v3778_v50 = vld [vmem:[%s5243_s1 + $0x540] sm:$0xf]  ;;  %v4378_v56 = vld [vmem:[%s5243_s1 + $0x74c] sm:$0xf0]  ;;  %v3651_v57 = vor.u32 %v4282_v49, %v3650_v48  ;;  %2497 = vmatpush.bf16.msrb.mxu2 %v3923_v47  ;;  %v4138_v36 = vld [vmem:[%s5241_s6 + $0x14] sm:$0xf]  ;;  %v3607_v47 = vor.u32 %v4268_v27, %v3604_v29 }
 0x18c   : > { %v3906_v53 = vld [vmem:[%s5243_s1 + $0x640] sm:$0xf]  ;;  %v3779_v59 = vor.u32 %v4314_v52, %v3778_v50  ;;  %v4278_v61 = vld [vmem:[%s5243_s1 + $0x42c] sm:$0xf0]  ;;  %2511 = vmatpush.bf16.msrb.mxu3 %v4051_v51  ;;  %v3092_v39 = vld [vmem:[%s5241_s6 + $0x30] sm:$0xf0]  ;;  %v5420_v52 = vor.u32 %v4143_v35, %v3098_v34 }
 0x18d   : > { %v4034_v55 = vld [vmem:[%s5243_s1 + $0x740] sm:$0xf]  ;;  %v3907_v60 = vor.u32 %v4346_v54, %v3906_v53  ;;  %v4310_v63 = vld [vmem:[%s5243_s1 + $0x52c] sm:$0xf0]  ;;  %2470 = vmatpush.bf16.msrb.mxu0 %v3651_v57  ;;  %v4139_v40 = vld [vmem:[%s5241_s6 + $0x1c] sm:$0xf]  ;;  %v5422_v53 = vor.u32 %v4138_v36, %v3092_v39 }
 0x18e   : > { %v3634_v58 = vld [vmem:[%s5243_s1 + $0x420] sm:$0xf]  ;;  %v4035_v0 = vor.u32 %v4378_v56, %v4034_v55  ;;  %v4342_v2 = vld [vmem:[%s5243_s1 + $0x62c] sm:$0xf0]  ;;  %2484 = vmatpush.bf16.msrb.mxu1 %v3779_v59  ;;  %v3100_v41 = vld [vmem:[%s5241_s6 + $0x38] sm:$0xf0] }
 0x18f   : > { %v3762_v62 = vld [vmem:[%s5243_s1 + $0x520] sm:$0xf]  ;;  %v4374_v5 = vld [vmem:[%s5243_s1 + $0x72c] sm:$0xf0]  ;;  %v3635_v8 = vor.u32 %v4278_v61, %v3634_v58  ;;  %2498 = vmatpush.bf16.msrb.mxu2 %v3907_v60  ;;  %v4168_v44 = vld [vmem:[%s5243_s1 + $0xc4] sm:$0xf]  ;;  %v5426_v56 = vor.u32 %v4139_v40, %v3100_v41 }
 0x190   : > { %v3890_v1 = vld [vmem:[%s5243_s1 + $0x620] sm:$0xf]  ;;  %v4274_v7 = vld [vmem:[%s5243_s1 + $0x40c] sm:$0xf0]  ;;  %v3763_v14 = vor.u32 %v4310_v63, %v3762_v62  ;;  %2512 = vmatpush.bf16.msrb.mxu3 %v4035_v0  ;;  %v3204_v45 = vld [vmem:[%s5243_s1 + $0xd0] sm:$0xf0] }
 0x191   : > { %v4018_v4 = vld [vmem:[%s5243_s1 + $0x720] sm:$0xf]  ;;  %v4306_v11 = vld [vmem:[%s5243_s1 + $0x50c] sm:$0xf0]  ;;  %v3891_v15 = vor.u32 %v4342_v2, %v3890_v1  ;;  %2471 = vmatpush.bf16.msrb.mxu0 %v3635_v8  ;;  %v4200_v46 = vld [vmem:[%s5243_s1 + $0x1c4] sm:$0xf]  ;;  %v3207_v57 = vor.u32 %v4168_v44, %v3204_v45 }
 0x192   : > { %v3618_v6 = vld [vmem:[%s5243_s1 + $0x400] sm:$0xf]  ;;  %v4338_v13 = vld [vmem:[%s5243_s1 + $0x60c] sm:$0xf0]  ;;  %v4019_v20 = vor.u32 %v4374_v5, %v4018_v4  ;;  %2485 = vmatpush.bf16.msrb.mxu1 %v3763_v14  ;;  %v3332_v49 = vld [vmem:[%s5243_s1 + $0x1d0] sm:$0xf0] }
 0x193   : > { %v3746_v9 = vld [vmem:[%s5243_s1 + $0x500] sm:$0xf]  ;;  %v4370_v17 = vld [vmem:[%s5243_s1 + $0x70c] sm:$0xf0]  ;;  %v3619_v28 = vor.u32 %v4274_v7, %v3618_v6  ;;  %2499 = vmatpush.bf16.msrb.mxu2 %v3891_v15  ;;  %v4232_v50 = vld [vmem:[%s5243_s1 + $0x2c4] sm:$0xf]  ;;  %v3335_v58 = vor.u32 %v4200_v46, %v3332_v49 }
 0x194   : > { %v3874_v12 = vld [vmem:[%s5243_s1 + $0x600] sm:$0xf]  ;;  %v3090_v30 = vld [vmem:[%s5241_s6 + $0x10] sm:$0xf]  ;;  %v3747_v32 = vor.u32 %v4306_v11, %v3746_v9  ;;  %2513 = vmatpush.bf16.msrb.mxu3 %v4019_v20  ;;  %v3460_v51 = vld [vmem:[%s5243_s1 + $0x2d0] sm:$0xf0] }
 0x195   : > { %v4002_v16 = vld [vmem:[%s5243_s1 + $0x700] sm:$0xf]  ;;  %v4142_v31 = vld [vmem:[%s5241_s6 + $0x2c] sm:$0xf0]  ;;  %v3875_v33 = vor.u32 %v4338_v13, %v3874_v12  ;;  %2472 = vmatpush.bf16.msrb.mxu0 %v3619_v28  ;;  %v4264_v54 = vld [vmem:[%s5243_s1 + $0x3c4] sm:$0xf]  ;;  %v3463_v59 = vor.u32 %v4232_v50, %v3460_v51 }
 0x196   : > { %v4003_v37 = vor.u32 %v4370_v17, %v4002_v16  ;;  %v5415_v48 = vor.u32 %v4142_v31, %v3090_v30  ;;  %2486 = vmatpush.bf16.msrb.mxu1 %v3747_v32  ;;  %v3588_v55 = vld [vmem:[%s5243_s1 + $0x3d0] sm:$0xf0]  ;;  %v4164_v60 = vld [vmem:[%s5243_s1 + $0xa4] sm:$0xf] }
 0x197   : > { %2500 = vmatpush.bf16.msrb.mxu2 %v3875_v33  ;;  %v3188_v61 = vld [vmem:[%s5243_s1 + $0xb0] sm:$0xf0]  ;;  %v4196_v62 = vld [vmem:[%s5243_s1 + $0x1a4] sm:$0xf]  ;;  %v3591_v63 = vor.u32 %v4264_v54, %v3588_v55 }
 0x198   : > { %2514 = vmatpush.bf16.msrb.mxu3 %v4003_v37  ;;  %2473 = vmatmul.bf16.vlgmr.msrb.gmra.mxu0 %v5415_v48  ;;  %v3316_v0 = vld [vmem:[%s5243_s1 + $0x1b0] sm:$0xf0]  ;;  %v4228_v1 = vld [vmem:[%s5243_s1 + $0x2a4] sm:$0xf]  ;;  %v3191_v6 = vor.u32 %v4164_v60, %v3188_v61 }
 0x199   : > { %2521 = vmatpush.bf16.msra.mxu0 %v3223_v38  ;;  %v3444_v2 = vld [vmem:[%s5243_s1 + $0x2b0] sm:$0xf0]  ;;  %2487 = vmatmul.bf16.vlgmr.msrb.gmra.mxu1 %v5422_v53  ;;  %v4260_v4 = vld [vmem:[%s5243_s1 + $0x3a4] sm:$0xf]  ;;  %v3319_v7 = vor.u32 %v4196_v62, %v3316_v0 }
 0x19a   : > { %2535 = vmatpush.bf16.msra.mxu1 %v3351_v42  ;;  %2501 = vmatmul.bf16.vlgmr.msrb.gmra.mxu2 %v5420_v52  ;;  %v3572_v5 = vld [vmem:[%s5243_s1 + $0x3b0] sm:$0xf0]  ;;  %v3447_v8 = vor.u32 %v4228_v1, %v3444_v2  ;;  %v4160_v9 = vld [vmem:[%s5243_s1 + $0x84] sm:$0xf] }
 0x19b   : > { %2549 = vmatpush.bf16.msra.mxu2 %v3479_v43  ;;  %2515 = vmatmul.bf16.vlgmr.msrb.gmra.mxu3 %v5426_v56  ;;  %v3172_v11 = vld [vmem:[%s5243_s1 + $0x90] sm:$0xf0]  ;;  %v4192_v12 = vld [vmem:[%s5243_s1 + $0x184] sm:$0xf]  ;;  %v3575_v13 = vor.u32 %v4260_v4, %v3572_v5 }
 0x19c   : > { %2563 = vmatpush.bf16.msra.mxu3 %v3607_v47  ;;  %v3300_v14 = vld [vmem:[%s5243_s1 + $0x190] sm:$0xf0]  ;;  %v4224_v15 = vld [vmem:[%s5243_s1 + $0x284] sm:$0xf]  ;;  %v3175_v20 = vor.u32 %v4160_v9, %v3172_v11 }
 0x19d   : > { %2522 = vmatpush.bf16.msra.mxu0 %v3207_v57  ;;  %v3428_v16 = vld [vmem:[%s5243_s1 + $0x290] sm:$0xf0]  ;;  %v4256_v17 = vld [vmem:[%s5243_s1 + $0x384] sm:$0xf]  ;;  %v3303_v21 = vor.u32 %v4192_v12, %v3300_v14 }
 0x19e   : > { %2536 = vmatpush.bf16.msra.mxu1 %v3335_v58  ;;  %v3556_v18 = vld [vmem:[%s5243_s1 + $0x390] sm:$0xf0]  ;;  %v3431_v22 = vor.u32 %v4224_v15, %v3428_v16  ;;  %v4156_v23 = vld [vmem:[%s5243_s1 + $0x64] sm:$0xf] }
 0x19f   : > { %2550 = vmatpush.bf16.msra.mxu2 %v3463_v59  ;;  %v3156_v24 = vld [vmem:[%s5243_s1 + $0x70] sm:$0xf0]  ;;  %v4188_v25 = vld [vmem:[%s5243_s1 + $0x164] sm:$0xf]  ;;  %v3559_v27 = vor.u32 %v4256_v17, %v3556_v18 }
 0x1a0   : > { %2564 = vmatpush.bf16.msra.mxu3 %v3591_v63  ;;  %v3284_v28 = vld [vmem:[%s5243_s1 + $0x170] sm:$0xf0]  ;;  %v4220_v29 = vld [vmem:[%s5243_s1 + $0x264] sm:$0xf]  ;;  %v3159_v33 = vor.u32 %v4156_v23, %v3156_v24 }
 0x1a1   : > { %2523 = vmatpush.bf16.msra.mxu0 %v3191_v6  ;;  %v3412_v30 = vld [vmem:[%s5243_s1 + $0x270] sm:$0xf0]  ;;  %v4252_v31 = vld [vmem:[%s5243_s1 + $0x364] sm:$0xf]  ;;  %v3287_v34 = vor.u32 %v4188_v25, %v3284_v28 }
 0x1a2   : > { %2537 = vmatpush.bf16.msra.mxu1 %v3319_v7  ;;  %v3540_v32 = vld [vmem:[%s5243_s1 + $0x370] sm:$0xf0]  ;;  %v3415_v35 = vor.u32 %v4220_v29, %v3412_v30  ;;  %v4152_v36 = vld [vmem:[%s5243_s1 + $0x44] sm:$0xf] }
 0x1a3   : > { %2551 = vmatpush.bf16.msra.mxu2 %v3447_v8  ;;  %v3140_v37 = vld [vmem:[%s5243_s1 + $0x50] sm:$0xf0]  ;;  %v4184_v38 = vld [vmem:[%s5243_s1 + $0x144] sm:$0xf]  ;;  %v3543_v39 = vor.u32 %v4252_v31, %v3540_v32 }
 0x1a4   : > { %2565 = vmatpush.bf16.msra.mxu3 %v3575_v13  ;;  %v3268_v40 = vld [vmem:[%s5243_s1 + $0x150] sm:$0xf0]  ;;  %v4216_v41 = vld [vmem:[%s5243_s1 + $0x244] sm:$0xf]  ;;  %v3143_v45 = vor.u32 %v4152_v36, %v3140_v37 }
 0x1a5   : > { %2524 = vmatpush.bf16.msra.mxu0 %v3175_v20  ;;  %v3396_v42 = vld [vmem:[%s5243_s1 + $0x250] sm:$0xf0]  ;;  %v4248_v43 = vld [vmem:[%s5243_s1 + $0x344] sm:$0xf]  ;;  %v3271_v46 = vor.u32 %v4184_v38, %v3268_v40 }
 0x1a6   : > { %2538 = vmatpush.bf16.msra.mxu1 %v3303_v21  ;;  %v3524_v44 = vld [vmem:[%s5243_s1 + $0x350] sm:$0xf0]  ;;  %v3399_v47 = vor.u32 %v4216_v41, %v3396_v42  ;;  %v4148_v49 = vld [vmem:[%s5243_s1 + $0x24] sm:$0xf] }
 0x1a7   : > { %2552 = vmatpush.bf16.msra.mxu2 %v3431_v22  ;;  %v3124_v50 = vld [vmem:[%s5243_s1 + $0x30] sm:$0xf0]  ;;  %v4180_v51 = vld [vmem:[%s5243_s1 + $0x124] sm:$0xf]  ;;  %v3527_v54 = vor.u32 %v4248_v43, %v3524_v44 }
 0x1a8   : > { %2566 = vmatpush.bf16.msra.mxu3 %v3559_v27  ;;  %v3252_v55 = vld [vmem:[%s5243_s1 + $0x130] sm:$0xf0]  ;;  %v4212_v57 = vld [vmem:[%s5243_s1 + $0x224] sm:$0xf]  ;;  %v3127_v61 = vor.u32 %v4148_v49, %v3124_v50 }
 0x1a9   : > { %2525 = vmatpush.bf16.msra.mxu0 %v3159_v33  ;;  %v3380_v58 = vld [vmem:[%s5243_s1 + $0x230] sm:$0xf0]  ;;  %v4244_v59 = vld [vmem:[%s5243_s1 + $0x324] sm:$0xf]  ;;  %v3255_v0 = vor.u32 %v4180_v51, %v3252_v55 }
 0x1aa   : > { %2539 = vmatpush.bf16.msra.mxu1 %v3287_v34  ;;  %v3508_v60 = vld [vmem:[%s5243_s1 + $0x330] sm:$0xf0]  ;;  %v4144_v62 = vld [vmem:[%s5243_s1 + $0x4] sm:$0xf]  ;;  %v3383_v1 = vor.u32 %v4212_v57, %v3380_v58 }
 0x1ab   : > { %2553 = vmatpush.bf16.msra.mxu2 %v3415_v35  ;;  %v3108_v63 = vld [vmem:[%s5243_s1 + $0x10] sm:$0xf0]  ;;  %v4176_v2 = vld [vmem:[%s5243_s1 + $0x104] sm:$0xf]  ;;  %v3511_v6 = vor.u32 %v4244_v59, %v3508_v60 }
 0x1ac   : > { %2567 = vmatpush.bf16.msra.mxu3 %v3543_v39  ;;  %v3236_v4 = vld [vmem:[%s5243_s1 + $0x110] sm:$0xf0]  ;;  %v4208_v5 = vld [vmem:[%s5243_s1 + $0x204] sm:$0xf]  ;;  %v3111_v14 = vor.u32 %v4144_v62, %v3108_v63 }
 0x1ad   : > { %2526 = vmatpush.bf16.msra.mxu0 %v3143_v45  ;;  %v3364_v7 = vld [vmem:[%s5243_s1 + $0x210] sm:$0xf0]  ;;  %v4240_v8 = vld [vmem:[%s5243_s1 + $0x304] sm:$0xf]  ;;  %v3239_v18 = vor.u32 %v4176_v2, %v3236_v4 }
 0x1ae   : > { %2540 = vmatpush.bf16.msra.mxu1 %v3271_v46  ;;  %v3492_v9 = vld [vmem:[%s5243_s1 + $0x310] sm:$0xf0]  ;;  %v4300_v11 = vld [vmem:[%s5243_s1 + $0x4e4] sm:$0xf]  ;;  %v3367_v20 = vor.u32 %v4208_v5, %v3364_v7 }
 0x1af   : > { %2554 = vmatpush.bf16.msra.mxu2 %v3399_v47  ;;  %v3732_v12 = vld [vmem:[%s5243_s1 + $0x4f0] sm:$0xf0]  ;;  %v4332_v13 = vld [vmem:[%s5243_s1 + $0x5e4] sm:$0xf]  ;;  %v3495_v23 = vor.u32 %v4240_v8, %v3492_v9 }
 0x1b0   : > { %2568 = vmatpush.bf16.msra.mxu3 %v3527_v54  ;;  %v3860_v15 = vld [vmem:[%s5243_s1 + $0x5f0] sm:$0xf0]  ;;  %v4364_v16 = vld [vmem:[%s5243_s1 + $0x6e4] sm:$0xf]  ;;  %v3735_v24 = vor.u32 %v4300_v11, %v3732_v12 }
 0x1b1   : > { %2527 = vmatpush.bf16.msra.mxu0 %v3127_v61  ;;  %v3988_v17 = vld [vmem:[%s5243_s1 + $0x6f0] sm:$0xf0]  ;;  %v4396_v21 = vld [vmem:[%s5243_s1 + $0x7e4] sm:$0xf]  ;;  %v3863_v25 = vor.u32 %v4332_v13, %v3860_v15 }
 0x1b2   : > { %2541 = vmatpush.bf16.msra.mxu1 %v3255_v0  ;;  %v4116_v22 = vld [vmem:[%s5243_s1 + $0x7f0] sm:$0xf0]  ;;  %v3991_v27 = vor.u32 %v4364_v16, %v3988_v17  ;;  %v4296_v28 = vld [vmem:[%s5243_s1 + $0x4c4] sm:$0xf] }
 0x1b3   : > { %2555 = vmatpush.bf16.msra.mxu2 %v3383_v1  ;;  %v3716_v29 = vld [vmem:[%s5243_s1 + $0x4d0] sm:$0xf0]  ;;  %v4328_v30 = vld [vmem:[%s5243_s1 + $0x5c4] sm:$0xf]  ;;  %v4119_v31 = vor.u32 %v4396_v21, %v4116_v22 }
 0x1b4   : > { %2569 = vmatpush.bf16.msra.mxu3 %v3511_v6  ;;  %v3844_v32 = vld [vmem:[%s5243_s1 + $0x5d0] sm:$0xf0]  ;;  %v4360_v33 = vld [vmem:[%s5243_s1 + $0x6c4] sm:$0xf]  ;;  %v3719_v37 = vor.u32 %v4296_v28, %v3716_v29 }
 0x1b5   : > { %2528 = vmatpush.bf16.msra.mxu0 %v3111_v14  ;;  %v3972_v34 = vld [vmem:[%s5243_s1 + $0x6d0] sm:$0xf0]  ;;  %v4392_v35 = vld [vmem:[%s5243_s1 + $0x7c4] sm:$0xf]  ;;  %v3847_v38 = vor.u32 %v4328_v30, %v3844_v32 }
 0x1b6   : > { %2542 = vmatpush.bf16.msra.mxu1 %v3239_v18  ;;  %v4100_v36 = vld [vmem:[%s5243_s1 + $0x7d0] sm:$0xf0]  ;;  %v3975_v39 = vor.u32 %v4360_v33, %v3972_v34  ;;  %v4292_v40 = vld [vmem:[%s5243_s1 + $0x4a4] sm:$0xf] }
 0x1b7   : > { %2556 = vmatpush.bf16.msra.mxu2 %v3367_v20  ;;  %v3700_v41 = vld [vmem:[%s5243_s1 + $0x4b0] sm:$0xf0]  ;;  %v4324_v42 = vld [vmem:[%s5243_s1 + $0x5a4] sm:$0xf]  ;;  %v4103_v43 = vor.u32 %v4392_v35, %v4100_v36 }
 0x1b8   : > { %2570 = vmatpush.bf16.msra.mxu3 %v3495_v23  ;;  %v3828_v44 = vld [vmem:[%s5243_s1 + $0x5b0] sm:$0xf0]  ;;  %v4356_v45 = vld [vmem:[%s5243_s1 + $0x6a4] sm:$0xf]  ;;  %2529 = vmatmul.bf16.vlgmr.msra.gmra.mxu0 %v5333_v3  ;;  %v3703_v50 = vor.u32 %v4292_v40, %v3700_v41 }
 0x1b9   : > { %2577 = vmatpush.bf16.msrb.mxu0 %v3735_v24  ;;  %v3956_v46 = vld [vmem:[%s5243_s1 + $0x6b0] sm:$0xf0]  ;;  %v4388_v47 = vld [vmem:[%s5243_s1 + $0x7a4] sm:$0xf]  ;;  %2543 = vmatmul.bf16.vlgmr.msra.gmra.mxu1 %v5349_v19  ;;  %v3831_v51 = vor.u32 %v4324_v42, %v3828_v44 }
 0x1ba   : > { %2591 = vmatpush.bf16.msrb.mxu1 %v3863_v25  ;;  %v4084_v49 = vld [vmem:[%s5243_s1 + $0x7b0] sm:$0xf0]  ;;  %2557 = vmatmul.bf16.vlgmr.msra.gmra.mxu2 %v5339_v10  ;;  %v3959_v54 = vor.u32 %v4356_v45, %v3956_v46  ;;  %v4288_v55 = vld [vmem:[%s5243_s1 + $0x484] sm:$0xf] }
 0x1bb   : > { %2605 = vmatpush.bf16.msrb.mxu2 %v3991_v27  ;;  %2571 = vmatmul.bf16.vlgmr.msra.gmra.mxu3 %v5355_v26  ;;  %v3684_v57 = vld [vmem:[%s5243_s1 + $0x490] sm:$0xf0]  ;;  %v4320_v58 = vld [vmem:[%s5243_s1 + $0x584] sm:$0xf]  ;;  %v4087_v59 = vor.u32 %v4388_v47, %v4084_v49 }
 0x1bc   : > { %2619 = vmatpush.bf16.msrb.mxu3 %v4119_v31  ;;  %v3812_v60 = vld [vmem:[%s5243_s1 + $0x590] sm:$0xf0]  ;;  %v4352_v61 = vld [vmem:[%s5243_s1 + $0x684] sm:$0xf]  ;;  %v3687_v1 = vor.u32 %v4288_v55, %v3684_v57  ;;  %v3226_v57 = vld [vmem:[%s5243_s1 + $0xe8] sm:$0xf] }
 0x1bd   : > { %2578 = vmatpush.bf16.msrb.mxu0 %v3719_v37  ;;  %v3940_v62 = vld [vmem:[%s5243_s1 + $0x690] sm:$0xf0]  ;;  %v4384_v63 = vld [vmem:[%s5243_s1 + $0x784] sm:$0xf]  ;;  %v3815_v2 = vor.u32 %v4320_v58, %v3812_v60  ;;  %v4175_v58 = vld [vmem:[%s5243_s1 + $0xf4] sm:$0xf0] }
 0x1be   : > { %2592 = vmatpush.bf16.msrb.mxu1 %v3847_v38  ;;  %v4068_v0 = vld [vmem:[%s5243_s1 + $0x790] sm:$0xf0]  ;;  %v3943_v4 = vor.u32 %v4352_v61, %v3940_v62  ;;  %v4284_v5 = vld [vmem:[%s5243_s1 + $0x464] sm:$0xf]  ;;  %v4207_v61 = vld [vmem:[%s5243_s1 + $0x1f4] sm:$0xf0] }
 0x1bf   : > { %2606 = vmatpush.bf16.msrb.mxu2 %v3975_v39  ;;  %v3668_v6 = vld [vmem:[%s5243_s1 + $0x470] sm:$0xf0]  ;;  %v4316_v7 = vld [vmem:[%s5243_s1 + $0x564] sm:$0xf]  ;;  %v4071_v8 = vor.u32 %v4384_v63, %v4068_v0  ;;  %v3482_v62 = vld [vmem:[%s5243_s1 + $0x2e8] sm:$0xf] }
 0x1c0   : > { %2620 = vmatpush.bf16.msrb.mxu3 %v4103_v43  ;;  %v3796_v9 = vld [vmem:[%s5243_s1 + $0x570] sm:$0xf0]  ;;  %v4348_v11 = vld [vmem:[%s5243_s1 + $0x664] sm:$0xf]  ;;  %v3671_v15 = vor.u32 %v4284_v5, %v3668_v6  ;;  %v4239_v63 = vld [vmem:[%s5243_s1 + $0x2f4] sm:$0xf0]  ;;  %v3227_v6 = vor.u32 %v4175_v58, %v3226_v57 }
 0x1c1   : > { %2579 = vmatpush.bf16.msrb.mxu0 %v3703_v50  ;;  %v3924_v12 = vld [vmem:[%s5243_s1 + $0x670] sm:$0xf0]  ;;  %v4380_v13 = vld [vmem:[%s5243_s1 + $0x764] sm:$0xf]  ;;  %v3799_v16 = vor.u32 %v4316_v7, %v3796_v9  ;;  %v3210_v9 = vld [vmem:[%s5243_s1 + $0xc8] sm:$0xf] }
 0x1c2   : > { %2593 = vmatpush.bf16.msrb.mxu1 %v3831_v51  ;;  %v4052_v14 = vld [vmem:[%s5243_s1 + $0x770] sm:$0xf0]  ;;  %v3927_v17 = vor.u32 %v4348_v11, %v3924_v12  ;;  %v4280_v18 = vld [vmem:[%s5243_s1 + $0x444] sm:$0xf]  ;;  %v4171_v11 = vld [vmem:[%s5243_s1 + $0xd4] sm:$0xf0] }
 0x1c3   : > { %2607 = vmatpush.bf16.msrb.mxu2 %v3959_v54  ;;  %v3652_v20 = vld [vmem:[%s5243_s1 + $0x450] sm:$0xf0]  ;;  %v4312_v21 = vld [vmem:[%s5243_s1 + $0x544] sm:$0xf]  ;;  %v4055_v22 = vor.u32 %v4380_v13, %v4052_v14  ;;  %v3338_v12 = vld [vmem:[%s5243_s1 + $0x1c8] sm:$0xf] }
 0x1c4   : > { %2621 = vmatpush.bf16.msrb.mxu3 %v4087_v59  ;;  %v3780_v23 = vld [vmem:[%s5243_s1 + $0x550] sm:$0xf0]  ;;  %v4344_v24 = vld [vmem:[%s5243_s1 + $0x644] sm:$0xf]  ;;  %v3655_v29 = vor.u32 %v4280_v18, %v3652_v20  ;;  %v3354_v59 = vld [vmem:[%s5243_s1 + $0x1e8] sm:$0xf]  ;;  %v3211_v20 = vor.u32 %v4171_v11, %v3210_v9 }
 0x1c5   : > { %2580 = vmatpush.bf16.msrb.mxu0 %v3687_v1  ;;  %v3908_v25 = vld [vmem:[%s5243_s1 + $0x650] sm:$0xf0]  ;;  %v4376_v27 = vld [vmem:[%s5243_s1 + $0x744] sm:$0xf]  ;;  %v3783_v30 = vor.u32 %v4312_v21, %v3780_v23  ;;  %v3355_v7 = vor.u32 %v4207_v61, %v3354_v59  ;;  %v4203_v14 = vld [vmem:[%s5243_s1 + $0x1d4] sm:$0xf0] }
 0x1c6   : > { %2594 = vmatpush.bf16.msrb.mxu1 %v3815_v2  ;;  %v4036_v28 = vld [vmem:[%s5243_s1 + $0x750] sm:$0xf0]  ;;  %v3911_v31 = vor.u32 %v4344_v24, %v3908_v25  ;;  %v4276_v32 = vld [vmem:[%s5243_s1 + $0x424] sm:$0xf]  ;;  %v3610_v2 = vld [vmem:[%s5243_s1 + $0x3e8] sm:$0xf]  ;;  %v3339_v21 = vor.u32 %v4203_v14, %v3338_v12 }
 0x1c7   : > { %2608 = vmatpush.bf16.msrb.mxu2 %v3943_v4  ;;  %v3636_v33 = vld [vmem:[%s5243_s1 + $0x430] sm:$0xf0]  ;;  %v4308_v34 = vld [vmem:[%s5243_s1 + $0x524] sm:$0xf]  ;;  %v4039_v35 = vor.u32 %v4376_v27, %v4036_v28  ;;  %v4271_v4 = vld [vmem:[%s5243_s1 + $0x3f4] sm:$0xf0] }
 0x1c8   : > { %2622 = vmatpush.bf16.msrb.mxu3 %v4071_v8  ;;  %v3764_v36 = vld [vmem:[%s5243_s1 + $0x530] sm:$0xf0]  ;;  %v4340_v37 = vld [vmem:[%s5243_s1 + $0x624] sm:$0xf]  ;;  %v3639_v41 = vor.u32 %v4276_v32, %v3636_v33  ;;  %v3483_v8 = vor.u32 %v4239_v63, %v3482_v62  ;;  %v3611_v13 = vor.u32 %v4271_v4, %v3610_v2  ;;  %v4267_v18 = vld [vmem:[%s5243_s1 + $0x3d4] sm:$0xf0] }
 0x1c9   : > { %2581 = vmatpush.bf16.msrb.mxu0 %v3671_v15  ;;  %v3892_v38 = vld [vmem:[%s5243_s1 + $0x630] sm:$0xf0]  ;;  %v4372_v39 = vld [vmem:[%s5243_s1 + $0x724] sm:$0xf]  ;;  %v3767_v44 = vor.u32 %v4308_v34, %v3764_v36  ;;  %v3466_v15 = vld [vmem:[%s5243_s1 + $0x2c8] sm:$0xf] }
 0x1ca   : > { %2595 = vmatpush.bf16.msrb.mxu1 %v3799_v16  ;;  %v4020_v40 = vld [vmem:[%s5243_s1 + $0x730] sm:$0xf0]  ;;  %v4272_v42 = vld [vmem:[%s5243_s1 + $0x404] sm:$0xf]  ;;  %v3895_v45 = vor.u32 %v4340_v37, %v3892_v38  ;;  %v4235_v16 = vld [vmem:[%s5243_s1 + $0x2d4] sm:$0xf0] }
 0x1cb   : > { %2609 = vmatpush.bf16.msrb.mxu2 %v3927_v17  ;;  %v3620_v43 = vld [vmem:[%s5243_s1 + $0x410] sm:$0xf0]  ;;  %v4304_v46 = vld [vmem:[%s5243_s1 + $0x504] sm:$0xf]  ;;  %v4023_v50 = vor.u32 %v4372_v39, %v4020_v40  ;;  %v3594_v17 = vld [vmem:[%s5243_s1 + $0x3c8] sm:$0xf] }
 0x1cc   : > { %2623 = vmatpush.bf16.msrb.mxu3 %v4055_v22  ;;  %v3748_v47 = vld [vmem:[%s5243_s1 + $0x510] sm:$0xf0]  ;;  %v4336_v49 = vld [vmem:[%s5243_s1 + $0x604] sm:$0xf]  ;;  %v3623_v60 = vor.u32 %v4272_v42, %v3620_v43  ;;  %v3467_v22 = vor.u32 %v4235_v16, %v3466_v15  ;;  %v3194_v23 = vld [vmem:[%s5243_s1 + $0xa8] sm:$0xf]  ;;  %v3595_v27 = vor.u32 %v4267_v18, %v3594_v17 }
 0x1cd   : > { %2582 = vmatpush.bf16.msrb.mxu0 %v3655_v29  ;;  %v3876_v51 = vld [vmem:[%s5243_s1 + $0x610] sm:$0xf0]  ;;  %v4368_v54 = vld [vmem:[%s5243_s1 + $0x704] sm:$0xf]  ;;  %v3751_v0 = vor.u32 %v4304_v46, %v3748_v47  ;;  %v4167_v24 = vld [vmem:[%s5243_s1 + $0xb4] sm:$0xf0] }
 0x1ce   : > { %2596 = vmatpush.bf16.msrb.mxu1 %v3783_v30  ;;  %v4004_v55 = vld [vmem:[%s5243_s1 + $0x710] sm:$0xf0]  ;;  %v3879_v1 = vor.u32 %v4336_v49, %v3876_v51  ;;  %v3322_v25 = vld [vmem:[%s5243_s1 + $0x1a8] sm:$0xf]  ;;  %v4199_v28 = vld [vmem:[%s5243_s1 + $0x1b4] sm:$0xf0]  ;;  %v3195_v33 = vor.u32 %v4167_v24, %v3194_v23 }
 0x1cf   : > { %2610 = vmatpush.bf16.msrb.mxu2 %v3911_v31  ;;  %v4007_v5 = vor.u32 %v4368_v54, %v4004_v55  ;;  %v3450_v29 = vld [vmem:[%s5243_s1 + $0x2a8] sm:$0xf]  ;;  %v4231_v30 = vld [vmem:[%s5243_s1 + $0x2b4] sm:$0xf0]  ;;  %v3323_v34 = vor.u32 %v4199_v28, %v3322_v25 }
 0x1d0   : > { %2624 = vmatpush.bf16.msrb.mxu3 %v4039_v35  ;;  %v3578_v31 = vld [vmem:[%s5243_s1 + $0x3a8] sm:$0xf]  ;;  %v4263_v32 = vld [vmem:[%s5243_s1 + $0x3b4] sm:$0xf0]  ;;  %v3451_v35 = vor.u32 %v4231_v30, %v3450_v29 }
 0x1d1   : > { %2583 = vmatpush.bf16.msrb.mxu0 %v3639_v41  ;;  %v3178_v36 = vld [vmem:[%s5243_s1 + $0x88] sm:$0xf]  ;;  %v4163_v37 = vld [vmem:[%s5243_s1 + $0x94] sm:$0xf0]  ;;  %v3579_v39 = vor.u32 %v4263_v32, %v3578_v31 }
 0x1d2   : > { %2597 = vmatpush.bf16.msrb.mxu1 %v3767_v44  ;;  %v3306_v38 = vld [vmem:[%s5243_s1 + $0x188] sm:$0xf]  ;;  %v4195_v40 = vld [vmem:[%s5243_s1 + $0x194] sm:$0xf0] }
 0x1d3   : > { %2611 = vmatpush.bf16.msrb.mxu2 %v3895_v45  ;;  %v3434_v41 = vld [vmem:[%s5243_s1 + $0x288] sm:$0xf]  ;;  %v4227_v42 = vld [vmem:[%s5243_s1 + $0x294] sm:$0xf0]  ;;  %v3179_v45 = vor.u32 %v4163_v37, %v3178_v36  ;;  %v3307_v46 = vor.u32 %v4195_v40, %v3306_v38 }
 0x1d4   : > { %2625 = vmatpush.bf16.msrb.mxu3 %v4023_v50  ;;  %v3562_v43 = vld [vmem:[%s5243_s1 + $0x388] sm:$0xf]  ;;  %v4259_v44 = vld [vmem:[%s5243_s1 + $0x394] sm:$0xf0]  ;;  %v3435_v47 = vor.u32 %v4227_v42, %v3434_v41 }
 0x1d5   : > { %2584 = vmatpush.bf16.msrb.mxu0 %v3623_v60  ;;  %v3162_v49 = vld [vmem:[%s5243_s1 + $0x68] sm:$0xf]  ;;  %v4159_v50 = vld [vmem:[%s5243_s1 + $0x74] sm:$0xf0]  ;;  %v3563_v54 = vor.u32 %v4259_v44, %v3562_v43 }
 0x1d6   : > { %2598 = vmatpush.bf16.msrb.mxu1 %v3751_v0  ;;  %v3290_v51 = vld [vmem:[%s5243_s1 + $0x168] sm:$0xf]  ;;  %v4191_v55 = vld [vmem:[%s5243_s1 + $0x174] sm:$0xf0]  ;;  %v3163_v61 = vor.u32 %v4159_v50, %v3162_v49 }
 0x1d7   : > { %2612 = vmatpush.bf16.msrb.mxu2 %v3879_v1  ;;  %v3418_v57 = vld [vmem:[%s5243_s1 + $0x268] sm:$0xf]  ;;  %v4223_v58 = vld [vmem:[%s5243_s1 + $0x274] sm:$0xf0]  ;;  %v3291_v62 = vor.u32 %v4191_v55, %v3290_v51 }
 0x1d8   : > { %2626 = vmatpush.bf16.msrb.mxu3 %v4007_v5  ;;  %2585 = vmatmul.bf16.vlgmr.msrb.gmra.mxu0 %v5415_v48  ;;  %v3546_v59 = vld [vmem:[%s5243_s1 + $0x368] sm:$0xf]  ;;  %v4255_v60 = vld [vmem:[%s5243_s1 + $0x374] sm:$0xf0]  ;;  %v3419_v63 = vor.u32 %v4223_v58, %v3418_v57 }
 0x1d9   : > { %2633 = vmatpush.bf16.msra.mxu0 %v3227_v6  ;;  %2599 = vmatmul.bf16.vlgmr.msrb.gmra.mxu1 %v5422_v53  ;;  %v3146_v0 = vld [vmem:[%s5243_s1 + $0x48] sm:$0xf]  ;;  %v4155_v1 = vld [vmem:[%s5243_s1 + $0x54] sm:$0xf0]  ;;  %v3547_v4 = vor.u32 %v4255_v60, %v3546_v59 }
 0x1da   : > { %2647 = vmatpush.bf16.msra.mxu1 %v3355_v7  ;;  %2613 = vmatmul.bf16.vlgmr.msrb.gmra.mxu2 %v5420_v52  ;;  %v3274_v2 = vld [vmem:[%s5243_s1 + $0x148] sm:$0xf]  ;;  %v4187_v5 = vld [vmem:[%s5243_s1 + $0x154] sm:$0xf0]  ;;  %v3147_v11 = vor.u32 %v4155_v1, %v3146_v0 }
 0x1db   : > { %2661 = vmatpush.bf16.msra.mxu2 %v3483_v8  ;;  %2627 = vmatmul.bf16.vlgmr.msrb.gmra.mxu3 %v5426_v56  ;;  %v3402_v6 = vld [vmem:[%s5243_s1 + $0x248] sm:$0xf]  ;;  %v4219_v7 = vld [vmem:[%s5243_s1 + $0x254] sm:$0xf0]  ;;  %v3275_v12 = vor.u32 %v4187_v5, %v3274_v2 }
 0x1dc   : > { %2675 = vmatpush.bf16.msra.mxu3 %v3611_v13  ;;  %v3530_v8 = vld [vmem:[%s5243_s1 + $0x348] sm:$0xf]  ;;  %v4251_v9 = vld [vmem:[%s5243_s1 + $0x354] sm:$0xf0]  ;;  %v3403_v13 = vor.u32 %v4219_v7, %v3402_v6 }
 0x1dd   : > { %2634 = vmatpush.bf16.msra.mxu0 %v3211_v20  ;;  %v3130_v14 = vld [vmem:[%s5243_s1 + $0x28] sm:$0xf]  ;;  %v4151_v15 = vld [vmem:[%s5243_s1 + $0x34] sm:$0xf0]  ;;  %v3531_v17 = vor.u32 %v4251_v9, %v3530_v8 }
 0x1de   : > { %2648 = vmatpush.bf16.msra.mxu1 %v3339_v21  ;;  %v3258_v16 = vld [vmem:[%s5243_s1 + $0x128] sm:$0xf]  ;;  %v4183_v18 = vld [vmem:[%s5243_s1 + $0x134] sm:$0xf0]  ;;  %v3131_v24 = vor.u32 %v4151_v15, %v3130_v14 }
 0x1df   : > { %2662 = vmatpush.bf16.msra.mxu2 %v3467_v22  ;;  %v3386_v20 = vld [vmem:[%s5243_s1 + $0x228] sm:$0xf]  ;;  %v4215_v21 = vld [vmem:[%s5243_s1 + $0x234] sm:$0xf0]  ;;  %v3259_v28 = vor.u32 %v4183_v18, %v3258_v16 }
 0x1e0   : > { %2676 = vmatpush.bf16.msra.mxu3 %v3595_v27  ;;  %v3514_v22 = vld [vmem:[%s5243_s1 + $0x328] sm:$0xf]  ;;  %v4247_v23 = vld [vmem:[%s5243_s1 + $0x334] sm:$0xf0]  ;;  %v3387_v29 = vor.u32 %v4215_v21, %v3386_v20 }
 0x1e1   : > { %2635 = vmatpush.bf16.msra.mxu0 %v3195_v33  ;;  %v3114_v25 = vld [vmem:[%s5243_s1 + $0x8] sm:$0xf]  ;;  %v4147_v27 = vld [vmem:[%s5243_s1 + $0x14] sm:$0xf0]  ;;  %v3515_v33 = vor.u32 %v4247_v23, %v3514_v22 }
 0x1e2   : > { %2649 = vmatpush.bf16.msra.mxu1 %v3323_v34  ;;  %v3242_v30 = vld [vmem:[%s5243_s1 + $0x108] sm:$0xf]  ;;  %v4179_v31 = vld [vmem:[%s5243_s1 + $0x114] sm:$0xf0]  ;;  %v3115_v40 = vor.u32 %v4147_v27, %v3114_v25 }
 0x1e3   : > { %2663 = vmatpush.bf16.msra.mxu2 %v3451_v35  ;;  %v3370_v32 = vld [vmem:[%s5243_s1 + $0x208] sm:$0xf]  ;;  %v4211_v34 = vld [vmem:[%s5243_s1 + $0x214] sm:$0xf0]  ;;  %v3243_v44 = vor.u32 %v4179_v31, %v3242_v30 }
 0x1e4   : > { %2677 = vmatpush.bf16.msra.mxu3 %v3579_v39  ;;  %v3498_v35 = vld [vmem:[%s5243_s1 + $0x308] sm:$0xf]  ;;  %v4243_v36 = vld [vmem:[%s5243_s1 + $0x314] sm:$0xf0] }
 0x1e5   : > { %2636 = vmatpush.bf16.msra.mxu0 %v3179_v45  ;;  %v3738_v37 = vld [vmem:[%s5243_s1 + $0x4e8] sm:$0xf]  ;;  %v4303_v38 = vld [vmem:[%s5243_s1 + $0x4f4] sm:$0xf0]  ;;  %v3371_v45 = vor.u32 %v4211_v34, %v3370_v32  ;;  %v3499_v49 = vor.u32 %v4243_v36, %v3498_v35 }
 0x1e6   : > { %2650 = vmatpush.bf16.msra.mxu1 %v3307_v46  ;;  %v3866_v39 = vld [vmem:[%s5243_s1 + $0x5e8] sm:$0xf]  ;;  %v4335_v41 = vld [vmem:[%s5243_s1 + $0x5f4] sm:$0xf0]  ;;  %v3739_v50 = vor.u32 %v4303_v38, %v3738_v37 }
 0x1e7   : > { %2664 = vmatpush.bf16.msra.mxu2 %v3435_v47  ;;  %v3994_v42 = vld [vmem:[%s5243_s1 + $0x6e8] sm:$0xf]  ;;  %v4367_v43 = vld [vmem:[%s5243_s1 + $0x6f4] sm:$0xf0]  ;;  %v3867_v51 = vor.u32 %v4335_v41, %v3866_v39 }
 0x1e8   : > { %2678 = vmatpush.bf16.msra.mxu3 %v3563_v54  ;;  %v4122_v46 = vld [vmem:[%s5243_s1 + $0x7e8] sm:$0xf]  ;;  %v4399_v47 = vld [vmem:[%s5243_s1 + $0x7f4] sm:$0xf0]  ;;  %v3995_v54 = vor.u32 %v4367_v43, %v3994_v42 }
 0x1e9   : > { %2637 = vmatpush.bf16.msra.mxu0 %v3163_v61  ;;  %v3722_v55 = vld [vmem:[%s5243_s1 + $0x4c8] sm:$0xf]  ;;  %v4299_v57 = vld [vmem:[%s5243_s1 + $0x4d4] sm:$0xf0]  ;;  %v4123_v59 = vor.u32 %v4399_v47, %v4122_v46 }
 0x1ea   : > { %2651 = vmatpush.bf16.msra.mxu1 %v3291_v62  ;;  %v3850_v58 = vld [vmem:[%s5243_s1 + $0x5c8] sm:$0xf]  ;;  %v4331_v60 = vld [vmem:[%s5243_s1 + $0x5d4] sm:$0xf0]  ;;  %v3723_v1 = vor.u32 %v4299_v57, %v3722_v55 }
 0x1eb   : > { %2665 = vmatpush.bf16.msra.mxu2 %v3419_v63  ;;  %v3978_v61 = vld [vmem:[%s5243_s1 + $0x6c8] sm:$0xf]  ;;  %v4363_v62 = vld [vmem:[%s5243_s1 + $0x6d4] sm:$0xf0]  ;;  %v3851_v2 = vor.u32 %v4331_v60, %v3850_v58 }
 0x1ec   : > { %2679 = vmatpush.bf16.msra.mxu3 %v3547_v4  ;;  %v4106_v63 = vld [vmem:[%s5243_s1 + $0x7c8] sm:$0xf]  ;;  %v4395_v0 = vld [vmem:[%s5243_s1 + $0x7d4] sm:$0xf0]  ;;  %v3979_v4 = vor.u32 %v4363_v62, %v3978_v61 }
 0x1ed   : > { %2638 = vmatpush.bf16.msra.mxu0 %v3147_v11  ;;  %v3706_v5 = vld [vmem:[%s5243_s1 + $0x4a8] sm:$0xf]  ;;  %v4295_v6 = vld [vmem:[%s5243_s1 + $0x4b4] sm:$0xf0]  ;;  %v4107_v8 = vor.u32 %v4395_v0, %v4106_v63 }
 0x1ee   : > { %2652 = vmatpush.bf16.msra.mxu1 %v3275_v12  ;;  %v3834_v7 = vld [vmem:[%s5243_s1 + $0x5a8] sm:$0xf]  ;;  %v4327_v9 = vld [vmem:[%s5243_s1 + $0x5b4] sm:$0xf0]  ;;  %v3707_v15 = vor.u32 %v4295_v6, %v3706_v5 }
 0x1ef   : > { %2666 = vmatpush.bf16.msra.mxu2 %v3403_v13  ;;  %v3962_v11 = vld [vmem:[%s5243_s1 + $0x6a8] sm:$0xf]  ;;  %v4359_v12 = vld [vmem:[%s5243_s1 + $0x6b4] sm:$0xf0]  ;;  %v3835_v16 = vor.u32 %v4327_v9, %v3834_v7 }
 0x1f0   : > { %2680 = vmatpush.bf16.msra.mxu3 %v3531_v17  ;;  %v4090_v13 = vld [vmem:[%s5243_s1 + $0x7a8] sm:$0xf]  ;;  %v4391_v14 = vld [vmem:[%s5243_s1 + $0x7b4] sm:$0xf0]  ;;  %v3963_v17 = vor.u32 %v4359_v12, %v3962_v11 }
 0x1f1   : > { %2639 = vmatpush.bf16.msra.mxu0 %v3131_v24  ;;  %v3690_v18 = vld [vmem:[%s5243_s1 + $0x488] sm:$0xf]  ;;  %v4291_v20 = vld [vmem:[%s5243_s1 + $0x494] sm:$0xf0]  ;;  %v4091_v22 = vor.u32 %v4391_v14, %v4090_v13 }
 0x1f2   : > { %2653 = vmatpush.bf16.msra.mxu1 %v3259_v28  ;;  %v3818_v21 = vld [vmem:[%s5243_s1 + $0x588] sm:$0xf]  ;;  %v4323_v23 = vld [vmem:[%s5243_s1 + $0x594] sm:$0xf0] }
 0x1f3   : > { %2667 = vmatpush.bf16.msra.mxu2 %v3387_v29  ;;  %v3946_v24 = vld [vmem:[%s5243_s1 + $0x688] sm:$0xf]  ;;  %v4355_v25 = vld [vmem:[%s5243_s1 + $0x694] sm:$0xf0]  ;;  %v3691_v29 = vor.u32 %v4291_v20, %v3690_v18  ;;  %v3819_v30 = vor.u32 %v4323_v23, %v3818_v21  ;;  %v3228_v23 = vld [vmem:[%s5243_s1 + $0xf8] sm:$0xf0] }
 0x1f4   : > { %2681 = vmatpush.bf16.msra.mxu3 %v3515_v33  ;;  %v4074_v27 = vld [vmem:[%s5243_s1 + $0x788] sm:$0xf]  ;;  %v4387_v28 = vld [vmem:[%s5243_s1 + $0x794] sm:$0xf0]  ;;  %v3947_v31 = vor.u32 %v4355_v25, %v3946_v24  ;;  %v2432_v5 = vpop.f32.mrf.mxu1  ;;  %v4205_v24 = vld [vmem:[%s5243_s1 + $0x1ec] sm:$0xf] }
 0x1f5   : > { %2640 = vmatpush.bf16.msra.mxu0 %v3115_v40  ;;  %v3674_v32 = vld [vmem:[%s5243_s1 + $0x468] sm:$0xf]  ;;  %v4287_v33 = vld [vmem:[%s5243_s1 + $0x474] sm:$0xf0]  ;;  %v4075_v35 = vor.u32 %v4387_v28, %v4074_v27  ;;  %v3356_v27 = vld [vmem:[%s5243_s1 + $0x1f8] sm:$0xf0] }
 0x1f6   : > { %2654 = vmatpush.bf16.msra.mxu1 %v3243_v44  ;;  %v3802_v34 = vld [vmem:[%s5243_s1 + $0x568] sm:$0xf]  ;;  %v4319_v36 = vld [vmem:[%s5243_s1 + $0x574] sm:$0xf0]  ;;  %v3675_v41 = vor.u32 %v4287_v33, %v3674_v32  ;;  %v4237_v28 = vld [vmem:[%s5243_s1 + $0x2ec] sm:$0xf] }
 0x1f7   : > { %2668 = vmatpush.bf16.msra.mxu2 %v3371_v45  ;;  %v3930_v37 = vld [vmem:[%s5243_s1 + $0x668] sm:$0xf]  ;;  %v4351_v38 = vld [vmem:[%s5243_s1 + $0x674] sm:$0xf0]  ;;  %v3803_v42 = vor.u32 %v4319_v36, %v3802_v34  ;;  %v4269_v33 = vld [vmem:[%s5243_s1 + $0x3ec] sm:$0xf] }
 0x1f8   : > { %2682 = vmatpush.bf16.msra.mxu3 %v3499_v49  ;;  %2641 = vmatmul.bf16.vlgmr.msra.gmra.mxu0 %v5333_v3  ;;  %v4058_v39 = vld [vmem:[%s5243_s1 + $0x768] sm:$0xf]  ;;  %v4383_v40 = vld [vmem:[%s5243_s1 + $0x774] sm:$0xf0]  ;;  %v3931_v43 = vor.u32 %v4351_v38, %v3930_v37  ;;  %v3612_v34 = vld [vmem:[%s5243_s1 + $0x3f8] sm:$0xf0] }
 0x1f9   : > { %2689 = vmatpush.bf16.msrb.mxu0 %v3739_v50  ;;  %2655 = vmatmul.bf16.vlgmr.msra.gmra.mxu1 %v5349_v19  ;;  %v3658_v44 = vld [vmem:[%s5243_s1 + $0x448] sm:$0xf]  ;;  %v4283_v45 = vld [vmem:[%s5243_s1 + $0x454] sm:$0xf0]  ;;  %v4059_v47 = vor.u32 %v4383_v40, %v4058_v39  ;;  %v3359_v39 = vor.u32 %v4205_v24, %v3356_v27  ;;  %v3564_v24 = vld [vmem:[%s5243_s1 + $0x398] sm:$0xf0] }
 0x1fa   : > { %2703 = vmatpush.bf16.msrb.mxu1 %v3867_v51  ;;  %2669 = vmatmul.bf16.vlgmr.msra.gmra.mxu2 %v5339_v10  ;;  %v3786_v46 = vld [vmem:[%s5243_s1 + $0x548] sm:$0xf]  ;;  %v4315_v49 = vld [vmem:[%s5243_s1 + $0x554] sm:$0xf0]  ;;  %v3659_v57 = vor.u32 %v4283_v45, %v3658_v44  ;;  %v4201_v44 = vld [vmem:[%s5243_s1 + $0x1cc] sm:$0xf]  ;;  %v3615_v45 = vor.u32 %v4269_v33, %v3612_v34 }
 0x1fb   : > { %2717 = vmatpush.bf16.msrb.mxu2 %v3995_v54  ;;  %2683 = vmatmul.bf16.vlgmr.msra.gmra.mxu3 %v5355_v26  ;;  %v3914_v50 = vld [vmem:[%s5243_s1 + $0x648] sm:$0xf]  ;;  %v4347_v51 = vld [vmem:[%s5243_s1 + $0x654] sm:$0xf0]  ;;  %v3787_v58 = vor.u32 %v4315_v49, %v3786_v46  ;;  %v3340_v46 = vld [vmem:[%s5243_s1 + $0x1d8] sm:$0xf0] }
 0x1fc   : > { %2731 = vmatpush.bf16.msrb.mxu3 %v4123_v59  ;;  %v4042_v54 = vld [vmem:[%s5243_s1 + $0x748] sm:$0xf]  ;;  %v4379_v55 = vld [vmem:[%s5243_s1 + $0x754] sm:$0xf0]  ;;  %v3915_v59 = vor.u32 %v4347_v51, %v3914_v50  ;;  %v3468_v49 = vld [vmem:[%s5243_s1 + $0x2d8] sm:$0xf0]  ;;  %v2434_v50 = vpop.f32.mrf.mxu1 }
 0x1fd   : > { %2690 = vmatpush.bf16.msrb.mxu0 %v3723_v1  ;;  %v2418_v60 = vpop.f32.mrf.mxu0  ;;  %v3642_v61 = vld [vmem:[%s5243_s1 + $0x428] sm:$0xf]  ;;  %v4279_v62 = vld [vmem:[%s5243_s1 + $0x434] sm:$0xf0]  ;;  %v4043_v0 = vor.u32 %v4379_v55, %v4042_v54  ;;  %v4265_v51 = vld [vmem:[%s5243_s1 + $0x3cc] sm:$0xf] }
 0x1fe   : > { %2704 = vmatpush.bf16.msrb.mxu1 %v3851_v2  ;;  %v3770_v63 = vld [vmem:[%s5243_s1 + $0x528] sm:$0xf]  ;;  %v4311_v1 = vld [vmem:[%s5243_s1 + $0x534] sm:$0xf0]  ;;  %v2433_v36 = vadd.f32 %v2432_v5, %v2418_v60  ;;  %v3596_v54 = vld [vmem:[%s5243_s1 + $0x3d8] sm:$0xf0] }
 0x1ff   : > { %2718 = vmatpush.bf16.msrb.mxu2 %v3979_v4  ;;  %v3898_v2 = vld [vmem:[%s5243_s1 + $0x628] sm:$0xf]  ;;  %v4343_v4 = vld [vmem:[%s5243_s1 + $0x634] sm:$0xf0]  ;;  %v3771_v12 = vor.u32 %v4311_v1, %v3770_v63  ;;  %v4165_v60 = vld [vmem:[%s5243_s1 + $0xac] sm:$0xf]  ;;  %v3599_v63 = vor.u32 %v4265_v51, %v3596_v54 }
 0x200   : > { %2732 = vmatpush.bf16.msrb.mxu3 %v4107_v8  ;;  %v4026_v6 = vld [vmem:[%s5243_s1 + $0x728] sm:$0xf]  ;;  %v4375_v7 = vld [vmem:[%s5243_s1 + $0x734] sm:$0xf0]  ;;  %v3643_v8 = vor.u32 %v4279_v62, %v3642_v61  ;;  %v3899_v13 = vor.u32 %v4343_v4, %v3898_v2  ;;  %v3196_v61 = vld [vmem:[%s5243_s1 + $0xb8] sm:$0xf0] }
 0x201   : > { %2691 = vmatpush.bf16.msrb.mxu0 %v3707_v15  ;;  %v3626_v9 = vld [vmem:[%s5243_s1 + $0x408] sm:$0xf]  ;;  %v4275_v11 = vld [vmem:[%s5243_s1 + $0x414] sm:$0xf0]  ;;  %v4197_v62 = vld [vmem:[%s5243_s1 + $0x1ac] sm:$0xf] }
 0x202   : > { %2705 = vmatpush.bf16.msrb.mxu1 %v3835_v16  ;;  %v3754_v14 = vld [vmem:[%s5243_s1 + $0x508] sm:$0xf]  ;;  %v4307_v15 = vld [vmem:[%s5243_s1 + $0x514] sm:$0xf0]  ;;  %v3627_v25 = vor.u32 %v4275_v11, %v3626_v9  ;;  %v4229_v1 = vld [vmem:[%s5243_s1 + $0x2ac] sm:$0xf] }
 0x203   : > { %2719 = vmatpush.bf16.msrb.mxu2 %v3963_v17  ;;  %v3882_v16 = vld [vmem:[%s5243_s1 + $0x608] sm:$0xf]  ;;  %v4027_v17 = vor.u32 %v4375_v7, %v4026_v6  ;;  %v4339_v18 = vld [vmem:[%s5243_s1 + $0x614] sm:$0xf0]  ;;  %v3452_v2 = vld [vmem:[%s5243_s1 + $0x2b8] sm:$0xf0]  ;;  %v3199_v7 = vor.u32 %v4165_v60, %v3196_v61 }
 0x204   : > { %2733 = vmatpush.bf16.msrb.mxu3 %v4091_v22  ;;  %v4010_v20 = vld [vmem:[%s5243_s1 + $0x708] sm:$0xf]  ;;  %v4371_v21 = vld [vmem:[%s5243_s1 + $0x714] sm:$0xf0]  ;;  %v4173_v22 = vld [vmem:[%s5243_s1 + $0xec] sm:$0xf]  ;;  %v3883_v32 = vor.u32 %v4339_v18, %v3882_v16  ;;  %v3455_v11 = vor.u32 %v4229_v1, %v3452_v2 }
 0x205   : > { %2692 = vmatpush.bf16.msrb.mxu0 %v3691_v29  ;;  %v3484_v29 = vld [vmem:[%s5243_s1 + $0x2f8] sm:$0xf0]  ;;  %v4011_v37 = vor.u32 %v4371_v21, %v4010_v20  ;;  %v3231_v38 = vor.u32 %v4173_v22, %v3228_v23  ;;  %v4261_v4 = vld [vmem:[%s5243_s1 + $0x3ac] sm:$0xf] }
 0x206   : > { %2706 = vmatpush.bf16.msrb.mxu1 %v3819_v30  ;;  %v2446_v30 = vpop.f32.mrf.mxu2  ;;  %v3487_v40 = vor.u32 %v4237_v28, %v3484_v29  ;;  %v3580_v5 = vld [vmem:[%s5243_s1 + $0x3b8] sm:$0xf0]  ;;  %v4225_v18 = vld [vmem:[%s5243_s1 + $0x28c] sm:$0xf] }
 0x207   : > { %2720 = vmatpush.bf16.msrb.mxu2 %v3947_v31  ;;  %v3755_v31 = vor.u32 %v4307_v15, %v3754_v14  ;;  %v2447_v55 = vadd.f32 %v2446_v30, %v2433_v36  ;;  %v3180_v14 = vld [vmem:[%s5243_s1 + $0x98] sm:$0xf0]  ;;  %v4193_v15 = vld [vmem:[%s5243_s1 + $0x18c] sm:$0xf]  ;;  %v3583_v16 = vor.u32 %v4261_v4, %v3580_v5 }
 0x208   : > { %2734 = vmatpush.bf16.msrb.mxu3 %v4075_v35  ;;  %v2460_v35 = vpop.f32.mrf.mxu3  ;;  %v3436_v20 = vld [vmem:[%s5243_s1 + $0x298] sm:$0xf0]  ;;  %v4257_v23 = vld [vmem:[%s5243_s1 + $0x38c] sm:$0xf] }
 0x209   : > { %2693 = vmatpush.bf16.msrb.mxu0 %v3675_v41  ;;  %v2420_v41 = vpop.f32.mrf.mxu0  ;;  %v2461_v6 = vadd.f32 %v2460_v35, %v2447_v55  ;;  %v3439_v30 = vor.u32 %v4225_v18, %v3436_v20  ;;  %v4189_v33 = vld [vmem:[%s5243_s1 + $0x16c] sm:$0xf]  ;;  %v3567_v34 = vor.u32 %v4257_v23, %v3564_v24  ;;  %v3292_v35 = vld [vmem:[%s5243_s1 + $0x178] sm:$0xf0] }
 0x20a   : > { %2707 = vmatpush.bf16.msrb.mxu1 %v3803_v42  ;;  %v4169_v42 = vld [vmem:[%s5243_s1 + $0xcc] sm:$0xf]  ;;  %v2435_v21 = vadd.f32 %v2434_v50, %v2420_v41  ;;  %v3548_v41 = vld [vmem:[%s5243_s1 + $0x378] sm:$0xf0] }
 0x20b   : > { %2721 = vmatpush.bf16.msrb.mxu2 %v3931_v43  ;;  %v3212_v43 = vld [vmem:[%s5243_s1 + $0xd8] sm:$0xf0]  ;;  %v4221_v36 = vld [vmem:[%s5243_s1 + $0x26c] sm:$0xf] }
 0x20c   : > { %2735 = vmatpush.bf16.msrb.mxu3 %v4059_v47  ;;  %v4233_v47 = vld [vmem:[%s5243_s1 + $0x2cc] sm:$0xf]  ;;  %v3404_v55 = vld [vmem:[%s5243_s1 + $0x258] sm:$0xf0] }
 0x20d   : > { %2694 = vmatpush.bf16.msrb.mxu0 %v3659_v57  ;;  %v3215_v57 = vor.u32 %v4169_v42, %v3212_v43  ;;  %v4153_v43 = vld [vmem:[%s5243_s1 + $0x4c] sm:$0xf] }
 0x20e   : > { %2708 = vmatpush.bf16.msrb.mxu1 %v3787_v58  ;;  %v3343_v58 = vor.u32 %v4201_v44, %v3340_v46  ;;  %v3295_v44 = vor.u32 %v4189_v33, %v3292_v35  ;;  %v3148_v46 = vld [vmem:[%s5243_s1 + $0x58] sm:$0xf0]  ;;  %v4217_v54 = vld [vmem:[%s5243_s1 + $0x24c] sm:$0xf] }
 0x20f   : > { %2722 = vmatpush.bf16.msrb.mxu2 %v3915_v59  ;;  %v3471_v59 = vor.u32 %v4233_v47, %v3468_v49  ;;  %v4185_v47 = vld [vmem:[%s5243_s1 + $0x14c] sm:$0xf]  ;;  %v3276_v49 = vld [vmem:[%s5243_s1 + $0x158] sm:$0xf0]  ;;  %v3407_v5 = vor.u32 %v4217_v54, %v3404_v55 }
 0x210   : > { %2736 = vmatpush.bf16.msrb.mxu3 %v4043_v0  ;;  %v3324_v0 = vld [vmem:[%s5243_s1 + $0x1b8] sm:$0xf0]  ;;  %v4249_v61 = vld [vmem:[%s5243_s1 + $0x34c] sm:$0xf]  ;;  %v3279_v1 = vor.u32 %v4185_v47, %v3276_v49 }
 0x211   : > { %2695 = vmatpush.bf16.msrb.mxu0 %v3643_v8  ;;  %v2448_v8 = vpop.f32.mrf.mxu2  ;;  %v3327_v9 = vor.u32 %v4197_v62, %v3324_v0  ;;  %v3532_v62 = vld [vmem:[%s5243_s1 + $0x358] sm:$0xf0]  ;;  %v3151_v0 = vor.u32 %v4153_v43, %v3148_v46  ;;  %v4145_v20 = vld [vmem:[%s5243_s1 + $0xc] sm:$0xf] }
 0x212   : > { %2709 = vmatpush.bf16.msrb.mxu1 %v3771_v12  ;;  %v2462_v12 = vpop.f32.mrf.mxu3  ;;  %v4241_v33 = vld [vmem:[%s5243_s1 + $0x30c] sm:$0xf]  ;;  %v3996_v43 = vld [vmem:[%s5243_s1 + $0x6f8] sm:$0xf0] }
 0x213   : > { %2723 = vmatpush.bf16.msrb.mxu2 %v3899_v13  ;;  %v4161_v13 = vld [vmem:[%s5243_s1 + $0x8c] sm:$0xf]  ;;  %v4124_v49 = vld [vmem:[%s5243_s1 + $0x7f8] sm:$0xf0] }
 0x214   : > { %2737 = vmatpush.bf16.msrb.mxu3 %v4027_v17  ;;  %v3308_v17 = vld [vmem:[%s5243_s1 + $0x198] sm:$0xf0]  ;;  %v3183_v27 = vor.u32 %v4161_v13, %v3180_v14  ;;  %v4213_v13 = vld [vmem:[%s5243_s1 + $0x22c] sm:$0xf] }
 0x215   : > { %2696 = vmatpush.bf16.msrb.mxu0 %v3627_v25  ;;  %v2474_v22 = vpop.f32.mrf.mxu0  ;;  %v3311_v29 = vor.u32 %v4193_v15, %v3308_v17  ;;  %v3388_v14 = vld [vmem:[%s5243_s1 + $0x238] sm:$0xf0]  ;;  %v4397_v47 = vld [vmem:[%s5243_s1 + $0x7ec] sm:$0xf] }
 0x216   : > { %2710 = vmatpush.bf16.msrb.mxu1 %v3755_v31  ;;  %v2475_v25 = vadd.f32 %v2474_v22, %v2461_v6  ;;  %v2488_v28 = vpop.f32.mrf.mxu1  ;;  %v4157_v31 = vld [vmem:[%s5243_s1 + $0x6c] sm:$0xf]  ;;  %v3516_v17 = vld [vmem:[%s5243_s1 + $0x338] sm:$0xf0] }
 0x217   : > { %2724 = vmatpush.bf16.msrb.mxu2 %v3883_v32  ;;  %v3164_v32 = vld [vmem:[%s5243_s1 + $0x78] sm:$0xf0]  ;;  %v4149_v6 = vld [vmem:[%s5243_s1 + $0x2c] sm:$0xf] }
 0x218   : > { %2738 = vmatpush.bf16.msrb.mxu3 %v4011_v37  ;;  %2697 = vmatmul.bf16.vlgmr.msrb.gmra.mxu0 %v5415_v48  ;;  %v3420_v37 = vld [vmem:[%s5243_s1 + $0x278] sm:$0xf0]  ;;  %v3167_v42 = vor.u32 %v4157_v31, %v3164_v32  ;;  %v4177_v22 = vld [vmem:[%s5243_s1 + $0x10c] sm:$0xf] }
 0x219   : > { %2745 = vmatpush.bf16.msra.mxu0 %v3231_v38  ;;  %2711 = vmatmul.bf16.vlgmr.msrb.gmra.mxu1 %v5422_v53  ;;  %v2449_v38 = vadd.f32 %v2448_v8, %v2435_v21  ;;  %v4181_v8 = vld [vmem:[%s5243_s1 + $0x12c] sm:$0xf]  ;;  %v3116_v21 = vld [vmem:[%s5243_s1 + $0x18] sm:$0xf0] }
 0x21a   : > { %2759 = vmatpush.bf16.msra.mxu1 %v3359_v39  ;;  %2725 = vmatmul.bf16.vlgmr.msrb.gmra.mxu2 %v5420_v52  ;;  %v2489_v39 = vadd.f32 %v2488_v28, %v2475_v25  ;;  %v3391_v25 = vor.u32 %v4213_v13, %v3388_v14  ;;  %v4209_v28 = vld [vmem:[%s5243_s1 + $0x20c] sm:$0xf]  ;;  %v3372_v32 = vld [vmem:[%s5243_s1 + $0x218] sm:$0xf0] }
 0x21b   : > { %2773 = vmatpush.bf16.msra.mxu2 %v3487_v40  ;;  %2739 = vmatmul.bf16.vlgmr.msrb.gmra.mxu3 %v5426_v56  ;;  %v4253_v40 = vld [vmem:[%s5243_s1 + $0x36c] sm:$0xf]  ;;  %v3375_v46 = vor.u32 %v4209_v28, %v3372_v32  ;;  %v3964_v14 = vld [vmem:[%s5243_s1 + $0x6b8] sm:$0xf0] }
 0x21c   : > { %2787 = vmatpush.bf16.msra.mxu3 %v3615_v45  ;;  %v3423_v45 = vor.u32 %v4221_v36, %v3420_v37  ;;  %v3551_v50 = vor.u32 %v4253_v40, %v3548_v41  ;;  %v821_v31 = vld [vmem:[#allocation2 + $0x8] sm:$0xff]  ;;  %v3119_v40 = vor.u32 %v4145_v20, %v3116_v21  ;;  %v3868_v41 = vld [vmem:[%s5243_s1 + $0x5f8] sm:$0xf0] }
 0x21d   : > { %2746 = vmatpush.bf16.msra.mxu0 %v3215_v57  ;;  %v2502_v51 = vpop.f32.mrf.mxu2  ;;  %v2463_v57 = vadd.f32 %v2462_v12, %v2449_v38  ;;  %v3260_v12 = vld [vmem:[%s5243_s1 + $0x138] sm:$0xf0]  ;;  %v4301_v37 = vld [vmem:[%s5243_s1 + $0x4ec] sm:$0xf] }
 0x21e   : > { %2760 = vmatpush.bf16.msra.mxu1 %v3343_v58  ;;  %v2503_v58 = vadd.f32 %v2502_v51, %v2489_v39  ;;  %v2516_v60 = vpop.f32.mrf.mxu3  ;;  %v3263_v24 = vor.u32 %v4181_v8, %v3260_v12  ;;  %v3740_v38 = vld [vmem:[%s5243_s1 + $0x4f8] sm:$0xf0]  ;;  %v4333_v39 = vld [vmem:[%s5243_s1 + $0x5ec] sm:$0xf] }
 0x21f   : > { %2774 = vmatpush.bf16.msra.mxu2 %v3471_v59  ;;  %v2476_v59 = vpop.f32.mrf.mxu0  ;;  %v3743_v51 = vor.u32 %v4301_v37, %v3740_v38  ;;  %v3871_v55 = vor.u32 %v4333_v39, %v3868_v41  ;;  %v3708_v8 = vld [vmem:[%s5243_s1 + $0x4b8] sm:$0xf0]  ;;  %v4357_v13 = vld [vmem:[%s5243_s1 + $0x6ac] sm:$0xf] }
 0x220   : > { %2788 = vmatpush.bf16.msra.mxu3 %v3599_v63  ;;  %v817_v63 = vld [vmem:[#allocation2 + $0x30] sm:$0xff]  ;;  %v2477_v2 = vadd.f32 %v2476_v59, %v2463_v57  ;;  %v2517_v4 = vadd.f32 %v2516_v60, %v2503_v58  ;;  %v4297_v58 = vld [vmem:[%s5243_s1 + $0x4cc] sm:$0xf]  ;;  %v3724_v59 = vld [vmem:[%s5243_s1 + $0x4d8] sm:$0xf0] }
 0x221   : > { %2747 = vmatpush.bf16.msra.mxu0 %v3199_v7  ;;  %v3132_v7 = vld [vmem:[%s5243_s1 + $0x38] sm:$0xf0]  ;;  %v4329_v60 = vld [vmem:[%s5243_s1 + $0x5cc] sm:$0xf] }
 0x222   : > { %2761 = vmatpush.bf16.msra.mxu1 %v3327_v9  ;;  %v3535_v9 = vor.u32 %v4249_v61, %v3532_v62  ;;  %v2857_v15 = vadd.f32 %v2517_v4, %v817_v63  ;;  %v3135_v18 = vor.u32 %v4149_v6, %v3132_v7  ;;  %v4127_v61 = vor.u32 %v4397_v47, %v4124_v49  ;;  %v3852_v62 = vld [vmem:[%s5243_s1 + $0x5d8] sm:$0xf0]  ;;  %v4361_v63 = vld [vmem:[%s5243_s1 + $0x6cc] sm:$0xf] }
 0x223   : > { %2775 = vmatpush.bf16.msra.mxu2 %v3455_v11  ;;  %v2490_v11 = vpop.f32.mrf.mxu1  ;;  %v3727_v4 = vor.u32 %v4297_v58, %v3724_v59  ;;  %v4293_v7 = vld [vmem:[%s5243_s1 + $0x4ac] sm:$0xf]  ;;  %v3836_v12 = vld [vmem:[%s5243_s1 + $0x5b8] sm:$0xf0] }
 0x224   : > { %2789 = vmatpush.bf16.msra.mxu3 %v3583_v16  ;;  %v4245_v16 = vld [vmem:[%s5243_s1 + $0x32c] sm:$0xf]  ;;  %2865 = vst [vmem:[#allocation2 + $0x30] sm:$0xff] %v2857_v15  ;;  %v2491_v23 = vadd.f32 %v2490_v11, %v2477_v2  ;;  %v4108_v2 = vld [vmem:[%s5243_s1 + $0x7d8] sm:$0xf0] }
 0x225   : > { %2748 = vmatpush.bf16.msra.mxu0 %v3183_v27  ;;  %v3244_v27 = vld [vmem:[%s5243_s1 + $0x118] sm:$0xf0]  ;;  %v4389_v15 = vld [vmem:[%s5243_s1 + $0x7ac] sm:$0xf] }
 0x226   : > { %2762 = vmatpush.bf16.msra.mxu1 %v3311_v29  ;;  %v3519_v29 = vor.u32 %v4245_v16, %v3516_v17  ;;  %v2518_v36 = vpop.f32.mrf.mxu3  ;;  %v4092_v16 = vld [vmem:[%s5243_s1 + $0x7b8] sm:$0xf0]  ;;  %v3711_v17 = vor.u32 %v4293_v7, %v3708_v8  ;;  %v4289_v20 = vld [vmem:[%s5243_s1 + $0x48c] sm:$0xf] }
 0x227   : > { %2776 = vmatpush.bf16.msra.mxu2 %v3439_v30  ;;  %v2504_v30 = vpop.f32.mrf.mxu2  ;;  %v4321_v21 = vld [vmem:[%s5243_s1 + $0x58c] sm:$0xf]  ;;  %v4060_v38 = vld [vmem:[%s5243_s1 + $0x778] sm:$0xf0] }
 0x228   : > { %2790 = vmatpush.bf16.msra.mxu3 %v3567_v34  ;;  %v3500_v34 = vld [vmem:[%s5243_s1 + $0x318] sm:$0xf0]  ;;  %v2505_v35 = vadd.f32 %v2504_v30, %v2491_v23  ;;  %v4285_v30 = vld [vmem:[%s5243_s1 + $0x46c] sm:$0xf] }
 0x229   : > { %2749 = vmatpush.bf16.msra.mxu0 %v3167_v42  ;;  %v4365_v42 = vld [vmem:[%s5243_s1 + $0x6ec] sm:$0xf]  ;;  %v3820_v23 = vld [vmem:[%s5243_s1 + $0x598] sm:$0xf0] }
 0x22a   : > { %2763 = vmatpush.bf16.msra.mxu1 %v3295_v44  ;;  %v2519_v44 = vadd.f32 %v2518_v36, %v2505_v35  ;;  %v3999_v57 = vor.u32 %v4365_v42, %v3996_v43  ;;  %v3823_v28 = vor.u32 %v4321_v21, %v3820_v23  ;;  %v4317_v32 = vld [vmem:[%s5243_s1 + $0x56c] sm:$0xf]  ;;  %v3932_v36 = vld [vmem:[%s5243_s1 + $0x678] sm:$0xf0] }
 0x22b   : > { %2777 = vmatpush.bf16.msra.mxu2 %v3423_v45  ;;  %v3247_v45 = vor.u32 %v4177_v22, %v3244_v27  ;;  %v4095_v22 = vor.u32 %v4389_v15, %v4092_v16  ;;  %v4349_v35 = vld [vmem:[%s5243_s1 + $0x66c] sm:$0xf]  ;;  %v3660_v43 = vld [vmem:[%s5243_s1 + $0x458] sm:$0xf0] }
 0x22c   : > { %2791 = vmatpush.bf16.msra.mxu3 %v3551_v50  ;;  %v3503_v50 = vor.u32 %v4241_v33, %v3500_v34  ;;  %v2861_v54 = vadd.f32 %v2519_v44, %v821_v31  ;;  %v3676_v31 = vld [vmem:[%s5243_s1 + $0x478] sm:$0xf0]  ;;  %v4381_v37 = vld [vmem:[%s5243_s1 + $0x76c] sm:$0xf]  ;;  %v3935_v41 = vor.u32 %v4349_v35, %v3932_v36 }
 0x22d   : > { %2750 = vmatpush.bf16.msra.mxu0 %v3151_v0  ;;  %v3980_v0 = vld [vmem:[%s5243_s1 + $0x6d8] sm:$0xf0]  ;;  %v3679_v39 = vor.u32 %v4285_v30, %v3676_v31  ;;  %v4281_v42 = vld [vmem:[%s5243_s1 + $0x44c] sm:$0xf] }
 0x22e   : > { %2764 = vmatpush.bf16.msra.mxu1 %v3279_v1  ;;  %2869 = vst [vmem:[#allocation2 + $0x8] sm:$0xff] %v2861_v54  ;;  %v4393_v1 = vld [vmem:[%s5243_s1 + $0x7cc] sm:$0xf]  ;;  %v3983_v6 = vor.u32 %v4361_v63, %v3980_v0  ;;  %v3804_v34 = vld [vmem:[%s5243_s1 + $0x578] sm:$0xf0]  ;;  %v3663_v54 = vor.u32 %v4281_v42, %v3660_v43 }
 0x22f   : > { %2778 = vmatpush.bf16.msra.mxu2 %v3407_v5  ;;  %v3855_v5 = vor.u32 %v4329_v60, %v3852_v62  ;;  %v4111_v11 = vor.u32 %v4393_v1, %v4108_v2  ;;  %v4313_v44 = vld [vmem:[%s5243_s1 + $0x54c] sm:$0xf]  ;;  %v3916_v49 = vld [vmem:[%s5243_s1 + $0x658] sm:$0xf0] }
 0x230   : > { %2792 = vmatpush.bf16.msra.mxu3 %v3535_v9  ;;  %v4325_v9 = vld [vmem:[%s5243_s1 + $0x5ac] sm:$0xf]  ;;  %v3644_v60 = vld [vmem:[%s5243_s1 + $0x438] sm:$0xf0] }
 0x231   : > { %2751 = vmatpush.bf16.msra.mxu0 %v3135_v18  ;;  %v3967_v18 = vor.u32 %v4357_v13, %v3964_v14  ;;  %v4345_v47 = vld [vmem:[%s5243_s1 + $0x64c] sm:$0xf]  ;;  %v3772_v63 = vld [vmem:[%s5243_s1 + $0x538] sm:$0xf0] }
 0x232   : > { %2765 = vmatpush.bf16.msra.mxu1 %v3263_v24  ;;  %v3948_v24 = vld [vmem:[%s5243_s1 + $0x698] sm:$0xf0]  ;;  %v4277_v59 = vld [vmem:[%s5243_s1 + $0x42c] sm:$0xf] }
 0x233   : > { %2779 = vmatpush.bf16.msra.mxu2 %v3391_v25  ;;  %v4385_v25 = vld [vmem:[%s5243_s1 + $0x78c] sm:$0xf]  ;;  %v3900_v1 = vld [vmem:[%s5243_s1 + $0x638] sm:$0xf0] }
 0x234   : > { %2793 = vmatpush.bf16.msra.mxu3 %v3519_v29  ;;  %v4341_v0 = vld [vmem:[%s5243_s1 + $0x62c] sm:$0xf]  ;;  %v3756_v14 = vld [vmem:[%s5243_s1 + $0x518] sm:$0xf0] }
 0x235   : > { %2752 = vmatpush.bf16.msra.mxu0 %v3119_v40  ;;  %v3807_v40 = vor.u32 %v4317_v32, %v3804_v34  ;;  %v2530_v58 = vpop.f32.mrf.mxu0  ;;  %v3903_v8 = vor.u32 %v4341_v0, %v3900_v1  ;;  %v4337_v15 = vld [vmem:[%s5243_s1 + $0x60c] sm:$0xf]  ;;  %v3884_v16 = vld [vmem:[%s5243_s1 + $0x618] sm:$0xf0] }
 0x236   : > { %2766 = vmatpush.bf16.msra.mxu1 %v3247_v45  ;;  %v4063_v45 = vor.u32 %v4381_v37, %v4060_v38  ;;  %v2544_v2 = vpop.f32.mrf.mxu1  ;;  %v3887_v21 = vor.u32 %v4337_v15, %v3884_v16 }
 0x237   : > { %2780 = vmatpush.bf16.msra.mxu2 %v3375_v46  ;;  %v3788_v46 = vld [vmem:[%s5243_s1 + $0x558] sm:$0xf0]  ;;  %v2545_v23 = vadd.f32 %v2544_v2, %v2530_v58 }
 0x238   : > { %2794 = vmatpush.bf16.msra.mxu3 %v3503_v50  ;;  %2753 = vmatmul.bf16.vlgmr.msra.gmra.mxu0 %v5333_v3  ;;  %v4353_v3 = vld [vmem:[%s5243_s1 + $0x68c] sm:$0xf] }
 0x239   : > { %2801 = vmatpush.bf16.msrb.mxu0 %v3743_v51  ;;  %2767 = vmatmul.bf16.vlgmr.msra.gmra.mxu1 %v5349_v19  ;;  %v4076_v19 = vld [vmem:[%s5243_s1 + $0x798] sm:$0xf0]  ;;  %v3951_v29 = vor.u32 %v4353_v3, %v3948_v24  ;;  %v4377_v50 = vld [vmem:[%s5243_s1 + $0x74c] sm:$0xf] }
 0x23a   : > { %2815 = vmatpush.bf16.msrb.mxu1 %v3871_v55  ;;  %2781 = vmatmul.bf16.vlgmr.msra.gmra.mxu2 %v5339_v10  ;;  %v3839_v10 = vor.u32 %v4325_v9, %v3836_v12  ;;  %v4079_v33 = vor.u32 %v4385_v25, %v4076_v19  ;;  %v4044_v51 = vld [vmem:[%s5243_s1 + $0x758] sm:$0xf0]  ;;  %v3791_v55 = vor.u32 %v4313_v44, %v3788_v46  ;;  %v4273_v9 = vld [vmem:[%s5243_s1 + $0x40c] sm:$0xf]  ;;  %v822_v46 = vld [vmem:[#allocation2 + $0x20] sm:$0xff] }
 0x23b   : > { %2829 = vmatpush.bf16.msrb.mxu2 %v3999_v57  ;;  %2795 = vmatmul.bf16.vlgmr.msra.gmra.mxu3 %v5355_v26  ;;  %v3692_v26 = vld [vmem:[%s5243_s1 + $0x498] sm:$0xf0]  ;;  %v3919_v57 = vor.u32 %v4345_v47, %v3916_v49  ;;  %v4047_v62 = vor.u32 %v4377_v50, %v4044_v51  ;;  %v4305_v12 = vld [vmem:[%s5243_s1 + $0x50c] sm:$0xf] }
 0x23c   : > { %2843 = vmatpush.bf16.msrb.mxu3 %v4127_v61  ;;  %v3695_v27 = vor.u32 %v4289_v20, %v3692_v26  ;;  %v4309_v61 = vld [vmem:[%s5243_s1 + $0x52c] sm:$0xf]  ;;  %v3759_v26 = vor.u32 %v4305_v12, %v3756_v14 }
 0x23d   : > { %2802 = vmatpush.bf16.msrb.mxu0 %v3727_v4  ;;  %v4373_v4 = vld [vmem:[%s5243_s1 + $0x72c] sm:$0xf]  ;;  %v3775_v7 = vor.u32 %v4309_v61, %v3772_v63  ;;  %v2558_v20 = vpop.f32.mrf.mxu2  ;;  %v2532_v24 = vpop.f32.mrf.mxu0 }
 0x23e   : > { %2816 = vmatpush.bf16.msrb.mxu1 %v3855_v5  ;;  %v4028_v5 = vld [vmem:[%s5243_s1 + $0x738] sm:$0xf0]  ;;  %v2546_v25 = vpop.f32.mrf.mxu1  ;;  %v2559_v19 = vadd.f32 %v2558_v20, %v2545_v23 }
 0x23f   : > { %2830 = vmatpush.bf16.msrb.mxu2 %v3983_v6  ;;  %v3647_v6 = vor.u32 %v4277_v59, %v3644_v60  ;;  %v4031_v13 = vor.u32 %v4373_v4, %v4028_v5  ;;  %v2547_v30 = vadd.f32 %v2546_v25, %v2532_v24 }
 0x240   : > { %2844 = vmatpush.bf16.msrb.mxu3 %v4111_v11  ;;  %v3628_v11 = vld [vmem:[%s5243_s1 + $0x418] sm:$0xf0] }
 0x241   : > { %2803 = vmatpush.bf16.msrb.mxu0 %v3711_v17  ;;  %v4369_v17 = vld [vmem:[%s5243_s1 + $0x70c] sm:$0xf] }
 0x242   : > { %2817 = vmatpush.bf16.msrb.mxu1 %v3839_v10  ;;  %v4012_v10 = vld [vmem:[%s5243_s1 + $0x718] sm:$0xf0] }
 0x243   : > { %2831 = vmatpush.bf16.msrb.mxu2 %v3967_v18  ;;  %v3631_v18 = vor.u32 %v4273_v9, %v3628_v11  ;;  %v4015_v3 = vor.u32 %v4369_v17, %v4012_v10 }
 0x244   : > { %2845 = vmatpush.bf16.msrb.mxu3 %v4095_v22  ;;  %v2572_v22 = vpop.f32.mrf.mxu3 }
 0x245   : > { %2804 = vmatpush.bf16.msrb.mxu0 %v3695_v27  ;;  %v2573_v27 = vadd.f32 %v2572_v22, %v2559_v19 }
 0x246   : > { %2818 = vmatpush.bf16.msrb.mxu1 %v3823_v28  ;;  %v2560_v28 = vpop.f32.mrf.mxu2 }
 0x247   : > { %2832 = vmatpush.bf16.msrb.mxu2 %v3951_v29  ;;  %v2561_v34 = vadd.f32 %v2560_v28, %v2547_v30 }
 0x248   : > { %2846 = vmatpush.bf16.msrb.mxu3 %v4079_v33 }
 0x249   : > { %2805 = vmatpush.bf16.msrb.mxu0 %v3679_v39 }
 0x24a   : > { %2819 = vmatpush.bf16.msrb.mxu1 %v3807_v40  ;;  %v818_v40 = vld [vmem:[#allocation2] sm:$0xff] }
 0x24b   : > { %2833 = vmatpush.bf16.msrb.mxu2 %v3935_v41 }
 0x24c   : > { %2847 = vmatpush.bf16.msrb.mxu3 %v4063_v45  ;;  %v2574_v29 = vpop.f32.mrf.mxu3 }
 0x24d   : > { %2806 = vmatpush.bf16.msrb.mxu0 %v3663_v54  ;;  %v2575_v37 = vadd.f32 %v2574_v29, %v2561_v34 }
 0x24e   : > { %2820 = vmatpush.bf16.msrb.mxu1 %v3791_v55 }
 0x24f   : > { %2834 = vmatpush.bf16.msrb.mxu2 %v3919_v57 }
 0x250   : > { %2848 = vmatpush.bf16.msrb.mxu3 %v4047_v62 }
 0x251   : > { %2807 = vmatpush.bf16.msrb.mxu0 %v3647_v6 }
 0x252   : > { %2821 = vmatpush.bf16.msrb.mxu1 %v3775_v7 }
 0x253   : > { %2835 = vmatpush.bf16.msrb.mxu2 %v3903_v8 }
 0x254   : > { %2849 = vmatpush.bf16.msrb.mxu3 %v4031_v13  ;;  %v819_v13 = vld [vmem:[#allocation2 + $0x18] sm:$0xff] }
 0x255   : > { %2808 = vmatpush.bf16.msrb.mxu0 %v3631_v18  ;;  %v2586_v31 = vpop.f32.mrf.mxu0 }
 0x256   : > { %2822 = vmatpush.bf16.msrb.mxu1 %v3759_v26  ;;  %v2587_v32 = vadd.f32 %v2586_v31, %v2573_v27  ;;  %v2600_v33 = vpop.f32.mrf.mxu1 }
 0x257   : > { %2836 = vmatpush.bf16.msrb.mxu2 %v3887_v21  ;;  %v823_v21 = vld [vmem:[#allocation2 + $0x28] sm:$0xff] }
 0x258   : > { %2850 = vmatpush.bf16.msrb.mxu3 %v4015_v3  ;;  %2809 = vmatmul.bf16.vlgmr.msrb.gmra.mxu0 %v5415_v48  ;;  %v2601_v35 = vadd.f32 %v2600_v33, %v2587_v32 }
 0x259   : > { %2823 = vmatmul.bf16.vlgmr.msrb.gmra.mxu1 %v5422_v53 }
 0x25a   : > { %2837 = vmatmul.bf16.vlgmr.msrb.gmra.mxu2 %v5420_v52 }
 0x25b   : > { %2851 = vmatmul.bf16.vlgmr.msrb.gmra.mxu3 %v5426_v56 }
 0x25d   : > { %v2614_v36 = vpop.f32.mrf.mxu2  ;;  %v2588_v39 = vpop.f32.mrf.mxu0 }
 0x25e   : > { %v2615_v38 = vadd.f32 %v2614_v36, %v2601_v35  ;;  %v2628_v48 = vpop.f32.mrf.mxu3  ;;  %v2589_v53 = vadd.f32 %v2588_v39, %v2575_v37  ;;  %v2602_v52 = vpop.f32.mrf.mxu1 }
 0x260   : > { %v2629_v41 = vadd.f32 %v2628_v48, %v2615_v38  ;;  %v2603_v56 = vadd.f32 %v2602_v52, %v2589_v53 }
 0x262   : > { %v2858_v42 = vadd.f32 %v2629_v41, %v818_v40 }
 0x264   : > { %2866 = vst [vmem:[#allocation2] sm:$0xff] %v2858_v42  ;;  %v820_v42 = vld [vmem:[#allocation2 + $0x10] sm:$0xff] }
 0x265   : > { %v2616_v43 = vpop.f32.mrf.mxu2 }
 0x266   : > { %v2617_v44 = vadd.f32 %v2616_v43, %v2603_v56  ;;  %v2630_v45 = vpop.f32.mrf.mxu3 }
 0x268   : > { %v2631_v47 = vadd.f32 %v2630_v45, %v2617_v44 }
 0x26a   : > { %v2862_v49 = vadd.f32 %v2631_v47, %v822_v46 }
 0x26c   : > { %2870 = vst [vmem:[#allocation2 + $0x20] sm:$0xff] %v2862_v49 }
 0x275   : > { %v2642_v50 = vpop.f32.mrf.mxu0 }
 0x276   : > { %v2656_v51 = vpop.f32.mrf.mxu1 }
 0x277   : > { %v2657_v57 = vadd.f32 %v2656_v51, %v2642_v50  ;;  %v824_v50 = vld [vmem:[#allocation2 + $0x38] sm:$0xff] }
 0x27d   : > { %v2670_v54 = vpop.f32.mrf.mxu2  ;;  %v2644_v58 = vpop.f32.mrf.mxu0 }
 0x27e   : > { %v2684_v55 = vpop.f32.mrf.mxu3  ;;  %v2658_v59 = vpop.f32.mrf.mxu1  ;;  %v2671_v60 = vadd.f32 %v2670_v54, %v2657_v57 }
 0x27f   : > { %v2659_v0 = vadd.f32 %v2658_v59, %v2644_v58 }
 0x280   : > { %v2685_v61 = vadd.f32 %v2684_v55, %v2671_v60 }
 0x285   : > { %v2672_v62 = vpop.f32.mrf.mxu2 }
 0x286   : > { %v2686_v63 = vpop.f32.mrf.mxu3  ;;  %v2673_v5 = vadd.f32 %v2672_v62, %v2659_v0 }
 0x288   : > { %v2687_v8 = vadd.f32 %v2686_v63, %v2673_v5 }
 0x295   : > { %v2698_v1 = vpop.f32.mrf.mxu0 }
 0x296   : > { %v2699_v2 = vadd.f32 %v2698_v1, %v2685_v61  ;;  %v2712_v4 = vpop.f32.mrf.mxu1 }
 0x298   : > { %v2713_v6 = vadd.f32 %v2712_v4, %v2699_v2 }
 0x29d   : > { %v2726_v7 = vpop.f32.mrf.mxu2  ;;  %v2700_v11 = vpop.f32.mrf.mxu0 }
 0x29e   : > { %v2727_v9 = vadd.f32 %v2726_v7, %v2713_v6  ;;  %v2740_v12 = vpop.f32.mrf.mxu3  ;;  %v2701_v14 = vadd.f32 %v2700_v11, %v2687_v8  ;;  %v2714_v16 = vpop.f32.mrf.mxu1 }
 0x2a0   : > { %v2741_v15 = vadd.f32 %v2740_v12, %v2727_v9  ;;  %v2715_v10 = vadd.f32 %v2714_v16, %v2701_v14 }
 0x2a2   : > { %v2859_v17 = vadd.f32 %v2741_v15, %v819_v13 }
 0x2a4   : > { %2867 = vst [vmem:[#allocation2 + $0x18] sm:$0xff] %v2859_v17 }
 0x2a5   : > { %v2728_v18 = vpop.f32.mrf.mxu2 }
 0x2a6   : > { %v2729_v20 = vadd.f32 %v2728_v18, %v2715_v10  ;;  %v2742_v26 = vpop.f32.mrf.mxu3 }
 0x2a8   : > { %v2743_v22 = vadd.f32 %v2742_v26, %v2729_v20 }
 0x2aa   : > { %v2863_v23 = vadd.f32 %v2743_v22, %v823_v21 }
 0x2ac   : > { %2871 = vst [vmem:[#allocation2 + $0x28] sm:$0xff] %v2863_v23 }
 0x2b5   : > { %v2754_v3 = vpop.f32.mrf.mxu0 }
 0x2b6   : > { %v2768_v24 = vpop.f32.mrf.mxu1 }
 0x2b7   : > { %v2769_v27 = vadd.f32 %v2768_v24, %v2754_v3 }
 0x2bd   : > { %v2782_v25 = vpop.f32.mrf.mxu2  ;;  %v2756_v28 = vpop.f32.mrf.mxu0 }
 0x2be   : > { %v2796_v19 = vpop.f32.mrf.mxu3  ;;  %v2770_v29 = vpop.f32.mrf.mxu1  ;;  %v2783_v30 = vadd.f32 %v2782_v25, %v2769_v27 }
 0x2bf   : > { %v2771_v33 = vadd.f32 %v2770_v29, %v2756_v28 }
 0x2c0   : > { %v2797_v32 = vadd.f32 %v2796_v19, %v2783_v30 }
 0x2c5   : > { %v2784_v31 = vpop.f32.mrf.mxu2 }
 0x2c6   : > { %v2798_v34 = vpop.f32.mrf.mxu3  ;;  %v2785_v38 = vadd.f32 %v2784_v31, %v2771_v33 }
 0x2c8   : > { %v2799_v40 = vadd.f32 %v2798_v34, %v2785_v38 }
 0x2d5   : > { %v2810_v35 = vpop.f32.mrf.mxu0 }
 0x2d6   : > { %v2811_v36 = vadd.f32 %v2810_v35, %v2797_v32  ;;  %v2824_v37 = vpop.f32.mrf.mxu1 }
 0x2d8   : > { %v2825_v39 = vadd.f32 %v2824_v37, %v2811_v36 }
 0x2dd   : > { %v2838_v48 = vpop.f32.mrf.mxu2  ;;  %v2812_v52 = vpop.f32.mrf.mxu0 }
 0x2de   : > { %v2839_v53 = vadd.f32 %v2838_v48, %v2825_v39  ;;  %v2852_v41 = vpop.f32.mrf.mxu3  ;;  %v2813_v43 = vadd.f32 %v2812_v52, %v2799_v40  ;;  %v2826_v45 = vpop.f32.mrf.mxu1 }
 0x2e0   : > { %v2853_v56 = vadd.f32 %v2852_v41, %v2839_v53  ;;  %v2827_v46 = vadd.f32 %v2826_v45, %v2813_v43 }
 0x2e2   : > { %v2860_v44 = vadd.f32 %v2853_v56, %v820_v42 }
 0x2e4   : > { %2868 = vst [vmem:[#allocation2 + $0x10] sm:$0xff] %v2860_v44 }
 0x2e5   : > { %v2840_v47 = vpop.f32.mrf.mxu2 }
 0x2e6   : > { %v2841_v49 = vadd.f32 %v2840_v47, %v2827_v46  ;;  %v2854_v51 = vpop.f32.mrf.mxu3 }
 0x2e8   : > { %v2855_v54 = vadd.f32 %v2854_v51, %v2841_v49  ;;  %2876 = sbr.rel (%p4128_p5) target bundleno = 761 (0x2f9), region = 86 }
 0x2ea   : > { %v2864_v55 = vadd.f32 %v2855_v54, %v824_v50 }
 0x2ec   : > { %2872 = vst [vmem:[#allocation2 + $0x38] sm:$0xff] %v2864_v55 }
 0x2ed   : > { %v2877_v57 = vld [vmem:[#allocation2 + $0x30] sm:$0xff]  ;;  %v2878_v58 = vld [vmem:[#allocation2] sm:$0xff]  ;;  %v2879_v62 = vld [vmem:[#allocation2 + $0x18] sm:$0xff] }
 0x2ee   : > { %v2885_v59 = vld [vmem:[%s801_s5] sm:$0xf]  ;;  %v2880_v63 = vld [vmem:[#allocation2 + $0x10] sm:$0xff]  ;;  %v2881_v2 = vld [vmem:[#allocation2 + $0x8] sm:$0xff] }
 0x2ef   : > { %v2887_v60 = vperm.slane %v2885_v59, 0  ;;  %v2888_v61 = vperm.slane %v2885_v59, 1  ;;  %v2889_v0 = vperm.slane %v2885_v59, 2  ;;  %v2890_v1 = vperm.slane %v2885_v59, 3  ;;  %v2882_v4 = vld [vmem:[#allocation2 + $0x20] sm:$0xff]  ;;  %v2883_v5 = vld [vmem:[#allocation2 + $0x28] sm:$0xff] }
 0x2f1   : > { %v2895_v6 = vadd.f32 %v2887_v60, %v2877_v57  ;;  %v2896_v7 = vadd.f32 %v2888_v61, %v2878_v58  ;;  %v2897_v8 = vadd.f32 %v2889_v0, %v2879_v62  ;;  %v2898_v9 = vadd.f32 %v2890_v1, %v2880_v63 }
 0x2f2   : > { %v2899_v12 = vadd.f32 %v2887_v60, %v2881_v2  ;;  %v2900_v13 = vadd.f32 %v2888_v61, %v2882_v4  ;;  %v2901_v14 = vadd.f32 %v2889_v0, %v2883_v5 }
 0x2f3   : > { %v2884_v11 = vld [vmem:[#allocation2 + $0x38] sm:$0xff]  ;;  %v2903_v16 = vpack.c.bf16 %v2896_v7, %v2895_v6  ;;  %v2904_v17 = vpack.c.bf16 %v2898_v9, %v2897_v8 }
 0x2f4   : > { %v2902_v15 = vadd.f32 %v2890_v1, %v2884_v11  ;;  %v2905_v10 = vpack.c.bf16 %v2900_v13, %v2899_v12 }
 0x2f5   : > { %2907 = vst [vmem:[%s5245_s25] sm:$0xff] %v2903_v16 }
 0x2f6   : > { %v2906_v18 = vpack.c.bf16 %v2902_v15, %v2901_v14  ;;  %2908 = vst [vmem:[%s5245_s25 + $0x8] sm:$0xff] %v2904_v17 }
 0x2f7   : > { %2909 = vst [vmem:[%s5245_s25 + $0x10] sm:$0xff] %v2905_v10 }
 0x2f8   : > { %2910 = vst [vmem:[%s5245_s25 + $0x18] sm:$0xff] %v2906_v18 }
 0x2f9 PF: > { %2917 = sbr.rel (!%p4693_p12) target bundleno = 769 (0x301), region = 90  ;;  %s4400_s14 = sshll.u32 (%p4693_p12), %s4564_s19, 4 }
 0x2fa   : > { %s2923_s0 = scalar_lea.vmem (%p4693_p12), %s5880_s3, %s4400_s14 }
 0x2fc   : > { %v2936_v20 = vld [vmem:[%s5245_s25] sm:$0xff] (%p4693_p12) }
 0x2fd   : > { %v2938_v26 = vld [vmem:[%s5245_s25 + $0x8] sm:$0xff] (%p4693_p12)  ;;  %2937 = vst [vmem:[%s2923_s0] sm:$0xff] (%p4693_p12), %v2936_v20 }
 0x2fe   : > { %v2940_v21 = vld [vmem:[%s5245_s25 + $0x10] sm:$0xff]  ;;  %2939 = vst [vmem:[%s2923_s0 + $0x8] sm:$0xff] %v2938_v26 }
 0x2ff   : > { %v2942_v22 = vld [vmem:[%s5245_s25 + $0x18] sm:$0xff]  ;;  %2941 = vst [vmem:[%s2923_s0 + $0x20] sm:$0xff] %v2940_v21 }
 0x300   : > { %2943 = vst [vmem:[%s2923_s0 + $0x28] sm:$0xff] %v2942_v22 }
 0x301 PF: > { %s13_s22 = sadd.s32 1, %s4576_s22   ;;  %s5890_s10 = sld [smem:[#allocation6_spill]] }
 0x302   : > { %p10_p6 = scmp.ge.s32.totalorder %s13_s22, 20   ;;  %s5891_s12 = smov %s4540_s13 }
 0x303   : > { %s5892_s13 = smov %s4691_s9  ;;  %s5893_s14 = smov %s4548_s15 }
 0x304   : > { %s5894_s15 = smov %s4688_s8  ;;  %s5895_s16 = smov %s4556_s17 }
 0x305   : > { %s5896_s17 = smov %s4674_s30  ;;  %s5897_s18 = smov %s4568_s20 }
 0x306   : > { %s5898_s19 = smov %s4572_s21  ;;  %s5899_s20 = smov %s5902_s24 }
 0x307   : > { %s5900_s21 = smov %s5890_s10  ;;  %12 = sbr.rel (!%p10_p6) target bundleno = 9 (0x9), region = 155 }

// kernel: zfnet_forward.15
= control target key start
LH: loop header
LB: loop body
LE: loop exit
PB: predicated region body
PF: predicated region fallthrough
CT: control target
= control target key end

     0   :  { %s1577_s12 = smov 0   ;;  %s1579_s13 = smov 0   ;;  %s1737_s0 = inlined_call_operand.vmem [shape: bf16[16,4096], index: 0, kind: input, shape index: {}]   ;;  %s1738_s1 = inlined_call_operand.vmem [shape: bf16[4096,128], index: 1, kind: input, shape index: {}]   ;;  %s1739_s2 = inlined_call_operand.vmem [shape: f32[1,128], index: 2, kind: input, shape index: {}]   ;;  %s1740_s3 = inlined_call_operand.vmem [shape: f32[16,128], index: 3, kind: output, shape index: {}]  }
   0x1   :  { %s1581_s14 = smov 0   ;;  %s1583_s15 = smov 0  }
   0x2   :  { %s1585_s16 = smov 0  }
   0x3 LB: > { %s25_s17 = sadd.s32 1, %s1550_s15  ;;  %p48_p1 = scmp.ne.s32.totalorder %s1542_s13, %s1538_s12  ;;  %s1554_s16 = sphi %s1585_s16, %s13_s16   ;;  %s1550_s15 = sphi %s1583_s15, %s1744_s15   ;;  %s1546_s14 = sphi %s1581_s14, %s1743_s14   ;;  %s1542_s13 = sphi %s1579_s13, %s1742_s13   ;;  %s1538_s12 = sphi %s1577_s12, %s1741_s12  }
   0x4   : > { %p26_p0 = scmp.ge.s32.totalorder %s25_s17, 4  ;;  %p49_p2 = scmp.eq.s32.totalorder %s1554_s16, 0 }
   0x5   : > { %s41_s19 = sadd.s32 1, %s1542_s13  ;;  %p1099_p5 = scmp.ge.s32.totalorder %s1554_s16, 4 }
   0x6   : > { %s1746_s17 = smov (%p26_p0, %s25_s17), 0  ;;  %p50_p3 = por %p49_p2, %p48_p1 }
   0x7   : > { %s37_s18 = ssub.s32 %s1550_s15, %s1746_s17  ;;  %162 = sbr.rel (%p1099_p5) target bundleno = 24 (0x18), region = 20 }
   0x8   : > { %p39_p4 = scmp.eq.s32.totalorder %s37_s18, 0 }
   0xa   : > { %s1612_s20 = scalar_select %p39_p4, %s1542_s13, %s41_s19  }
   0xc   : > { %165 = sbr.rel (!%p50_p3) target bundleno = 24 (0x18), region = 24  ;;  %s167_s21 = sand.u32 (%p50_p3), 1, %s1542_s13  }
   0xd   : > { %s1401_s22 = sshll.u32 (%p50_p3), %s1550_s15, 5  ;;  %s1100_s23 = sshll.u32 (%p50_p3), %s167_s21, 6 }
   0xe   : > { %s175_s26 = scalar_lea.vmem (%p50_p3), %s1737_s0, %s1401_s22  ;;  %s169_s27 = scalar_lea.vmem (%p50_p3), [#allocation3], %s1100_s23 }
   0xf   : > { %v188_v0 = vld [vmem:[%s175_s26] sm:$0xff] (%p50_p3)  ;;  %v190_v1 = vld [vmem:[%s175_s26 + $0x8] sm:$0xff] (%p50_p3)  ;;  %v192_v2 = vld [vmem:[%s175_s26 + $0x10] sm:$0xff] (%p50_p3) }
  0x10   : > { %189 = vst [vmem:[%s169_s27] sm:$0xff] (%p50_p3), %v188_v0  ;;  %v194_v3 = vld [vmem:[%s175_s26 + $0x18] sm:$0xff] (%p50_p3)  ;;  %v196_v4 = vld [vmem:[%s175_s26 + $0x80] sm:$0xff] (%p50_p3)  ;;  %v198_v5 = vld [vmem:[%s175_s26 + $0x88] sm:$0xff] (%p50_p3) }
  0x11   : > { %191 = vst [vmem:[%s169_s27 + $0x8] sm:$0xff] %v190_v1  ;;  %v200_v6 = vld [vmem:[%s175_s26 + $0x90] sm:$0xff]  ;;  %v202_v7 = vld [vmem:[%s175_s26 + $0x98] sm:$0xff] }
  0x12   : > { %193 = vst [vmem:[%s169_s27 + $0x10] sm:$0xff] %v192_v2 }
  0x13   : > { %195 = vst [vmem:[%s169_s27 + $0x18] sm:$0xff] %v194_v3 }
  0x14   : > { %197 = vst [vmem:[%s169_s27 + $0x20] sm:$0xff] %v196_v4 }
  0x15   : > { %199 = vst [vmem:[%s169_s27 + $0x28] sm:$0xff] %v198_v5 }
  0x16   : > { %201 = vst [vmem:[%s169_s27 + $0x30] sm:$0xff] %v200_v6 }
  0x17   : > { %203 = vst [vmem:[%s169_s27 + $0x38] sm:$0xff] %v202_v7 }
  0x18 PF: > { %p1103_p6 = scmp.ge.s32.totalorder %s1554_s16, 1  ;;  %p220_p7 = scmp.lt.s32.totalorder %s1554_s16, 5 }
  0x1a   : > { %p221_p8 = pnand %p1103_p6, %p220_p7 }
  0x1b   : > { %s227_s28 = sand.u32 (!%p221_p8), 1, %s1538_s12   ;;  %s1105_s29 = sshll.u32 (!%p221_p8), %s1546_s14, 7 }
  0x1c   : > { %224 = sbr.rel (%p221_p8) target bundleno = 264 (0x108), region = 51  ;;  %s1104_s30 = sshll.u32 (!%p221_p8), %s227_s28, 6 }
  0x1d   : > { %p267_p9 = scmp.lt.s32.totalorder (!%p221_p8), %s1105_s29, 511  ;;  %s1629_s8 = scalar_lea.vmem (!%p221_p8), [#allocation3], %s1104_s30 }
  0x1e   : > { %p1107_p10 = scmp.ne.s32.totalorder (!%p221_p8), %s1546_s14, 0 }
  0x21   : > { %s1748_s29 = smov (!%p267_p9, %s1105_s29), 511  ;;  %290 = sbr.rel (%p1107_p10) target bundleno = 41 (0x29), region = 59 }
  0x22   : > { %s1106_s4 = sshll.u32 %s1748_s29, 2 }
  0x23   : > { %s1627_s7 = scalar_lea.vmem %s1738_s1, %s1106_s4 }
  0x26   : > { %v1556_v8 = vmov 0.0  }
  0x27   : > { %291 = vst [vmem:[#allocation2] sm:$0xff] %v1556_v8 }
  0x28   : > { %292 = vst [vmem:[#allocation2 + $0x8] sm:$0xff] %v1556_v8 }
  0x29 PF: > { %v1417_v9 = vld [vmem:[%s1627_s7 + $0x38] sm:$0xff]  ;;  %v1416_v13 = vld [vmem:[%s1627_s7 + $0x30] sm:$0xff]  ;;  %v1415_v17 = vld [vmem:[%s1627_s7 + $0x28] sm:$0xff]  ;;  %p1396_p11 = scmp.ne.s32.totalorder %s1546_s14, 3 }
  0x2a   : > { %v1425_v10 = vld [vmem:[%s1627_s7 + $0x78] sm:$0xff]  ;;  %855 = vmatpush.bf16.msra.mxu0 %v1417_v9  ;;  %v1424_v14 = vld [vmem:[%s1627_s7 + $0x70] sm:$0xff]  ;;  %v1423_v18 = vld [vmem:[%s1627_s7 + $0x68] sm:$0xff] }
  0x2b   : > { %v1433_v11 = vld [vmem:[%s1627_s7 + $0xb8] sm:$0xff]  ;;  %869 = vmatpush.bf16.msra.mxu1 %v1425_v10  ;;  %v1432_v15 = vld [vmem:[%s1627_s7 + $0xb0] sm:$0xff]  ;;  %v1431_v19 = vld [vmem:[%s1627_s7 + $0xa8] sm:$0xff] }
  0x2c   : > { %v1441_v12 = vld [vmem:[%s1627_s7 + $0xf8] sm:$0xff]  ;;  %883 = vmatpush.bf16.msra.mxu2 %v1433_v11  ;;  %v1440_v16 = vld [vmem:[%s1627_s7 + $0xf0] sm:$0xff]  ;;  %v1439_v20 = vld [vmem:[%s1627_s7 + $0xe8] sm:$0xff] }
  0x2d   : > { %897 = vmatpush.bf16.msra.mxu3 %v1441_v12  ;;  %v1414_v21 = vld [vmem:[%s1627_s7 + $0x20] sm:$0xff]  ;;  %v1413_v25 = vld [vmem:[%s1627_s7 + $0x18] sm:$0xff]  ;;  %v1412_v29 = vld [vmem:[%s1627_s7 + $0x10] sm:$0xff] }
  0x2e   : > { %856 = vmatpush.bf16.msra.mxu0 %v1416_v13  ;;  %v1422_v22 = vld [vmem:[%s1627_s7 + $0x60] sm:$0xff]  ;;  %v1421_v26 = vld [vmem:[%s1627_s7 + $0x58] sm:$0xff]  ;;  %v1420_v30 = vld [vmem:[%s1627_s7 + $0x50] sm:$0xff] }
  0x2f   : > { %870 = vmatpush.bf16.msra.mxu1 %v1424_v14  ;;  %v1430_v23 = vld [vmem:[%s1627_s7 + $0xa0] sm:$0xff]  ;;  %v1429_v27 = vld [vmem:[%s1627_s7 + $0x98] sm:$0xff]  ;;  %v1428_v31 = vld [vmem:[%s1627_s7 + $0x90] sm:$0xff] }
  0x30   : > { %884 = vmatpush.bf16.msra.mxu2 %v1432_v15  ;;  %v1438_v24 = vld [vmem:[%s1627_s7 + $0xe0] sm:$0xff]  ;;  %v1437_v28 = vld [vmem:[%s1627_s7 + $0xd8] sm:$0xff]  ;;  %v1436_v32 = vld [vmem:[%s1627_s7 + $0xd0] sm:$0xff] }
  0x31   : > { %898 = vmatpush.bf16.msra.mxu3 %v1440_v16  ;;  %v1411_v33 = vld [vmem:[%s1627_s7 + $0x8] sm:$0xff]  ;;  %v1410_v37 = vld [vmem:[%s1627_s7] sm:$0xff]  ;;  %v1449_v41 = vld [vmem:[%s1627_s7 + $0x138] sm:$0xff] }
  0x32   : > { %857 = vmatpush.bf16.msra.mxu0 %v1415_v17  ;;  %v1419_v34 = vld [vmem:[%s1627_s7 + $0x48] sm:$0xff]  ;;  %v1418_v38 = vld [vmem:[%s1627_s7 + $0x40] sm:$0xff]  ;;  %v1457_v42 = vld [vmem:[%s1627_s7 + $0x178] sm:$0xff] }
  0x33   : > { %871 = vmatpush.bf16.msra.mxu1 %v1423_v18  ;;  %v1427_v35 = vld [vmem:[%s1627_s7 + $0x88] sm:$0xff]  ;;  %v1426_v39 = vld [vmem:[%s1627_s7 + $0x80] sm:$0xff]  ;;  %v1118_v43 = vld [vmem:[%s1629_s8 + $0x8] sm:$0xf] }
  0x34   : > { %885 = vmatpush.bf16.msra.mxu2 %v1431_v19  ;;  %v1435_v36 = vld [vmem:[%s1627_s7 + $0xc8] sm:$0xff]  ;;  %v1434_v40 = vld [vmem:[%s1627_s7 + $0xc0] sm:$0xff]  ;;  %v1407_v44 = vld [vmem:[%s1629_s8 + $0x24] sm:$0xf0] }
  0x35   : > { %899 = vmatpush.bf16.msra.mxu3 %v1439_v20  ;;  %v1403_v45 = vld [vmem:[%s1629_s8 + $0xc] sm:$0xf]  ;;  %v1110_v47 = vld [vmem:[%s1629_s8] sm:$0xf]  ;;  %v1402_v49 = vld [vmem:[%s1629_s8 + $0x4] sm:$0xf]  ;;  %v1119_v53 = vor.u32 %v1407_v44, %v1118_v43 }
  0x36   : > { %858 = vmatpush.bf16.msra.mxu0 %v1414_v21  ;;  %v1120_v46 = vld [vmem:[%s1629_s8 + $0x28] sm:$0xf0]  ;;  %v1406_v48 = vld [vmem:[%s1629_s8 + $0x1c] sm:$0xf0]  ;;  %v1112_v50 = vld [vmem:[%s1629_s8 + $0x20] sm:$0xf0] }
  0x37   : > { %872 = vmatpush.bf16.msra.mxu1 %v1422_v22  ;;  %v1465_v51 = vld [vmem:[%s1627_s7 + $0x1b8] sm:$0xff]  ;;  %v1123_v54 = vor.u32 %v1403_v45, %v1120_v46  ;;  %v1111_v55 = vor.u32 %v1406_v48, %v1110_v47  ;;  %v1115_v56 = vor.u32 %v1402_v49, %v1112_v50  ;;  %v1448_v57 = vld [vmem:[%s1627_s7 + $0x130] sm:$0xff]  ;;  %v1447_v61 = vld [vmem:[%s1627_s7 + $0x128] sm:$0xff] }
  0x38   : > { %886 = vmatpush.bf16.msra.mxu2 %v1430_v23  ;;  %v1473_v52 = vld [vmem:[%s1627_s7 + $0x1f8] sm:$0xff]  ;;  %v1456_v58 = vld [vmem:[%s1627_s7 + $0x170] sm:$0xff]  ;;  %v1455_v62 = vld [vmem:[%s1627_s7 + $0x168] sm:$0xff] }
  0x39   : > { %900 = vmatpush.bf16.msra.mxu3 %v1438_v24  ;;  %v1464_v59 = vld [vmem:[%s1627_s7 + $0x1b0] sm:$0xff]  ;;  %v1463_v63 = vld [vmem:[%s1627_s7 + $0x1a8] sm:$0xff]  ;;  %v1446_v1 = vld [vmem:[%s1627_s7 + $0x120] sm:$0xff] }
  0x3a   : > { %859 = vmatpush.bf16.msra.mxu0 %v1413_v25  ;;  %v1472_v60 = vld [vmem:[%s1627_s7 + $0x1f0] sm:$0xff]  ;;  %v1471_v0 = vld [vmem:[%s1627_s7 + $0x1e8] sm:$0xff]  ;;  %v1454_v2 = vld [vmem:[%s1627_s7 + $0x160] sm:$0xff] }
  0x3b   : > { %873 = vmatpush.bf16.msra.mxu1 %v1421_v26  ;;  %v1462_v3 = vld [vmem:[%s1627_s7 + $0x1a0] sm:$0xff]  ;;  %v1445_v5 = vld [vmem:[%s1627_s7 + $0x118] sm:$0xff]  ;;  %v1444_v9 = vld [vmem:[%s1627_s7 + $0x110] sm:$0xff] }
  0x3c   : > { %887 = vmatpush.bf16.msra.mxu2 %v1429_v27  ;;  %v1470_v4 = vld [vmem:[%s1627_s7 + $0x1e0] sm:$0xff]  ;;  %v1453_v6 = vld [vmem:[%s1627_s7 + $0x158] sm:$0xff]  ;;  %v1452_v10 = vld [vmem:[%s1627_s7 + $0x150] sm:$0xff] }
  0x3d   : > { %901 = vmatpush.bf16.msra.mxu3 %v1437_v28  ;;  %v1461_v7 = vld [vmem:[%s1627_s7 + $0x198] sm:$0xff]  ;;  %v1460_v11 = vld [vmem:[%s1627_s7 + $0x190] sm:$0xff]  ;;  %v1443_v13 = vld [vmem:[%s1627_s7 + $0x108] sm:$0xff] }
  0x3e   : > { %860 = vmatpush.bf16.msra.mxu0 %v1412_v29  ;;  %v1469_v8 = vld [vmem:[%s1627_s7 + $0x1d8] sm:$0xff]  ;;  %v1468_v12 = vld [vmem:[%s1627_s7 + $0x1d0] sm:$0xff]  ;;  %v1451_v14 = vld [vmem:[%s1627_s7 + $0x148] sm:$0xff] }
  0x3f   : > { %874 = vmatpush.bf16.msra.mxu1 %v1420_v30  ;;  %v1459_v15 = vld [vmem:[%s1627_s7 + $0x188] sm:$0xff]  ;;  %v1442_v17 = vld [vmem:[%s1627_s7 + $0x100] sm:$0xff] }
  0x40   : > { %888 = vmatpush.bf16.msra.mxu2 %v1428_v31  ;;  %v1467_v16 = vld [vmem:[%s1627_s7 + $0x1c8] sm:$0xff]  ;;  %v1450_v18 = vld [vmem:[%s1627_s7 + $0x140] sm:$0xff] }
  0x41   : > { %902 = vmatpush.bf16.msra.mxu3 %v1436_v32  ;;  %v1458_v19 = vld [vmem:[%s1627_s7 + $0x180] sm:$0xff]  ;;  %v1134_v25 = vld [vmem:[%s1629_s8 + $0x18] sm:$0xf]  ;;  %v1405_v27 = vld [vmem:[%s1629_s8 + $0x1c] sm:$0xf] }
  0x42   : > { %861 = vmatpush.bf16.msra.mxu0 %v1411_v33  ;;  %v1466_v20 = vld [vmem:[%s1627_s7 + $0x1c0] sm:$0xff]  ;;  %v1409_v26 = vld [vmem:[%s1629_s8 + $0x34] sm:$0xf0]  ;;  %v1136_v28 = vld [vmem:[%s1629_s8 + $0x38] sm:$0xf0] }
  0x43   : > { %875 = vmatpush.bf16.msra.mxu1 %v1419_v34  ;;  %v1126_v21 = vld [vmem:[%s1629_s8 + $0x10] sm:$0xf]  ;;  %v1404_v23 = vld [vmem:[%s1629_s8 + $0x14] sm:$0xf]  ;;  %v1135_v31 = vor.u32 %v1409_v26, %v1134_v25  ;;  %v1139_v32 = vor.u32 %v1405_v27, %v1136_v28 }
  0x44   : > { %889 = vmatpush.bf16.msra.mxu2 %v1427_v35  ;;  %v1408_v22 = vld [vmem:[%s1629_s8 + $0x2c] sm:$0xf0]  ;;  %v1128_v24 = vld [vmem:[%s1629_s8 + $0x30] sm:$0xf0] }
  0x45   : > { %903 = vmatpush.bf16.msra.mxu3 %v1435_v36  ;;  %v1127_v29 = vor.u32 %v1408_v22, %v1126_v21  ;;  %v1131_v30 = vor.u32 %v1404_v23, %v1128_v24 }
  0x46   : > { %862 = vmatpush.bf16.msra.mxu0 %v1410_v37 }
  0x47   : > { %876 = vmatpush.bf16.msra.mxu1 %v1418_v38 }
  0x48   : > { %890 = vmatpush.bf16.msra.mxu2 %v1426_v39 }
  0x49   : > { %904 = vmatpush.bf16.msra.mxu3 %v1434_v40  ;;  %863 = vmatmul.bf16.vlgmr.msra.gmra.mxu0 %v1111_v55  ;;  %v293_v55 = vld [vmem:[#allocation2] sm:$0xff] }
  0x4a   : > { %911 = vmatpush.bf16.msrb.mxu0 %v1449_v41  ;;  %877 = vmatmul.bf16.vlgmr.msra.gmra.mxu1 %v1115_v56 }
  0x4b   : > { %925 = vmatpush.bf16.msrb.mxu1 %v1457_v42  ;;  %891 = vmatmul.bf16.vlgmr.msra.gmra.mxu2 %v1119_v53 }
  0x4c   : > { %939 = vmatpush.bf16.msrb.mxu2 %v1465_v51  ;;  %905 = vmatmul.bf16.vlgmr.msra.gmra.mxu3 %v1123_v54 }
  0x4d   : > { %953 = vmatpush.bf16.msrb.mxu3 %v1473_v52 }
  0x4e   : > { %912 = vmatpush.bf16.msrb.mxu0 %v1448_v57 }
  0x4f   : > { %926 = vmatpush.bf16.msrb.mxu1 %v1456_v58 }
  0x50   : > { %940 = vmatpush.bf16.msrb.mxu2 %v1464_v59 }
  0x51   : > { %954 = vmatpush.bf16.msrb.mxu3 %v1472_v60 }
  0x52   : > { %913 = vmatpush.bf16.msrb.mxu0 %v1447_v61 }
  0x53   : > { %927 = vmatpush.bf16.msrb.mxu1 %v1455_v62 }
  0x54   : > { %941 = vmatpush.bf16.msrb.mxu2 %v1463_v63  ;;  %v294_v63 = vld [vmem:[#allocation2 + $0x8] sm:$0xff] }
  0x55   : > { %955 = vmatpush.bf16.msrb.mxu3 %v1471_v0 }
  0x56   : > { %914 = vmatpush.bf16.msrb.mxu0 %v1446_v1 }
  0x57   : > { %928 = vmatpush.bf16.msrb.mxu1 %v1454_v2 }
  0x58   : > { %942 = vmatpush.bf16.msrb.mxu2 %v1462_v3 }
  0x59   : > { %956 = vmatpush.bf16.msrb.mxu3 %v1470_v4 }
  0x5a   : > { %915 = vmatpush.bf16.msrb.mxu0 %v1445_v5 }
  0x5b   : > { %929 = vmatpush.bf16.msrb.mxu1 %v1453_v6 }
  0x5c   : > { %943 = vmatpush.bf16.msrb.mxu2 %v1461_v7 }
  0x5d   : > { %957 = vmatpush.bf16.msrb.mxu3 %v1469_v8 }
  0x5e   : > { %916 = vmatpush.bf16.msrb.mxu0 %v1444_v9 }
  0x5f   : > { %930 = vmatpush.bf16.msrb.mxu1 %v1452_v10 }
  0x60   : > { %944 = vmatpush.bf16.msrb.mxu2 %v1460_v11 }
  0x61   : > { %958 = vmatpush.bf16.msrb.mxu3 %v1468_v12 }
  0x62   : > { %917 = vmatpush.bf16.msrb.mxu0 %v1443_v13 }
  0x63   : > { %931 = vmatpush.bf16.msrb.mxu1 %v1451_v14 }
  0x64   : > { %945 = vmatpush.bf16.msrb.mxu2 %v1459_v15 }
  0x65   : > { %959 = vmatpush.bf16.msrb.mxu3 %v1467_v16 }
  0x66   : > { %918 = vmatpush.bf16.msrb.mxu0 %v1442_v17 }
  0x67   : > { %932 = vmatpush.bf16.msrb.mxu1 %v1450_v18 }
  0x68   : > { %946 = vmatpush.bf16.msrb.mxu2 %v1458_v19 }
  0x69   : > { %960 = vmatpush.bf16.msrb.mxu3 %v1466_v20  ;;  %919 = vmatmul.bf16.vlgmr.msrb.gmra.mxu0 %v1127_v29 }
  0x6a   : > { %933 = vmatmul.bf16.vlgmr.msrb.gmra.mxu1 %v1131_v30 }
  0x6b   : > { %947 = vmatmul.bf16.vlgmr.msrb.gmra.mxu2 %v1135_v31 }
  0x6c   : > { %961 = vmatmul.bf16.vlgmr.msrb.gmra.mxu3 %v1139_v32 }
  0xc6   : > { %v864_v33 = vpop.f32.mrf.mxu0 }
  0xc7   : > { %v878_v34 = vpop.f32.mrf.mxu1 }
  0xc8   : > { %v879_v37 = vadd.f32 %v878_v34, %v864_v33 }
  0xce   : > { %v892_v35 = vpop.f32.mrf.mxu2  ;;  %v866_v38 = vpop.f32.mrf.mxu0 }
  0xcf   : > { %v906_v36 = vpop.f32.mrf.mxu3  ;;  %v880_v39 = vpop.f32.mrf.mxu1  ;;  %v893_v40 = vadd.f32 %v892_v35, %v879_v37 }
  0xd0   : > { %v881_v44 = vadd.f32 %v880_v39, %v866_v38 }
  0xd1   : > { %v907_v43 = vadd.f32 %v906_v36, %v893_v40 }
  0xd6   : > { %v894_v41 = vpop.f32.mrf.mxu2 }
  0xd7   : > { %v908_v42 = vpop.f32.mrf.mxu3  ;;  %v895_v48 = vadd.f32 %v894_v41, %v881_v44 }
  0xd9   : > { %v909_v52 = vadd.f32 %v908_v42, %v895_v48 }
  0xe6   : > { %v920_v45 = vpop.f32.mrf.mxu0 }
  0xe7   : > { %v921_v46 = vadd.f32 %v920_v45, %v907_v43  ;;  %v934_v47 = vpop.f32.mrf.mxu1 }
  0xe9   : > { %v935_v49 = vadd.f32 %v934_v47, %v921_v46 }
  0xee   : > { %v948_v50 = vpop.f32.mrf.mxu2  ;;  %v922_v54 = vpop.f32.mrf.mxu0 }
  0xef   : > { %v962_v51 = vpop.f32.mrf.mxu3  ;;  %v949_v53 = vadd.f32 %v948_v50, %v935_v49  ;;  %v923_v57 = vadd.f32 %v922_v54, %v909_v52  ;;  %v936_v59 = vpop.f32.mrf.mxu1 }
  0xf1   : > { %v963_v56 = vadd.f32 %v962_v51, %v949_v53  ;;  %v937_v60 = vadd.f32 %v936_v59, %v923_v57 }
  0xf3   : > { %v967_v58 = vadd.f32 %v963_v56, %v293_v55 }
  0xf5   : > { %969 = vst [vmem:[#allocation2] sm:$0xff] %v967_v58 }
  0xf6   : > { %v950_v61 = vpop.f32.mrf.mxu2 }
  0xf7   : > { %v951_v62 = vadd.f32 %v950_v61, %v937_v60  ;;  %v964_v0 = vpop.f32.mrf.mxu3 }
  0xf9   : > { %v965_v1 = vadd.f32 %v964_v0, %v951_v62  ;;  %974 = sbr.rel (%p1396_p11) target bundleno = 264 (0x108), region = 63 }
  0xfb   : > { %v968_v2 = vadd.f32 %v965_v1, %v294_v63 }
  0xfd   : > { %970 = vst [vmem:[#allocation2 + $0x8] sm:$0xff] %v968_v2 }
  0xfe   : > { %v975_v3 = vld [vmem:[#allocation2] sm:$0xff] }
  0xff   : > { %v1515_v4 = vld [vmem:[%s1739_s2] ss:$0 sm:$0xff] }
 0x100   : > { %v981_v6 = vadd.f32 %v1515_v4, %v975_v3 }
 0x102   : > { %983 = vst [vmem:[%s1740_s3] sm:$0xff] %v981_v6 }
 0x104   : > { %v976_v5 = vld [vmem:[#allocation2 + $0x8] sm:$0xff] }
 0x105   : > { %v982_v7 = vadd.f32 %v1515_v4, %v976_v5 }
 0x107   : > { %984 = vst [vmem:[%s1740_s3 + $0x8] sm:$0xff] %v982_v7 }
 0x108 PF: > { %s13_s16 = sadd.s32 1, %s1554_s16   ;;  %s1741_s12 = smov %s1542_s13 }
 0x109   : > { %p10_p12 = scmp.ge.s32.totalorder %s13_s16, 6   ;;  %s1742_s13 = smov %s1612_s20 }
 0x10a   : > { %s1743_s14 = smov %s1550_s15  ;;  %s1744_s15 = smov %s1746_s17 }
 0x10b   :  { %12 = sbr.rel (!%p10_p12) target bundleno = 3 (0x3), region = 104 }

</bundles_post_ra>
